<compile_context>
chip_gen: v6e
topology: v6e:2x2x1
jax: 0.10.0
libtpu: 0.0.40
codegen_flags: <defaults>
</compile_context>

<pallas_src>
import jax
import jax.numpy as jnp
from jax.experimental import pallas as pl
from jax.experimental.pallas import tpu as pltpu


LATENT_DIM = 100
LATENT_PAD = 128                                       # K padded to MXU-aligned 128
IMG_SHAPE = (3, 25, 25)
IMG_FLAT = IMG_SHAPE[0] * IMG_SHAPE[1] * IMG_SHAPE[2]  # 1875
OUT_PAD = 1920                                         # 15 * 128 lane-dense output slab
TILE_N = 640                                           # 5 * 128 -> 3 grid steps over w5
REAL_ACT_DIM = 512                                     # cat(512, 512) -> 1024 for l4
BN_EPS = 0.8
LEAKY_SLOPE = 0.2


def _leaky_relu(x):
    return jnp.where(x > 0, x, LEAKY_SLOPE * x)


def _batchnorm_train(x, gamma, beta):
    # Training-mode BatchNorm1d, eps=0.8, biased variance.
    # One-pass moments: sum and sum-of-squares in a single sweep (halves XLU reductions).
    inv_b = 1.0 / x.shape[0]
    s = jnp.sum(x, axis=0, keepdims=True)
    ss = jnp.sum(x * x, axis=0, keepdims=True)
    mean = s * inv_b
    var = ss * inv_b - mean * mean
    return (x - mean) * jax.lax.rsqrt(var + BN_EPS) * gamma + beta


def generator_kernel(z_ref, ra_ref,
                     w1_ref, b1_ref,
                     w2_ref, b2_ref, g2_ref, be2_ref,
                     w3_ref, b3_ref, g3_ref, be3_ref,
                     w4a_ref, w4b_ref, b4_ref, g4_ref, be4_ref,
                     w5_ref, b5_ref,
                     out_ref):
    # Each grid step owns one TILE_N-wide slab of the l5 output. Layers 1-4 are
    # recomputed per step (tiny at B=8; fully hidden under the w5 tile DMA), which
    # keeps every step independent -> safe for "parallel" / v7x core sharding.
    f32 = jnp.float32

    # l1 + LeakyReLU (K padded to 128; padded rows of w1 are zero -> identical result)
    x = _leaky_relu(jnp.dot(z_ref[...], w1_ref[...], preferred_element_type=f32)
                    + b1_ref[...])

    # l2 + BN2 + LeakyReLU
    x = jnp.dot(x, w2_ref[...], preferred_element_type=f32) + b2_ref[...]
    x = _leaky_relu(_batchnorm_train(x, g2_ref[...], be2_ref[...]))

    # l3 + BN3 + LeakyReLU
    x = jnp.dot(x, w3_ref[...], preferred_element_type=f32) + b3_ref[...]
    x = _leaky_relu(_batchnorm_train(x, g3_ref[...], be3_ref[...]))

    # l4 on cat(x, real_act) rewritten as a split matmul (no lane-axis concatenate)
    h4 = (jnp.dot(x, w4a_ref[...], preferred_element_type=f32)
          + jnp.dot(ra_ref[...], w4b_ref[...], preferred_element_type=f32)
          + b4_ref[...])
    x = _leaky_relu(_batchnorm_train(h4, g4_ref[...], be4_ref[...]))

    # l5 (current N tile) + tanh, lane-dense store
    y = jnp.dot(x, w5_ref[...], preferred_element_type=f32) + b5_ref[...]
    out_ref[...] = jnp.tanh(y)


@jax.jit
def generator_forward(z, real_act, packed):
    B = z.shape[0]
    zp = jnp.pad(z, ((0, 0), (0, LATENT_PAD - LATENT_DIM)))

    def resident(shape):
        # Same block index every grid step -> fetched once, stays resident in VMEM.
        return pl.BlockSpec(shape, lambda j: (0, 0))

    in_specs = [
        resident((B, LATENT_PAD)),                                   # z (padded)
        resident((B, REAL_ACT_DIM)),                                 # real_act
        resident((LATENT_PAD, 128)), resident((1, 128)),             # w1, b1
        resident((128, 256)), resident((1, 256)),                    # w2, b2
        resident((1, 256)), resident((1, 256)),                      # g2, be2
        resident((256, 512)), resident((1, 512)),                    # w3, b3
        resident((1, 512)), resident((1, 512)),                      # g3, be3
        resident((512, 1024)), resident((512, 1024)),                # w4a, w4b
        resident((1, 1024)), resident((1, 1024)), resident((1, 1024)),  # b4, g4, be4
        pl.BlockSpec((1024, TILE_N), lambda j: (0, j)),              # w5 column tile
        pl.BlockSpec((1, TILE_N), lambda j: (0, j)),                 # b5 tile
    ]
    out_spec = pl.BlockSpec((B, TILE_N), lambda j: (0, j))

    out_pad = pl.pallas_call(
        generator_kernel,
        out_shape=jax.ShapeDtypeStruct((B, OUT_PAD), jnp.float32),
        grid_spec=pltpu.PrefetchScalarGridSpec(
            num_scalar_prefetch=0,
            grid=(OUT_PAD // TILE_N,),
            in_specs=in_specs,
            out_specs=out_spec,
        ),
        compiler_params=pltpu.CompilerParams(
            dimension_semantics=("parallel",),
            vmem_limit_bytes=32 << 20,   # fits v7x's 64 MiB physical VMEM per core
        ),
    )(zp, real_act,
      packed["w1"], packed["b1"],
      packed["w2"], packed["b2"], packed["g2"], packed["be2"],
      packed["w3"], packed["b3"], packed["g3"], packed["be3"],
      packed["w4a"], packed["w4b"], packed["b4"], packed["g4"], packed["be4"],
      packed["w5"], packed["b5"])

    # Slice off the lane padding and reshape to NCHW image.
    return out_pad[:, :IMG_FLAT].reshape(B, *IMG_SHAPE)


def init_params(key):
    """PyTorch-style init: Linear weights/biases ~ U(-1/sqrt(fan_in), +1/sqrt(fan_in)),
    BN gamma=1, beta=0. Weights stored pre-transposed as (in, out); biases/BN as (1, N)."""
    def linear(k, fan_in, fan_out):
        kw, kb = jax.random.split(k)
        bound = 1.0 / jnp.sqrt(jnp.float32(fan_in))
        w = jax.random.uniform(kw, (fan_in, fan_out), jnp.float32, -bound, bound)
        b = jax.random.uniform(kb, (1, fan_out), jnp.float32, -bound, bound)
        return w, b

    k1, k2, k3, k4, k5 = jax.random.split(key, 5)
    w1, b1 = linear(k1, LATENT_DIM, 128)
    w2, b2 = linear(k2, 128, 256)
    w3, b3 = linear(k3, 256, 512)
    w4, b4 = linear(k4, 1024, 1024)
    w5, b5 = linear(k5, 1024, IMG_FLAT)

    ones = lambda n: jnp.ones((1, n), jnp.float32)
    zeros = lambda n: jnp.zeros((1, n), jnp.float32)
    return dict(
        w1=w1, b1=b1,
        w2=w2, b2=b2, g2=ones(256), be2=zeros(256),
        w3=w3, b3=b3, g3=ones(512), be3=zeros(512),
        w4=w4, b4=b4, g4=ones(1024), be4=zeros(1024),
        w5=w5, b5=b5,
    )


def pack_params(p):
    """Kernel-layout params: pad w1's K to 128, split w4 (removes the concat),
    pad w5/b5 to a 1920-wide lane-dense output slab."""
    packed = dict(p)
    packed["w1"] = jnp.pad(p["w1"], ((0, LATENT_PAD - LATENT_DIM), (0, 0)))
    packed["w4a"] = p["w4"][:REAL_ACT_DIM, :]
    packed["w4b"] = p["w4"][REAL_ACT_DIM:, :]
    del packed["w4"]
    packed["w5"] = jnp.pad(p["w5"], ((0, 0), (0, OUT_PAD - IMG_FLAT)))
    packed["b5"] = jnp.pad(p["b5"], ((0, 0), (0, OUT_PAD - IMG_FLAT)))
    return packed


def reference_forward(z, real_act, p):
    """Pure-JAX reference of the PyTorch forward (training-mode BN, eps=0.8)."""
    def bn(x, g, b):
        mean = jnp.mean(x, axis=0, keepdims=True)
        var = jnp.mean((x - mean) ** 2, axis=0, keepdims=True)
        return (x - mean) * jax.lax.rsqrt(var + BN_EPS) * g + b

    x = _leaky_relu(z @ p["w1"] + p["b1"])
    x = _leaky_relu(bn(x @ p["w2"] + p["b2"], p["g2"], p["be2"]))
    x = _leaky_relu(bn(x @ p["w3"] + p["b3"], p["g3"], p["be3"]))
    x = jnp.concatenate([x, real_act], axis=-1)
    x = _leaky_relu(bn(x @ p["w4"] + p["b4"], p["g4"], p["be4"]))
    img = jnp.tanh(x @ p["w5"] + p["b5"])
    return img.reshape(z.shape[0], *IMG_SHAPE)


if __name__ == "__main__":
    key = jax.random.PRNGKey(0)
    kp, kz, kr = jax.random.split(key, 3)

    params = init_params(kp)
    packed = pack_params(params)

    B = 8  # batch (>= 2 required for meaningful batch-norm statistics)
    z = jax.random.normal(kz, (B, LATENT_DIM), jnp.float32)
    real_act = jax.random.normal(kr, (B, REAL_ACT_DIM), jnp.float32)

    img = generator_forward(z, real_act, packed)
    img = jax.block_until_ready(img)
    assert img.shape == (B, *IMG_SHAPE), img.shape

    ref = reference_forward(z, real_act, params)
    max_err = float(jnp.max(jnp.abs(img - ref)))
    assert jnp.allclose(img, ref, atol=1e-3, rtol=1e-3), max_err

    print("KERNEL_OK")
</pallas_src>

<mosaic_0001>
module attributes {stable_mosaic.version = 11 : i64} {
  func.func @generator_kernel(%arg0: i32, %arg1: memref<8x128xf32, #tpu.memory_space<vmem>>, %arg2: memref<8x512xf32, #tpu.memory_space<vmem>>, %arg3: memref<128x128xf32, #tpu.memory_space<vmem>>, %arg4: memref<1x128xf32, #tpu.memory_space<vmem>>, %arg5: memref<128x256xf32, #tpu.memory_space<vmem>>, %arg6: memref<1x256xf32, #tpu.memory_space<vmem>>, %arg7: memref<1x256xf32, #tpu.memory_space<vmem>>, %arg8: memref<1x256xf32, #tpu.memory_space<vmem>>, %arg9: memref<256x512xf32, #tpu.memory_space<vmem>>, %arg10: memref<1x512xf32, #tpu.memory_space<vmem>>, %arg11: memref<1x512xf32, #tpu.memory_space<vmem>>, %arg12: memref<1x512xf32, #tpu.memory_space<vmem>>, %arg13: memref<512x1024xf32, #tpu.memory_space<vmem>>, %arg14: memref<512x1024xf32, #tpu.memory_space<vmem>>, %arg15: memref<1x1024xf32, #tpu.memory_space<vmem>>, %arg16: memref<1x1024xf32, #tpu.memory_space<vmem>>, %arg17: memref<1x1024xf32, #tpu.memory_space<vmem>>, %arg18: memref<1024x640xf32, #tpu.memory_space<vmem>>, %arg19: memref<1x640xf32, #tpu.memory_space<vmem>>, %arg20: memref<8x640xf32, #tpu.memory_space<vmem>>) attributes {dimension_semantics = [#tpu.dimension_semantics<parallel>], iteration_bounds = array<i64: 3>, scalar_prefetch = 0 : i64, scratch_operands = 0 : i64, tpu.core_type = #tpu.core_type<tc>, window_params = [{pipeline_mode = #tpu.pipeline_mode<synchronous>, transform_indices = @transform_0, window_bounds = array<i64: 8, 128>}, {pipeline_mode = #tpu.pipeline_mode<synchronous>, transform_indices = @transform_1, window_bounds = array<i64: 8, 512>}, {pipeline_mode = #tpu.pipeline_mode<synchronous>, transform_indices = @transform_2, window_bounds = array<i64: 128, 128>}, {pipeline_mode = #tpu.pipeline_mode<synchronous>, transform_indices = @transform_3, window_bounds = array<i64: 1, 128>}, {pipeline_mode = #tpu.pipeline_mode<synchronous>, transform_indices = @transform_4, window_bounds = array<i64: 128, 256>}, {pipeline_mode = #tpu.pipeline_mode<synchronous>, transform_indices = @transform_5, window_bounds = array<i64: 1, 256>}, {pipeline_mode = #tpu.pipeline_mode<synchronous>, transform_indices = @transform_6, window_bounds = array<i64: 1, 256>}, {pipeline_mode = #tpu.pipeline_mode<synchronous>, transform_indices = @transform_7, window_bounds = array<i64: 1, 256>}, {pipeline_mode = #tpu.pipeline_mode<synchronous>, transform_indices = @transform_8, window_bounds = array<i64: 256, 512>}, {pipeline_mode = #tpu.pipeline_mode<synchronous>, transform_indices = @transform_9, window_bounds = array<i64: 1, 512>}, {pipeline_mode = #tpu.pipeline_mode<synchronous>, transform_indices = @transform_10, window_bounds = array<i64: 1, 512>}, {pipeline_mode = #tpu.pipeline_mode<synchronous>, transform_indices = @transform_11, window_bounds = array<i64: 1, 512>}, {pipeline_mode = #tpu.pipeline_mode<synchronous>, transform_indices = @transform_12, window_bounds = array<i64: 512, 1024>}, {pipeline_mode = #tpu.pipeline_mode<synchronous>, transform_indices = @transform_13, window_bounds = array<i64: 512, 1024>}, {pipeline_mode = #tpu.pipeline_mode<synchronous>, transform_indices = @transform_14, window_bounds = array<i64: 1, 1024>}, {pipeline_mode = #tpu.pipeline_mode<synchronous>, transform_indices = @transform_15, window_bounds = array<i64: 1, 1024>}, {pipeline_mode = #tpu.pipeline_mode<synchronous>, transform_indices = @transform_16, window_bounds = array<i64: 1, 1024>}, {transform_indices = @transform_17, window_bounds = array<i64: 1024, 640>}, {transform_indices = @transform_18, window_bounds = array<i64: 1, 640>}, {transform_indices = @transform_19, window_bounds = array<i64: 8, 640>}]} {
    %c0 = arith.constant 0 : index
    %c0_0 = arith.constant 0 : index
    %0 = vector.load %arg1[%c0, %c0_0] : memref<8x128xf32, #tpu.memory_space<vmem>>, vector<8x128xf32>
    %c0_1 = arith.constant 0 : index
    %c0_2 = arith.constant 0 : index
    %1 = vector.load %arg3[%c0_1, %c0_2] : memref<128x128xf32, #tpu.memory_space<vmem>>, vector<128x128xf32>
    %cst = arith.constant dense<0.000000e+00> : vector<8x128xf32>
    %2 = tpu.matmul %0, %1, %cst {dimension_numbers = #tpu.dot_dimension_numbers<[1], [0], [0], [1], [0, 0, 1, 1], [], []>} : vector<8x128xf32>, vector<128x128xf32>, vector<8x128xf32> -> vector<8x128xf32>
    %c0_3 = arith.constant 0 : index
    %c0_4 = arith.constant 0 : index
    %3 = vector.load %arg4[%c0_3, %c0_4] : memref<1x128xf32, #tpu.memory_space<vmem>>, vector<1x128xf32>
    %4 = vector.broadcast %3 : vector<1x128xf32> to vector<8x128xf32>
    %5 = arith.addf %2, %4 : vector<8x128xf32>
    %cst_5 = arith.constant 0.000000e+00 : f32
    %6 = vector.broadcast %cst_5 : f32 to vector<8x128xf32>
    %7 = arith.cmpf ogt, %5, %6 : vector<8x128xf32>
    %cst_6 = arith.constant 2.000000e-01 : f32
    %8 = vector.broadcast %cst_6 : f32 to vector<8x128xf32>
    %9 = arith.mulf %8, %5 : vector<8x128xf32>
    %10 = arith.select %7, %5, %9 : vector<8x128xi1>, vector<8x128xf32>
    %c0_7 = arith.constant 0 : index
    %c0_8 = arith.constant 0 : index
    %11 = vector.load %arg5[%c0_7, %c0_8] : memref<128x256xf32, #tpu.memory_space<vmem>>, vector<128x256xf32>
    %cst_9 = arith.constant dense<0.000000e+00> : vector<8x256xf32>
    %12 = tpu.matmul %10, %11, %cst_9 {dimension_numbers = #tpu.dot_dimension_numbers<[1], [0], [0], [1], [0, 0, 1, 1], [], []>} : vector<8x128xf32>, vector<128x256xf32>, vector<8x256xf32> -> vector<8x256xf32>
    %c0_10 = arith.constant 0 : index
    %c0_11 = arith.constant 0 : index
    %13 = vector.load %arg6[%c0_10, %c0_11] : memref<1x256xf32, #tpu.memory_space<vmem>>, vector<1x256xf32>
    %14 = vector.broadcast %13 : vector<1x256xf32> to vector<8x256xf32>
    %15 = arith.addf %12, %14 : vector<8x256xf32>
    %c0_12 = arith.constant 0 : index
    %c0_13 = arith.constant 0 : index
    %16 = vector.load %arg7[%c0_12, %c0_13] : memref<1x256xf32, #tpu.memory_space<vmem>>, vector<1x256xf32>
    %c0_14 = arith.constant 0 : index
    %c0_15 = arith.constant 0 : index
    %17 = vector.load %arg8[%c0_14, %c0_15] : memref<1x256xf32, #tpu.memory_space<vmem>>, vector<1x256xf32>
    %cst_16 = arith.constant dense<0.000000e+00> : vector<256xf32>
    %18 = vector.multi_reduction <add>, %15, %cst_16 [0] : vector<8x256xf32> to vector<256xf32>
    %19 = vector.shape_cast %18 : vector<256xf32> to vector<1x256xf32>
    %20 = arith.mulf %15, %15 : vector<8x256xf32>
    %cst_17 = arith.constant dense<0.000000e+00> : vector<256xf32>
    %21 = vector.multi_reduction <add>, %20, %cst_17 [0] : vector<8x256xf32> to vector<256xf32>
    %22 = vector.shape_cast %21 : vector<256xf32> to vector<1x256xf32>
    %cst_18 = arith.constant 1.250000e-01 : f32
    %23 = vector.broadcast %cst_18 : f32 to vector<1x256xf32>
    %24 = arith.mulf %19, %23 : vector<1x256xf32>
    %cst_19 = arith.constant 1.250000e-01 : f32
    %25 = vector.broadcast %cst_19 : f32 to vector<1x256xf32>
    %26 = arith.mulf %22, %25 : vector<1x256xf32>
    %27 = arith.mulf %24, %24 : vector<1x256xf32>
    %28 = arith.subf %26, %27 : vector<1x256xf32>
    %29 = vector.broadcast %24 : vector<1x256xf32> to vector<8x256xf32>
    %30 = arith.subf %15, %29 : vector<8x256xf32>
    %cst_20 = arith.constant 8.000000e-01 : f32
    %31 = vector.broadcast %cst_20 : f32 to vector<1x256xf32>
    %32 = arith.addf %28, %31 : vector<1x256xf32>
    %33 = math.rsqrt %32 : vector<1x256xf32>
    %34 = vector.broadcast %33 : vector<1x256xf32> to vector<8x256xf32>
    %35 = arith.mulf %30, %34 : vector<8x256xf32>
    %36 = vector.broadcast %16 : vector<1x256xf32> to vector<8x256xf32>
    %37 = arith.mulf %35, %36 : vector<8x256xf32>
    %38 = vector.broadcast %17 : vector<1x256xf32> to vector<8x256xf32>
    %39 = arith.addf %37, %38 : vector<8x256xf32>
    %cst_21 = arith.constant 0.000000e+00 : f32
    %40 = vector.broadcast %cst_21 : f32 to vector<8x256xf32>
    %41 = arith.cmpf ogt, %39, %40 : vector<8x256xf32>
    %cst_22 = arith.constant 2.000000e-01 : f32
    %42 = vector.broadcast %cst_22 : f32 to vector<8x256xf32>
    %43 = arith.mulf %42, %39 : vector<8x256xf32>
    %44 = arith.select %41, %39, %43 : vector<8x256xi1>, vector<8x256xf32>
    %c0_23 = arith.constant 0 : index
    %c0_24 = arith.constant 0 : index
    %45 = vector.load %arg9[%c0_23, %c0_24] : memref<256x512xf32, #tpu.memory_space<vmem>>, vector<256x512xf32>
    %cst_25 = arith.constant dense<0.000000e+00> : vector<8x512xf32>
    %46 = tpu.matmul %44, %45, %cst_25 {dimension_numbers = #tpu.dot_dimension_numbers<[1], [0], [0], [1], [0, 0, 1, 1], [], []>} : vector<8x256xf32>, vector<256x512xf32>, vector<8x512xf32> -> vector<8x512xf32>
    %c0_26 = arith.constant 0 : index
    %c0_27 = arith.constant 0 : index
    %47 = vector.load %arg10[%c0_26, %c0_27] : memref<1x512xf32, #tpu.memory_space<vmem>>, vector<1x512xf32>
    %48 = vector.broadcast %47 : vector<1x512xf32> to vector<8x512xf32>
    %49 = arith.addf %46, %48 : vector<8x512xf32>
    %c0_28 = arith.constant 0 : index
    %c0_29 = arith.constant 0 : index
    %50 = vector.load %arg11[%c0_28, %c0_29] : memref<1x512xf32, #tpu.memory_space<vmem>>, vector<1x512xf32>
    %c0_30 = arith.constant 0 : index
    %c0_31 = arith.constant 0 : index
    %51 = vector.load %arg12[%c0_30, %c0_31] : memref<1x512xf32, #tpu.memory_space<vmem>>, vector<1x512xf32>
    %cst_32 = arith.constant dense<0.000000e+00> : vector<512xf32>
    %52 = vector.multi_reduction <add>, %49, %cst_32 [0] : vector<8x512xf32> to vector<512xf32>
    %53 = vector.shape_cast %52 : vector<512xf32> to vector<1x512xf32>
    %54 = arith.mulf %49, %49 : vector<8x512xf32>
    %cst_33 = arith.constant dense<0.000000e+00> : vector<512xf32>
    %55 = vector.multi_reduction <add>, %54, %cst_33 [0] : vector<8x512xf32> to vector<512xf32>
    %56 = vector.shape_cast %55 : vector<512xf32> to vector<1x512xf32>
    %cst_34 = arith.constant 1.250000e-01 : f32
    %57 = vector.broadcast %cst_34 : f32 to vector<1x512xf32>
    %58 = arith.mulf %53, %57 : vector<1x512xf32>
    %cst_35 = arith.constant 1.250000e-01 : f32
    %59 = vector.broadcast %cst_35 : f32 to vector<1x512xf32>
    %60 = arith.mulf %56, %59 : vector<1x512xf32>
    %61 = arith.mulf %58, %58 : vector<1x512xf32>
    %62 = arith.subf %60, %61 : vector<1x512xf32>
    %63 = vector.broadcast %58 : vector<1x512xf32> to vector<8x512xf32>
    %64 = arith.subf %49, %63 : vector<8x512xf32>
    %cst_36 = arith.constant 8.000000e-01 : f32
    %65 = vector.broadcast %cst_36 : f32 to vector<1x512xf32>
    %66 = arith.addf %62, %65 : vector<1x512xf32>
    %67 = math.rsqrt %66 : vector<1x512xf32>
    %68 = vector.broadcast %67 : vector<1x512xf32> to vector<8x512xf32>
    %69 = arith.mulf %64, %68 : vector<8x512xf32>
    %70 = vector.broadcast %50 : vector<1x512xf32> to vector<8x512xf32>
    %71 = arith.mulf %69, %70 : vector<8x512xf32>
    %72 = vector.broadcast %51 : vector<1x512xf32> to vector<8x512xf32>
    %73 = arith.addf %71, %72 : vector<8x512xf32>
    %cst_37 = arith.constant 0.000000e+00 : f32
    %74 = vector.broadcast %cst_37 : f32 to vector<8x512xf32>
    %75 = arith.cmpf ogt, %73, %74 : vector<8x512xf32>
    %cst_38 = arith.constant 2.000000e-01 : f32
    %76 = vector.broadcast %cst_38 : f32 to vector<8x512xf32>
    %77 = arith.mulf %76, %73 : vector<8x512xf32>
    %78 = arith.select %75, %73, %77 : vector<8x512xi1>, vector<8x512xf32>
    %c0_39 = arith.constant 0 : index
    %c0_40 = arith.constant 0 : index
    %79 = vector.load %arg13[%c0_39, %c0_40] : memref<512x1024xf32, #tpu.memory_space<vmem>>, vector<512x1024xf32>
    %cst_41 = arith.constant dense<0.000000e+00> : vector<8x1024xf32>
    %80 = tpu.matmul %78, %79, %cst_41 {dimension_numbers = #tpu.dot_dimension_numbers<[1], [0], [0], [1], [0, 0, 1, 1], [], []>} : vector<8x512xf32>, vector<512x1024xf32>, vector<8x1024xf32> -> vector<8x1024xf32>
    %c0_42 = arith.constant 0 : index
    %c0_43 = arith.constant 0 : index
    %81 = vector.load %arg2[%c0_42, %c0_43] : memref<8x512xf32, #tpu.memory_space<vmem>>, vector<8x512xf32>
    %c0_44 = arith.constant 0 : index
    %c0_45 = arith.constant 0 : index
    %82 = vector.load %arg14[%c0_44, %c0_45] : memref<512x1024xf32, #tpu.memory_space<vmem>>, vector<512x1024xf32>
    %cst_46 = arith.constant dense<0.000000e+00> : vector<8x1024xf32>
    %83 = tpu.matmul %81, %82, %cst_46 {dimension_numbers = #tpu.dot_dimension_numbers<[1], [0], [0], [1], [0, 0, 1, 1], [], []>} : vector<8x512xf32>, vector<512x1024xf32>, vector<8x1024xf32> -> vector<8x1024xf32>
    %84 = arith.addf %80, %83 : vector<8x1024xf32>
    %c0_47 = arith.constant 0 : index
    %c0_48 = arith.constant 0 : index
    %85 = vector.load %arg15[%c0_47, %c0_48] : memref<1x1024xf32, #tpu.memory_space<vmem>>, vector<1x1024xf32>
    %86 = vector.broadcast %85 : vector<1x1024xf32> to vector<8x1024xf32>
    %87 = arith.addf %84, %86 : vector<8x1024xf32>
    %c0_49 = arith.constant 0 : index
    %c0_50 = arith.constant 0 : index
    %88 = vector.load %arg16[%c0_49, %c0_50] : memref<1x1024xf32, #tpu.memory_space<vmem>>, vector<1x1024xf32>
    %c0_51 = arith.constant 0 : index
    %c0_52 = arith.constant 0 : index
    %89 = vector.load %arg17[%c0_51, %c0_52] : memref<1x1024xf32, #tpu.memory_space<vmem>>, vector<1x1024xf32>
    %cst_53 = arith.constant dense<0.000000e+00> : vector<1024xf32>
    %90 = vector.multi_reduction <add>, %87, %cst_53 [0] : vector<8x1024xf32> to vector<1024xf32>
    %91 = vector.shape_cast %90 : vector<1024xf32> to vector<1x1024xf32>
    %92 = arith.mulf %87, %87 : vector<8x1024xf32>
    %cst_54 = arith.constant dense<0.000000e+00> : vector<1024xf32>
    %93 = vector.multi_reduction <add>, %92, %cst_54 [0] : vector<8x1024xf32> to vector<1024xf32>
    %94 = vector.shape_cast %93 : vector<1024xf32> to vector<1x1024xf32>
    %cst_55 = arith.constant 1.250000e-01 : f32
    %95 = vector.broadcast %cst_55 : f32 to vector<1x1024xf32>
    %96 = arith.mulf %91, %95 : vector<1x1024xf32>
    %cst_56 = arith.constant 1.250000e-01 : f32
    %97 = vector.broadcast %cst_56 : f32 to vector<1x1024xf32>
    %98 = arith.mulf %94, %97 : vector<1x1024xf32>
    %99 = arith.mulf %96, %96 : vector<1x1024xf32>
    %100 = arith.subf %98, %99 : vector<1x1024xf32>
    %101 = vector.broadcast %96 : vector<1x1024xf32> to vector<8x1024xf32>
    %102 = arith.subf %87, %101 : vector<8x1024xf32>
    %cst_57 = arith.constant 8.000000e-01 : f32
    %103 = vector.broadcast %cst_57 : f32 to vector<1x1024xf32>
    %104 = arith.addf %100, %103 : vector<1x1024xf32>
    %105 = math.rsqrt %104 : vector<1x1024xf32>
    %106 = vector.broadcast %105 : vector<1x1024xf32> to vector<8x1024xf32>
    %107 = arith.mulf %102, %106 : vector<8x1024xf32>
    %108 = vector.broadcast %88 : vector<1x1024xf32> to vector<8x1024xf32>
    %109 = arith.mulf %107, %108 : vector<8x1024xf32>
    %110 = vector.broadcast %89 : vector<1x1024xf32> to vector<8x1024xf32>
    %111 = arith.addf %109, %110 : vector<8x1024xf32>
    %cst_58 = arith.constant 0.000000e+00 : f32
    %112 = vector.broadcast %cst_58 : f32 to vector<8x1024xf32>
    %113 = arith.cmpf ogt, %111, %112 : vector<8x1024xf32>
    %cst_59 = arith.constant 2.000000e-01 : f32
    %114 = vector.broadcast %cst_59 : f32 to vector<8x1024xf32>
    %115 = arith.mulf %114, %111 : vector<8x1024xf32>
    %116 = arith.select %113, %111, %115 : vector<8x1024xi1>, vector<8x1024xf32>
    %c0_60 = arith.constant 0 : index
    %c0_61 = arith.constant 0 : index
    %117 = vector.load %arg18[%c0_60, %c0_61] : memref<1024x640xf32, #tpu.memory_space<vmem>>, vector<1024x640xf32>
    %cst_62 = arith.constant dense<0.000000e+00> : vector<8x640xf32>
    %118 = tpu.matmul %116, %117, %cst_62 {dimension_numbers = #tpu.dot_dimension_numbers<[1], [0], [0], [1], [0, 0, 1, 1], [], []>} : vector<8x1024xf32>, vector<1024x640xf32>, vector<8x640xf32> -> vector<8x640xf32>
    %c0_63 = arith.constant 0 : index
    %c0_64 = arith.constant 0 : index
    %119 = vector.load %arg19[%c0_63, %c0_64] : memref<1x640xf32, #tpu.memory_space<vmem>>, vector<1x640xf32>
    %120 = vector.broadcast %119 : vector<1x640xf32> to vector<8x640xf32>
    %121 = arith.addf %118, %120 : vector<8x640xf32>
    %122 = math.tanh %121 : vector<8x640xf32>
    %c0_65 = arith.constant 0 : index
    %c0_66 = arith.constant 0 : index
    %123 = vector.load %arg20[%c0_65, %c0_66] : memref<8x640xf32, #tpu.memory_space<vmem>>, vector<8x640xf32>
    tpu.vector_store %arg20[%c0_65, %c0_66], %122 {strides = array<i32>} : memref<8x640xf32, #tpu.memory_space<vmem>>, vector<8x640xf32>,
    return
  }
  func.func @transform_0(%arg0: i32) -> (i32, i32) {
    %c0_i32 = arith.constant 0 : i32
    %c0_i32_0 = arith.constant 0 : i32
    %c0_i32_1 = arith.constant 0 : i32
    return %c0_i32, %c0_i32_0 : i32, i32
  }
  func.func @transform_1(%arg0: i32) -> (i32, i32) {
    %c0_i32 = arith.constant 0 : i32
    %c0_i32_0 = arith.constant 0 : i32
    %c0_i32_1 = arith.constant 0 : i32
    return %c0_i32, %c0_i32_0 : i32, i32
  }
  func.func @transform_2(%arg0: i32) -> (i32, i32) {
    %c0_i32 = arith.constant 0 : i32
    %c0_i32_0 = arith.constant 0 : i32
    %c0_i32_1 = arith.constant 0 : i32
    return %c0_i32, %c0_i32_0 : i32, i32
  }
  func.func @transform_3(%arg0: i32) -> (i32, i32) {
    %c0_i32 = arith.constant 0 : i32
    %c0_i32_0 = arith.constant 0 : i32
    %c0_i32_1 = arith.constant 0 : i32
    return %c0_i32, %c0_i32_0 : i32, i32
  }
  func.func @transform_4(%arg0: i32) -> (i32, i32) {
    %c0_i32 = arith.constant 0 : i32
    %c0_i32_0 = arith.constant 0 : i32
    %c0_i32_1 = arith.constant 0 : i32
    return %c0_i32, %c0_i32_0 : i32, i32
  }
  func.func @transform_5(%arg0: i32) -> (i32, i32) {
    %c0_i32 = arith.constant 0 : i32
    %c0_i32_0 = arith.constant 0 : i32
    %c0_i32_1 = arith.constant 0 : i32
    return %c0_i32, %c0_i32_0 : i32, i32
  }
  func.func @transform_6(%arg0: i32) -> (i32, i32) {
    %c0_i32 = arith.constant 0 : i32
    %c0_i32_0 = arith.constant 0 : i32
    %c0_i32_1 = arith.constant 0 : i32
    return %c0_i32, %c0_i32_0 : i32, i32
  }
  func.func @transform_7(%arg0: i32) -> (i32, i32) {
    %c0_i32 = arith.constant 0 : i32
    %c0_i32_0 = arith.constant 0 : i32
    %c0_i32_1 = arith.constant 0 : i32
    return %c0_i32, %c0_i32_0 : i32, i32
  }
  func.func @transform_8(%arg0: i32) -> (i32, i32) {
    %c0_i32 = arith.constant 0 : i32
    %c0_i32_0 = arith.constant 0 : i32
    %c0_i32_1 = arith.constant 0 : i32
    return %c0_i32, %c0_i32_0 : i32, i32
  }
  func.func @transform_9(%arg0: i32) -> (i32, i32) {
    %c0_i32 = arith.constant 0 : i32
    %c0_i32_0 = arith.constant 0 : i32
    %c0_i32_1 = arith.constant 0 : i32
    return %c0_i32, %c0_i32_0 : i32, i32
  }
  func.func @transform_10(%arg0: i32) -> (i32, i32) {
    %c0_i32 = arith.constant 0 : i32
    %c0_i32_0 = arith.constant 0 : i32
    %c0_i32_1 = arith.constant 0 : i32
    return %c0_i32, %c0_i32_0 : i32, i32
  }
  func.func @transform_11(%arg0: i32) -> (i32, i32) {
    %c0_i32 = arith.constant 0 : i32
    %c0_i32_0 = arith.constant 0 : i32
    %c0_i32_1 = arith.constant 0 : i32
    return %c0_i32, %c0_i32_0 : i32, i32
  }
  func.func @transform_12(%arg0: i32) -> (i32, i32) {
    %c0_i32 = arith.constant 0 : i32
    %c0_i32_0 = arith.constant 0 : i32
    %c0_i32_1 = arith.constant 0 : i32
    return %c0_i32, %c0_i32_0 : i32, i32
  }
  func.func @transform_13(%arg0: i32) -> (i32, i32) {
    %c0_i32 = arith.constant 0 : i32
    %c0_i32_0 = arith.constant 0 : i32
    %c0_i32_1 = arith.constant 0 : i32
    return %c0_i32, %c0_i32_0 : i32, i32
  }
  func.func @transform_14(%arg0: i32) -> (i32, i32) {
    %c0_i32 = arith.constant 0 : i32
    %c0_i32_0 = arith.constant 0 : i32
    %c0_i32_1 = arith.constant 0 : i32
    return %c0_i32, %c0_i32_0 : i32, i32
  }
  func.func @transform_15(%arg0: i32) -> (i32, i32) {
    %c0_i32 = arith.constant 0 : i32
    %c0_i32_0 = arith.constant 0 : i32
    %c0_i32_1 = arith.constant 0 : i32
    return %c0_i32, %c0_i32_0 : i32, i32
  }
  func.func @transform_16(%arg0: i32) -> (i32, i32) {
    %c0_i32 = arith.constant 0 : i32
    %c0_i32_0 = arith.constant 0 : i32
    %c0_i32_1 = arith.constant 0 : i32
    return %c0_i32, %c0_i32_0 : i32, i32
  }
  func.func @transform_17(%arg0: i32) -> (i32, i32) {
    %c0_i32 = arith.constant 0 : i32
    %c0_i32_0 = arith.constant 0 : i32
    return %c0_i32, %arg0 : i32, i32
  }
  func.func @transform_18(%arg0: i32) -> (i32, i32) {
    %c0_i32 = arith.constant 0 : i32
    %c0_i32_0 = arith.constant 0 : i32
    return %c0_i32, %arg0 : i32, i32
  }
  func.func @transform_19(%arg0: i32) -> (i32, i32) {
    %c0_i32 = arith.constant 0 : i32
    %c0_i32_0 = arith.constant 0 : i32
    return %c0_i32, %arg0 : i32, i32
  }
}

</mosaic_0001>

<bundles_post_ra>
// kernel: generator_forward.1
= control target key start
LH: loop header
LB: loop body
LE: loop exit
PB: predicated region body
PF: predicated region fallthrough
CT: control target
= control target key end

     0   :  { %s8442_s0 = inlined_call_operand.vmem [shape: f32[8,128], index: 0, kind: input, shape index: {}]   ;;  %s8443_s1 = inlined_call_operand.hbm [shape: f32[8,512], index: 1, kind: input, shape index: {}]   ;;  %s8444_s2 = inlined_call_operand.hbm [shape: f32[128,128], index: 2, kind: input, shape index: {}]   ;;  %s8445_s3 = inlined_call_operand.hbm [shape: f32[1,128], index: 3, kind: input, shape index: {}]   ;;  %s8446_s4 = inlined_call_operand.hbm [shape: f32[128,256], index: 4, kind: input, shape index: {}]   ;;  %s8447_s5 = inlined_call_operand.hbm [shape: f32[1,256], index: 5, kind: input, shape index: {}]   ;;  %s8448_s6 = inlined_call_operand.hbm [shape: f32[1,256], index: 6, kind: input, shape index: {}]   ;;  %s8449_s7 = inlined_call_operand.hbm [shape: f32[1,256], index: 7, kind: input, shape index: {}]   ;;  %s8450_s8 = inlined_call_operand.hbm [shape: f32[256,512], index: 8, kind: input, shape index: {}]   ;;  %s8451_s9 = inlined_call_operand.hbm [shape: f32[1,512], index: 9, kind: input, shape index: {}]   ;;  %s8452_s10 = inlined_call_operand.hbm [shape: f32[1,512], index: 10, kind: input, shape index: {}]   ;;  %s8453_s11 = inlined_call_operand.hbm [shape: f32[1,512], index: 11, kind: input, shape index: {}]   ;;  %s8454_s12 = inlined_call_operand.hbm [shape: f32[512,1024], index: 12, kind: input, shape index: {}]   ;;  %s8455_s13 = inlined_call_operand.hbm [shape: f32[512,1024], index: 13, kind: input, shape index: {}]   ;;  %s8456_s14 = inlined_call_operand.hbm [shape: f32[1,1024], index: 14, kind: input, shape index: {}]   ;;  %s8457_s15 = inlined_call_operand.hbm [shape: f32[1,1024], index: 15, kind: input, shape index: {}]   ;;  %s8458_s16 = inlined_call_operand.hbm [shape: f32[1,1024], index: 16, kind: input, shape index: {}]   ;;  %s8459_s17 = inlined_call_operand.hbm [shape: f32[1024,1920], index: 17, kind: input, shape index: {}]   ;;  %s8460_s18 = inlined_call_operand.hbm [shape: f32[1,1920], index: 18, kind: input, shape index: {}]   ;;  %s8461_s19 = inlined_call_operand.vmem [shape: f32[8,1920], index: 19, kind: output, shape index: {}]  }
   0x1   :  { %8475 = sst [smem:[#allocation40_spill]] %s8442_s0 }
   0x2   :  { %8476 = sst [smem:[#allocation41_spill]] %s8443_s1 }
   0x3   :  { %8477 = sst [smem:[#allocation42_spill]] %s8444_s2 }
   0x4   :  { %8478 = sst [smem:[#allocation43_spill]] %s8445_s3 }
   0x5   :  { %8479 = sst [smem:[#allocation44_spill]] %s8446_s4 }
   0x6   :  { %8480 = sst [smem:[#allocation45_spill]] %s8447_s5 }
   0x7   :  { %8481 = sst [smem:[#allocation46_spill]] %s8448_s6 }
   0x8   :  { %8482 = sst [smem:[#allocation47_spill]] %s8450_s8 }
   0x9   :  { %8483 = sst [smem:[#allocation48_spill]] %s8452_s10 }
   0xa   :  { %8484 = sst [smem:[#allocation49_spill]] %s8454_s12 }
   0xb   :  { %8485 = sst [smem:[#allocation50_spill]] %s8458_s16 }
   0xc   :  { %8486 = sst [smem:[#allocation51_spill]] %s8460_s18 }
   0xd   :  { %8487 = sst [smem:[#allocation52_spill]] %s8461_s19 }
   0xe   :  { %24 = vsyncpa [#allocation3], 0 }
   0xf   :  { %25 = vsyncpa [#allocation5], 0 }
  0x10   :  { %26 = vsyncpa [#allocation8], 0 }
  0x11   :  { %27 = vsyncpa [#allocation11], 0 }
  0x12   :  { %28 = vsyncpa [#allocation14], 0 }
  0x13   :  { %29 = vsyncpa [#allocation17], 0 }
  0x14   :  { %30 = vsyncpa [#allocation20], 0 }
  0x15   :  { %31 = vsyncpa [#allocation23], 0 }
  0x16   :  { %32 = vsyncpa [#allocation26], 0  ;;  %s7046_s0 = smov 0   ;;  %s7048_s30 = smov 0  }
  0x17   :  { %s7050_s20 = smov 0   ;;  %s7052_s21 = smov 0  }
  0x18 LB: > { %s6915_s1 = smov [#allocation2]   ;;  %s7067_s2 = sadd.s32 4294967295, %s6913_s21   ;;  %s6913_s21 = sphi %s7052_s21, %s8539_s21   ;;  %s6909_s20 = sphi %s7050_s20, %s8538_s20   ;;  %s6905_s30 = sphi %s7048_s30, %s8537_s30   ;;  %s6901_s0 = sphi %s7046_s0, %s8536_s0  }
  0x19   : > { %s494_s22 = sshll.u32 %s6915_s1, 4  ;;  %p5869_p0 = scmp.ge.s32.totalorder %s6913_s21, 1  ;;  %s495_s22 = int_to_ptr.vmem [resolvable:$true] %s494_s22 }
  0x1a   : > { %p8464_p1 = scmp.eq.s32.totalorder %s7067_s2, 0  ;;  %p478_p2 = scmp.lt.s32.totalorder %s6913_s21, 4 }
  0x1b   : > { %s6916_s24 = smov [#allocation4]   ;;  %s6917_s26 = smov [#allocation7]  }
  0x1c   : > { %p7072_p3 = pnand %p5869_p0, %p478_p2  ;;  %s504_s25 = sshll.u32 %s6916_s24, 4  ;;  %s7078_s25 = int_to_ptr.vmem [resolvable:$true] %s504_s25 }
  0x1d   : > { %s528_s27 = sshll.u32 %s6917_s26, 4  ;;  %s6382_s29 = scalar_lea.vmem %s495_s22, 512  ;;  %s7086_s27 = int_to_ptr.vmem [resolvable:$true] %s528_s27 }
  0x1e   : > { %s8488_s23 = scalar_select %p7072_p3, 1, 0 }
  0x1f   : > { %p6176_p4 = pneg %p7072_p3  ;;  %p6383_p7 = scmp.ne.s32.totalorder %s495_s22, %s6382_s29 }
  0x20   : > { %8489 = sst [smem:[#allocation39_spill]] %s8488_s23  ;;  %p6390_p10 = scmp.lt.s32.totalorder %s495_s22, %s495_s22 }
  0x21   : > { %p7082_p5 = pnand %p6176_p4, %p8464_p1  ;;  %p6391_p11 = scmp.lt.s32.totalorder %s6382_s29, %s6382_s29 }
  0x23   : > { %s8490_s3 = scalar_select %p7082_p5, 1, 0 }
  0x24   : > { %p7090_p6 = pneg %p7082_p5  ;;  %p6392_p12 = por %p6391_p11, %p6390_p10 }
  0x26   : > { %p6385_p8 = pnand %p6383_p7, %p7090_p6 }
  0x28   : > { %p6386_p9 = pneg %p6385_p8 }
  0x2a   : > { %p6393_p13 = pnand %p6392_p12, %p6386_p9 }
  0x2c   : > { %6396 = shalt.err (!%p6393_p13)
}
  0x2d   : > { %s8492_s26 = sld [smem:[#allocation41_spill]]  ;;  %s6408_s19 = scalar_lea.vmem %s7078_s25, 2048 }
  0x2e   : > { %p6409_p0 = scmp.ne.s32.totalorder %s7078_s25, %s6408_s19  ;;  %p6416_p7 = scmp.lt.s32.totalorder %s7078_s25, %s7078_s25 }
  0x2f   : > { %p6417_p8 = scmp.lt.s32.totalorder %s6408_s19, %s6408_s19 }
  0x30   : > { %p6411_p2 = pnand %p6409_p0, %p7090_p6 }
  0x31   : > { %p6418_p9 = por %p6417_p8, %p6416_p7 }
  0x32   : > { %p6412_p4 = pneg %p6411_p2 }
  0x33   : > { %6179 = dma.hbm_to_vmem [thread:$0]  (!%p7082_p5), %s8492_s26, 512, %s495_s22, [#allocation3]  }
  0x34   : > { %p6419_p10 = pnand %p6418_p9, %p6412_p4 }
  0x36   : > { %6422 = shalt.err (!%p6419_p10)
}
  0x37   : > { %s6918_s29 = smov 128   ;;  %s6919_s1 = smov 8  }
  0x38   : > { %s8493_s26 = sld [smem:[#allocation42_spill]]  ;;  %s6434_s23 = scalar_lea.vmem %s7086_s27, 4096 }
  0x39   : > { %p6435_p11 = scmp.ne.s32.totalorder %s7086_s27, %s6434_s23  ;;  %p6442_p0 = scmp.lt.s32.totalorder %s7086_s27, %s7086_s27 }
  0x3a   : > { %p6443_p2 = scmp.lt.s32.totalorder %s6434_s23, %s6434_s23 }
  0x3b   : > { %p6437_p12 = pnand %p6435_p11, %p7090_p6 }
  0x3c   : > { %p6444_p4 = por %p6443_p2, %p6442_p0 }
  0x3d   : > { %p6438_p13 = pneg %p6437_p12 }
  0x3e   : > { %6182 = dma.hbm_to_vmem [thread:$0]  (!%p7082_p5), %s8493_s26, 2048, %s7078_s25, [#allocation5], %s6918_s29, %s6918_s29, %s6919_s1  }
  0x3f   : > { %p6445_p7 = pnand %p6444_p4, %p6438_p13 }
  0x41   : > { %6448 = shalt.err (!%p6445_p7)
}
  0x42   : > { %s6920_s19 = smov 256   ;;  %s6921_s18 = smov 16  }
  0x43   : > { %s8494_s4 = sld [smem:[#allocation44_spill]]  ;;  %s6922_s25 = smov [#allocation10]  }
  0x44   : > { %s553_s29 = sshll.u32 %s6922_s25, 4  ;;  %s6923_s1 = smov [#allocation13]   ;;  %s554_s29 = int_to_ptr.vmem [resolvable:$true] %s553_s29 }
  0x45   : > { %s574_s24 = sshll.u32 %s6923_s1, 4  ;;  %s6460_s26 = scalar_lea.vmem %s554_s29, 32  ;;  %s575_s24 = int_to_ptr.vmem [resolvable:$true] %s574_s24 }
  0x46   : > { %p6461_p8 = scmp.ne.s32.totalorder %s554_s29, %s6460_s26  ;;  %p6468_p11 = scmp.lt.s32.totalorder %s554_s29, %s554_s29 }
  0x47   : > { %p6469_p12 = scmp.lt.s32.totalorder %s6460_s26, %s6460_s26 }
  0x48   : > { %p6463_p9 = pnand %p6461_p8, %p7090_p6 }
  0x49   : > { %6188 = dma.hbm_to_vmem [thread:$0]  (!%p7082_p5), %s8494_s4, 4096, %s7086_s27, [#allocation8], %s6920_s19, %s6920_s19, %s6921_s18  }
  0x4a   : > { %p6464_p10 = pneg %p6463_p9  ;;  %p6470_p13 = por %p6469_p12, %p6468_p11 }
  0x4c   : > { %p6471_p0 = pnand %p6470_p13, %p6464_p10 }
  0x4e   : > { %6474 = shalt.err (!%p6471_p0)
}
  0x4f   : > { %s8495_s6 = sld [smem:[#allocation46_spill]]  ;;  %s6486_s18 = scalar_lea.vmem %s575_s24, 16384 }
  0x50   : > { %p6487_p2 = scmp.ne.s32.totalorder %s575_s24, %s6486_s18  ;;  %p6494_p8 = scmp.lt.s32.totalorder %s575_s24, %s575_s24 }
  0x51   : > { %p6495_p9 = scmp.lt.s32.totalorder %s6486_s18, %s6486_s18 }
  0x52   : > { %p6489_p4 = pnand %p6487_p2, %p7090_p6 }
  0x53   : > { %p6496_p1 = por %p6495_p9, %p6494_p8 }
  0x54   : > { %p6490_p7 = pneg %p6489_p4 }
  0x55   : > { %6194 = dma.hbm_to_vmem [thread:$0]  (!%p7082_p5), %s8495_s6, 32, %s554_s29, [#allocation11]  }
  0x56   : > { %p6497_p3 = pnand %p6496_p1, %p6490_p7 }
  0x58   : > { %6500 = shalt.err (!%p6497_p3)
}
  0x59   : > { %s6924_s27 = smov 512   ;;  %s6925_s19 = smov 32  }
  0x5a   : > { %s8496_s8 = sld [smem:[#allocation47_spill]]  ;;  %s6926_s29 = smov [#allocation16]  }
  0x5b   : > { %s599_s1 = sshll.u32 %s6926_s29, 4  ;;  %s6927_s26 = smov [#allocation19]   ;;  %s600_s1 = int_to_ptr.vmem [resolvable:$true] %s599_s1 }
  0x5c   : > { %s620_s23 = sshll.u32 %s6927_s26, 4  ;;  %s6512_s16 = scalar_lea.vmem %s600_s1, 64  ;;  %s621_s23 = int_to_ptr.vmem [resolvable:$true] %s620_s23 }
  0x5d   : > { %p6513_p10 = scmp.ne.s32.totalorder %s600_s1, %s6512_s16  ;;  %p6520_p3 = scmp.lt.s32.totalorder %s600_s1, %s600_s1 }
  0x5e   : > { %p6521_p12 = scmp.lt.s32.totalorder %s6512_s16, %s6512_s16 }
  0x5f   : > { %p6515_p11 = pnand %p6513_p10, %p7090_p6 }
  0x60   : > { %6200 = dma.hbm_to_vmem [thread:$0]  (!%p7082_p5), %s8496_s8, 16384, %s575_s24, [#allocation14], %s6924_s27, %s6924_s27, %s6925_s19  }
  0x61   : > { %p6516_p1 = pneg %p6515_p11  ;;  %p6522_p13 = por %p6521_p12, %p6520_p3 }
  0x63   : > { %p6523_p0 = pnand %p6522_p13, %p6516_p1 }
  0x65   : > { %6526 = shalt.err (!%p6523_p0)
}
  0x66   : > { %s8497_s10 = sld [smem:[#allocation48_spill]]  ;;  %s6538_s24 = scalar_lea.vmem %s621_s23, 65536 }
  0x67   : > { %p6539_p2 = scmp.ne.s32.totalorder %s621_s23, %s6538_s24  ;;  %p6546_p8 = scmp.lt.s32.totalorder %s621_s23, %s621_s23 }
  0x68   : > { %p6547_p9 = scmp.lt.s32.totalorder %s6538_s24, %s6538_s24 }
  0x69   : > { %p6541_p4 = pnand %p6539_p2, %p7090_p6 }
  0x6a   : > { %p6548_p10 = por %p6547_p9, %p6546_p8 }
  0x6b   : > { %p6542_p7 = pneg %p6541_p4 }
  0x6c   : > { %6206 = dma.hbm_to_vmem [thread:$0]  (!%p7082_p5), %s8497_s10, 64, %s600_s1, [#allocation17]  }
  0x6d   : > { %p6549_p11 = pnand %p6548_p10, %p6542_p7 }
  0x6f   : > { %6552 = shalt.err (!%p6549_p11)
}
  0x70   : > { %s8466_s27 = smov 1024   ;;  %s8467_s19 = smov 64  }
  0x71   : > { %s8498_s12 = sld [smem:[#allocation49_spill]]  ;;  %s6930_s1 = smov [#allocation22]  }
  0x72   : > { %s647_s26 = sshll.u32 %s6930_s1, 4  ;;  %s648_s26 = int_to_ptr.vmem [resolvable:$true] %s647_s26 }
  0x73   : > { %s6564_s16 = scalar_lea.vmem %s648_s26, 128  ;;  %p6572_p13 = scmp.lt.s32.totalorder %s648_s26, %s648_s26 }
  0x74   : > { %p6565_p1 = scmp.ne.s32.totalorder %s648_s26, %s6564_s16  ;;  %p6573_p0 = scmp.lt.s32.totalorder %s6564_s16, %s6564_s16 }
  0x76   : > { %p6567_p3 = pnand %p6565_p1, %p7090_p6  ;;  %p6574_p2 = por %p6573_p0, %p6572_p13 }
  0x77   : > { %6212 = dma.hbm_to_vmem [thread:$0]  (!%p7082_p5), %s8498_s12, 65536, %s621_s23, [#allocation20], %s8466_s27, %s8466_s27, %s8467_s19  }
  0x78   : > { %p6568_p12 = pneg %p6567_p3 }
  0x7a   : > { %p6575_p4 = pnand %p6574_p2, %p6568_p12 }
  0x7c   : > { %6578 = shalt.err (!%p6575_p4)
}
  0x7d   : > { %6218 = dma.hbm_to_vmem [thread:$0]  (!%p7082_p5), %s8456_s14, 128, %s648_s26, [#allocation23]  }
  0x7e   : > { %s7164_s23 = sadd.s32 1, %s6913_s21   ;;  %s402_s24 = sadd.s32 1, %s6909_s20 }
  0x7f   : > { %s399_s25 = ssub.s32 %s6913_s21, %s7164_s23  ;;  %p409_p7 = scmp.ne.s32.totalorder %s6909_s20, %s6905_s30 }
  0x80   : > { %p400_p8 = scmp.eq.s32.totalorder %s399_s25, 0  ;;  %p410_p9 = scmp.eq.s32.totalorder %s6913_s21, 0 }
  0x81   : > { %p415_p10 = scmp.ne.s32.totalorder %s6905_s30, %s6901_s0  ;;  %p6248_p11 = scmp.lt.s32.totalorder %s6913_s21, 3 }
  0x82   : > { %s7176_s29 = scalar_select %p400_p8, %s6909_s20, %s402_s24  }
  0x83   : > { %p411_p1 = por %p410_p9, %p409_p7  ;;  %p8499_p3 = scmp.eq.s32.totalorder %s7067_s2, 0 }
  0x84   : > { %s680_s16 = sand.u32 1, %s6913_s21   ;;  %s8468_s26 = sand.u32 1, %s6909_s20  }
  0x85   : > { %p7180_p12 = por %p8499_p3, %p415_p10  ;;  %s6104_s18 = smul.u32 5120, %s8468_s26 }
  0x86   : > { %s5910_s22 = smul.u32 640, %s6913_s21  ;;  %p7189_p13 = pnand %p6248_p11, %p411_p1 }
  0x87   : > { %s8500_s1 = scalar_select %p7180_p12, 1, 0 }
  0x88   : > { %s8501_s27 = scalar_select %p7189_p13, 1, 0 }
  0x89   : > { %s7196_s24 = scalar_lea.hbm %s8459_s17, %s5910_s22  ;;  %s684_s19 = scalar_lea.vmem [#allocation27], %s6104_s18 }
  0x8a   : > { %s691_s4 = sshll.u32 %s684_s19, 4  ;;  %s7200_s26 = scalar_lea.sflag [#allocation3], %s680_s16  ;;  %s7198_s4 = int_to_ptr.vmem [resolvable:$true] %s691_s4 }
  0x8b   : > { %s6579_s6 = scalar_lea.hbm %s7196_s24, 81920  ;;  %p8472_p2 = pneg %p7189_p13 }
  0x8c   : > { %p6580_p0 = scmp.ne.s32.totalorder %s7196_s24, %s6579_s6  ;;  %s6584_s0 = scalar_lea.hbm %s8459_s17, 245760 }
  0x8d   : > { %p6585_p8 = scmp.lt.s32.totalorder %s7196_s24, %s8459_s17  ;;  %p6586_p9 = scmp.lt.s32.totalorder %s6584_s0, %s6579_s6 }
  0x8e   : > { %p6582_p4 = pnand %p8472_p2, %p6580_p0 }
  0x8f   : > { %p6587_p10 = por %p6586_p9, %p6585_p8 }
  0x90   : > { %p6583_p7 = pneg %p6582_p4 }
  0x92   : > { %p6588_p11 = pnand %p6587_p10, %p6583_p7 }
  0x94   : > { %6591 = shalt.err (!%p6588_p11)
}
  0x95   : > { %s6592_s19 = scalar_lea.vmem %s7198_s4, 81920  ;;  %s6931_s16 = smov [#allocation27]  }
  0x96   : > { %p6593_p1 = scmp.ne.s32.totalorder %s7198_s4, %s6592_s19  ;;  %s6597_s18 = sshll.u32 %s6931_s16, 4  ;;  %s6598_s18 = int_to_ptr.vmem [resolvable:$false] %s6597_s18 }
  0x97   : > { %s6599_s25 = scalar_lea.vmem %s6598_s18, 163840  ;;  %p6600_p4 = scmp.lt.s32.totalorder %s7198_s4, %s6598_s18 }
  0x98   : > { %p6595_p3 = pnand %p6593_p1, %p8472_p2  ;;  %p6601_p12 = scmp.lt.s32.totalorder %s6599_s25, %s6592_s19 }
  0x9a   : > { %p6596_p0 = pneg %p6595_p3  ;;  %p6602_p5 = por %p6601_p12, %p6600_p4 }
  0x9c   : > { %p6603_p8 = pnand %p6602_p5, %p6596_p0 }
  0x9e   : > { %6606 = shalt.err (!%p6603_p8)
}
  0x9f   : > { %s6932_s6 = smov 1920   ;;  %s6933_s8 = smov 640  }
  0xa0   : > { %s6934_s10 = smov 40   ;;  %s6935_s22 = smov [#allocation6]  }
  0xa1   : > { %6228 = dma.hbm_to_vmem [thread:$0]  (!%p7189_p13), %s7196_s24, 81920, %s7198_s4, %s7200_s26, %s6932_s6, %s6933_s8, %s6934_s10  }
  0xa2   : > { %s518_s0 = sshll.u32 %s6935_s22, 4  ;;  %s6936_s16 = smov [#allocation9]   ;;  %s519_s0 = int_to_ptr.vmem [resolvable:$true] %s518_s0 }
  0xa3   : > { %s542_s12 = sshll.u32 %s6936_s16, 4  ;;  %s6618_s19 = scalar_lea.vmem %s519_s0, 16  ;;  %s543_s12 = int_to_ptr.vmem [resolvable:$true] %s542_s12 }
  0xa4   : > { %p6619_p12 = scmp.ne.s32.totalorder %s519_s0, %s6618_s19  ;;  %s6625_s18 = scalar_lea.vmem %s519_s0, 32 }
  0xa5   : > { %p6626_p9 = scmp.lt.s32.totalorder %s519_s0, %s519_s0  ;;  %p6627_p10 = scmp.lt.s32.totalorder %s6625_s18, %s6618_s19 }
  0xa6   : > { %p6621_p5 = pnand %p6619_p12, %p7090_p6 }
  0xa7   : > { %p6628_p11 = por %p6627_p10, %p6626_p9 }
  0xa8   : > { %p6622_p7 = pneg %p6621_p5 }
  0xaa   : > { %p6629_p1 = pnand %p6628_p11, %p6622_p7 }
  0xac   : > { %6632 = shalt.err (!%p6629_p1)
}
  0xad   : > { %p8502_p3 = scmp.ne.s32.totalorder %s8490_s3, 0  ;;  %s8503_s25 = sld [smem:[#allocation43_spill]] }
  0xae   : > { %s6644_s6 = scalar_lea.vmem %s543_s12, 32  ;;  %p6652_p12 = scmp.lt.s32.totalorder %s543_s12, %s543_s12 }
  0xaf   : > { %p6645_p0 = scmp.ne.s32.totalorder %s543_s12, %s6644_s6  ;;  %p6653_p5 = scmp.lt.s32.totalorder %s6644_s6, %s6644_s6 }
  0xb1   : > { %p6647_p4 = pnand %p6645_p0, %p7090_p6  ;;  %p6654_p2 = por %p6653_p5, %p6652_p12 }
  0xb3   : > { %6185 = dma.hbm_to_vmem [thread:$0]  (!%p8502_p3), %s8503_s25, 16, %s519_s0, [#allocation5]  }
  0xb4   : > { %p6648_p8 = pneg %p6647_p4 }
  0xb6   : > { %p6655_p13 = pnand %p6654_p2, %p6648_p8 }
  0xb8   : > { %6658 = shalt.err (!%p6655_p13)
}
  0xb9   : > { %s8504_s5 = sld [smem:[#allocation45_spill]]  ;;  %s6937_s22 = smov [#allocation12]  }
  0xba   : > { %s564_s16 = sshll.u32 %s6937_s22, 4  ;;  %s6938_s0 = smov [#allocation15]   ;;  %s565_s16 = int_to_ptr.vmem [resolvable:$true] %s564_s16 }
  0xbb   : > { %s588_s19 = sshll.u32 %s6938_s0, 4  ;;  %s6670_s18 = scalar_lea.vmem %s565_s16, 32  ;;  %s589_s19 = int_to_ptr.vmem [resolvable:$true] %s588_s19 }
  0xbc   : > { %p6671_p7 = scmp.ne.s32.totalorder %s565_s16, %s6670_s18  ;;  %p6678_p2 = scmp.lt.s32.totalorder %s565_s16, %s565_s16 }
  0xbd   : > { %p6679_p13 = scmp.lt.s32.totalorder %s6670_s18, %s6670_s18 }
  0xbe   : > { %p6673_p9 = pnand %p6671_p7, %p7090_p6 }
  0xbf   : > { %6191 = dma.hbm_to_vmem [thread:$0]  (!%p8502_p3), %s8504_s5, 32, %s543_s12, [#allocation8]  }
  0xc0   : > { %p6674_p10 = pneg %p6673_p9  ;;  %p6680_p11 = por %p6679_p13, %p6678_p2 }
  0xc2   : > { %p6681_p1 = pnand %p6680_p11, %p6674_p10 }
  0xc4   : > { %6684 = shalt.err (!%p6681_p1)
}
  0xc5   : > { %6197 = dma.hbm_to_vmem [thread:$0]  (!%p8502_p3), %s8449_s7, 32, %s565_s16, [#allocation11]  }
  0xc6   : > { %s6696_s24 = scalar_lea.vmem %s589_s19, 64  ;;  %p6704_p12 = scmp.lt.s32.totalorder %s589_s19, %s589_s19 }
  0xc7   : > { %p6697_p0 = scmp.ne.s32.totalorder %s589_s19, %s6696_s24  ;;  %p6705_p5 = scmp.lt.s32.totalorder %s6696_s24, %s6696_s24 }
  0xc9   : > { %p6699_p4 = pnand %p6697_p0, %p7090_p6  ;;  %p6706_p7 = por %p6705_p5, %p6704_p12 }
  0xcb   : > { %p6700_p8 = pneg %p6699_p4 }
  0xcd   : > { %p6707_p9 = pnand %p6706_p7, %p6700_p8 }
  0xcf   : > { %6710 = shalt.err (!%p6707_p9)
}
  0xd0   : > { %6203 = dma.hbm_to_vmem [thread:$0]  (!%p8502_p3), %s8451_s9, 64, %s589_s19, [#allocation14]  }
  0xd1   : > { %s6939_s8 = smov [#allocation18]   ;;  %s6940_s22 = smov [#allocation21]  }
  0xd2   : > { %s610_s10 = sshll.u32 %s6939_s8, 4  ;;  %s633_s16 = sshll.u32 %s6940_s22, 4  ;;  %s611_s10 = int_to_ptr.vmem [resolvable:$true] %s610_s10  ;;  %s634_s16 = int_to_ptr.vmem [resolvable:$true] %s633_s16 }
  0xd3   : > { %s6722_s0 = scalar_lea.vmem %s611_s10, 64  ;;  %p6730_p11 = scmp.lt.s32.totalorder %s611_s10, %s611_s10 }
  0xd4   : > { %p6723_p10 = scmp.ne.s32.totalorder %s611_s10, %s6722_s0  ;;  %p6731_p1 = scmp.lt.s32.totalorder %s6722_s0, %s6722_s0 }
  0xd6   : > { %p6725_p2 = pnand %p6723_p10, %p7090_p6  ;;  %p6732_p0 = por %p6731_p1, %p6730_p11 }
  0xd8   : > { %p6726_p13 = pneg %p6725_p2 }
  0xda   : > { %p6733_p4 = pnand %p6732_p0, %p6726_p13 }
  0xdc   : > { %6736 = shalt.err (!%p6733_p4)
}
  0xdd   : > { %6209 = dma.hbm_to_vmem [thread:$0]  (!%p8502_p3), %s8453_s11, 64, %s611_s10, [#allocation17]  }
  0xde   : > { %s6748_s4 = scalar_lea.vmem %s634_s16, 65536  ;;  %p6756_p7 = scmp.lt.s32.totalorder %s634_s16, %s634_s16 }
  0xdf   : > { %p6749_p8 = scmp.ne.s32.totalorder %s634_s16, %s6748_s4  ;;  %p6757_p9 = scmp.lt.s32.totalorder %s6748_s4, %s6748_s4 }
  0xe1   : > { %p6751_p12 = pnand %p6749_p8, %p7090_p6  ;;  %p6758_p10 = por %p6757_p9, %p6756_p7 }
  0xe3   : > { %p6752_p5 = pneg %p6751_p12 }
  0xe5   : > { %p6759_p2 = pnand %p6758_p10, %p6752_p5 }
  0xe7   : > { %6762 = shalt.err (!%p6759_p2)
}
  0xe8   : > { %s8505_s12 = smov 64   ;;  %s8506_s24 = smov 1024  }
  0xe9   : > { %6215 = dma.hbm_to_vmem [thread:$0]  (!%p8502_p3), %s8455_s13, 65536, %s634_s16, [#allocation20], %s8506_s24, %s8506_s24, %s8505_s12  }
  0xea   : > { %s6941_s8 = smov [#allocation24]   ;;  %s6942_s22 = smov [#allocation25]  }
  0xeb   : > { %s658_s10 = sshll.u32 %s6941_s8, 4  ;;  %s669_s0 = sshll.u32 %s6942_s22, 4  ;;  %s659_s10 = int_to_ptr.vmem [resolvable:$true] %s658_s10  ;;  %s670_s0 = int_to_ptr.vmem [resolvable:$true] %s669_s0 }
  0xec   : > { %s6774_s18 = scalar_lea.vmem %s659_s10, 128  ;;  %p6782_p0 = scmp.lt.s32.totalorder %s659_s10, %s659_s10 }
  0xed   : > { %p6775_p13 = scmp.ne.s32.totalorder %s659_s10, %s6774_s18  ;;  %p6783_p4 = scmp.lt.s32.totalorder %s6774_s18, %s6774_s18 }
  0xef   : > { %p6777_p11 = pnand %p6775_p13, %p7090_p6  ;;  %p6784_p8 = por %p6783_p4, %p6782_p0 }
  0xf1   : > { %p6778_p1 = pneg %p6777_p11 }
  0xf3   : > { %p6785_p12 = pnand %p6784_p8, %p6778_p1 }
  0xf5   : > { %6788 = shalt.err (!%p6785_p12)
}
  0xf6   : > { %6221 = dma.hbm_to_vmem [thread:$0]  (!%p8502_p3), %s8457_s15, 128, %s659_s10, [#allocation23]  }
  0xf7   : > { %s6800_s4 = scalar_lea.vmem %s670_s0, 128  ;;  %p6808_p10 = scmp.lt.s32.totalorder %s670_s0, %s670_s0 }
  0xf8   : > { %p6801_p5 = scmp.ne.s32.totalorder %s670_s0, %s6800_s4  ;;  %p6809_p2 = scmp.lt.s32.totalorder %s6800_s4, %s6800_s4 }
  0xfa   : > { %p6803_p7 = pnand %p6801_p5, %p7090_p6  ;;  %p6810_p13 = por %p6809_p2, %p6808_p10 }
  0xfc   : > { %p6804_p9 = pneg %p6803_p7 }
  0xfe   : > { %p6811_p11 = pnand %p6810_p13, %p6804_p9 }
 0x100   : > { %6814 = shalt.err (!%p6811_p11)
}
 0x101   : > { %s8507_s25 = sld [smem:[#allocation50_spill]]  ;;  %s8508_s6 = sand.u32 1, %s6909_s20  }
 0x102   : > { %s6105_s8 = smul.u32 5, %s8508_s6  ;;  %s8509_s18 = sld [smem:[#allocation51_spill]] }
 0x103   : > { %s5911_s10 = smul.u32 80, %s6913_s21  ;;  %p8510_p1 = scmp.ne.s32.totalorder %s8501_s27, 0 }
 0x104   : > { %s705_s16 = scalar_lea.vmem [#allocation28], %s6105_s8 }
 0x105   : > { %s713_s4 = sshll.u32 %s705_s16, 4  ;;  %p8511_p0 = pneg %p8510_p1  ;;  %s714_s4 = int_to_ptr.vmem [resolvable:$true] %s713_s4 }
 0x107   : > { %6224 = dma.hbm_to_vmem [thread:$0]  (!%p8502_p3), %s8507_s25, 128, %s670_s0, [#allocation26]  }
 0x108   : > { %s711_s19 = scalar_lea.hbm %s8509_s18, %s5911_s10  ;;  %s6820_s0 = scalar_lea.hbm %s8509_s18, 240 }
 0x109   : > { %s6815_s5 = scalar_lea.hbm %s711_s19, 80  ;;  %p6821_p3 = scmp.lt.s32.totalorder %s711_s19, %s8509_s18 }
 0x10a   : > { %p6816_p6 = scmp.ne.s32.totalorder %s711_s19, %s6815_s5  ;;  %p6822_p12 = scmp.lt.s32.totalorder %s6820_s0, %s6815_s5 }
 0x10c   : > { %p6818_p4 = pnand %p6816_p6, %p8511_p0  ;;  %p6823_p5 = por %p6822_p12, %p6821_p3 }
 0x10e   : > { %p6819_p8 = pneg %p6818_p4 }
 0x110   : > { %p6824_p7 = pnand %p6823_p5, %p6819_p8 }
 0x112   : > { %6827 = shalt.err (!%p6824_p7)
}
 0x113   : > { %s6828_s21 = scalar_lea.vmem %s714_s4, 80  ;;  %p8512_p10 = pmov %p8511_p0 }
 0x114   : > { %p6829_p9 = scmp.ne.s32.totalorder %s714_s4, %s6828_s21  ;;  %s6943_s6 = smov [#allocation28]  }
 0x115   : > { %s6833_s8 = sshll.u32 %s6943_s6, 4  ;;  %s6834_s8 = int_to_ptr.vmem [resolvable:$false] %s6833_s8 }
 0x116   : > { %p6831_p2 = pnand %p6829_p9, %p8512_p10  ;;  %s6835_s10 = scalar_lea.vmem %s6834_s8, 160 }
 0x117   : > { %p6836_p11 = scmp.lt.s32.totalorder %s714_s4, %s6834_s8  ;;  %p6837_p6 = scmp.lt.s32.totalorder %s6835_s10, %s6828_s21 }
 0x118   : > { %p6832_p13 = pneg %p6831_p2 }
 0x119   : > { %p6838_p0 = por %p6837_p6, %p6836_p11 }
 0x11b   : > { %p6839_p4 = pnand %p6838_p0, %p6832_p13 }
 0x11d   : > { %6842 = shalt.err (!%p6839_p4)
}
 0x11e   : > { %6231 = dma.hbm_to_vmem [thread:$0]  (!%p8510_p1), %s711_s19, 80, %s714_s4, %s7200_s26  }
 0x11f   : > { %s8513_s5 = sld [smem:[#allocation39_spill]] }
 0x125   : > { %p8514_p8 = scmp.ne.s32.totalorder %s8513_s5, 0 }
 0x126   : > { %p8515_p3 = scmp.eq.s32.totalorder (!%p8514_p8), %s7067_s2, 0 }
 0x127   : > { %722 = sbr.rel (%p8514_p8) target bundleno = 1984 (0x7c0), region = 96 }
 0x12c   : > { %6860 = dma.done.wait (%p8515_p3), [#allocation3], 512   ;;  %p8516_p12 = pmov %p8515_p3 }
 0x12d   : > { %p8517_p5 = pmov %p8515_p3 }
 0x12e   : > { %6862 = vsyncadd (%p8516_p12), [#allocation3], 4294966784 }
 0x12f   : > { %6864 = dma.done.wait (%p8517_p5), [#allocation5], 2064   ;;  %p8518_p7 = pmov %p8515_p3 }
 0x130   : > { %p8519_p9 = pmov %p8515_p3 }
 0x131   : > { %6866 = vsyncadd (%p8518_p7), [#allocation5], 4294965232 }
 0x132   : > { %6868 = dma.done.wait (%p8519_p9), [#allocation8], 4128   ;;  %p8520_p1 = pmov %p8515_p3 }
 0x134   : > { %6870 = vsyncadd (%p8520_p1), [#allocation8], 4294963168  ;;  %p8521_p10 = pmov %p8520_p1 }
 0x135   : > { %p8522_p2 = pmov %p8520_p1 }
 0x136   : > { %6872 = dma.done.wait (%p8521_p10), [#allocation11], 64  }
 0x137   : > { %6874 = vsyncadd (%p8522_p2), [#allocation11], 4294967232  ;;  %p8523_p13 = pmov %p8520_p1 }
 0x138   : > { %p8524_p11 = pmov %p8520_p1 }
 0x139   : > { %6876 = dma.done.wait (%p8523_p13), [#allocation14], 16448  }
 0x13a   : > { %6878 = vsyncadd (%p8524_p11), [#allocation14], 4294950848  ;;  %p8525_p6 = pmov %p8520_p1 }
 0x13b   : > { %p8526_p0 = pmov %p8520_p1 }
 0x13c   : > { %6880 = dma.done.wait (%p8525_p6), [#allocation17], 128  }
 0x13d   : > { %6882 = vsyncadd (%p8526_p0), [#allocation17], 4294967168  ;;  %p8527_p4 = pmov %p8526_p0 }
 0x13e   : > { %p8528_p8 = pmov %p8526_p0 }
 0x13f   : > { %6884 = dma.done.wait (%p8527_p4), [#allocation20], 131072  }
 0x140   : > { %6886 = vsyncadd (%p8528_p8), [#allocation20], 4294836224  ;;  %p8529_p3 = pmov %p8526_p0 }
 0x141   : > { %p8530_p12 = pmov %p8526_p0 }
 0x142   : > { %6888 = dma.done.wait (%p8529_p3), [#allocation23], 256  }
 0x143   : > { %6890 = vsyncadd (%p8530_p12), [#allocation23], 4294967040  ;;  %p8531_p5 = pmov %p8526_p0 }
 0x144   : > { %p8532_p7 = pmov %p8526_p0 }
 0x145   : > { %6892 = dma.done.wait (%p8531_p5), [#allocation26], 128  }
 0x146   : > { %6894 = vsyncadd (%p8532_p7), [#allocation26], 4294967168  ;;  %s788_s27 = sand.u32 1, %s7067_s2   ;;  %s790_s26 = sand.u32 1, %s6905_s30  }
 0x147   : > { %s6106_s28 = smul.u32 5120, %s790_s26  ;;  %s789_s22 = scalar_lea.sflag [#allocation3], %s788_s27 }
 0x148   : > { %p8533_p9 = scmp.ne.s32.totalorder %s8500_s1, 0 }
 0x149   : > { %s7349_s19 = scalar_lea.vmem [#allocation27], %s6106_s28 }
 0x14a   : > { %6896 = dma.done.wait (%p8533_p9), %s789_s22, 82000  }
 0x14b   : > { %6898 = vsyncadd (%p8533_p9), %s789_s22, 4294885296  ;;  %v6944_v0 = vmov 0.0   ;;  %vm6945_vm0 = vmmov 0   ;;  %v885_v1 = vld [vmem:[#allocation4 + $0x78] sm:$0xff]  ;;  %v884_v2 = vld [vmem:[#allocation4 + $0x70] sm:$0xff]  ;;  %s8534_s4 = sld [smem:[#allocation40_spill]] }
 0x14c   : > { %6069 = vmatprep.subr.mxu0 %v6944_v0  ;;  %6101 = vmatprep.mubr.msk.f32.mxu0 %vm6945_vm0, %v6944_v0  ;;  %v883_v3 = vld [vmem:[#allocation4 + $0x68] sm:$0xff]  ;;  %v882_v4 = vld [vmem:[#allocation4 + $0x60] sm:$0xff]  ;;  %v881_v5 = vld [vmem:[#allocation4 + $0x58] sm:$0xff]  ;;  %s6107_s3 = smul.u32 5, %s790_s26  ;;  %s8535_s6 = sld [smem:[#allocation52_spill]] }
 0x14d   : > { %1074 = vmatprep.mubr.f32.mxu1 %v6944_v0  ;;  %6070 = vmatpush3.msra.mxu0 %v885_v1  ;;  %v997_v6 = vld [vmem:[#allocation7 + $0xf8] sm:$0xff]  ;;  %v996_v7 = vld [vmem:[#allocation7 + $0xf0] sm:$0xff]  ;;  %v995_v8 = vld [vmem:[#allocation7 + $0xe8] sm:$0xff]  ;;  %s863_s0 = smul.u32 5, %s7067_s2 }
 0x14e   : > { %6071 = vmatprep.subr.mxu0 %v6944_v0  ;;  %1010 = vmatprep.subr.mxu1 %v997_v6  ;;  %v994_v9 = vld [vmem:[#allocation7 + $0xe0] sm:$0xff]  ;;  %v993_v10 = vld [vmem:[#allocation7 + $0xd8] sm:$0xff]  ;;  %v880_v11 = vld [vmem:[#allocation4 + $0x50] sm:$0xff]  ;;  %s801_s12 = scalar_lea.vmem [#allocation28], %s6107_s3 }
 0x14f   : > { %6072 = vmatpush3.msra.mxu0 %v884_v2  ;;  %1011 = vmatpush1.msra.mxu1 %v996_v7  ;;  %v992_v12 = vld [vmem:[#allocation7 + $0xd0] sm:$0xff]  ;;  %v991_v13 = vld [vmem:[#allocation7 + $0xc8] sm:$0xff]  ;;  %v990_v15 = vld [vmem:[#allocation7 + $0xc0] sm:$0xff]  ;;  %p864_p1 = scmp.lt.s32.totalorder %s863_s0, 14 }
 0x150   : > { %6073 = vmatprep.subr.mxu0 %v6944_v0  ;;  %1012 = vmatprep.subr.mxu1 %v995_v8  ;;  %v879_v14 = vld [vmem:[#allocation4 + $0x48] sm:$0xff]  ;;  %v989_v16 = vld [vmem:[#allocation7 + $0xb8] sm:$0xff]  ;;  %v988_v18 = vld [vmem:[#allocation7 + $0xb0] sm:$0xff] }
 0x151   : > { %6074 = vmatpush3.msra.mxu0 %v883_v3  ;;  %1013 = vmatpush1.msra.mxu1 %v994_v9  ;;  %v878_v17 = vld [vmem:[#allocation4 + $0x40] sm:$0xff]  ;;  %v987_v19 = vld [vmem:[#allocation7 + $0xa8] sm:$0xff]  ;;  %v877_v20 = vld [vmem:[#allocation4 + $0x38] sm:$0xff]  ;;  %s8541_s0 = smov (!%p864_p1, %s863_s0), 14 }
 0x152   : > { %6075 = vmatprep.subr.mxu0 %v6944_v0  ;;  %1014 = vmatprep.subr.mxu1 %v993_v10  ;;  %v986_v21 = vld [vmem:[#allocation7 + $0xa0] sm:$0xff]  ;;  %v985_v22 = vld [vmem:[#allocation7 + $0x98] sm:$0xff]  ;;  %v876_v23 = vld [vmem:[#allocation4 + $0x30] sm:$0xff]  ;;  %s5906_s24 = sshll.u32 %s8541_s0, 3 }
 0x153   : > { %6076 = vmatpush3.msra.mxu0 %v882_v4  ;;  %1015 = vmatpush1.msra.mxu1 %v992_v12  ;;  %v984_v24 = vld [vmem:[#allocation7 + $0x90] sm:$0xff]  ;;  %v983_v25 = vld [vmem:[#allocation7 + $0x88] sm:$0xff]  ;;  %v982_v27 = vld [vmem:[#allocation7 + $0x80] sm:$0xff]  ;;  %s8416_s8 = scalar_lea.vmem %s8535_s6, %s5906_s24 }
 0x154   : > { %6077 = vmatprep.subr.mxu0 %v6944_v0  ;;  %1016 = vmatprep.subr.mxu1 %v991_v13  ;;  %v875_v26 = vld [vmem:[#allocation4 + $0x28] sm:$0xff]  ;;  %v981_v28 = vld [vmem:[#allocation7 + $0x78] sm:$0xff]  ;;  %v980_v30 = vld [vmem:[#allocation7 + $0x70] sm:$0xff] }
 0x155   : > { %6078 = vmatpush3.msra.mxu0 %v881_v5  ;;  %1017 = vmatpush1.msra.mxu1 %v990_v15  ;;  %v874_v29 = vld [vmem:[#allocation4 + $0x20] sm:$0xff]  ;;  %v979_v31 = vld [vmem:[#allocation7 + $0x68] sm:$0xff]  ;;  %v873_v32 = vld [vmem:[#allocation4 + $0x18] sm:$0xff] }
 0x156   : > { %6079 = vmatprep.subr.mxu0 %v6944_v0  ;;  %1018 = vmatprep.subr.mxu1 %v989_v16  ;;  %v978_v33 = vld [vmem:[#allocation7 + $0x60] sm:$0xff]  ;;  %v977_v34 = vld [vmem:[#allocation7 + $0x58] sm:$0xff]  ;;  %v872_v35 = vld [vmem:[#allocation4 + $0x10] sm:$0xff] }
 0x157   : > { %6080 = vmatpush3.msra.mxu0 %v880_v11  ;;  %1019 = vmatpush1.msra.mxu1 %v988_v18  ;;  %v976_v36 = vld [vmem:[#allocation7 + $0x50] sm:$0xff]  ;;  %v975_v37 = vld [vmem:[#allocation7 + $0x48] sm:$0xff]  ;;  %v974_v39 = vld [vmem:[#allocation7 + $0x40] sm:$0xff] }
 0x158   : > { %6081 = vmatprep.subr.mxu0 %v6944_v0  ;;  %1020 = vmatprep.subr.mxu1 %v987_v19  ;;  %v871_v38 = vld [vmem:[#allocation4 + $0x8] sm:$0xff]  ;;  %v973_v40 = vld [vmem:[#allocation7 + $0x38] sm:$0xff]  ;;  %v972_v42 = vld [vmem:[#allocation7 + $0x30] sm:$0xff] }
 0x159   : > { %6082 = vmatpush3.msra.mxu0 %v879_v14  ;;  %1021 = vmatpush1.msra.mxu1 %v986_v21  ;;  %v870_v41 = vld [vmem:[#allocation4] sm:$0xff]  ;;  %v971_v44 = vld [vmem:[#allocation7 + $0x28] sm:$0xff]  ;;  %v968_v47 = vld [vmem:[#allocation7 + $0x10] sm:$0xff] }
 0x15a   : > { %6083 = vmatprep.subr.mxu0 %v6944_v0  ;;  %1022 = vmatprep.subr.mxu1 %v985_v22  ;;  %v869_v43 = vld [vmem:[%s8534_s4] sm:$0xff]  ;;  %v967_v48 = vld [vmem:[#allocation7 + $0x8] sm:$0xff]  ;;  %v1219_v8 = vld [vmem:[#allocation13 + $0x1f0] sm:$0xff] }
 0x15b   : > { %6084 = vmatpush3.msra.mxu0 %v878_v17  ;;  %1023 = vmatpush1.msra.mxu1 %v984_v24  ;;  %v970_v45 = vld [vmem:[#allocation7 + $0x20] sm:$0xff]  ;;  %v969_v46 = vld [vmem:[#allocation7 + $0x18] sm:$0xff]  ;;  %v1218_v50 = vld [vmem:[#allocation13 + $0x1e8] sm:$0xff] }
 0x15c   : > { %6085 = vmatprep.subr.mxu0 %v6944_v0  ;;  %1024 = vmatprep.subr.mxu1 %v983_v25  ;;  %v966_v49 = vld [vmem:[#allocation7] sm:$0xff]  ;;  %v1214_v53 = vld [vmem:[#allocation13 + $0x1c8] sm:$0xff]  ;;  %v5907_v3 = vld [vmem:[#allocation6] ss:$0 sm:$0xff] }
 0x15d   : > { %6086 = vmatpush3.msra.mxu0 %v877_v20  ;;  %1025 = vmatpush1.msra.mxu1 %v982_v27  ;;  %v1220_v51 = vld [vmem:[#allocation13 + $0x1f8] sm:$0xff]  ;;  %v1217_v52 = vld [vmem:[#allocation13 + $0x1e0] sm:$0xff]  ;;  %v1210_v55 = vld [vmem:[#allocation13 + $0x1a8] sm:$0xff] }
 0x15e   : > { %6087 = vmatprep.subr.mxu0 %v6944_v0  ;;  %1026 = vmatprep.subr.mxu1 %v981_v28  ;;  %v1213_v54 = vld [vmem:[#allocation13 + $0x1c0] sm:$0xff]  ;;  %v1206_v57 = vld [vmem:[#allocation13 + $0x188] sm:$0xff]  ;;  %v1216_v10 = vld [vmem:[#allocation13 + $0x1d8] sm:$0xff] }
 0x15f   : > { %6088 = vmatpush3.msra.mxu0 %v876_v23  ;;  %1027 = vmatpush1.msra.mxu1 %v980_v30  ;;  %v1209_v56 = vld [vmem:[#allocation13 + $0x1a0] sm:$0xff]  ;;  %v1202_v59 = vld [vmem:[#allocation13 + $0x168] sm:$0xff]  ;;  %v1215_v11 = vld [vmem:[#allocation13 + $0x1d0] sm:$0xff] }
 0x160   : > { %6089 = vmatprep.subr.mxu0 %v6944_v0  ;;  %1028 = vmatprep.subr.mxu1 %v979_v31  ;;  %v1205_v58 = vld [vmem:[#allocation13 + $0x180] sm:$0xff]  ;;  %v1198_v61 = vld [vmem:[#allocation13 + $0x148] sm:$0xff]  ;;  %v1212_v12 = vld [vmem:[#allocation13 + $0x1b8] sm:$0xff] }
 0x161   : > { %6090 = vmatpush3.msra.mxu0 %v875_v26  ;;  %1029 = vmatpush1.msra.mxu1 %v978_v33  ;;  %v1201_v60 = vld [vmem:[#allocation13 + $0x160] sm:$0xff]  ;;  %v1194_v63 = vld [vmem:[#allocation13 + $0x128] sm:$0xff]  ;;  %v1211_v13 = vld [vmem:[#allocation13 + $0x1b0] sm:$0xff] }
 0x162   : > { %6091 = vmatprep.subr.mxu0 %v6944_v0  ;;  %1030 = vmatprep.subr.mxu1 %v977_v34  ;;  %v1197_v62 = vld [vmem:[#allocation13 + $0x140] sm:$0xff]  ;;  %v1190_v1 = vld [vmem:[#allocation13 + $0x108] sm:$0xff]  ;;  %v1208_v14 = vld [vmem:[#allocation13 + $0x198] sm:$0xff] }
 0x163   : > { %6092 = vmatpush3.msra.mxu0 %v874_v29  ;;  %1031 = vmatpush1.msra.mxu1 %v976_v36  ;;  %v1189_v2 = vld [vmem:[#allocation13 + $0x100] sm:$0xff]  ;;  %v1207_v15 = vld [vmem:[#allocation13 + $0x190] sm:$0xff]  ;;  %v1204_v16 = vld [vmem:[#allocation13 + $0x178] sm:$0xff] }
 0x164   : > { %6093 = vmatprep.subr.mxu0 %v6944_v0  ;;  %1032 = vmatprep.subr.mxu1 %v975_v37  ;;  %v1203_v17 = vld [vmem:[#allocation13 + $0x170] sm:$0xff]  ;;  %v1200_v18 = vld [vmem:[#allocation13 + $0x158] sm:$0xff]  ;;  %v1186_v24 = vld [vmem:[#allocation13 + $0xe8] sm:$0xff] }
 0x165   : > { %6094 = vmatpush3.msra.mxu0 %v873_v32  ;;  %1033 = vmatpush1.msra.mxu1 %v974_v39  ;;  %v1199_v19 = vld [vmem:[#allocation13 + $0x150] sm:$0xff]  ;;  %v1196_v20 = vld [vmem:[#allocation13 + $0x138] sm:$0xff]  ;;  %v1185_v26 = vld [vmem:[#allocation13 + $0xe0] sm:$0xff] }
 0x166   : > { %6095 = vmatprep.subr.mxu0 %v6944_v0  ;;  %1034 = vmatprep.subr.mxu1 %v973_v40  ;;  %v1195_v21 = vld [vmem:[#allocation13 + $0x130] sm:$0xff]  ;;  %v1192_v22 = vld [vmem:[#allocation13 + $0x118] sm:$0xff]  ;;  %v1182_v28 = vld [vmem:[#allocation13 + $0xc8] sm:$0xff] }
 0x167   : > { %6096 = vmatpush3.msra.mxu0 %v872_v35  ;;  %1035 = vmatpush1.msra.mxu1 %v972_v42  ;;  %v1191_v23 = vld [vmem:[#allocation13 + $0x110] sm:$0xff]  ;;  %v1188_v25 = vld [vmem:[#allocation13 + $0xf8] sm:$0xff]  ;;  %v1181_v30 = vld [vmem:[#allocation13 + $0xc0] sm:$0xff] }
 0x168   : > { %6097 = vmatprep.subr.mxu0 %v6944_v0  ;;  %1036 = vmatprep.subr.mxu1 %v971_v44  ;;  %v1187_v27 = vld [vmem:[#allocation13 + $0xf0] sm:$0xff]  ;;  %v1184_v29 = vld [vmem:[#allocation13 + $0xd8] sm:$0xff]  ;;  %v1178_v32 = vld [vmem:[#allocation13 + $0xa8] sm:$0xff] }
 0x169   : > { %6098 = vmatpush3.msra.mxu0 %v871_v38  ;;  %1037 = vmatpush1.msra.mxu1 %v970_v45  ;;  %v1183_v31 = vld [vmem:[#allocation13 + $0xd0] sm:$0xff]  ;;  %v1180_v33 = vld [vmem:[#allocation13 + $0xb8] sm:$0xff]  ;;  %v1177_v34 = vld [vmem:[#allocation13 + $0xa0] sm:$0xff] }
 0x16a   : > { %6099 = vmatprep.subr.mxu0 %v6944_v0  ;;  %1038 = vmatprep.subr.mxu1 %v969_v46  ;;  %v1193_v0 = vld [vmem:[#allocation13 + $0x120] sm:$0xff]  ;;  %v1179_v35 = vld [vmem:[#allocation13 + $0xb0] sm:$0xff]  ;;  %v1174_v36 = vld [vmem:[#allocation13 + $0x88] sm:$0xff] }
 0x16b   : > { %6100 = vmatpush3.msra.mxu0 %v870_v41  ;;  %1039 = vmatpush1.msra.mxu1 %v968_v47  ;;  %v1176_v37 = vld [vmem:[#allocation13 + $0x98] sm:$0xff]  ;;  %v1173_v38 = vld [vmem:[#allocation13 + $0x80] sm:$0xff]  ;;  %v1175_v39 = vld [vmem:[#allocation13 + $0x90] sm:$0xff] }
 0x16c   : > { %6102 = vmatmul.mubr.f32.vlgmr.msra.gmra.mxu0 %v869_v43  ;;  %1040 = vmatprep.subr.mxu1 %v967_v48  ;;  %v1170_v40 = vld [vmem:[#allocation13 + $0x68] sm:$0xff]  ;;  %v1172_v41 = vld [vmem:[#allocation13 + $0x78] sm:$0xff]  ;;  %v1169_v42 = vld [vmem:[#allocation13 + $0x60] sm:$0xff] }
 0x16d   : > { %1041 = vmatpush1.msra.mxu1 %v966_v49  ;;  %1307 = vmatprep.subr.mxu0 %v1218_v50  ;;  %v1171_v43 = vld [vmem:[#allocation13 + $0x70] sm:$0xff]  ;;  %v1166_v44 = vld [vmem:[#allocation13 + $0x48] sm:$0xff]  ;;  %v1168_v45 = vld [vmem:[#allocation13 + $0x58] sm:$0xff] }
 0x16e   : > { %1378 = vmatprep.subr.mxu1 %v1220_v51  ;;  %1308 = vmatpush1.msra.mxu0 %v1217_v52  ;;  %v1165_v46 = vld [vmem:[#allocation13 + $0x40] sm:$0xff]  ;;  %v1167_v47 = vld [vmem:[#allocation13 + $0x50] sm:$0xff]  ;;  %v1162_v48 = vld [vmem:[#allocation13 + $0x28] sm:$0xff] }
 0x16f   : > { %1309 = vmatprep.subr.mxu0 %v1214_v53  ;;  %v1164_v49 = vld [vmem:[#allocation13 + $0x38] sm:$0xff]  ;;  %v1161_v50 = vld [vmem:[#allocation13 + $0x20] sm:$0xff]  ;;  %v1163_v51 = vld [vmem:[#allocation13 + $0x30] sm:$0xff] }
 0x170   : > { %1310 = vmatpush1.msra.mxu0 %v1213_v54  ;;  %v1158_v52 = vld [vmem:[#allocation13 + $0x8] sm:$0xff]  ;;  %v1160_v53 = vld [vmem:[#allocation13 + $0x18] sm:$0xff]  ;;  %v1157_v54 = vld [vmem:[#allocation13] sm:$0xff] }
 0x171   : > { %1311 = vmatprep.subr.mxu0 %v1210_v55  ;;  %v1159_v55 = vld [vmem:[#allocation13 + $0x10] sm:$0xff] }
 0x172   : > { %1312 = vmatpush1.msra.mxu0 %v1209_v56  ;;  %v1282_v56 = vld [vmem:[#allocation13 + $0x3e8] sm:$0xff] }
 0x173   : > { %1313 = vmatprep.subr.mxu0 %v1206_v57  ;;  %v1284_v57 = vld [vmem:[#allocation13 + $0x3f8] sm:$0xff] }
 0x174   : > { %1314 = vmatpush1.msra.mxu0 %v1205_v58  ;;  %v1281_v58 = vld [vmem:[#allocation13 + $0x3e0] sm:$0xff] }
 0x175   : > { %1315 = vmatprep.subr.mxu0 %v1202_v59  ;;  %v1283_v59 = vld [vmem:[#allocation13 + $0x3f0] sm:$0xff] }
 0x176   : > { %1316 = vmatpush1.msra.mxu0 %v1201_v60  ;;  %v1278_v60 = vld [vmem:[#allocation13 + $0x3c8] sm:$0xff] }
 0x177   : > { %1317 = vmatprep.subr.mxu0 %v1198_v61  ;;  %v1280_v61 = vld [vmem:[#allocation13 + $0x3d8] sm:$0xff] }
 0x178   : > { %1318 = vmatpush1.msra.mxu0 %v1197_v62  ;;  %v1277_v62 = vld [vmem:[#allocation13 + $0x3c0] sm:$0xff] }
 0x179   : > { %1319 = vmatprep.subr.mxu0 %v1194_v63  ;;  %v1279_v63 = vld [vmem:[#allocation13 + $0x3d0] sm:$0xff] }
 0x17a   : > { %1320 = vmatpush1.msra.mxu0 %v1193_v0  ;;  %v1274_v0 = vld [vmem:[#allocation13 + $0x3a8] sm:$0xff] }
 0x17b   : > { %1321 = vmatprep.subr.mxu0 %v1190_v1  ;;  %v1276_v1 = vld [vmem:[#allocation13 + $0x3b8] sm:$0xff] }
 0x17c   : > { %1322 = vmatpush1.msra.mxu0 %v1189_v2  ;;  %v1273_v2 = vld [vmem:[#allocation13 + $0x3a0] sm:$0xff] }
 0x17d   : > { %1323 = vmatprep.subr.mxu0 %v1186_v24  ;;  %v1250_v24 = vld [vmem:[#allocation13 + $0x2e8] sm:$0xff] }
 0x17e   : > { %1324 = vmatpush1.msra.mxu0 %v1185_v26  ;;  %v1249_v26 = vld [vmem:[#allocation13 + $0x2e0] sm:$0xff] }
 0x17f   : > { %1325 = vmatprep.subr.mxu0 %v1182_v28  ;;  %v1246_v28 = vld [vmem:[#allocation13 + $0x2c8] sm:$0xff] }
 0x180   : > { %1326 = vmatpush1.msra.mxu0 %v1181_v30  ;;  %v1245_v30 = vld [vmem:[#allocation13 + $0x2c0] sm:$0xff] }
 0x181   : > { %1327 = vmatprep.subr.mxu0 %v1178_v32  ;;  %v1242_v32 = vld [vmem:[#allocation13 + $0x2a8] sm:$0xff] }
 0x182   : > { %1328 = vmatpush1.msra.mxu0 %v1177_v34  ;;  %v1241_v34 = vld [vmem:[#allocation13 + $0x2a0] sm:$0xff] }
 0x183   : > { %1329 = vmatprep.subr.mxu0 %v1174_v36  ;;  %v1238_v36 = vld [vmem:[#allocation13 + $0x288] sm:$0xff] }
 0x184   : > { %1330 = vmatpush1.msra.mxu0 %v1173_v38  ;;  %v1237_v38 = vld [vmem:[#allocation13 + $0x280] sm:$0xff] }
 0x185   : > { %1331 = vmatprep.subr.mxu0 %v1170_v40  ;;  %v1234_v40 = vld [vmem:[#allocation13 + $0x268] sm:$0xff] }
 0x186   : > { %1332 = vmatpush1.msra.mxu0 %v1169_v42  ;;  %v1233_v42 = vld [vmem:[#allocation13 + $0x260] sm:$0xff] }
 0x187   : > { %1333 = vmatprep.subr.mxu0 %v1166_v44  ;;  %v1230_v44 = vld [vmem:[#allocation13 + $0x248] sm:$0xff] }
 0x188   : > { %1334 = vmatpush1.msra.mxu0 %v1165_v46  ;;  %v1229_v46 = vld [vmem:[#allocation13 + $0x240] sm:$0xff] }
 0x189   : > { %1335 = vmatprep.subr.mxu0 %v1162_v48  ;;  %v1226_v48 = vld [vmem:[#allocation13 + $0x228] sm:$0xff] }
 0x18a   : > { %1336 = vmatpush1.msra.mxu0 %v1161_v50  ;;  %v1225_v50 = vld [vmem:[#allocation13 + $0x220] sm:$0xff] }
 0x18b   : > { %1337 = vmatprep.subr.mxu0 %v1158_v52  ;;  %v1222_v52 = vld [vmem:[#allocation13 + $0x208] sm:$0xff] }
 0x18c   : > { %1338 = vmatpush1.msra.mxu0 %v1157_v54  ;;  %v1221_v54 = vld [vmem:[#allocation13 + $0x200] sm:$0xff] }
 0x18d   : > { %1339 = vmatprep.subr.mxu0 %v1282_v56  ;;  %v2234_v56 = vld [vmem:[#allocation21 + $0x3c8] sm:$0xff] }
 0x18e   : > { %1340 = vmatpush2.msra.mxu0 %v1281_v58  ;;  %v1000_v58 = vlaneseq }
 0x18f   : > { %1341 = vmatprep.subr.mxu0 %v1278_v60 }
 0x190   : > { %1342 = vmatpush2.msra.mxu0 %v1277_v62 }
 0x191   : > { %1343 = vmatprep.subr.mxu0 %v1274_v0 }
 0x192   : > { %1344 = vmatpush2.msra.mxu0 %v1273_v2 }
 0x22c   : > { %v959_v4 = vpop.f32.mrf.mxu0 }
 0x22d   : > { %v960_v5 = vadd.f32 %v5907_v3, %v959_v4  ;;  %v1275_v3 = vld [vmem:[#allocation13 + $0x3b0] sm:$0xff]  ;;  %v1270_v4 = vld [vmem:[#allocation13 + $0x388] sm:$0xff] }
 0x22e   : > { %v6103_v6 = vpop.f32.mrf.mxu0  ;;  %1345 = vmatprep.subr.mxu0 %v1270_v4 }
 0x22f   : > { %v964_v7 = vmul.f32 0.2, %v960_v5  ;;  %vm963_vm1 = vcmp.gt.f32.partialorder %v960_v5, 0.0  ;;  %v1269_v6 = vld [vmem:[#allocation13 + $0x380] sm:$0xff] }
 0x230   : > { %1346 = vmatpush2.msra.mxu0 %v1269_v6 }
 0x231   : > { %v965_v9 = vsel %vm963_vm1, %v960_v5, %v964_v7  ;;  %v1272_v5 = vld [vmem:[#allocation13 + $0x398] sm:$0xff]  ;;  %v1271_v7 = vld [vmem:[#allocation13 + $0x390] sm:$0xff] }
 0x232   : > { %1075 = vmatmul.mubr.f32.vlgmr.msra.gmra.mxu1 %v965_v9  ;;  %v1268_v9 = vld [vmem:[#allocation13 + $0x378] sm:$0xff] }
 0x233   : > { %1379 = vmatpush1.msra.mxu1 %v1219_v8  ;;  %v1266_v8 = vld [vmem:[#allocation13 + $0x368] sm:$0xff] }
 0x234   : > { %1380 = vmatprep.subr.mxu1 %v1216_v10  ;;  %1347 = vmatprep.subr.mxu0 %v1266_v8  ;;  %v1265_v10 = vld [vmem:[#allocation13 + $0x360] sm:$0xff] }
 0x235   : > { %1381 = vmatpush1.msra.mxu1 %v1215_v11  ;;  %v1267_v11 = vld [vmem:[#allocation13 + $0x370] sm:$0xff]  ;;  %1348 = vmatpush2.msra.mxu0 %v1265_v10 }
 0x236   : > { %1382 = vmatprep.subr.mxu1 %v1212_v12  ;;  %v1262_v12 = vld [vmem:[#allocation13 + $0x348] sm:$0xff] }
 0x237   : > { %1383 = vmatpush1.msra.mxu1 %v1211_v13  ;;  %v1264_v13 = vld [vmem:[#allocation13 + $0x358] sm:$0xff]  ;;  %1349 = vmatprep.subr.mxu0 %v1262_v12 }
 0x238   : > { %1384 = vmatprep.subr.mxu1 %v1208_v14  ;;  %v1261_v14 = vld [vmem:[#allocation13 + $0x340] sm:$0xff] }
 0x239   : > { %1385 = vmatpush1.msra.mxu1 %v1207_v15  ;;  %v1263_v15 = vld [vmem:[#allocation13 + $0x350] sm:$0xff]  ;;  %1350 = vmatpush2.msra.mxu0 %v1261_v14 }
 0x23a   : > { %1386 = vmatprep.subr.mxu1 %v1204_v16  ;;  %v1258_v16 = vld [vmem:[#allocation13 + $0x328] sm:$0xff] }
 0x23b   : > { %1387 = vmatpush1.msra.mxu1 %v1203_v17  ;;  %v1260_v17 = vld [vmem:[#allocation13 + $0x338] sm:$0xff]  ;;  %1351 = vmatprep.subr.mxu0 %v1258_v16 }
 0x23c   : > { %1388 = vmatprep.subr.mxu1 %v1200_v18  ;;  %v1257_v18 = vld [vmem:[#allocation13 + $0x320] sm:$0xff] }
 0x23d   : > { %1389 = vmatpush1.msra.mxu1 %v1199_v19  ;;  %v1259_v19 = vld [vmem:[#allocation13 + $0x330] sm:$0xff]  ;;  %1352 = vmatpush2.msra.mxu0 %v1257_v18 }
 0x23e   : > { %1390 = vmatprep.subr.mxu1 %v1196_v20  ;;  %v1254_v20 = vld [vmem:[#allocation13 + $0x308] sm:$0xff] }
 0x23f   : > { %1391 = vmatpush1.msra.mxu1 %v1195_v21  ;;  %v1256_v21 = vld [vmem:[#allocation13 + $0x318] sm:$0xff]  ;;  %1353 = vmatprep.subr.mxu0 %v1254_v20 }
 0x240   : > { %1392 = vmatprep.subr.mxu1 %v1192_v22  ;;  %v1253_v22 = vld [vmem:[#allocation13 + $0x300] sm:$0xff] }
 0x241   : > { %1393 = vmatpush1.msra.mxu1 %v1191_v23  ;;  %v1255_v23 = vld [vmem:[#allocation13 + $0x310] sm:$0xff]  ;;  %1354 = vmatpush2.msra.mxu0 %v1253_v22 }
 0x242   : > { %1394 = vmatprep.subr.mxu1 %v1188_v25  ;;  %v1252_v25 = vld [vmem:[#allocation13 + $0x2f8] sm:$0xff]  ;;  %1355 = vmatprep.subr.mxu0 %v1250_v24 }
 0x243   : > { %1395 = vmatpush1.msra.mxu1 %v1187_v27  ;;  %v1251_v27 = vld [vmem:[#allocation13 + $0x2f0] sm:$0xff]  ;;  %1356 = vmatpush2.msra.mxu0 %v1249_v26 }
 0x244   : > { %1396 = vmatprep.subr.mxu1 %v1184_v29  ;;  %v1248_v29 = vld [vmem:[#allocation13 + $0x2d8] sm:$0xff]  ;;  %1357 = vmatprep.subr.mxu0 %v1246_v28 }
 0x245   : > { %1397 = vmatpush1.msra.mxu1 %v1183_v31  ;;  %v1247_v31 = vld [vmem:[#allocation13 + $0x2d0] sm:$0xff]  ;;  %1358 = vmatpush2.msra.mxu0 %v1245_v30 }
 0x246   : > { %1398 = vmatprep.subr.mxu1 %v1180_v33  ;;  %v1244_v33 = vld [vmem:[#allocation13 + $0x2b8] sm:$0xff]  ;;  %1359 = vmatprep.subr.mxu0 %v1242_v32 }
 0x247   : > { %1399 = vmatpush1.msra.mxu1 %v1179_v35  ;;  %v1243_v35 = vld [vmem:[#allocation13 + $0x2b0] sm:$0xff]  ;;  %1360 = vmatpush2.msra.mxu0 %v1241_v34 }
 0x248   : > { %1400 = vmatprep.subr.mxu1 %v1176_v37  ;;  %v1240_v37 = vld [vmem:[#allocation13 + $0x298] sm:$0xff]  ;;  %1361 = vmatprep.subr.mxu0 %v1238_v36 }
 0x249   : > { %1401 = vmatpush1.msra.mxu1 %v1175_v39  ;;  %v1239_v39 = vld [vmem:[#allocation13 + $0x290] sm:$0xff]  ;;  %1362 = vmatpush2.msra.mxu0 %v1237_v38 }
 0x24a   : > { %1402 = vmatprep.subr.mxu1 %v1172_v41  ;;  %v1236_v41 = vld [vmem:[#allocation13 + $0x278] sm:$0xff]  ;;  %1363 = vmatprep.subr.mxu0 %v1234_v40 }
 0x24b   : > { %1403 = vmatpush1.msra.mxu1 %v1171_v43  ;;  %v1235_v43 = vld [vmem:[#allocation13 + $0x270] sm:$0xff]  ;;  %1364 = vmatpush2.msra.mxu0 %v1233_v42  ;;  %v1082_v42 = vld [vmem:[#allocation12] sm:$0x3] }
 0x24c   : > { %1404 = vmatprep.subr.mxu1 %v1168_v45  ;;  %v1232_v45 = vld [vmem:[#allocation13 + $0x258] sm:$0xff]  ;;  %1365 = vmatprep.subr.mxu0 %v1230_v44 }
 0x24d   : > { %1405 = vmatpush1.msra.mxu1 %v1167_v47  ;;  %v1231_v47 = vld [vmem:[#allocation13 + $0x250] sm:$0xff]  ;;  %1366 = vmatpush2.msra.mxu0 %v1229_v46 }
 0x24e   : > { %1406 = vmatprep.subr.mxu1 %v1164_v49  ;;  %v1228_v49 = vld [vmem:[#allocation13 + $0x238] sm:$0xff]  ;;  %1367 = vmatprep.subr.mxu0 %v1226_v48 }
 0x24f   : > { %1407 = vmatpush1.msra.mxu1 %v1163_v51  ;;  %v1227_v51 = vld [vmem:[#allocation13 + $0x230] sm:$0xff]  ;;  %1368 = vmatpush2.msra.mxu0 %v1225_v50 }
 0x250   : > { %1408 = vmatprep.subr.mxu1 %v1160_v53  ;;  %v1224_v53 = vld [vmem:[#allocation13 + $0x218] sm:$0xff]  ;;  %1369 = vmatprep.subr.mxu0 %v1222_v52 }
 0x251   : > { %1409 = vmatpush1.msra.mxu1 %v1159_v55  ;;  %v1223_v55 = vld [vmem:[#allocation13 + $0x210] sm:$0xff]  ;;  %1370 = vmatpush2.msra.mxu0 %v1221_v54 }
 0x252   : > { %1410 = vmatprep.subr.mxu1 %v1284_v57  ;;  %v2490_v57 = vld [vmem:[#allocation21 + $0xbc8] sm:$0xff]  ;;  %2625 = vmatprep.subr.mxu0 %v2234_v56 }
 0x253   : > { %1411 = vmatpush2.msra.mxu1 %v1283_v59  ;;  %v7376_v59 = vshrl.u32 %v1000_v58, 7 }
 0x254   : > { %1412 = vmatprep.subr.mxu1 %v1280_v61  ;;  %v998_v61 = vld [vmem:[#allocation9] sm:$0x3] }
 0x255   : > { %1413 = vmatpush2.msra.mxu1 %v1279_v63  ;;  %v7379_v60 = vsub.s32 0, %v7376_v59  ;;  %v7382_v62 = vsub.s32 1, %v7376_v59 }
 0x256   : > { %1414 = vmatprep.subr.mxu1 %v1276_v1 }
 0x257   : > { %1415 = vmatpush2.msra.mxu1 %v1275_v3  ;;  %v1003_v63 = vrot.slane %v998_v61, %v7379_v60  ;;  %v1007_v0 = vrot.slane %v998_v61, %v7382_v62 }
 0x258   : > { %1416 = vmatprep.subr.mxu1 %v1272_v5 }
 0x259   : > { %1417 = vmatpush2.msra.mxu1 %v1271_v7 }
 0x25a   : > { %1418 = vmatprep.subr.mxu1 %v1268_v9 }
 0x25b   : > { %1419 = vmatpush2.msra.mxu1 %v1267_v11 }
 0x25c   : > { %1420 = vmatprep.subr.mxu1 %v1264_v13 }
 0x25d   : > { %1421 = vmatpush2.msra.mxu1 %v1263_v15 }
 0x25e   : > { %1422 = vmatprep.subr.mxu1 %v1260_v17 }
 0x25f   : > { %1423 = vmatpush2.msra.mxu1 %v1259_v19 }
 0x260   : > { %1424 = vmatprep.subr.mxu1 %v1256_v21 }
 0x261   : > { %1425 = vmatpush2.msra.mxu1 %v1255_v23 }
 0x262   : > { %1426 = vmatprep.subr.mxu1 %v1252_v25 }
 0x263   : > { %1427 = vmatpush2.msra.mxu1 %v1251_v27 }
 0x264   : > { %1428 = vmatprep.subr.mxu1 %v1248_v29 }
 0x265   : > { %1429 = vmatpush2.msra.mxu1 %v1247_v31 }
 0x266   : > { %1430 = vmatprep.subr.mxu1 %v1244_v33 }
 0x267   : > { %1431 = vmatpush2.msra.mxu1 %v1243_v35 }
 0x268   : > { %1432 = vmatprep.subr.mxu1 %v1240_v37 }
 0x269   : > { %1433 = vmatpush2.msra.mxu1 %v1239_v39 }
 0x26a   : > { %1434 = vmatprep.subr.mxu1 %v1236_v41  ;;  %v1081_v41 = vld [vmem:[#allocation10] sm:$0x3] }
 0x26b   : > { %1435 = vmatpush2.msra.mxu1 %v1235_v43  ;;  %v1129_v44 = vrot.slane %v1081_v41, %v7379_v60 }
 0x26c   : > { %1436 = vmatprep.subr.mxu1 %v1232_v45 }
 0x26d   : > { %1437 = vmatpush2.msra.mxu1 %v1231_v47  ;;  %v1142_v47 = vrot.slane %v1082_v42, %v7379_v60 }
 0x26e   : > { %1438 = vmatprep.subr.mxu1 %v1228_v49  ;;  %v1133_v49 = vrot.slane %v1081_v41, %v7382_v62  ;;  %v2409_v41 = vld [vmem:[#allocation21 + $0x940] sm:$0xff] }
 0x26f   : > { %1439 = vmatpush2.msra.mxu1 %v1227_v51 }
 0x270   : > { %1440 = vmatprep.subr.mxu1 %v1224_v53  ;;  %v1146_v53 = vrot.slane %v1082_v42, %v7382_v62  ;;  %v2146_v42 = vld [vmem:[#allocation21 + $0x108] sm:$0xff] }
 0x271   : > { %1441 = vmatpush2.msra.mxu1 %v1223_v55 }
 0x272   : > { %2696 = vmatprep.subr.mxu1 %v2490_v57 }
 0x2f2   : > { %v1076_v1 = vpop.f32.mrf.mxu1 }
 0x2f3   : > { %v1077_v2 = vadd.f32 %v1076_v1, %v1003_v63  ;;  %v2233_v63 = vld [vmem:[#allocation21 + $0x3c0] sm:$0xff] }
 0x2f4   : > { %v1078_v3 = vpop.f32.mrf.mxu1 }
 0x2f5   : > { %v1083_v4 = vrot.slane %v1077_v2, 4  ;;  %v1095_v5 = vmul.f32 %v1077_v2, %v1077_v2  ;;  %v1079_v6 = vadd.f32 %v1078_v3, %v1007_v0  ;;  %v2489_v0 = vld [vmem:[#allocation21 + $0xbc0] sm:$0xff]  ;;  %v2482_v3 = vld [vmem:[#allocation21 + $0xb88] sm:$0xff] }
 0x2f7   : > { %v1084_v7 = vadd.f32 %v1083_v4, %v1077_v2  ;;  %v1097_v8 = vrot.slane %v1095_v5, 4  ;;  %v1089_v9 = vrot.slane %v1079_v6, 4  ;;  %v1096_v10 = vmul.f32 %v1079_v6, %v1079_v6  ;;  %v2225_v4 = vld [vmem:[#allocation21 + $0x380] sm:$0xff] }
 0x2f9   : > { %v1085_v11 = vrot.slane %v1084_v7, 2  ;;  %v1098_v12 = vadd.f32 %v1097_v8, %v1095_v5  ;;  %v1090_v13 = vadd.f32 %v1089_v9, %v1079_v6  ;;  %v1103_v14 = vrot.slane %v1096_v10, 4  ;;  %v2481_v5 = vld [vmem:[#allocation21 + $0xb80] sm:$0xff] }
 0x2fa   : > { %v2217_v8 = vld [vmem:[#allocation21 + $0x340] sm:$0xff] }
 0x2fb   : > { %v1086_v15 = vadd.f32 %v1085_v11, %v1084_v7  ;;  %v1099_v16 = vrot.slane %v1098_v12, 2  ;;  %v1091_v17 = vrot.slane %v1090_v13, 2  ;;  %v1104_v18 = vadd.f32 %v1103_v14, %v1096_v10  ;;  %v2474_v7 = vld [vmem:[#allocation21 + $0xb48] sm:$0xff]  ;;  %v2473_v9 = vld [vmem:[#allocation21 + $0xb40] sm:$0xff] }
 0x2fc   : > { %v2210_v10 = vld [vmem:[#allocation21 + $0x308] sm:$0xff] }
 0x2fd   : > { %v1087_v19 = vrot.slane %v1086_v15, 1  ;;  %v1100_v20 = vadd.f32 %v1099_v16, %v1098_v12  ;;  %v1092_v21 = vadd.f32 %v1091_v17, %v1090_v13  ;;  %v1105_v22 = vrot.slane %v1104_v18, 2  ;;  %v2466_v11 = vld [vmem:[#allocation21 + $0xb08] sm:$0xff]  ;;  %v2209_v12 = vld [vmem:[#allocation21 + $0x300] sm:$0xff] }
 0x2fe   : > { %v2465_v13 = vld [vmem:[#allocation21 + $0xb00] sm:$0xff]  ;;  %v2202_v14 = vld [vmem:[#allocation21 + $0x2c8] sm:$0xff] }
 0x2ff   : > { %v1088_v23 = vadd.f32 %v1087_v19, %v1086_v15  ;;  %v1101_v24 = vrot.slane %v1100_v20, 1  ;;  %v1093_v25 = vrot.slane %v1092_v21, 1  ;;  %v1106_v26 = vadd.f32 %v1105_v22, %v1104_v18  ;;  %v2458_v15 = vld [vmem:[#allocation21 + $0xac8] sm:$0xff]  ;;  %v2201_v16 = vld [vmem:[#allocation21 + $0x2c0] sm:$0xff] }
 0x300   : > { %v2457_v17 = vld [vmem:[#allocation21 + $0xac0] sm:$0xff]  ;;  %v2194_v18 = vld [vmem:[#allocation21 + $0x288] sm:$0xff] }
 0x301   : > { %v1102_v27 = vadd.f32 %v1101_v24, %v1100_v20  ;;  %v1109_v28 = vmul.f32 0.125, %v1088_v23  ;;  %v1094_v29 = vadd.f32 %v1093_v25, %v1092_v21  ;;  %v1107_v30 = vrot.slane %v1106_v26, 1  ;;  %v2450_v19 = vld [vmem:[#allocation21 + $0xa88] sm:$0xff]  ;;  %v2193_v20 = vld [vmem:[#allocation21 + $0x280] sm:$0xff] }
 0x302   : > { %v2449_v21 = vld [vmem:[#allocation21 + $0xa80] sm:$0xff]  ;;  %v2186_v22 = vld [vmem:[#allocation21 + $0x248] sm:$0xff] }
 0x303   : > { %v1111_v31 = vmul.f32 0.125, %v1102_v27  ;;  %v1113_v32 = vmul.f32 %v1109_v28, %v1109_v28  ;;  %v1108_v33 = vadd.f32 %v1107_v30, %v1106_v26  ;;  %v1110_v34 = vmul.f32 0.125, %v1094_v29  ;;  %v2442_v23 = vld [vmem:[#allocation21 + $0xa48] sm:$0xff]  ;;  %v2185_v24 = vld [vmem:[#allocation21 + $0x240] sm:$0xff] }
 0x304   : > { %v1117_v43 = vsub.f32 %v1077_v2, %v1109_v28  ;;  %v2226_v2 = vld [vmem:[#allocation21 + $0x388] sm:$0xff]  ;;  %v2441_v25 = vld [vmem:[#allocation21 + $0xa40] sm:$0xff] }
 0x305   : > { %v1115_v35 = vsub.f32 %v1111_v31, %v1113_v32  ;;  %v1112_v36 = vmul.f32 0.125, %v1108_v33  ;;  %v1114_v37 = vmul.f32 %v1110_v34, %v1110_v34  ;;  %v1118_v48 = vsub.f32 %v1079_v6, %v1110_v34  ;;  %v2218_v6 = vld [vmem:[#allocation21 + $0x348] sm:$0xff]  ;;  %v2177_v28 = vld [vmem:[#allocation21 + $0x200] sm:$0xff] }
 0x306   : > { %v2178_v26 = vld [vmem:[#allocation21 + $0x208] sm:$0xff]  ;;  %v2433_v29 = vld [vmem:[#allocation21 + $0xa00] sm:$0xff] }
 0x307   : > { %v1119_v38 = vadd.f32 0.8, %v1115_v35  ;;  %v1116_v39 = vsub.f32 %v1112_v36, %v1114_v37  ;;  %v2434_v27 = vld [vmem:[#allocation21 + $0xa08] sm:$0xff]  ;;  %v2169_v32 = vld [vmem:[#allocation21 + $0x1c0] sm:$0xff] }
 0x308   : > { %v2170_v30 = vld [vmem:[#allocation21 + $0x1c8] sm:$0xff]  ;;  %v2425_v33 = vld [vmem:[#allocation21 + $0x9c0] sm:$0xff] }
 0x309   : > { %6326 = vrsqrt.f32 %v1119_v38  ;;  %v1120_v40 = vadd.f32 0.8, %v1116_v39  ;;  %v2426_v31 = vld [vmem:[#allocation21 + $0x9c8] sm:$0xff]  ;;  %v2161_v36 = vld [vmem:[#allocation21 + $0x180] sm:$0xff] }
 0x30a   : > { %v2162_v34 = vld [vmem:[#allocation21 + $0x188] sm:$0xff]  ;;  %v2417_v37 = vld [vmem:[#allocation21 + $0x980] sm:$0xff] }
 0x30b   : > { %6328 = vrsqrt.f32 %v1120_v40  ;;  %v2418_v35 = vld [vmem:[#allocation21 + $0x988] sm:$0xff]  ;;  %v2153_v40 = vld [vmem:[#allocation21 + $0x140] sm:$0xff] }
 0x30c   : > { %v2154_v38 = vld [vmem:[#allocation21 + $0x148] sm:$0xff] }
 0x30d   : > { %v2410_v39 = vld [vmem:[#allocation21 + $0x948] sm:$0xff] }
 0x316   : > { %v6327_v45 = vpop.eup %6326 }
 0x317   : > { %v1123_v46 = vmul.f32 %v6327_v45, %v1117_v43  ;;  %v2402_v43 = vld [vmem:[#allocation21 + $0x908] sm:$0xff]  ;;  %v2401_v45 = vld [vmem:[#allocation21 + $0x900] sm:$0xff] }
 0x318   : > { %v6329_v50 = vpop.eup %6328 }
 0x319   : > { %v1136_v51 = vmul.f32 %v1129_v44, %v1123_v46  ;;  %v1124_v52 = vmul.f32 %v6329_v50, %v1118_v48  ;;  %v2145_v44 = vld [vmem:[#allocation21 + $0x100] sm:$0xff]  ;;  %v2138_v46 = vld [vmem:[#allocation21 + $0xc8] sm:$0xff] }
 0x31a   : > { %v2137_v48 = vld [vmem:[#allocation21 + $0xc0] sm:$0xff]  ;;  %v2130_v50 = vld [vmem:[#allocation21 + $0x88] sm:$0xff] }
 0x31b   : > { %v1149_v54 = vadd.f32 %v1142_v47, %v1136_v51  ;;  %v1137_v55 = vmul.f32 %v1133_v49, %v1124_v52  ;;  %v2394_v47 = vld [vmem:[#allocation21 + $0x8c8] sm:$0xff]  ;;  %v2393_v49 = vld [vmem:[#allocation21 + $0x8c0] sm:$0xff] }
 0x31c   : > { %v2386_v51 = vld [vmem:[#allocation21 + $0x888] sm:$0xff]  ;;  %v2129_v52 = vld [vmem:[#allocation21 + $0x80] sm:$0xff] }
 0x31d   : > { %v1150_v56 = vadd.f32 %v1146_v53, %v1137_v55  ;;  %v1153_v57 = vmul.f32 0.2, %v1149_v54  ;;  %vm1151_vm3 = vcmp.gt.f32.partialorder %v1149_v54, 0.0  ;;  %v2385_v53 = vld [vmem:[#allocation21 + $0x880] sm:$0xff]  ;;  %v2378_v55 = vld [vmem:[#allocation21 + $0x848] sm:$0xff] }
 0x31f   : > { %vm1152_vm2 = vcmp.gt.f32.partialorder %v1150_v56, 0.0  ;;  %v1154_v58 = vmul.f32 0.2, %v1150_v56  ;;  %v1155_v1 = vsel %vm1151_vm3, %v1149_v54, %v1153_v57  ;;  %v2122_v54 = vld [vmem:[#allocation21 + $0x48] sm:$0xff]  ;;  %v2377_v57 = vld [vmem:[#allocation21 + $0x840] sm:$0xff] }
 0x321   : > { %v1156_v61 = vsel %vm1152_vm2, %v1150_v56, %v1154_v58  ;;  %v2121_v56 = vld [vmem:[#allocation21 + $0x40] sm:$0xff]  ;;  %v2114_v58 = vld [vmem:[#allocation21 + $0x8] sm:$0xff] }
 0x322   : > { %1371 = vmatprep.mubr.f32.mxu0 %v1156_v61  ;;  %1442 = vmatprep.mubr.f32.mxu1 %v1156_v61  ;;  %v2370_v61 = vld [vmem:[#allocation21 + $0x808] sm:$0xff] }
 0x323   : > { %1372 = vmatmul.mubr.f32.vlgmr.msra.gmra.mxu0 %v1155_v1  ;;  %1443 = vmatmul.mubr.f32.vlgmr.msra.gmra.mxu1 %v1155_v1  ;;  %v2362_v1 = vld [vmem:[#allocation21 + $0x7c8] sm:$0xff] }
 0x324   : > { %2626 = vmatpush1.msra.mxu0 %v2233_v63  ;;  %2697 = vmatpush1.msra.mxu1 %v2489_v0  ;;  %v2113_v63 = vld [vmem:[#allocation21] sm:$0xff] }
 0x325   : > { %2627 = vmatprep.subr.mxu0 %v2226_v2  ;;  %2698 = vmatprep.subr.mxu1 %v2482_v3  ;;  %v2369_v0 = vld [vmem:[#allocation21 + $0x800] sm:$0xff]  ;;  %v2618_v2 = vld [vmem:[#allocation21 + $0xfc8] sm:$0xff] }
 0x326   : > { %2628 = vmatpush1.msra.mxu0 %v2225_v4  ;;  %2699 = vmatpush1.msra.mxu1 %v2481_v5  ;;  %v2361_v3 = vld [vmem:[#allocation21 + $0x7c0] sm:$0xff]  ;;  %v2354_v5 = vld [vmem:[#allocation21 + $0x788] sm:$0xff] }
 0x327   : > { %2629 = vmatprep.subr.mxu0 %v2218_v6  ;;  %2700 = vmatprep.subr.mxu1 %v2474_v7  ;;  %v2617_v4 = vld [vmem:[#allocation21 + $0xfc0] sm:$0xff]  ;;  %v2610_v6 = vld [vmem:[#allocation21 + $0xf88] sm:$0xff] }
 0x328   : > { %2630 = vmatpush1.msra.mxu0 %v2217_v8  ;;  %2701 = vmatpush1.msra.mxu1 %v2473_v9  ;;  %v2353_v7 = vld [vmem:[#allocation21 + $0x780] sm:$0xff]  ;;  %v2346_v9 = vld [vmem:[#allocation21 + $0x748] sm:$0xff] }
 0x329   : > { %2631 = vmatprep.subr.mxu0 %v2210_v10  ;;  %2702 = vmatprep.subr.mxu1 %v2466_v11  ;;  %v2609_v8 = vld [vmem:[#allocation21 + $0xf80] sm:$0xff]  ;;  %v2602_v10 = vld [vmem:[#allocation21 + $0xf48] sm:$0xff] }
 0x32a   : > { %2632 = vmatpush1.msra.mxu0 %v2209_v12  ;;  %2703 = vmatpush1.msra.mxu1 %v2465_v13  ;;  %v2345_v11 = vld [vmem:[#allocation21 + $0x740] sm:$0xff]  ;;  %v2338_v13 = vld [vmem:[#allocation21 + $0x708] sm:$0xff] }
 0x32b   : > { %2633 = vmatprep.subr.mxu0 %v2202_v14  ;;  %2704 = vmatprep.subr.mxu1 %v2458_v15  ;;  %v2601_v12 = vld [vmem:[#allocation21 + $0xf40] sm:$0xff]  ;;  %v2594_v14 = vld [vmem:[#allocation21 + $0xf08] sm:$0xff] }
 0x32c   : > { %2634 = vmatpush1.msra.mxu0 %v2201_v16  ;;  %2705 = vmatpush1.msra.mxu1 %v2457_v17  ;;  %v2337_v15 = vld [vmem:[#allocation21 + $0x700] sm:$0xff]  ;;  %v2330_v17 = vld [vmem:[#allocation21 + $0x6c8] sm:$0xff] }
 0x32d   : > { %2635 = vmatprep.subr.mxu0 %v2194_v18  ;;  %2706 = vmatprep.subr.mxu1 %v2450_v19  ;;  %v2593_v16 = vld [vmem:[#allocation21 + $0xf00] sm:$0xff]  ;;  %v2586_v18 = vld [vmem:[#allocation21 + $0xec8] sm:$0xff] }
 0x32e   : > { %2636 = vmatpush1.msra.mxu0 %v2193_v20  ;;  %2707 = vmatpush1.msra.mxu1 %v2449_v21  ;;  %v2329_v19 = vld [vmem:[#allocation21 + $0x6c0] sm:$0xff]  ;;  %v2322_v21 = vld [vmem:[#allocation21 + $0x688] sm:$0xff] }
 0x32f   : > { %2637 = vmatprep.subr.mxu0 %v2186_v22  ;;  %2708 = vmatprep.subr.mxu1 %v2442_v23  ;;  %v2585_v20 = vld [vmem:[#allocation21 + $0xec0] sm:$0xff]  ;;  %v2578_v22 = vld [vmem:[#allocation21 + $0xe88] sm:$0xff] }
 0x330   : > { %2638 = vmatpush1.msra.mxu0 %v2185_v24  ;;  %2709 = vmatpush1.msra.mxu1 %v2441_v25  ;;  %v2321_v23 = vld [vmem:[#allocation21 + $0x680] sm:$0xff]  ;;  %v2314_v25 = vld [vmem:[#allocation21 + $0x648] sm:$0xff] }
 0x331   : > { %2639 = vmatprep.subr.mxu0 %v2178_v26  ;;  %2710 = vmatprep.subr.mxu1 %v2434_v27  ;;  %v2577_v24 = vld [vmem:[#allocation21 + $0xe80] sm:$0xff]  ;;  %v2570_v26 = vld [vmem:[#allocation21 + $0xe48] sm:$0xff] }
 0x332   : > { %2640 = vmatpush1.msra.mxu0 %v2177_v28  ;;  %2711 = vmatpush1.msra.mxu1 %v2433_v29  ;;  %v2313_v27 = vld [vmem:[#allocation21 + $0x640] sm:$0xff]  ;;  %v2306_v29 = vld [vmem:[#allocation21 + $0x608] sm:$0xff] }
 0x333   : > { %2641 = vmatprep.subr.mxu0 %v2170_v30  ;;  %2712 = vmatprep.subr.mxu1 %v2426_v31  ;;  %v2569_v28 = vld [vmem:[#allocation21 + $0xe40] sm:$0xff]  ;;  %v2562_v30 = vld [vmem:[#allocation21 + $0xe08] sm:$0xff] }
 0x334   : > { %2642 = vmatpush1.msra.mxu0 %v2169_v32  ;;  %2713 = vmatpush1.msra.mxu1 %v2425_v33  ;;  %v2305_v31 = vld [vmem:[#allocation21 + $0x600] sm:$0xff]  ;;  %v2298_v33 = vld [vmem:[#allocation21 + $0x5c8] sm:$0xff] }
 0x335   : > { %2643 = vmatprep.subr.mxu0 %v2162_v34  ;;  %2714 = vmatprep.subr.mxu1 %v2418_v35  ;;  %v2561_v32 = vld [vmem:[#allocation21 + $0xe00] sm:$0xff]  ;;  %v2554_v34 = vld [vmem:[#allocation21 + $0xdc8] sm:$0xff] }
 0x336   : > { %2644 = vmatpush1.msra.mxu0 %v2161_v36  ;;  %2715 = vmatpush1.msra.mxu1 %v2417_v37  ;;  %v2297_v35 = vld [vmem:[#allocation21 + $0x5c0] sm:$0xff]  ;;  %v2290_v37 = vld [vmem:[#allocation21 + $0x588] sm:$0xff] }
 0x337   : > { %2645 = vmatprep.subr.mxu0 %v2154_v38  ;;  %2716 = vmatprep.subr.mxu1 %v2410_v39  ;;  %v2553_v36 = vld [vmem:[#allocation21 + $0xdc0] sm:$0xff]  ;;  %v2546_v38 = vld [vmem:[#allocation21 + $0xd88] sm:$0xff] }
 0x338   : > { %2646 = vmatpush1.msra.mxu0 %v2153_v40  ;;  %2717 = vmatpush1.msra.mxu1 %v2409_v41  ;;  %v2289_v39 = vld [vmem:[#allocation21 + $0x580] sm:$0xff]  ;;  %v2282_v41 = vld [vmem:[#allocation21 + $0x548] sm:$0xff] }
 0x339   : > { %2647 = vmatprep.subr.mxu0 %v2146_v42  ;;  %2718 = vmatprep.subr.mxu1 %v2402_v43  ;;  %v2545_v40 = vld [vmem:[#allocation21 + $0xd80] sm:$0xff]  ;;  %v2538_v42 = vld [vmem:[#allocation21 + $0xd48] sm:$0xff] }
 0x33a   : > { %2648 = vmatpush1.msra.mxu0 %v2145_v44  ;;  %2719 = vmatpush1.msra.mxu1 %v2401_v45  ;;  %v2281_v43 = vld [vmem:[#allocation21 + $0x540] sm:$0xff]  ;;  %v2274_v45 = vld [vmem:[#allocation21 + $0x508] sm:$0xff] }
 0x33b   : > { %2649 = vmatprep.subr.mxu0 %v2138_v46  ;;  %2720 = vmatprep.subr.mxu1 %v2394_v47  ;;  %v2537_v44 = vld [vmem:[#allocation21 + $0xd40] sm:$0xff]  ;;  %v2530_v46 = vld [vmem:[#allocation21 + $0xd08] sm:$0xff] }
 0x33c   : > { %2650 = vmatpush1.msra.mxu0 %v2137_v48  ;;  %2721 = vmatpush1.msra.mxu1 %v2393_v49  ;;  %v2273_v47 = vld [vmem:[#allocation21 + $0x500] sm:$0xff]  ;;  %v2266_v49 = vld [vmem:[#allocation21 + $0x4c8] sm:$0xff] }
 0x33d   : > { %2651 = vmatprep.subr.mxu0 %v2130_v50  ;;  %2722 = vmatprep.subr.mxu1 %v2386_v51  ;;  %v2529_v48 = vld [vmem:[#allocation21 + $0xd00] sm:$0xff]  ;;  %v2522_v50 = vld [vmem:[#allocation21 + $0xcc8] sm:$0xff] }
 0x33e   : > { %2652 = vmatpush1.msra.mxu0 %v2129_v52  ;;  %2723 = vmatpush1.msra.mxu1 %v2385_v53  ;;  %v2265_v51 = vld [vmem:[#allocation21 + $0x4c0] sm:$0xff]  ;;  %v2258_v53 = vld [vmem:[#allocation21 + $0x488] sm:$0xff] }
 0x33f   : > { %2653 = vmatprep.subr.mxu0 %v2122_v54  ;;  %2724 = vmatprep.subr.mxu1 %v2378_v55  ;;  %v2521_v52 = vld [vmem:[#allocation21 + $0xcc0] sm:$0xff]  ;;  %v2514_v54 = vld [vmem:[#allocation21 + $0xc88] sm:$0xff] }
 0x340   : > { %2654 = vmatpush1.msra.mxu0 %v2121_v56  ;;  %2725 = vmatpush1.msra.mxu1 %v2377_v57  ;;  %v2257_v55 = vld [vmem:[#allocation21 + $0x480] sm:$0xff]  ;;  %v2250_v57 = vld [vmem:[#allocation21 + $0x448] sm:$0xff] }
 0x341   : > { %2655 = vmatprep.subr.mxu0 %v2114_v58  ;;  %2726 = vmatprep.subr.mxu1 %v2370_v61  ;;  %v2513_v56 = vld [vmem:[#allocation21 + $0xc80] sm:$0xff]  ;;  %v2506_v58 = vld [vmem:[#allocation21 + $0xc48] sm:$0xff] }
 0x342   : > { %2656 = vmatpush1.msra.mxu0 %v2113_v63  ;;  %2727 = vmatpush1.msra.mxu1 %v2369_v0  ;;  %v2249_v61 = vld [vmem:[#allocation21 + $0x440] sm:$0xff]  ;;  %v2242_v0 = vld [vmem:[#allocation21 + $0x408] sm:$0xff] }
 0x343   : > { %2657 = vmatprep.subr.mxu0 %v2362_v1  ;;  %2728 = vmatprep.subr.mxu1 %v2618_v2  ;;  %v2505_v63 = vld [vmem:[#allocation21 + $0xc40] sm:$0xff]  ;;  %v2498_v1 = vld [vmem:[#allocation21 + $0xc08] sm:$0xff] }
 0x344   : > { %2658 = vmatpush2.msra.mxu0 %v2361_v3  ;;  %2729 = vmatpush2.msra.mxu1 %v2617_v4  ;;  %v2241_v2 = vld [vmem:[#allocation21 + $0x400] sm:$0xff]  ;;  %v7390_v3 = vld [vmem:[#allocation2 + $0x8] sm:$0xff] }
 0x345   : > { %2659 = vmatprep.subr.mxu0 %v2354_v5  ;;  %2730 = vmatprep.subr.mxu1 %v2610_v6  ;;  %v2497_v4 = vld [vmem:[#allocation21 + $0xc00] sm:$0xff]  ;;  %v7394_v6 = vld [vmem:[#allocation2] sm:$0xff] }
 0x346   : > { %2660 = vmatpush2.msra.mxu0 %v2353_v7  ;;  %2731 = vmatpush2.msra.mxu1 %v2609_v8  ;;  %v7392_v5 = vld [vmem:[#allocation2 + $0x18] sm:$0xff]  ;;  %v7396_v7 = vld [vmem:[#allocation2 + $0x10] sm:$0xff] }
 0x347   : > { %2661 = vmatprep.subr.mxu0 %v2346_v9  ;;  %2732 = vmatprep.subr.mxu1 %v2602_v10  ;;  %v2236_v8 = vld [vmem:[#allocation21 + $0x3d8] sm:$0xff]  ;;  %v2235_v10 = vld [vmem:[#allocation21 + $0x3d0] sm:$0xff] }
 0x348   : > { %2662 = vmatpush2.msra.mxu0 %v2345_v11  ;;  %2733 = vmatpush2.msra.mxu1 %v2601_v12  ;;  %v2492_v9 = vld [vmem:[#allocation21 + $0xbd8] sm:$0xff]  ;;  %v2491_v11 = vld [vmem:[#allocation21 + $0xbd0] sm:$0xff] }
 0x349   : > { %2663 = vmatprep.subr.mxu0 %v2338_v13  ;;  %2734 = vmatprep.subr.mxu1 %v2594_v14  ;;  %v2228_v12 = vld [vmem:[#allocation21 + $0x398] sm:$0xff]  ;;  %v2227_v14 = vld [vmem:[#allocation21 + $0x390] sm:$0xff] }
 0x34a   : > { %2664 = vmatpush2.msra.mxu0 %v2337_v15  ;;  %2735 = vmatpush2.msra.mxu1 %v2593_v16  ;;  %v2484_v13 = vld [vmem:[#allocation21 + $0xb98] sm:$0xff]  ;;  %v2483_v15 = vld [vmem:[#allocation21 + $0xb90] sm:$0xff] }
 0x34b   : > { %2665 = vmatprep.subr.mxu0 %v2330_v17  ;;  %2736 = vmatprep.subr.mxu1 %v2586_v18  ;;  %v2220_v16 = vld [vmem:[#allocation21 + $0x358] sm:$0xff]  ;;  %v2219_v18 = vld [vmem:[#allocation21 + $0x350] sm:$0xff] }
 0x34c   : > { %2666 = vmatpush2.msra.mxu0 %v2329_v19  ;;  %2737 = vmatpush2.msra.mxu1 %v2585_v20  ;;  %v2476_v17 = vld [vmem:[#allocation21 + $0xb58] sm:$0xff]  ;;  %v2475_v19 = vld [vmem:[#allocation21 + $0xb50] sm:$0xff] }
 0x34d   : > { %2667 = vmatprep.subr.mxu0 %v2322_v21  ;;  %2738 = vmatprep.subr.mxu1 %v2578_v22  ;;  %v2212_v20 = vld [vmem:[#allocation21 + $0x318] sm:$0xff]  ;;  %v2211_v22 = vld [vmem:[#allocation21 + $0x310] sm:$0xff] }
 0x34e   : > { %2668 = vmatpush2.msra.mxu0 %v2321_v23  ;;  %2739 = vmatpush2.msra.mxu1 %v2577_v24  ;;  %v2468_v21 = vld [vmem:[#allocation21 + $0xb18] sm:$0xff]  ;;  %v2467_v23 = vld [vmem:[#allocation21 + $0xb10] sm:$0xff] }
 0x34f   : > { %2669 = vmatprep.subr.mxu0 %v2314_v25  ;;  %2740 = vmatprep.subr.mxu1 %v2570_v26  ;;  %v2204_v24 = vld [vmem:[#allocation21 + $0x2d8] sm:$0xff]  ;;  %v2203_v26 = vld [vmem:[#allocation21 + $0x2d0] sm:$0xff] }
 0x350   : > { %2670 = vmatpush2.msra.mxu0 %v2313_v27  ;;  %2741 = vmatpush2.msra.mxu1 %v2569_v28  ;;  %v2460_v25 = vld [vmem:[#allocation21 + $0xad8] sm:$0xff]  ;;  %v2459_v27 = vld [vmem:[#allocation21 + $0xad0] sm:$0xff] }
 0x351   : > { %2671 = vmatprep.subr.mxu0 %v2306_v29  ;;  %2742 = vmatprep.subr.mxu1 %v2562_v30  ;;  %v2196_v28 = vld [vmem:[#allocation21 + $0x298] sm:$0xff]  ;;  %v2195_v30 = vld [vmem:[#allocation21 + $0x290] sm:$0xff] }
 0x352   : > { %2672 = vmatpush2.msra.mxu0 %v2305_v31  ;;  %2743 = vmatpush2.msra.mxu1 %v2561_v32  ;;  %v2452_v29 = vld [vmem:[#allocation21 + $0xa98] sm:$0xff]  ;;  %v2451_v31 = vld [vmem:[#allocation21 + $0xa90] sm:$0xff] }
 0x353   : > { %2673 = vmatprep.subr.mxu0 %v2298_v33  ;;  %2744 = vmatprep.subr.mxu1 %v2554_v34  ;;  %v2188_v32 = vld [vmem:[#allocation21 + $0x258] sm:$0xff]  ;;  %v2187_v34 = vld [vmem:[#allocation21 + $0x250] sm:$0xff] }
 0x354   : > { %2674 = vmatpush2.msra.mxu0 %v2297_v35  ;;  %2745 = vmatpush2.msra.mxu1 %v2553_v36  ;;  %v2444_v33 = vld [vmem:[#allocation21 + $0xa58] sm:$0xff]  ;;  %v2443_v35 = vld [vmem:[#allocation21 + $0xa50] sm:$0xff] }
 0x355   : > { %2675 = vmatprep.subr.mxu0 %v2290_v37  ;;  %2746 = vmatprep.subr.mxu1 %v2546_v38  ;;  %v2180_v36 = vld [vmem:[#allocation21 + $0x218] sm:$0xff]  ;;  %v2179_v38 = vld [vmem:[#allocation21 + $0x210] sm:$0xff] }
 0x356   : > { %2676 = vmatpush2.msra.mxu0 %v2289_v39  ;;  %2747 = vmatpush2.msra.mxu1 %v2545_v40  ;;  %v2436_v37 = vld [vmem:[#allocation21 + $0xa18] sm:$0xff]  ;;  %v2435_v39 = vld [vmem:[#allocation21 + $0xa10] sm:$0xff] }
 0x357   : > { %2677 = vmatprep.subr.mxu0 %v2282_v41  ;;  %2748 = vmatprep.subr.mxu1 %v2538_v42  ;;  %v2172_v40 = vld [vmem:[#allocation21 + $0x1d8] sm:$0xff]  ;;  %v2171_v42 = vld [vmem:[#allocation21 + $0x1d0] sm:$0xff] }
 0x358   : > { %2678 = vmatpush2.msra.mxu0 %v2281_v43  ;;  %2749 = vmatpush2.msra.mxu1 %v2537_v44  ;;  %v2428_v41 = vld [vmem:[#allocation21 + $0x9d8] sm:$0xff]  ;;  %v2427_v43 = vld [vmem:[#allocation21 + $0x9d0] sm:$0xff] }
 0x359   : > { %2679 = vmatprep.subr.mxu0 %v2274_v45  ;;  %2750 = vmatprep.subr.mxu1 %v2530_v46  ;;  %v2164_v44 = vld [vmem:[#allocation21 + $0x198] sm:$0xff]  ;;  %v2163_v46 = vld [vmem:[#allocation21 + $0x190] sm:$0xff] }
 0x35a   : > { %2680 = vmatpush2.msra.mxu0 %v2273_v47  ;;  %2751 = vmatpush2.msra.mxu1 %v2529_v48  ;;  %v2420_v45 = vld [vmem:[#allocation21 + $0x998] sm:$0xff]  ;;  %v2419_v47 = vld [vmem:[#allocation21 + $0x990] sm:$0xff] }
 0x35b   : > { %2681 = vmatprep.subr.mxu0 %v2266_v49  ;;  %2752 = vmatprep.subr.mxu1 %v2522_v50  ;;  %v2156_v48 = vld [vmem:[#allocation21 + $0x158] sm:$0xff]  ;;  %v2155_v50 = vld [vmem:[#allocation21 + $0x150] sm:$0xff] }
 0x35c   : > { %2682 = vmatpush2.msra.mxu0 %v2265_v51  ;;  %2753 = vmatpush2.msra.mxu1 %v2521_v52  ;;  %v2412_v49 = vld [vmem:[#allocation21 + $0x958] sm:$0xff]  ;;  %v2411_v51 = vld [vmem:[#allocation21 + $0x950] sm:$0xff] }
 0x35d   : > { %2683 = vmatprep.subr.mxu0 %v2258_v53  ;;  %2754 = vmatprep.subr.mxu1 %v2514_v54  ;;  %v2148_v52 = vld [vmem:[#allocation21 + $0x118] sm:$0xff]  ;;  %v2147_v54 = vld [vmem:[#allocation21 + $0x110] sm:$0xff] }
 0x35e   : > { %2684 = vmatpush2.msra.mxu0 %v2257_v55  ;;  %2755 = vmatpush2.msra.mxu1 %v2513_v56  ;;  %v2404_v53 = vld [vmem:[#allocation21 + $0x918] sm:$0xff]  ;;  %v2403_v55 = vld [vmem:[#allocation21 + $0x910] sm:$0xff] }
 0x35f   : > { %2685 = vmatprep.subr.mxu0 %v2250_v57  ;;  %2756 = vmatprep.subr.mxu1 %v2506_v58  ;;  %v2140_v56 = vld [vmem:[#allocation21 + $0xd8] sm:$0xff]  ;;  %v2139_v58 = vld [vmem:[#allocation21 + $0xd0] sm:$0xff] }
 0x360   : > { %2686 = vmatpush2.msra.mxu0 %v2249_v61  ;;  %2757 = vmatpush2.msra.mxu1 %v2505_v63  ;;  %v2396_v57 = vld [vmem:[#allocation21 + $0x8d8] sm:$0xff]  ;;  %v2395_v61 = vld [vmem:[#allocation21 + $0x8d0] sm:$0xff] }
 0x361   : > { %2687 = vmatprep.subr.mxu0 %v2242_v0  ;;  %2758 = vmatprep.subr.mxu1 %v2498_v1  ;;  %v2132_v63 = vld [vmem:[#allocation21 + $0x98] sm:$0xff]  ;;  %v2131_v1 = vld [vmem:[#allocation21 + $0x90] sm:$0xff] }
 0x362   : > { %2688 = vmatpush2.msra.mxu0 %v2241_v2  ;;  %2689 = vmatprep.mubr.f32.mxu0 %v7390_v3  ;;  %v2388_v0 = vld [vmem:[#allocation21 + $0x898] sm:$0xff]  ;;  %v2387_v2 = vld [vmem:[#allocation21 + $0x890] sm:$0xff] }
 0x363   : > { %2759 = vmatpush2.msra.mxu1 %v2497_v4  ;;  %2760 = vmatprep.mubr.f32.mxu1 %v7392_v5  ;;  %v2124_v4 = vld [vmem:[#allocation21 + $0x58] sm:$0xff] }
 0x364   : > { %2690 = vmatmul.mubr.f32.vlgmr.msra.gmra.mxu0 %v7394_v6  ;;  %2761 = vmatmul.mubr.f32.vlgmr.msra.gmra.mxu1 %v7396_v7 }
 0x365   : > { %2767 = vmatprep.subr.mxu0 %v2236_v8  ;;  %2838 = vmatprep.subr.mxu1 %v2492_v9  ;;  %v2380_v8 = vld [vmem:[#allocation21 + $0x858] sm:$0xff]  ;;  %v2123_v9 = vld [vmem:[#allocation21 + $0x50] sm:$0xff] }
 0x366   : > { %2768 = vmatpush1.msra.mxu0 %v2235_v10  ;;  %2839 = vmatpush1.msra.mxu1 %v2491_v11  ;;  %v2379_v10 = vld [vmem:[#allocation21 + $0x850] sm:$0xff]  ;;  %v2116_v11 = vld [vmem:[#allocation21 + $0x18] sm:$0xff] }
 0x367   : > { %2769 = vmatprep.subr.mxu0 %v2228_v12  ;;  %2840 = vmatprep.subr.mxu1 %v2484_v13  ;;  %v2372_v12 = vld [vmem:[#allocation21 + $0x818] sm:$0xff]  ;;  %v2115_v13 = vld [vmem:[#allocation21 + $0x10] sm:$0xff] }
 0x368   : > { %2770 = vmatpush1.msra.mxu0 %v2227_v14  ;;  %2841 = vmatpush1.msra.mxu1 %v2483_v15  ;;  %v2371_v14 = vld [vmem:[#allocation21 + $0x810] sm:$0xff]  ;;  %v2364_v15 = vld [vmem:[#allocation21 + $0x7d8] sm:$0xff] }
 0x369   : > { %2771 = vmatprep.subr.mxu0 %v2220_v16  ;;  %2842 = vmatprep.subr.mxu1 %v2476_v17  ;;  %v2620_v16 = vld [vmem:[#allocation21 + $0xfd8] sm:$0xff]  ;;  %v2363_v17 = vld [vmem:[#allocation21 + $0x7d0] sm:$0xff] }
 0x36a   : > { %2772 = vmatpush1.msra.mxu0 %v2219_v18  ;;  %2843 = vmatpush1.msra.mxu1 %v2475_v19  ;;  %v2619_v18 = vld [vmem:[#allocation21 + $0xfd0] sm:$0xff]  ;;  %v2356_v19 = vld [vmem:[#allocation21 + $0x798] sm:$0xff] }
 0x36b   : > { %2773 = vmatprep.subr.mxu0 %v2212_v20  ;;  %2844 = vmatprep.subr.mxu1 %v2468_v21  ;;  %v2612_v20 = vld [vmem:[#allocation21 + $0xf98] sm:$0xff]  ;;  %v2355_v21 = vld [vmem:[#allocation21 + $0x790] sm:$0xff] }
 0x36c   : > { %2774 = vmatpush1.msra.mxu0 %v2211_v22  ;;  %2845 = vmatpush1.msra.mxu1 %v2467_v23  ;;  %v2611_v22 = vld [vmem:[#allocation21 + $0xf90] sm:$0xff]  ;;  %v2348_v23 = vld [vmem:[#allocation21 + $0x758] sm:$0xff] }
 0x36d   : > { %2775 = vmatprep.subr.mxu0 %v2204_v24  ;;  %2846 = vmatprep.subr.mxu1 %v2460_v25  ;;  %v2604_v24 = vld [vmem:[#allocation21 + $0xf58] sm:$0xff]  ;;  %v2347_v25 = vld [vmem:[#allocation21 + $0x750] sm:$0xff] }
 0x36e   : > { %2776 = vmatpush1.msra.mxu0 %v2203_v26  ;;  %2847 = vmatpush1.msra.mxu1 %v2459_v27  ;;  %v2603_v26 = vld [vmem:[#allocation21 + $0xf50] sm:$0xff]  ;;  %v2340_v27 = vld [vmem:[#allocation21 + $0x718] sm:$0xff] }
 0x36f   : > { %2777 = vmatprep.subr.mxu0 %v2196_v28  ;;  %2848 = vmatprep.subr.mxu1 %v2452_v29  ;;  %v2596_v28 = vld [vmem:[#allocation21 + $0xf18] sm:$0xff]  ;;  %v2339_v29 = vld [vmem:[#allocation21 + $0x710] sm:$0xff] }
 0x370   : > { %2778 = vmatpush1.msra.mxu0 %v2195_v30  ;;  %2849 = vmatpush1.msra.mxu1 %v2451_v31  ;;  %v2595_v30 = vld [vmem:[#allocation21 + $0xf10] sm:$0xff]  ;;  %v2332_v31 = vld [vmem:[#allocation21 + $0x6d8] sm:$0xff] }
 0x371   : > { %2779 = vmatprep.subr.mxu0 %v2188_v32  ;;  %2850 = vmatprep.subr.mxu1 %v2444_v33  ;;  %v2588_v32 = vld [vmem:[#allocation21 + $0xed8] sm:$0xff]  ;;  %v2331_v33 = vld [vmem:[#allocation21 + $0x6d0] sm:$0xff] }
 0x372   : > { %2780 = vmatpush1.msra.mxu0 %v2187_v34  ;;  %2851 = vmatpush1.msra.mxu1 %v2443_v35  ;;  %v2587_v34 = vld [vmem:[#allocation21 + $0xed0] sm:$0xff]  ;;  %v2324_v35 = vld [vmem:[#allocation21 + $0x698] sm:$0xff] }
 0x373   : > { %2781 = vmatprep.subr.mxu0 %v2180_v36  ;;  %2852 = vmatprep.subr.mxu1 %v2436_v37  ;;  %v2580_v36 = vld [vmem:[#allocation21 + $0xe98] sm:$0xff]  ;;  %v2323_v37 = vld [vmem:[#allocation21 + $0x690] sm:$0xff] }
 0x374   : > { %2782 = vmatpush1.msra.mxu0 %v2179_v38  ;;  %2853 = vmatpush1.msra.mxu1 %v2435_v39  ;;  %v2579_v38 = vld [vmem:[#allocation21 + $0xe90] sm:$0xff]  ;;  %v2316_v39 = vld [vmem:[#allocation21 + $0x658] sm:$0xff] }
 0x375   : > { %2783 = vmatprep.subr.mxu0 %v2172_v40  ;;  %2854 = vmatprep.subr.mxu1 %v2428_v41  ;;  %v2572_v40 = vld [vmem:[#allocation21 + $0xe58] sm:$0xff]  ;;  %v2315_v41 = vld [vmem:[#allocation21 + $0x650] sm:$0xff] }
 0x376   : > { %2784 = vmatpush1.msra.mxu0 %v2171_v42  ;;  %2855 = vmatpush1.msra.mxu1 %v2427_v43  ;;  %v2571_v42 = vld [vmem:[#allocation21 + $0xe50] sm:$0xff]  ;;  %v2308_v43 = vld [vmem:[#allocation21 + $0x618] sm:$0xff] }
 0x377   : > { %2785 = vmatprep.subr.mxu0 %v2164_v44  ;;  %2856 = vmatprep.subr.mxu1 %v2420_v45  ;;  %v2564_v44 = vld [vmem:[#allocation21 + $0xe18] sm:$0xff]  ;;  %v2307_v45 = vld [vmem:[#allocation21 + $0x610] sm:$0xff] }
 0x378   : > { %2786 = vmatpush1.msra.mxu0 %v2163_v46  ;;  %2857 = vmatpush1.msra.mxu1 %v2419_v47  ;;  %v2563_v46 = vld [vmem:[#allocation21 + $0xe10] sm:$0xff]  ;;  %v2300_v47 = vld [vmem:[#allocation21 + $0x5d8] sm:$0xff] }
 0x379   : > { %2787 = vmatprep.subr.mxu0 %v2156_v48  ;;  %2858 = vmatprep.subr.mxu1 %v2412_v49  ;;  %v2556_v48 = vld [vmem:[#allocation21 + $0xdd8] sm:$0xff]  ;;  %v2299_v49 = vld [vmem:[#allocation21 + $0x5d0] sm:$0xff] }
 0x37a   : > { %2788 = vmatpush1.msra.mxu0 %v2155_v50  ;;  %2859 = vmatpush1.msra.mxu1 %v2411_v51  ;;  %v2555_v50 = vld [vmem:[#allocation21 + $0xdd0] sm:$0xff]  ;;  %v2292_v51 = vld [vmem:[#allocation21 + $0x598] sm:$0xff] }
 0x37b   : > { %2789 = vmatprep.subr.mxu0 %v2148_v52  ;;  %2860 = vmatprep.subr.mxu1 %v2404_v53  ;;  %v2548_v52 = vld [vmem:[#allocation21 + $0xd98] sm:$0xff]  ;;  %v2291_v53 = vld [vmem:[#allocation21 + $0x590] sm:$0xff] }
 0x37c   : > { %2790 = vmatpush1.msra.mxu0 %v2147_v54  ;;  %2861 = vmatpush1.msra.mxu1 %v2403_v55  ;;  %v2547_v54 = vld [vmem:[#allocation21 + $0xd90] sm:$0xff]  ;;  %v2284_v55 = vld [vmem:[#allocation21 + $0x558] sm:$0xff] }
 0x37d   : > { %2791 = vmatprep.subr.mxu0 %v2140_v56  ;;  %2862 = vmatprep.subr.mxu1 %v2396_v57  ;;  %v2540_v56 = vld [vmem:[#allocation21 + $0xd58] sm:$0xff]  ;;  %v2283_v57 = vld [vmem:[#allocation21 + $0x550] sm:$0xff] }
 0x37e   : > { %2792 = vmatpush1.msra.mxu0 %v2139_v58  ;;  %2863 = vmatpush1.msra.mxu1 %v2395_v61  ;;  %v2539_v58 = vld [vmem:[#allocation21 + $0xd50] sm:$0xff]  ;;  %v2276_v61 = vld [vmem:[#allocation21 + $0x518] sm:$0xff] }
 0x37f   : > { %2793 = vmatprep.subr.mxu0 %v2132_v63  ;;  %2864 = vmatprep.subr.mxu1 %v2388_v0  ;;  %v2532_v63 = vld [vmem:[#allocation21 + $0xd18] sm:$0xff]  ;;  %v2275_v0 = vld [vmem:[#allocation21 + $0x510] sm:$0xff] }
 0x380   : > { %2794 = vmatpush1.msra.mxu0 %v2131_v1  ;;  %2865 = vmatpush1.msra.mxu1 %v2387_v2  ;;  %v2531_v1 = vld [vmem:[#allocation21 + $0xd10] sm:$0xff]  ;;  %v2268_v2 = vld [vmem:[#allocation21 + $0x4d8] sm:$0xff] }
 0x381   : > { %2795 = vmatprep.subr.mxu0 %v2124_v4  ;;  %2866 = vmatprep.subr.mxu1 %v2380_v8  ;;  %v2524_v4 = vld [vmem:[#allocation21 + $0xcd8] sm:$0xff]  ;;  %v2267_v8 = vld [vmem:[#allocation21 + $0x4d0] sm:$0xff] }
 0x382   : > { %2796 = vmatpush1.msra.mxu0 %v2123_v9  ;;  %2867 = vmatpush1.msra.mxu1 %v2379_v10  ;;  %v2523_v9 = vld [vmem:[#allocation21 + $0xcd0] sm:$0xff]  ;;  %v2260_v10 = vld [vmem:[#allocation21 + $0x498] sm:$0xff] }
 0x383   : > { %2797 = vmatprep.subr.mxu0 %v2116_v11  ;;  %2868 = vmatprep.subr.mxu1 %v2372_v12  ;;  %v2516_v11 = vld [vmem:[#allocation21 + $0xc98] sm:$0xff]  ;;  %v2259_v12 = vld [vmem:[#allocation21 + $0x490] sm:$0xff] }
 0x384   : > { %2798 = vmatpush1.msra.mxu0 %v2115_v13  ;;  %2869 = vmatpush1.msra.mxu1 %v2371_v14  ;;  %v2515_v13 = vld [vmem:[#allocation21 + $0xc90] sm:$0xff]  ;;  %v2252_v14 = vld [vmem:[#allocation21 + $0x458] sm:$0xff] }
 0x385   : > { %2799 = vmatprep.subr.mxu0 %v2364_v15  ;;  %2870 = vmatprep.subr.mxu1 %v2620_v16  ;;  %v2508_v15 = vld [vmem:[#allocation21 + $0xc58] sm:$0xff]  ;;  %v2251_v16 = vld [vmem:[#allocation21 + $0x450] sm:$0xff] }
 0x386   : > { %2800 = vmatpush2.msra.mxu0 %v2363_v17  ;;  %2871 = vmatpush2.msra.mxu1 %v2619_v18  ;;  %v2507_v17 = vld [vmem:[#allocation21 + $0xc50] sm:$0xff]  ;;  %v2244_v18 = vld [vmem:[#allocation21 + $0x418] sm:$0xff] }
 0x387   : > { %2801 = vmatprep.subr.mxu0 %v2356_v19  ;;  %2872 = vmatprep.subr.mxu1 %v2612_v20  ;;  %v2500_v19 = vld [vmem:[#allocation21 + $0xc18] sm:$0xff]  ;;  %v2243_v20 = vld [vmem:[#allocation21 + $0x410] sm:$0xff] }
 0x388   : > { %2802 = vmatpush2.msra.mxu0 %v2355_v21  ;;  %2873 = vmatpush2.msra.mxu1 %v2611_v22  ;;  %v2499_v21 = vld [vmem:[#allocation21 + $0xc10] sm:$0xff]  ;;  %v2238_v22 = vld [vmem:[#allocation21 + $0x3e8] sm:$0xff] }
 0x389   : > { %2803 = vmatprep.subr.mxu0 %v2348_v23  ;;  %2874 = vmatprep.subr.mxu1 %v2604_v24  ;;  %v2494_v23 = vld [vmem:[#allocation21 + $0xbe8] sm:$0xff]  ;;  %v2237_v24 = vld [vmem:[#allocation21 + $0x3e0] sm:$0xff] }
 0x38a   : > { %2804 = vmatpush2.msra.mxu0 %v2347_v25  ;;  %2875 = vmatpush2.msra.mxu1 %v2603_v26  ;;  %v2493_v25 = vld [vmem:[#allocation21 + $0xbe0] sm:$0xff]  ;;  %v2230_v26 = vld [vmem:[#allocation21 + $0x3a8] sm:$0xff] }
 0x38b   : > { %2805 = vmatprep.subr.mxu0 %v2340_v27  ;;  %2876 = vmatprep.subr.mxu1 %v2596_v28  ;;  %v2486_v27 = vld [vmem:[#allocation21 + $0xba8] sm:$0xff]  ;;  %v2229_v28 = vld [vmem:[#allocation21 + $0x3a0] sm:$0xff] }
 0x38c   : > { %2806 = vmatpush2.msra.mxu0 %v2339_v29  ;;  %2877 = vmatpush2.msra.mxu1 %v2595_v30  ;;  %v2485_v29 = vld [vmem:[#allocation21 + $0xba0] sm:$0xff]  ;;  %v2478_v30 = vld [vmem:[#allocation21 + $0xb68] sm:$0xff] }
 0x38d   : > { %2807 = vmatprep.subr.mxu0 %v2332_v31  ;;  %2878 = vmatprep.subr.mxu1 %v2588_v32  ;;  %v2221_v31 = vld [vmem:[#allocation21 + $0x360] sm:$0xff]  ;;  %v2214_v32 = vld [vmem:[#allocation21 + $0x328] sm:$0xff] }
 0x38e   : > { %2808 = vmatpush2.msra.mxu0 %v2331_v33  ;;  %2879 = vmatpush2.msra.mxu1 %v2587_v34  ;;  %v2469_v33 = vld [vmem:[#allocation21 + $0xb20] sm:$0xff]  ;;  %v2206_v34 = vld [vmem:[#allocation21 + $0x2e8] sm:$0xff] }
 0x38f   : > { %2809 = vmatprep.subr.mxu0 %v2324_v35  ;;  %2880 = vmatprep.subr.mxu1 %v2580_v36  ;;  %v2462_v35 = vld [vmem:[#allocation21 + $0xae8] sm:$0xff]  ;;  %v2205_v36 = vld [vmem:[#allocation21 + $0x2e0] sm:$0xff] }
 0x390   : > { %2810 = vmatpush2.msra.mxu0 %v2323_v37  ;;  %2881 = vmatpush2.msra.mxu1 %v2579_v38  ;;  %v2461_v37 = vld [vmem:[#allocation21 + $0xae0] sm:$0xff]  ;;  %v2198_v38 = vld [vmem:[#allocation21 + $0x2a8] sm:$0xff] }
 0x391   : > { %2811 = vmatprep.subr.mxu0 %v2316_v39  ;;  %2882 = vmatprep.subr.mxu1 %v2572_v40  ;;  %v2454_v39 = vld [vmem:[#allocation21 + $0xaa8] sm:$0xff]  ;;  %v2197_v40 = vld [vmem:[#allocation21 + $0x2a0] sm:$0xff] }
 0x392   : > { %2812 = vmatpush2.msra.mxu0 %v2315_v41  ;;  %2883 = vmatpush2.msra.mxu1 %v2571_v42  ;;  %v2453_v41 = vld [vmem:[#allocation21 + $0xaa0] sm:$0xff]  ;;  %v2190_v42 = vld [vmem:[#allocation21 + $0x268] sm:$0xff] }
 0x393   : > { %2813 = vmatprep.subr.mxu0 %v2308_v43  ;;  %2884 = vmatprep.subr.mxu1 %v2564_v44  ;;  %v2446_v43 = vld [vmem:[#allocation21 + $0xa68] sm:$0xff]  ;;  %v2189_v44 = vld [vmem:[#allocation21 + $0x260] sm:$0xff] }
 0x394   : > { %2814 = vmatpush2.msra.mxu0 %v2307_v45  ;;  %2885 = vmatpush2.msra.mxu1 %v2563_v46  ;;  %v2445_v45 = vld [vmem:[#allocation21 + $0xa60] sm:$0xff]  ;;  %v2182_v46 = vld [vmem:[#allocation21 + $0x228] sm:$0xff] }
 0x395   : > { %2815 = vmatprep.subr.mxu0 %v2300_v47  ;;  %2886 = vmatprep.subr.mxu1 %v2556_v48  ;;  %v2438_v47 = vld [vmem:[#allocation21 + $0xa28] sm:$0xff]  ;;  %v2181_v48 = vld [vmem:[#allocation21 + $0x220] sm:$0xff] }
 0x396   : > { %2816 = vmatpush2.msra.mxu0 %v2299_v49  ;;  %2887 = vmatpush2.msra.mxu1 %v2555_v50  ;;  %v2437_v49 = vld [vmem:[#allocation21 + $0xa20] sm:$0xff]  ;;  %v2174_v50 = vld [vmem:[#allocation21 + $0x1e8] sm:$0xff] }
 0x397   : > { %2817 = vmatprep.subr.mxu0 %v2292_v51  ;;  %2888 = vmatprep.subr.mxu1 %v2548_v52  ;;  %v2430_v51 = vld [vmem:[#allocation21 + $0x9e8] sm:$0xff]  ;;  %v2173_v52 = vld [vmem:[#allocation21 + $0x1e0] sm:$0xff] }
 0x398   : > { %2818 = vmatpush2.msra.mxu0 %v2291_v53  ;;  %2889 = vmatpush2.msra.mxu1 %v2547_v54  ;;  %v2429_v53 = vld [vmem:[#allocation21 + $0x9e0] sm:$0xff]  ;;  %v2166_v54 = vld [vmem:[#allocation21 + $0x1a8] sm:$0xff] }
 0x399   : > { %2819 = vmatprep.subr.mxu0 %v2284_v55  ;;  %2890 = vmatprep.subr.mxu1 %v2540_v56  ;;  %v2422_v55 = vld [vmem:[#allocation21 + $0x9a8] sm:$0xff]  ;;  %v2165_v56 = vld [vmem:[#allocation21 + $0x1a0] sm:$0xff] }
 0x39a   : > { %2820 = vmatpush2.msra.mxu0 %v2283_v57  ;;  %2891 = vmatpush2.msra.mxu1 %v2539_v58  ;;  %v2421_v57 = vld [vmem:[#allocation21 + $0x9a0] sm:$0xff]  ;;  %v2158_v58 = vld [vmem:[#allocation21 + $0x168] sm:$0xff] }
 0x39b   : > { %2821 = vmatprep.subr.mxu0 %v2276_v61  ;;  %2892 = vmatprep.subr.mxu1 %v2532_v63  ;;  %v2414_v61 = vld [vmem:[#allocation21 + $0x968] sm:$0xff]  ;;  %v2157_v63 = vld [vmem:[#allocation21 + $0x160] sm:$0xff] }
 0x39c   : > { %2822 = vmatpush2.msra.mxu0 %v2275_v0  ;;  %2893 = vmatpush2.msra.mxu1 %v2531_v1  ;;  %v2413_v0 = vld [vmem:[#allocation21 + $0x960] sm:$0xff]  ;;  %v2150_v1 = vld [vmem:[#allocation21 + $0x128] sm:$0xff] }
 0x39d   : > { %2823 = vmatprep.subr.mxu0 %v2268_v2  ;;  %2894 = vmatprep.subr.mxu1 %v2524_v4  ;;  %v2406_v2 = vld [vmem:[#allocation21 + $0x928] sm:$0xff]  ;;  %v2149_v4 = vld [vmem:[#allocation21 + $0x120] sm:$0xff] }
 0x39e   : > { %2824 = vmatpush2.msra.mxu0 %v2267_v8  ;;  %2895 = vmatpush2.msra.mxu1 %v2523_v9  ;;  %v2405_v8 = vld [vmem:[#allocation21 + $0x920] sm:$0xff]  ;;  %v2142_v9 = vld [vmem:[#allocation21 + $0xe8] sm:$0xff] }
 0x39f   : > { %2825 = vmatprep.subr.mxu0 %v2260_v10  ;;  %2896 = vmatprep.subr.mxu1 %v2516_v11  ;;  %v2398_v10 = vld [vmem:[#allocation21 + $0x8e8] sm:$0xff]  ;;  %v2141_v11 = vld [vmem:[#allocation21 + $0xe0] sm:$0xff] }
 0x3a0   : > { %2826 = vmatpush2.msra.mxu0 %v2259_v12  ;;  %2897 = vmatpush2.msra.mxu1 %v2515_v13  ;;  %v2397_v12 = vld [vmem:[#allocation21 + $0x8e0] sm:$0xff]  ;;  %v2134_v13 = vld [vmem:[#allocation21 + $0xa8] sm:$0xff] }
 0x3a1   : > { %2827 = vmatprep.subr.mxu0 %v2252_v14  ;;  %2898 = vmatprep.subr.mxu1 %v2508_v15  ;;  %v2390_v14 = vld [vmem:[#allocation21 + $0x8a8] sm:$0xff]  ;;  %v2133_v15 = vld [vmem:[#allocation21 + $0xa0] sm:$0xff] }
 0x3a2   : > { %2828 = vmatpush2.msra.mxu0 %v2251_v16  ;;  %2899 = vmatpush2.msra.mxu1 %v2507_v17  ;;  %v2389_v16 = vld [vmem:[#allocation21 + $0x8a0] sm:$0xff]  ;;  %v2126_v17 = vld [vmem:[#allocation21 + $0x68] sm:$0xff] }
 0x3a3   : > { %2829 = vmatprep.subr.mxu0 %v2244_v18  ;;  %2900 = vmatprep.subr.mxu1 %v2500_v19  ;;  %v2382_v18 = vld [vmem:[#allocation21 + $0x868] sm:$0xff]  ;;  %v2125_v19 = vld [vmem:[#allocation21 + $0x60] sm:$0xff] }
 0x3a4   : > { %2830 = vmatpush2.msra.mxu0 %v2243_v20  ;;  %2831 = vmatprep.mubr.f32.mxu0 %v7390_v3  ;;  %v2222_v3 = vld [vmem:[#allocation21 + $0x368] sm:$0xff]  ;;  %v2381_v20 = vld [vmem:[#allocation21 + $0x860] sm:$0xff] }
 0x3a5   : > { %2901 = vmatpush2.msra.mxu1 %v2499_v21  ;;  %2902 = vmatprep.mubr.f32.mxu1 %v7392_v5  ;;  %v2477_v5 = vld [vmem:[#allocation21 + $0xb60] sm:$0xff]  ;;  %v2118_v21 = vld [vmem:[#allocation21 + $0x28] sm:$0xff] }
 0x3a6   : > { %2832 = vmatmul.mubr.f32.vlgmr.msra.gmra.mxu0 %v7394_v6  ;;  %2903 = vmatmul.mubr.f32.vlgmr.msra.gmra.mxu1 %v7396_v7  ;;  %v2470_v6 = vld [vmem:[#allocation21 + $0xb28] sm:$0xff]  ;;  %v2213_v7 = vld [vmem:[#allocation21 + $0x320] sm:$0xff] }
 0x3a7   : > { %2909 = vmatprep.subr.mxu0 %v2238_v22  ;;  %2980 = vmatprep.subr.mxu1 %v2494_v23  ;;  %v2374_v22 = vld [vmem:[#allocation21 + $0x828] sm:$0xff]  ;;  %v2117_v23 = vld [vmem:[#allocation21 + $0x20] sm:$0xff] }
 0x3a8   : > { %2910 = vmatpush1.msra.mxu0 %v2237_v24  ;;  %2981 = vmatpush1.msra.mxu1 %v2493_v25  ;;  %v2373_v24 = vld [vmem:[#allocation21 + $0x820] sm:$0xff]  ;;  %v2366_v25 = vld [vmem:[#allocation21 + $0x7e8] sm:$0xff] }
 0x3a9   : > { %2911 = vmatprep.subr.mxu0 %v2230_v26  ;;  %2982 = vmatprep.subr.mxu1 %v2486_v27  ;;  %v2622_v26 = vld [vmem:[#allocation21 + $0xfe8] sm:$0xff]  ;;  %v2365_v27 = vld [vmem:[#allocation21 + $0x7e0] sm:$0xff] }
 0x3aa   : > { %2912 = vmatpush1.msra.mxu0 %v2229_v28  ;;  %2983 = vmatpush1.msra.mxu1 %v2485_v29  ;;  %v2621_v28 = vld [vmem:[#allocation21 + $0xfe0] sm:$0xff]  ;;  %v2358_v29 = vld [vmem:[#allocation21 + $0x7a8] sm:$0xff] }
 0x3ab   : > { %2913 = vmatprep.subr.mxu0 %v2222_v3  ;;  %2984 = vmatprep.subr.mxu1 %v2478_v30  ;;  %v2614_v3 = vld [vmem:[#allocation21 + $0xfa8] sm:$0xff]  ;;  %v2357_v30 = vld [vmem:[#allocation21 + $0x7a0] sm:$0xff] }
 0x3ac   : > { %2914 = vmatpush1.msra.mxu0 %v2221_v31  ;;  %2985 = vmatpush1.msra.mxu1 %v2477_v5  ;;  %v2613_v31 = vld [vmem:[#allocation21 + $0xfa0] sm:$0xff]  ;;  %v2350_v5 = vld [vmem:[#allocation21 + $0x768] sm:$0xff] }
 0x3ad   : > { %2915 = vmatprep.subr.mxu0 %v2214_v32  ;;  %2986 = vmatprep.subr.mxu1 %v2470_v6  ;;  %v2606_v32 = vld [vmem:[#allocation21 + $0xf68] sm:$0xff]  ;;  %v2349_v6 = vld [vmem:[#allocation21 + $0x760] sm:$0xff] }
 0x3ae   : > { %2916 = vmatpush1.msra.mxu0 %v2213_v7  ;;  %2987 = vmatpush1.msra.mxu1 %v2469_v33  ;;  %v2605_v7 = vld [vmem:[#allocation21 + $0xf60] sm:$0xff]  ;;  %v2342_v33 = vld [vmem:[#allocation21 + $0x728] sm:$0xff] }
 0x3af   : > { %2917 = vmatprep.subr.mxu0 %v2206_v34  ;;  %2988 = vmatprep.subr.mxu1 %v2462_v35  ;;  %v2598_v34 = vld [vmem:[#allocation21 + $0xf28] sm:$0xff]  ;;  %v2341_v35 = vld [vmem:[#allocation21 + $0x720] sm:$0xff] }
 0x3b0   : > { %2918 = vmatpush1.msra.mxu0 %v2205_v36  ;;  %2989 = vmatpush1.msra.mxu1 %v2461_v37  ;;  %v2597_v36 = vld [vmem:[#allocation21 + $0xf20] sm:$0xff]  ;;  %v2334_v37 = vld [vmem:[#allocation21 + $0x6e8] sm:$0xff] }
 0x3b1   : > { %2919 = vmatprep.subr.mxu0 %v2198_v38  ;;  %2990 = vmatprep.subr.mxu1 %v2454_v39  ;;  %v2590_v38 = vld [vmem:[#allocation21 + $0xee8] sm:$0xff]  ;;  %v2333_v39 = vld [vmem:[#allocation21 + $0x6e0] sm:$0xff] }
 0x3b2   : > { %2920 = vmatpush1.msra.mxu0 %v2197_v40  ;;  %2991 = vmatpush1.msra.mxu1 %v2453_v41  ;;  %v2589_v40 = vld [vmem:[#allocation21 + $0xee0] sm:$0xff]  ;;  %v2326_v41 = vld [vmem:[#allocation21 + $0x6a8] sm:$0xff] }
 0x3b3   : > { %2921 = vmatprep.subr.mxu0 %v2190_v42  ;;  %2992 = vmatprep.subr.mxu1 %v2446_v43  ;;  %v2582_v42 = vld [vmem:[#allocation21 + $0xea8] sm:$0xff]  ;;  %v2325_v43 = vld [vmem:[#allocation21 + $0x6a0] sm:$0xff] }
 0x3b4   : > { %2922 = vmatpush1.msra.mxu0 %v2189_v44  ;;  %2993 = vmatpush1.msra.mxu1 %v2445_v45  ;;  %v2581_v44 = vld [vmem:[#allocation21 + $0xea0] sm:$0xff]  ;;  %v2318_v45 = vld [vmem:[#allocation21 + $0x668] sm:$0xff] }
 0x3b5   : > { %2923 = vmatprep.subr.mxu0 %v2182_v46  ;;  %2994 = vmatprep.subr.mxu1 %v2438_v47  ;;  %v2574_v46 = vld [vmem:[#allocation21 + $0xe68] sm:$0xff]  ;;  %v2317_v47 = vld [vmem:[#allocation21 + $0x660] sm:$0xff] }
 0x3b6   : > { %2924 = vmatpush1.msra.mxu0 %v2181_v48  ;;  %2995 = vmatpush1.msra.mxu1 %v2437_v49  ;;  %v2573_v48 = vld [vmem:[#allocation21 + $0xe60] sm:$0xff]  ;;  %v2310_v49 = vld [vmem:[#allocation21 + $0x628] sm:$0xff] }
 0x3b7   : > { %2925 = vmatprep.subr.mxu0 %v2174_v50  ;;  %2996 = vmatprep.subr.mxu1 %v2430_v51  ;;  %v2566_v50 = vld [vmem:[#allocation21 + $0xe28] sm:$0xff]  ;;  %v2309_v51 = vld [vmem:[#allocation21 + $0x620] sm:$0xff] }
 0x3b8   : > { %2926 = vmatpush1.msra.mxu0 %v2173_v52  ;;  %2997 = vmatpush1.msra.mxu1 %v2429_v53  ;;  %v2565_v52 = vld [vmem:[#allocation21 + $0xe20] sm:$0xff]  ;;  %v2302_v53 = vld [vmem:[#allocation21 + $0x5e8] sm:$0xff] }
 0x3b9   : > { %2927 = vmatprep.subr.mxu0 %v2166_v54  ;;  %2998 = vmatprep.subr.mxu1 %v2422_v55  ;;  %v2558_v54 = vld [vmem:[#allocation21 + $0xde8] sm:$0xff]  ;;  %v2301_v55 = vld [vmem:[#allocation21 + $0x5e0] sm:$0xff] }
 0x3ba   : > { %2928 = vmatpush1.msra.mxu0 %v2165_v56  ;;  %2999 = vmatpush1.msra.mxu1 %v2421_v57  ;;  %v2557_v56 = vld [vmem:[#allocation21 + $0xde0] sm:$0xff]  ;;  %v2294_v57 = vld [vmem:[#allocation21 + $0x5a8] sm:$0xff] }
 0x3bb   : > { %2929 = vmatprep.subr.mxu0 %v2158_v58  ;;  %3000 = vmatprep.subr.mxu1 %v2414_v61  ;;  %v2550_v58 = vld [vmem:[#allocation21 + $0xda8] sm:$0xff]  ;;  %v2293_v61 = vld [vmem:[#allocation21 + $0x5a0] sm:$0xff] }
 0x3bc   : > { %2930 = vmatpush1.msra.mxu0 %v2157_v63  ;;  %3001 = vmatpush1.msra.mxu1 %v2413_v0  ;;  %v2549_v63 = vld [vmem:[#allocation21 + $0xda0] sm:$0xff]  ;;  %v2286_v0 = vld [vmem:[#allocation21 + $0x568] sm:$0xff] }
 0x3bd   : > { %2931 = vmatprep.subr.mxu0 %v2150_v1  ;;  %3002 = vmatprep.subr.mxu1 %v2406_v2  ;;  %v2542_v1 = vld [vmem:[#allocation21 + $0xd68] sm:$0xff]  ;;  %v2285_v2 = vld [vmem:[#allocation21 + $0x560] sm:$0xff] }
 0x3be   : > { %2932 = vmatpush1.msra.mxu0 %v2149_v4  ;;  %3003 = vmatpush1.msra.mxu1 %v2405_v8  ;;  %v2541_v4 = vld [vmem:[#allocation21 + $0xd60] sm:$0xff]  ;;  %v2278_v8 = vld [vmem:[#allocation21 + $0x528] sm:$0xff] }
 0x3bf   : > { %2933 = vmatprep.subr.mxu0 %v2142_v9  ;;  %3004 = vmatprep.subr.mxu1 %v2398_v10  ;;  %v2534_v9 = vld [vmem:[#allocation21 + $0xd28] sm:$0xff]  ;;  %v2277_v10 = vld [vmem:[#allocation21 + $0x520] sm:$0xff] }
 0x3c0   : > { %2934 = vmatpush1.msra.mxu0 %v2141_v11  ;;  %3005 = vmatpush1.msra.mxu1 %v2397_v12  ;;  %v2533_v11 = vld [vmem:[#allocation21 + $0xd20] sm:$0xff]  ;;  %v2270_v12 = vld [vmem:[#allocation21 + $0x4e8] sm:$0xff] }
 0x3c1   : > { %2935 = vmatprep.subr.mxu0 %v2134_v13  ;;  %3006 = vmatprep.subr.mxu1 %v2390_v14  ;;  %v2526_v13 = vld [vmem:[#allocation21 + $0xce8] sm:$0xff]  ;;  %v7407_v14 = vsub.s32 2, %v7376_v59 }
 0x3c2   : > { %2936 = vmatpush1.msra.mxu0 %v2133_v15  ;;  %3007 = vmatpush1.msra.mxu1 %v2389_v16  ;;  %v2269_v15 = vld [vmem:[#allocation21 + $0x4e0] sm:$0xff] }
 0x3c3   : > { %2937 = vmatprep.subr.mxu0 %v2126_v17  ;;  %3008 = vmatprep.subr.mxu1 %v2382_v18  ;;  %v2525_v16 = vld [vmem:[#allocation21 + $0xce0] sm:$0xff]  ;;  %v1285_v17 = vld [vmem:[#allocation15] sm:$0xf]  ;;  %v2262_v18 = vld [vmem:[#allocation21 + $0x4a8] sm:$0xff] }
 0x3c4   : > { %2938 = vmatpush1.msra.mxu0 %v2125_v19  ;;  %3009 = vmatpush1.msra.mxu1 %v2381_v20  ;;  %v2518_v19 = vld [vmem:[#allocation21 + $0xca8] sm:$0xff]  ;;  %v2261_v20 = vld [vmem:[#allocation21 + $0x4a0] sm:$0xff] }
 0x3c5   : > { %2939 = vmatprep.subr.mxu0 %v2118_v21  ;;  %3010 = vmatprep.subr.mxu1 %v2374_v22  ;;  %v2517_v21 = vld [vmem:[#allocation21 + $0xca0] sm:$0xff]  ;;  %v7410_v22 = vsub.s32 3, %v7376_v59 }
 0x3c6   : > { %2940 = vmatpush1.msra.mxu0 %v2117_v23  ;;  %3011 = vmatpush1.msra.mxu1 %v2373_v24  ;;  %v2254_v23 = vld [vmem:[#allocation21 + $0x468] sm:$0xff] }
 0x3c7   : > { %2941 = vmatprep.subr.mxu0 %v2366_v25  ;;  %3012 = vmatprep.subr.mxu1 %v2622_v26  ;;  %v2510_v24 = vld [vmem:[#allocation21 + $0xc68] sm:$0xff]  ;;  %v1290_v25 = vrot.slane %v1285_v17, %v7379_v60  ;;  %v1298_v26 = vrot.slane %v1285_v17, %v7407_v14 }
 0x3c8   : > { %2942 = vmatpush2.msra.mxu0 %v2365_v27  ;;  %3013 = vmatpush2.msra.mxu1 %v2621_v28  ;;  %v2253_v27 = vld [vmem:[#allocation21 + $0x460] sm:$0xff] }
 0x3c9   : > { %2943 = vmatprep.subr.mxu0 %v2358_v29  ;;  %3014 = vmatprep.subr.mxu1 %v2614_v3  ;;  %v2509_v28 = vld [vmem:[#allocation21 + $0xc60] sm:$0xff]  ;;  %v2246_v29 = vld [vmem:[#allocation21 + $0x428] sm:$0xff] }
 0x3ca   : > { %2944 = vmatpush2.msra.mxu0 %v2357_v30  ;;  %3015 = vmatpush2.msra.mxu1 %v2613_v31  ;;  %v2502_v3 = vld [vmem:[#allocation21 + $0xc28] sm:$0xff]  ;;  %v2245_v30 = vld [vmem:[#allocation21 + $0x420] sm:$0xff] }
 0x3cb   : > { %2945 = vmatprep.subr.mxu0 %v2350_v5  ;;  %3016 = vmatprep.subr.mxu1 %v2606_v32  ;;  %v1294_v32 = vrot.slane %v1285_v17, %v7382_v62 }
 0x3cc   : > { %2946 = vmatpush2.msra.mxu0 %v2349_v6  ;;  %3017 = vmatpush2.msra.mxu1 %v2605_v7  ;;  %v1302_v6 = vrot.slane %v1285_v17, %v7410_v22  ;;  %v2501_v7 = vld [vmem:[#allocation21 + $0xc20] sm:$0xff]  ;;  %v2223_v17 = vld [vmem:[#allocation21 + $0x370] sm:$0xff] }
 0x3cd   : > { %2947 = vmatprep.subr.mxu0 %v2342_v33  ;;  %3018 = vmatprep.subr.mxu1 %v2598_v34 }
 0x3ce   : > { %2948 = vmatpush2.msra.mxu0 %v2341_v35  ;;  %3019 = vmatpush2.msra.mxu1 %v2597_v36 }
 0x3cf   : > { %2949 = vmatprep.subr.mxu0 %v2334_v37  ;;  %3020 = vmatprep.subr.mxu1 %v2590_v38  ;;  %v7420_v37 = vld [vmem:[#allocation2 + $0x8] sm:$0xff] }
 0x3d0   : > { %2950 = vmatpush2.msra.mxu0 %v2333_v39  ;;  %3021 = vmatpush2.msra.mxu1 %v2589_v40  ;;  %v2240_v38 = vld [vmem:[#allocation21 + $0x3f8] sm:$0xff] }
 0x3d1   : > { %2951 = vmatprep.subr.mxu0 %v2326_v41  ;;  %3022 = vmatprep.subr.mxu1 %v2582_v42  ;;  %v2496_v39 = vld [vmem:[#allocation21 + $0xbf8] sm:$0xff] }
 0x3d2   : > { %2952 = vmatpush2.msra.mxu0 %v2325_v43  ;;  %3023 = vmatpush2.msra.mxu1 %v2581_v44  ;;  %v7429_v44 = vld [vmem:[#allocation2 + $0x18] sm:$0xff] }
 0x3d3   : > { %2953 = vmatprep.subr.mxu0 %v2318_v45  ;;  %3024 = vmatprep.subr.mxu1 %v2574_v46  ;;  %v2239_v45 = vld [vmem:[#allocation21 + $0x3f0] sm:$0xff] }
 0x3d4   : > { %2954 = vmatpush2.msra.mxu0 %v2317_v47  ;;  %3025 = vmatpush2.msra.mxu1 %v2573_v48  ;;  %v2495_v46 = vld [vmem:[#allocation21 + $0xbf0] sm:$0xff] }
 0x3d5   : > { %2955 = vmatprep.subr.mxu0 %v2310_v49  ;;  %3026 = vmatprep.subr.mxu1 %v2566_v50  ;;  %v7436_v49 = vld [vmem:[#allocation2] sm:$0xff]  ;;  %v7439_v50 = vld [vmem:[#allocation2 + $0x10] sm:$0xff] }
 0x3d6   : > { %2956 = vmatpush2.msra.mxu0 %v2309_v51  ;;  %3027 = vmatpush2.msra.mxu1 %v2565_v52 }
 0x3d7   : > { %2957 = vmatprep.subr.mxu0 %v2302_v53  ;;  %3028 = vmatprep.subr.mxu1 %v2558_v54 }
 0x3d8   : > { %2958 = vmatpush2.msra.mxu0 %v2301_v55  ;;  %3029 = vmatpush2.msra.mxu1 %v2557_v56  ;;  %v2232_v55 = vld [vmem:[#allocation21 + $0x3b8] sm:$0xff] }
 0x3d9   : > { %2959 = vmatprep.subr.mxu0 %v2294_v57  ;;  %3030 = vmatprep.subr.mxu1 %v2550_v58  ;;  %v2488_v56 = vld [vmem:[#allocation21 + $0xbb8] sm:$0xff] }
 0x3da   : > { %2960 = vmatpush2.msra.mxu0 %v2293_v61  ;;  %3031 = vmatpush2.msra.mxu1 %v2549_v63 }
 0x3db   : > { %2961 = vmatprep.subr.mxu0 %v2286_v0  ;;  %3032 = vmatprep.subr.mxu1 %v2542_v1  ;;  %v2231_v0 = vld [vmem:[#allocation21 + $0x3b0] sm:$0xff] }
 0x3dc   : > { %2962 = vmatpush2.msra.mxu0 %v2285_v2  ;;  %3033 = vmatpush2.msra.mxu1 %v2541_v4  ;;  %v2487_v1 = vld [vmem:[#allocation21 + $0xbb0] sm:$0xff] }
 0x3dd   : > { %2963 = vmatprep.subr.mxu0 %v2278_v8  ;;  %3034 = vmatprep.subr.mxu1 %v2534_v9 }
 0x3de   : > { %2964 = vmatpush2.msra.mxu0 %v2277_v10  ;;  %3035 = vmatpush2.msra.mxu1 %v2533_v11  ;;  %v2224_v10 = vld [vmem:[#allocation21 + $0x378] sm:$0xff] }
 0x3df   : > { %2965 = vmatprep.subr.mxu0 %v2270_v12  ;;  %3036 = vmatprep.subr.mxu1 %v2526_v13  ;;  %v2480_v11 = vld [vmem:[#allocation21 + $0xb78] sm:$0xff] }
 0x3e0   : > { %2966 = vmatpush2.msra.mxu0 %v2269_v15  ;;  %3037 = vmatpush2.msra.mxu1 %v2525_v16 }
 0x3e1   : > { %2967 = vmatprep.subr.mxu0 %v2262_v18  ;;  %3038 = vmatprep.subr.mxu1 %v2518_v19  ;;  %v2479_v18 = vld [vmem:[#allocation21 + $0xb70] sm:$0xff] }
 0x3e2   : > { %2968 = vmatpush2.msra.mxu0 %v2261_v20  ;;  %3039 = vmatpush2.msra.mxu1 %v2517_v21 }
 0x3e3   : > { %2969 = vmatprep.subr.mxu0 %v2254_v23  ;;  %3040 = vmatprep.subr.mxu1 %v2510_v24  ;;  %v1373_v31 = vpop.f32.mrf.mxu0  ;;  %v1444_v5 = vpop.f32.mrf.mxu1  ;;  %v2216_v24 = vld [vmem:[#allocation21 + $0x338] sm:$0xff] }
 0x3e4   : > { %2970 = vmatpush2.msra.mxu0 %v2253_v27  ;;  %3041 = vmatpush2.msra.mxu1 %v2509_v28  ;;  %v7416_v33 = vadd.f32 %v1373_v31, %v1290_v25  ;;  %v7418_v34 = vadd.f32 %v1444_v5, %v1298_v26  ;;  %v2472_v25 = vld [vmem:[#allocation21 + $0xb38] sm:$0xff] }
 0x3e5   : > { %2971 = vmatprep.subr.mxu0 %v2246_v29  ;;  %3042 = vmatprep.subr.mxu1 %v2502_v3  ;;  %v1375_v35 = vpop.f32.mrf.mxu0  ;;  %v1446_v36 = vpop.f32.mrf.mxu1  ;;  %v2215_v3 = vld [vmem:[#allocation21 + $0x330] sm:$0xff] }
 0x3e6   : > { %2972 = vmatpush2.msra.mxu0 %v2245_v30  ;;  %2973 = vmatprep.mubr.f32.mxu0 %v7420_v37  ;;  %v1451_v40 = vrot.slane %v7416_v33, 4  ;;  %v1475_v41 = vmul.f32 %v7416_v33, %v7416_v33  ;;  %v1463_v42 = vrot.slane %v7418_v34, 4  ;;  %v1477_v43 = vmul.f32 %v7418_v34, %v7418_v34  ;;  %v2471_v30 = vld [vmem:[#allocation21 + $0xb30] sm:$0xff] }
 0x3e7   : > { %3043 = vmatpush2.msra.mxu1 %v2501_v7  ;;  %3044 = vmatprep.mubr.f32.mxu1 %v7429_v44  ;;  %v7432_v47 = vadd.f32 %v1375_v35, %v1294_v32  ;;  %v7434_v48 = vadd.f32 %v1446_v36, %v1302_v6  ;;  %v2208_v7 = vld [vmem:[#allocation21 + $0x2f8] sm:$0xff] }
 0x3e8   : > { %2974 = vmatmul.mubr.f32.vlgmr.msra.gmra.mxu0 %v7436_v49  ;;  %3045 = vmatmul.mubr.f32.vlgmr.msra.gmra.mxu1 %v7439_v50  ;;  %v1452_v51 = vadd.f32 %v1451_v40, %v7416_v33  ;;  %v1479_v52 = vrot.slane %v1475_v41, 4  ;;  %v1464_v53 = vadd.f32 %v1463_v42, %v7418_v34  ;;  %v1491_v54 = vrot.slane %v1477_v43, 4  ;;  %v2464_v35 = vld [vmem:[#allocation21 + $0xaf8] sm:$0xff]  ;;  %v2463_v42 = vld [vmem:[#allocation21 + $0xaf0] sm:$0xff] }
 0x3e9   : > { %3051 = vmatprep.subr.mxu0 %v2240_v38  ;;  %3122 = vmatprep.subr.mxu1 %v2496_v39  ;;  %v1457_v57 = vrot.slane %v7432_v47, 4  ;;  %v1476_v58 = vmul.f32 %v7432_v47, %v7432_v47  ;;  %v1469_v61 = vrot.slane %v7434_v48, 4  ;;  %v1478_v63 = vmul.f32 %v7434_v48, %v7434_v48 }
 0x3ea   : > { %v1453_v2 = vrot.slane %v1452_v51, 2  ;;  %v1480_v4 = vadd.f32 %v1479_v52, %v1475_v41  ;;  %v1465_v8 = vrot.slane %v1464_v53, 2  ;;  %v1492_v9 = vadd.f32 %v1491_v54, %v1477_v43  ;;  %3052 = vmatpush1.msra.mxu0 %v2239_v45  ;;  %3123 = vmatpush1.msra.mxu1 %v2495_v46  ;;  %v2207_v41 = vld [vmem:[#allocation21 + $0x2f0] sm:$0xff]  ;;  %v2200_v52 = vld [vmem:[#allocation21 + $0x2b8] sm:$0xff] }
 0x3eb   : > { %3053 = vmatprep.subr.mxu0 %v2232_v55  ;;  %3124 = vmatprep.subr.mxu1 %v2488_v56  ;;  %v1458_v12 = vadd.f32 %v1457_v57, %v7432_v47  ;;  %v1485_v13 = vrot.slane %v1476_v58, 4  ;;  %v1470_v15 = vadd.f32 %v1469_v61, %v7434_v48  ;;  %v1497_v16 = vrot.slane %v1478_v63, 4  ;;  %v2199_v54 = vld [vmem:[#allocation21 + $0x2b0] sm:$0xff] }
 0x3ec   : > { %v1454_v19 = vadd.f32 %v1453_v2, %v1452_v51  ;;  %v1481_v20 = vrot.slane %v1480_v4, 2  ;;  %v1466_v21 = vadd.f32 %v1465_v8, %v1464_v53  ;;  %v1493_v23 = vrot.slane %v1492_v9, 2  ;;  %3054 = vmatpush1.msra.mxu0 %v2231_v0  ;;  %3125 = vmatpush1.msra.mxu1 %v2487_v1  ;;  %v2456_v53 = vld [vmem:[#allocation21 + $0xab8] sm:$0xff]  ;;  %v2455_v55 = vld [vmem:[#allocation21 + $0xab0] sm:$0xff] }
 0x3ed   : > { %v1459_v26 = vrot.slane %v1458_v12, 2  ;;  %v1486_v27 = vadd.f32 %v1485_v13, %v1476_v58  ;;  %v1471_v28 = vrot.slane %v1470_v15, 2  ;;  %v1498_v29 = vadd.f32 %v1497_v16, %v1478_v63  ;;  %3055 = vmatprep.subr.mxu0 %v2224_v10  ;;  %3126 = vmatprep.subr.mxu1 %v2480_v11  ;;  %v2192_v63 = vld [vmem:[#allocation21 + $0x278] sm:$0xff]  ;;  %v2191_v8 = vld [vmem:[#allocation21 + $0x270] sm:$0xff] }
 0x3ee   : > { %v1455_v31 = vrot.slane %v1454_v19, 1  ;;  %v1482_v5 = vadd.f32 %v1481_v20, %v1480_v4  ;;  %v1467_v32 = vrot.slane %v1466_v21, 1  ;;  %v1494_v6 = vadd.f32 %v1493_v23, %v1492_v9  ;;  %3056 = vmatpush1.msra.mxu0 %v2223_v17  ;;  %3127 = vmatpush1.msra.mxu1 %v2479_v18  ;;  %v2448_v0 = vld [vmem:[#allocation21 + $0xa78] sm:$0xff]  ;;  %v2447_v9 = vld [vmem:[#allocation21 + $0xa70] sm:$0xff] }
 0x3ef   : > { %v1460_v36 = vadd.f32 %v1459_v26, %v1458_v12  ;;  %v1487_v38 = vrot.slane %v1486_v27, 2  ;;  %v1472_v39 = vadd.f32 %v1471_v28, %v1470_v15  ;;  %v1499_v40 = vrot.slane %v1498_v29, 2  ;;  %3057 = vmatprep.subr.mxu0 %v2216_v24  ;;  %3128 = vmatprep.subr.mxu1 %v2472_v25  ;;  %v2184_v15 = vld [vmem:[#allocation21 + $0x238] sm:$0xff]  ;;  %v2183_v18 = vld [vmem:[#allocation21 + $0x230] sm:$0xff] }
 0x3f0   : > { %v1456_v43 = vadd.f32 %v1455_v31, %v1454_v19  ;;  %v1483_v45 = vrot.slane %v1482_v5, 1  ;;  %v1468_v46 = vadd.f32 %v1467_v32, %v1466_v21  ;;  %v1495_v51 = vrot.slane %v1494_v6, 1  ;;  %3058 = vmatpush1.msra.mxu0 %v2215_v3  ;;  %3129 = vmatpush1.msra.mxu1 %v2471_v30  ;;  %v2440_v16 = vld [vmem:[#allocation21 + $0xa38] sm:$0xff]  ;;  %v2439_v19 = vld [vmem:[#allocation21 + $0xa30] sm:$0xff] }
 0x3f1   : > { %3059 = vmatprep.subr.mxu0 %v2208_v7  ;;  %3130 = vmatprep.subr.mxu1 %v2464_v35  ;;  %v1461_v1 = vrot.slane %v1460_v36, 1  ;;  %v1488_v2 = vadd.f32 %v1487_v38, %v1486_v27  ;;  %v1473_v4 = vrot.slane %v1472_v39, 1  ;;  %v1500_v13 = vadd.f32 %v1499_v40, %v1498_v29  ;;  %v2176_v21 = vld [vmem:[#allocation21 + $0x1f8] sm:$0xff]  ;;  %v2175_v27 = vld [vmem:[#allocation21 + $0x1f0] sm:$0xff] }
 0x3f2   : > { %v1484_v56 = vadd.f32 %v1483_v45, %v1482_v5  ;;  %v7452_v57 = vmul.f32 0.125, %v1456_v43  ;;  %v1496_v58 = vadd.f32 %v1495_v51, %v1494_v6  ;;  %v7454_v61 = vmul.f32 0.125, %v1468_v46  ;;  %3060 = vmatpush1.msra.mxu0 %v2207_v41  ;;  %3131 = vmatpush1.msra.mxu1 %v2463_v42  ;;  %v2432_v23 = vld [vmem:[#allocation21 + $0x9f8] sm:$0xff]  ;;  %v2431_v28 = vld [vmem:[#allocation21 + $0x9f0] sm:$0xff] }
 0x3f3   : > { %3061 = vmatprep.subr.mxu0 %v2200_v52  ;;  %3132 = vmatprep.subr.mxu1 %v2456_v53  ;;  %v1462_v25 = vadd.f32 %v1461_v1, %v1460_v36  ;;  %v1489_v26 = vrot.slane %v1488_v2, 1  ;;  %v1474_v3 = vadd.f32 %v1473_v4, %v1472_v39  ;;  %v1501_v30 = vrot.slane %v1500_v13, 1  ;;  %v2168_v31 = vld [vmem:[#allocation21 + $0x1b8] sm:$0xff]  ;;  %v2167_v6 = vld [vmem:[#allocation21 + $0x1b0] sm:$0xff] }
 0x3f4   : > { %v1507_v10 = vmul.f32 0.125, %v1484_v56  ;;  %v1511_v11 = vmul.f32 %v7452_v57, %v7452_v57  ;;  %v1509_v12 = vmul.f32 0.125, %v1496_v58  ;;  %3062 = vmatpush1.msra.mxu0 %v2199_v54  ;;  %3133 = vmatpush1.msra.mxu1 %v2455_v55  ;;  %v1513_v17 = vmul.f32 %v7454_v61, %v7454_v61  ;;  %v2424_v5 = vld [vmem:[#allocation21 + $0x9b8] sm:$0xff]  ;;  %v2423_v7 = vld [vmem:[#allocation21 + $0x9b0] sm:$0xff] }
 0x3f5   : > { %3063 = vmatprep.subr.mxu0 %v2192_v63  ;;  %3134 = vmatprep.subr.mxu1 %v2448_v0  ;;  %v2160_v35 = vld [vmem:[#allocation21 + $0x178] sm:$0xff]  ;;  %v1490_v38 = vadd.f32 %v1489_v26, %v1488_v2  ;;  %v7460_v40 = vmul.f32 0.125, %v1462_v25  ;;  %v2159_v39 = vld [vmem:[#allocation21 + $0x170] sm:$0xff]  ;;  %v1502_v42 = vadd.f32 %v1501_v30, %v1500_v13  ;;  %v7462_v43 = vmul.f32 0.125, %v1474_v3 }
 0x3f6   : > { %v1515_v20 = vsub.f32 %v1507_v10, %v1511_v11  ;;  %3064 = vmatpush1.msra.mxu0 %v2191_v8  ;;  %3135 = vmatpush1.msra.mxu1 %v2447_v9  ;;  %v1517_v24 = vsub.f32 %v1509_v12, %v1513_v17  ;;  %v2416_v36 = vld [vmem:[#allocation21 + $0x978] sm:$0xff]  ;;  %v2415_v41 = vld [vmem:[#allocation21 + $0x970] sm:$0xff] }
 0x3f7   : > { %3065 = vmatprep.subr.mxu0 %v2184_v15  ;;  %3136 = vmatprep.subr.mxu1 %v2440_v16  ;;  %v2152_v45 = vld [vmem:[#allocation21 + $0x138] sm:$0xff]  ;;  %v2151_v51 = vld [vmem:[#allocation21 + $0x130] sm:$0xff]  ;;  %v1508_v55 = vmul.f32 0.125, %v1490_v38  ;;  %v1512_v56 = vmul.f32 %v7460_v40, %v7460_v40  ;;  %v1510_v0 = vmul.f32 0.125, %v1502_v42  ;;  %v1514_v1 = vmul.f32 %v7462_v43, %v7462_v43 }
 0x3f8   : > { %v1523_v29 = vadd.f32 0.8, %v1515_v20  ;;  %3066 = vmatpush1.msra.mxu0 %v2183_v18  ;;  %3137 = vmatpush1.msra.mxu1 %v2439_v19  ;;  %v1525_v32 = vadd.f32 0.8, %v1517_v24  ;;  %v2408_v46 = vld [vmem:[#allocation21 + $0x938] sm:$0xff]  ;;  %v2407_v52 = vld [vmem:[#allocation21 + $0x930] sm:$0xff]  ;;  %v1519_v24 = vsub.f32 %v7416_v33, %v7452_v57 }
 0x3f9   : > { %3067 = vmatprep.subr.mxu0 %v2176_v21  ;;  %3138 = vmatprep.subr.mxu1 %v2432_v23  ;;  %v2144_v53 = vld [vmem:[#allocation21 + $0xf8] sm:$0xff]  ;;  %v2143_v58 = vld [vmem:[#allocation21 + $0xf0] sm:$0xff]  ;;  %v1516_v12 = vsub.f32 %v1508_v55, %v1512_v56  ;;  %v1518_v17 = vsub.f32 %v1510_v0, %v1514_v1 }
 0x3fa   : > { %6330 = vrsqrt.f32 %v1523_v29  ;;  %3068 = vmatpush1.msra.mxu0 %v2175_v27  ;;  %3139 = vmatpush1.msra.mxu1 %v2431_v28  ;;  %v2400_v54 = vld [vmem:[#allocation21 + $0x8f8] sm:$0xff]  ;;  %v2399_v63 = vld [vmem:[#allocation21 + $0x8f0] sm:$0xff]  ;;  %v1521_v29 = vsub.f32 %v7418_v34, %v7454_v61 }
 0x3fb   : > { %6332 = vrsqrt.f32 %v1525_v32  ;;  %3069 = vmatprep.subr.mxu0 %v2168_v31  ;;  %3140 = vmatprep.subr.mxu1 %v2424_v5  ;;  %v2136_v2 = vld [vmem:[#allocation21 + $0xb8] sm:$0xff]  ;;  %v2135_v8 = vld [vmem:[#allocation21 + $0xb0] sm:$0xff]  ;;  %v1524_v3 = vadd.f32 0.8, %v1516_v12  ;;  %v1526_v32 = vadd.f32 0.8, %v1518_v17 }
 0x3fc   : > { %3070 = vmatpush1.msra.mxu0 %v2167_v6  ;;  %3141 = vmatpush1.msra.mxu1 %v2423_v7  ;;  %v2392_v4 = vld [vmem:[#allocation21 + $0x8b8] sm:$0xff]  ;;  %v2391_v9 = vld [vmem:[#allocation21 + $0x8b0] sm:$0xff] }
 0x3fd   : > { %3071 = vmatprep.subr.mxu0 %v2160_v35  ;;  %3142 = vmatprep.subr.mxu1 %v2416_v36  ;;  %v2128_v10 = vld [vmem:[#allocation21 + $0x78] sm:$0xff]  ;;  %v2127_v13 = vld [vmem:[#allocation21 + $0x70] sm:$0xff]  ;;  %6334 = vrsqrt.f32 %v1524_v3 }
 0x3fe   : > { %3072 = vmatpush1.msra.mxu0 %v2159_v39  ;;  %3143 = vmatpush1.msra.mxu1 %v2415_v41  ;;  %v2384_v11 = vld [vmem:[#allocation21 + $0x878] sm:$0xff]  ;;  %v2383_v15 = vld [vmem:[#allocation21 + $0x870] sm:$0xff]  ;;  %6336 = vrsqrt.f32 %v1526_v32 }
 0x3ff   : > { %3073 = vmatprep.subr.mxu0 %v2152_v45  ;;  %3144 = vmatprep.subr.mxu1 %v2408_v46  ;;  %v7468_v16 = vld [vmem:[#allocation16] sm:$0xf]  ;;  %v2119_v20 = vld [vmem:[#allocation21 + $0x30] sm:$0xff]  ;;  %v7470_v23 = vld [vmem:[#allocation18] sm:$0xf] }
 0x400   : > { %3074 = vmatpush1.msra.mxu0 %v2151_v51  ;;  %3145 = vmatpush1.msra.mxu1 %v2407_v52  ;;  %v2120_v18 = vld [vmem:[#allocation21 + $0x38] sm:$0xff]  ;;  %v2375_v21 = vld [vmem:[#allocation21 + $0x830] sm:$0xff]  ;;  %v1539_v27 = vrot.slane %v7468_v16, %v7379_v60  ;;  %v1547_v5 = vrot.slane %v7468_v16, %v7407_v14  ;;  %v1564_v35 = vrot.slane %v7470_v23, %v7379_v60 }
 0x401   : > { %3075 = vmatprep.subr.mxu0 %v2144_v53  ;;  %3146 = vmatprep.subr.mxu1 %v2400_v54  ;;  %v2376_v19 = vld [vmem:[#allocation21 + $0x838] sm:$0xff]  ;;  %v2367_v30 = vld [vmem:[#allocation21 + $0x7f0] sm:$0xff]  ;;  %v1572_v38 = vrot.slane %v7470_v23, %v7407_v14 }
 0x402   : > { %3076 = vmatpush1.msra.mxu0 %v2143_v58  ;;  %3147 = vmatpush1.msra.mxu1 %v2399_v63  ;;  %v2368_v25 = vld [vmem:[#allocation21 + $0x7f8] sm:$0xff]  ;;  %v2623_v31 = vld [vmem:[#allocation21 + $0xff0] sm:$0xff] }
 0x403   : > { %3077 = vmatprep.subr.mxu0 %v2136_v2  ;;  %3148 = vmatprep.subr.mxu1 %v2392_v4  ;;  %v2624_v26 = vld [vmem:[#allocation21 + $0xff8] sm:$0xff]  ;;  %v2359_v34 = vld [vmem:[#allocation21 + $0x7b0] sm:$0xff] }
 0x404   : > { %3078 = vmatpush1.msra.mxu0 %v2135_v8  ;;  %3149 = vmatpush1.msra.mxu1 %v2391_v9  ;;  %v2360_v6 = vld [vmem:[#allocation21 + $0x7b8] sm:$0xff]  ;;  %v2615_v61 = vld [vmem:[#allocation21 + $0xfb0] sm:$0xff] }
 0x405   : > { %3079 = vmatprep.subr.mxu0 %v2128_v10  ;;  %3150 = vmatprep.subr.mxu1 %v2384_v11  ;;  %v2616_v7 = vld [vmem:[#allocation21 + $0xfb8] sm:$0xff]  ;;  %v2351_v45 = vld [vmem:[#allocation21 + $0x770] sm:$0xff] }
 0x406   : > { %3080 = vmatpush1.msra.mxu0 %v2127_v13  ;;  %3151 = vmatpush1.msra.mxu1 %v2383_v15  ;;  %v2352_v39 = vld [vmem:[#allocation21 + $0x778] sm:$0xff]  ;;  %v2607_v46 = vld [vmem:[#allocation21 + $0xf70] sm:$0xff] }
 0x407   : > { %v6331_v28 = vpop.eup %6330  ;;  %3081 = vmatprep.subr.mxu0 %v2120_v18  ;;  %3152 = vmatprep.subr.mxu1 %v2376_v19  ;;  %v2608_v41 = vld [vmem:[#allocation21 + $0xf78] sm:$0xff]  ;;  %v2343_v55 = vld [vmem:[#allocation21 + $0x730] sm:$0xff] }
 0x408   : > { %v6333_v33 = vpop.eup %6332  ;;  %v1531_v57 = vmul.f32 %v6331_v28, %v1519_v24  ;;  %3082 = vmatpush1.msra.mxu0 %v2119_v20  ;;  %3153 = vmatpush1.msra.mxu1 %v2375_v21  ;;  %v2344_v52 = vld [vmem:[#allocation21 + $0x738] sm:$0xff]  ;;  %v2599_v56 = vld [vmem:[#allocation21 + $0xf30] sm:$0xff] }
 0x409   : > { %v1533_v36 = vmul.f32 %v6333_v33, %v1521_v29  ;;  %3083 = vmatprep.subr.mxu0 %v2368_v25  ;;  %3154 = vmatprep.subr.mxu1 %v2624_v26  ;;  %v2600_v53 = vld [vmem:[#allocation21 + $0xf38] sm:$0xff]  ;;  %v2335_v1 = vld [vmem:[#allocation21 + $0x6f0] sm:$0xff]  ;;  %v1522_v33 = vsub.f32 %v7434_v48, %v7462_v43  ;;  %v1551_v48 = vrot.slane %v7468_v16, %v7410_v22 }
 0x40a   : > { %3084 = vmatpush2.msra.mxu0 %v2367_v30  ;;  %3155 = vmatpush2.msra.mxu1 %v2623_v31  ;;  %v1556_v42 = vmul.f32 %v1539_v27, %v1531_v57  ;;  %v2336_v63 = vld [vmem:[#allocation21 + $0x6f8] sm:$0xff]  ;;  %v2591_v2 = vld [vmem:[#allocation21 + $0xef0] sm:$0xff]  ;;  %v6335_v27 = vpop.eup %6334  ;;  %v1520_v30 = vsub.f32 %v7432_v47, %v7460_v40 }
 0x40b   : > { %3085 = vmatprep.subr.mxu0 %v2360_v6  ;;  %3156 = vmatprep.subr.mxu1 %v2616_v7  ;;  %v1558_v51 = vmul.f32 %v1547_v5, %v1533_v36  ;;  %v2592_v0 = vld [vmem:[#allocation21 + $0xef8] sm:$0xff]  ;;  %v2327_v9 = vld [vmem:[#allocation21 + $0x6b0] sm:$0xff]  ;;  %v6337_v3 = vpop.eup %6336  ;;  %v1543_v36 = vrot.slane %v7468_v16, %v7382_v62 }
 0x40c   : > { %3086 = vmatpush2.msra.mxu0 %v2359_v34  ;;  %3157 = vmatpush2.msra.mxu1 %v2615_v61  ;;  %v7484_v54 = vadd.f32 %v1564_v35, %v1556_v42  ;;  %v2328_v4 = vld [vmem:[#allocation21 + $0x6b8] sm:$0xff]  ;;  %v2583_v10 = vld [vmem:[#allocation21 + $0xeb0] sm:$0xff]  ;;  %v1532_v6 = vmul.f32 %v6335_v27, %v1520_v30  ;;  %v1534_v47 = vmul.f32 %v6337_v3, %v1522_v33  ;;  %v1957_v27 = vld [vmem:[#allocation19 + $0xb40] sm:$0xff] }
 0x40d   : > { %3087 = vmatprep.subr.mxu0 %v2352_v39  ;;  %3158 = vmatprep.subr.mxu1 %v2608_v41  ;;  %v7486_v58 = vadd.f32 %v1572_v38, %v1558_v51  ;;  %v2584_v8 = vld [vmem:[#allocation21 + $0xeb8] sm:$0xff]  ;;  %v2319_v13 = vld [vmem:[#allocation21 + $0x670] sm:$0xff]  ;;  %v1693_v3 = vld [vmem:[#allocation19 + $0x300] sm:$0xff] }
 0x40e   : > { %3088 = vmatpush2.msra.mxu0 %v2351_v45  ;;  %3159 = vmatpush2.msra.mxu1 %v2607_v46  ;;  %v2320_v11 = vld [vmem:[#allocation21 + $0x678] sm:$0xff]  ;;  %v2575_v15 = vld [vmem:[#allocation21 + $0xe70] sm:$0xff]  ;;  %v1557_v45 = vmul.f32 %v1543_v36, %v1532_v6  ;;  %v1568_v46 = vrot.slane %v7470_v23, %v7382_v62  ;;  %v1949_v30 = vld [vmem:[#allocation19 + $0xb00] sm:$0xff]  ;;  %vm1585_vm6 = vcmp.gt.f32.partialorder %v7484_v54, 0.0 }
 0x40f   : > { %3089 = vmatprep.subr.mxu0 %v2344_v52  ;;  %3160 = vmatprep.subr.mxu1 %v2600_v53  ;;  %v2576_v12 = vld [vmem:[#allocation21 + $0xe78] sm:$0xff]  ;;  %v2311_v19 = vld [vmem:[#allocation21 + $0x630] sm:$0xff]  ;;  %v1559_v52 = vmul.f32 %v1551_v48, %v1534_v47  ;;  %v1576_v53 = vrot.slane %v7470_v23, %v7410_v22  ;;  %v1685_v33 = vld [vmem:[#allocation19 + $0x2c0] sm:$0xff]  ;;  %vm1587_vm7 = vcmp.gt.f32.partialorder %v7486_v58, 0.0 }
 0x410   : > { %3090 = vmatpush2.msra.mxu0 %v2343_v55  ;;  %3161 = vmatpush2.msra.mxu1 %v2599_v56  ;;  %v2312_v17 = vld [vmem:[#allocation21 + $0x638] sm:$0xff]  ;;  %v2567_v20 = vld [vmem:[#allocation21 + $0xe30] sm:$0xff]  ;;  %v1934_v6 = vld [vmem:[#allocation19 + $0xa88] sm:$0xff] }
 0x411   : > { %3091 = vmatprep.subr.mxu0 %v2336_v63  ;;  %3162 = vmatprep.subr.mxu1 %v2592_v0  ;;  %v2568_v18 = vld [vmem:[#allocation21 + $0xe38] sm:$0xff]  ;;  %v2303_v25 = vld [vmem:[#allocation21 + $0x5f0] sm:$0xff]  ;;  %v1670_v36 = vld [vmem:[#allocation19 + $0x248] sm:$0xff] }
 0x412   : > { %3092 = vmatpush2.msra.mxu0 %v2335_v1  ;;  %3163 = vmatpush2.msra.mxu1 %v2591_v2  ;;  %v2304_v21 = vld [vmem:[#allocation21 + $0x5f8] sm:$0xff]  ;;  %v2559_v26 = vld [vmem:[#allocation21 + $0xdf0] sm:$0xff]  ;;  %v1926_v47 = vld [vmem:[#allocation19 + $0xa48] sm:$0xff] }
 0x413   : > { %3093 = vmatprep.subr.mxu0 %v2328_v4  ;;  %3164 = vmatprep.subr.mxu1 %v2584_v8  ;;  %v2560_v24 = vld [vmem:[#allocation21 + $0xdf8] sm:$0xff]  ;;  %v2295_v31 = vld [vmem:[#allocation21 + $0x5b0] sm:$0xff]  ;;  %v1582_v4 = vadd.f32 %v1568_v46, %v1557_v45  ;;  %v1662_v48 = vld [vmem:[#allocation19 + $0x208] sm:$0xff] }
 0x414   : > { %3094 = vmatpush2.msra.mxu0 %v2327_v9  ;;  %3165 = vmatpush2.msra.mxu1 %v2583_v10  ;;  %v2296_v28 = vld [vmem:[#allocation21 + $0x5b8] sm:$0xff]  ;;  %v2551_v5 = vld [vmem:[#allocation21 + $0xdb0] sm:$0xff]  ;;  %v1584_v10 = vadd.f32 %v1576_v53, %v1559_v52  ;;  %v1909_v45 = vld [vmem:[#allocation19 + $0x9c0] sm:$0xff] }
 0x415   : > { %3095 = vmatprep.subr.mxu0 %v2320_v11  ;;  %3166 = vmatprep.subr.mxu1 %v2576_v12  ;;  %v2552_v29 = vld [vmem:[#allocation21 + $0xdb8] sm:$0xff]  ;;  %v2287_v7 = vld [vmem:[#allocation21 + $0x570] sm:$0xff]  ;;  %v1590_v12 = vmul.f32 0.2, %v1582_v4  ;;  %vm1586_vm4 = vcmp.gt.f32.partialorder %v1582_v4, 0.0  ;;  %v1646_v46 = vld [vmem:[#allocation19 + $0x188] sm:$0xff] }
 0x416   : > { %3096 = vmatpush2.msra.mxu0 %v2319_v13  ;;  %3167 = vmatpush2.msra.mxu1 %v2575_v15  ;;  %v2288_v57 = vld [vmem:[#allocation21 + $0x578] sm:$0xff]  ;;  %v2543_v35 = vld [vmem:[#allocation21 + $0xd70] sm:$0xff]  ;;  %v1718_v13 = vld [vmem:[#allocation19 + $0x3c8] sm:$0xff]  ;;  %vm1588_vm5 = vcmp.gt.f32.partialorder %v1584_v10, 0.0 }
 0x417   : > { %3097 = vmatprep.subr.mxu0 %v2312_v17  ;;  %3168 = vmatprep.subr.mxu1 %v2568_v18  ;;  %v2544_v32 = vld [vmem:[#allocation21 + $0xd78] sm:$0xff]  ;;  %v2279_v43 = vld [vmem:[#allocation21 + $0x530] sm:$0xff]  ;;  %v1974_v15 = vld [vmem:[#allocation19 + $0xbc8] sm:$0xff]  ;;  %v1592_v17 = vmul.f32 0.2, %v1584_v10 }
 0x418   : > { %3098 = vmatpush2.msra.mxu0 %v2311_v19  ;;  %3169 = vmatpush2.msra.mxu1 %v2567_v20  ;;  %v2280_v40 = vld [vmem:[#allocation21 + $0x538] sm:$0xff]  ;;  %v2535_v61 = vld [vmem:[#allocation21 + $0xd30] sm:$0xff]  ;;  %v1717_v18 = vld [vmem:[#allocation19 + $0x3c0] sm:$0xff]  ;;  %v7504_v20 = vsel %vm1586_vm4, %v1582_v4, %v1590_v12 }
 0x419   : > { %3099 = vmatprep.subr.mxu0 %v2304_v21  ;;  %3170 = vmatprep.subr.mxu1 %v2560_v24  ;;  %v2536_v34 = vld [vmem:[#allocation21 + $0xd38] sm:$0xff]  ;;  %v2271_v41 = vld [vmem:[#allocation21 + $0x4f0] sm:$0xff]  ;;  %v1973_v19 = vld [vmem:[#allocation19 + $0xbc0] sm:$0xff]  ;;  %v7507_v24 = vsel %vm1588_vm5, %v1584_v10, %v1592_v17 }
 0x41a   : > { %3100 = vmatpush2.msra.mxu0 %v2303_v25  ;;  %3171 = vmatpush2.msra.mxu1 %v2559_v26  ;;  %v2272_v38 = vld [vmem:[#allocation21 + $0x4f8] sm:$0xff]  ;;  %v2527_v42 = vld [vmem:[#allocation21 + $0xcf0] sm:$0xff]  ;;  %v1710_v21 = vld [vmem:[#allocation19 + $0x388] sm:$0xff] }
 0x41b   : > { %3101 = vmatprep.subr.mxu0 %v2296_v28  ;;  %3172 = vmatprep.subr.mxu1 %v2552_v29  ;;  %v2528_v39 = vld [vmem:[#allocation21 + $0xcf8] sm:$0xff]  ;;  %v2263_v55 = vld [vmem:[#allocation21 + $0x4b0] sm:$0xff]  ;;  %v1709_v25 = vld [vmem:[#allocation19 + $0x380] sm:$0xff] }
 0x41c   : > { %3102 = vmatpush2.msra.mxu0 %v2295_v31  ;;  %3173 = vmatpush2.msra.mxu1 %v2551_v5  ;;  %v2264_v51 = vld [vmem:[#allocation21 + $0x4b8] sm:$0xff]  ;;  %v2519_v56 = vld [vmem:[#allocation21 + $0xcb0] sm:$0xff]  ;;  %v1958_v26 = vld [vmem:[#allocation19 + $0xb48] sm:$0xff] }
 0x41d   : > { %3103 = vmatprep.subr.mxu0 %v2288_v57  ;;  %3174 = vmatprep.subr.mxu1 %v2544_v32  ;;  %v2520_v16 = vld [vmem:[#allocation21 + $0xcb8] sm:$0xff]  ;;  %v2255_v1 = vld [vmem:[#allocation21 + $0x470] sm:$0xff]  ;;  %v1694_v28 = vld [vmem:[#allocation19 + $0x308] sm:$0xff] }
 0x41e   : > { %3104 = vmatpush2.msra.mxu0 %v2287_v7  ;;  %3175 = vmatpush2.msra.mxu1 %v2543_v35  ;;  %v2256_v63 = vld [vmem:[#allocation21 + $0x478] sm:$0xff]  ;;  %v2511_v2 = vld [vmem:[#allocation21 + $0xc70] sm:$0xff]  ;;  %v1950_v29 = vld [vmem:[#allocation19 + $0xb08] sm:$0xff] }
 0x41f   : > { %3105 = vmatprep.subr.mxu0 %v2280_v40  ;;  %3176 = vmatprep.subr.mxu1 %v2536_v34  ;;  %v2512_v0 = vld [vmem:[#allocation21 + $0xc78] sm:$0xff]  ;;  %v2247_v23 = vld [vmem:[#allocation21 + $0x430] sm:$0xff]  ;;  %v1686_v31 = vld [vmem:[#allocation19 + $0x2c8] sm:$0xff] }
 0x420   : > { %3106 = vmatpush2.msra.mxu0 %v2279_v43  ;;  %3177 = vmatpush2.msra.mxu1 %v2535_v61  ;;  %v2248_v8 = vld [vmem:[#allocation21 + $0x438] sm:$0xff]  ;;  %v2503_v11 = vld [vmem:[#allocation21 + $0xc30] sm:$0xff]  ;;  %v1942_v5 = vld [vmem:[#allocation19 + $0xac8] sm:$0xff] }
 0x421   : > { %3107 = vmatprep.subr.mxu0 %v2272_v38  ;;  %3178 = vmatprep.subr.mxu1 %v2528_v39  ;;  %v2504_v9 = vld [vmem:[#allocation21 + $0xc38] sm:$0xff]  ;;  %v1941_v57 = vld [vmem:[#allocation19 + $0xac0] sm:$0xff]  ;;  %v1678_v32 = vld [vmem:[#allocation19 + $0x288] sm:$0xff] }
 0x422   : > { %3108 = vmatpush2.msra.mxu0 %v2271_v41  ;;  %3179 = vmatpush2.msra.mxu1 %v2527_v42  ;;  %v1677_v7 = vld [vmem:[#allocation19 + $0x280] sm:$0xff]  ;;  %v1918_v43 = vld [vmem:[#allocation19 + $0xa08] sm:$0xff] }
 0x423   : > { %3109 = vmatprep.subr.mxu0 %v2264_v51  ;;  %3180 = vmatprep.subr.mxu1 %v2520_v16  ;;  %v1933_v35 = vld [vmem:[#allocation19 + $0xa80] sm:$0xff]  ;;  %v1654_v39 = vld [vmem:[#allocation19 + $0x1c8] sm:$0xff] }
 0x424   : > { %3110 = vmatpush2.msra.mxu0 %v2263_v55  ;;  %3181 = vmatpush2.msra.mxu1 %v2519_v56  ;;  %v1669_v40 = vld [vmem:[#allocation19 + $0x240] sm:$0xff]  ;;  %v1910_v41 = vld [vmem:[#allocation19 + $0x9c8] sm:$0xff] }
 0x425   : > { %3111 = vmatprep.subr.mxu0 %v2256_v63  ;;  %3182 = vmatprep.subr.mxu1 %v2512_v0  ;;  %v1925_v34 = vld [vmem:[#allocation19 + $0xa40] sm:$0xff]  ;;  %v1902_v51 = vld [vmem:[#allocation19 + $0x988] sm:$0xff] }
 0x426   : > { %3112 = vmatpush2.msra.mxu0 %v2255_v1  ;;  %3183 = vmatpush2.msra.mxu1 %v2511_v2  ;;  %v1661_v61 = vld [vmem:[#allocation19 + $0x200] sm:$0xff]  ;;  %v1638_v53 = vld [vmem:[#allocation19 + $0x148] sm:$0xff] }
 0x427   : > { %3113 = vmatprep.subr.mxu0 %v2248_v8  ;;  %3184 = vmatprep.subr.mxu1 %v2504_v9  ;;  %v1917_v38 = vld [vmem:[#allocation19 + $0xa00] sm:$0xff]  ;;  %v1894_v55 = vld [vmem:[#allocation19 + $0x948] sm:$0xff] }
 0x428   : > { %3114 = vmatpush2.msra.mxu0 %v2247_v23  ;;  %3115 = vmatprep.mubr.f32.mxu0 %v7420_v37  ;;  %v1966_v37 = vld [vmem:[#allocation19 + $0xb88] sm:$0xff]  ;;  %v1653_v42 = vld [vmem:[#allocation19 + $0x1c0] sm:$0xff] }
 0x429   : > { %3185 = vmatpush2.msra.mxu1 %v2503_v11  ;;  %3186 = vmatprep.mubr.f32.mxu1 %v7429_v44  ;;  %v1965_v44 = vld [vmem:[#allocation19 + $0xb80] sm:$0xff]  ;;  %v1630_v0 = vld [vmem:[#allocation19 + $0x108] sm:$0xff] }
 0x42a   : > { %3116 = vmatmul.mubr.f32.vlgmr.msra.gmra.mxu0 %v7436_v49  ;;  %3187 = vmatmul.mubr.f32.vlgmr.msra.gmra.mxu1 %v7439_v50  ;;  %v1702_v49 = vld [vmem:[#allocation19 + $0x348] sm:$0xff]  ;;  %v1701_v50 = vld [vmem:[#allocation19 + $0x340] sm:$0xff] }
 0x42b   : > { %3193 = vmatprep.subr.mxu0 %v1718_v13  ;;  %3264 = vmatprep.subr.mxu1 %v1974_v15  ;;  %v1645_v16 = vld [vmem:[#allocation19 + $0x180] sm:$0xff]  ;;  %v1886_v1 = vld [vmem:[#allocation19 + $0x908] sm:$0xff] }
 0x42c   : > { %3194 = vmatpush1.msra.mxu0 %v1717_v18  ;;  %3257 = vmatprep.mubr.f32.mxu0 %v7504_v20  ;;  %v1901_v52 = vld [vmem:[#allocation19 + $0x980] sm:$0xff]  ;;  %v1622_v8 = vld [vmem:[#allocation19 + $0xc8] sm:$0xff] }
 0x42d   : > { %3265 = vmatpush1.msra.mxu1 %v1973_v19  ;;  %3328 = vmatprep.mubr.f32.mxu1 %v7507_v24  ;;  %v1637_v56 = vld [vmem:[#allocation19 + $0x140] sm:$0xff]  ;;  %v1878_v9 = vld [vmem:[#allocation19 + $0x8c8] sm:$0xff] }
 0x42e   : > { %3195 = vmatprep.subr.mxu0 %v1710_v21  ;;  %3266 = vmatprep.subr.mxu1 %v1966_v37  ;;  %v1893_v63 = vld [vmem:[#allocation19 + $0x940] sm:$0xff]  ;;  %v1614_v11 = vld [vmem:[#allocation19 + $0x88] sm:$0xff] }
 0x42f   : > { %3196 = vmatpush1.msra.mxu0 %v1709_v25  ;;  %3267 = vmatpush1.msra.mxu1 %v1965_v44  ;;  %v1629_v2 = vld [vmem:[#allocation19 + $0x100] sm:$0xff]  ;;  %v1870_v12 = vld [vmem:[#allocation19 + $0x888] sm:$0xff] }
 0x430   : > { %3197 = vmatprep.subr.mxu0 %v1702_v49  ;;  %3268 = vmatprep.subr.mxu1 %v1958_v26  ;;  %v1885_v4 = vld [vmem:[#allocation19 + $0x900] sm:$0xff]  ;;  %v1606_v17 = vld [vmem:[#allocation19 + $0x48] sm:$0xff] }
 0x431   : > { %3198 = vmatpush1.msra.mxu0 %v1701_v50  ;;  %3269 = vmatpush1.msra.mxu1 %v1957_v27  ;;  %v1621_v10 = vld [vmem:[#allocation19 + $0xc0] sm:$0xff]  ;;  %v1862_v18 = vld [vmem:[#allocation19 + $0x848] sm:$0xff] }
 0x432   : > { %3199 = vmatprep.subr.mxu0 %v1694_v28  ;;  %3270 = vmatprep.subr.mxu1 %v1950_v29  ;;  %v1877_v23 = vld [vmem:[#allocation19 + $0x8c0] sm:$0xff]  ;;  %v1598_v37 = vld [vmem:[#allocation19 + $0x8] sm:$0xff] }
 0x433   : > { %3200 = vmatpush1.msra.mxu0 %v1693_v3  ;;  %3271 = vmatpush1.msra.mxu1 %v1949_v30  ;;  %v1613_v13 = vld [vmem:[#allocation19 + $0x80] sm:$0xff]  ;;  %v1854_v25 = vld [vmem:[#allocation19 + $0x808] sm:$0xff] }
 0x434   : > { %3201 = vmatprep.subr.mxu0 %v1686_v31  ;;  %3272 = vmatprep.subr.mxu1 %v1942_v5  ;;  %v1869_v15 = vld [vmem:[#allocation19 + $0x880] sm:$0xff]  ;;  %v1846_v26 = vld [vmem:[#allocation19 + $0x7c8] sm:$0xff] }
 0x435   : > { %3202 = vmatpush1.msra.mxu0 %v1685_v33  ;;  %3273 = vmatpush1.msra.mxu1 %v1941_v57  ;;  %v1605_v19 = vld [vmem:[#allocation19 + $0x40] sm:$0xff]  ;;  %v2102_v50 = vld [vmem:[#allocation19 + $0xfc8] sm:$0xff] }
 0x436   : > { %3203 = vmatprep.subr.mxu0 %v1678_v32  ;;  %3274 = vmatprep.subr.mxu1 %v1934_v6  ;;  %v1861_v21 = vld [vmem:[#allocation19 + $0x840] sm:$0xff]  ;;  %v1838_v29 = vld [vmem:[#allocation19 + $0x788] sm:$0xff] }
 0x437   : > { %3204 = vmatpush1.msra.mxu0 %v1677_v7  ;;  %3275 = vmatpush1.msra.mxu1 %v1933_v35  ;;  %v1597_v44 = vld [vmem:[#allocation19] sm:$0xff]  ;;  %v2094_v3 = vld [vmem:[#allocation19 + $0xf88] sm:$0xff] }
 0x438   : > { %3205 = vmatprep.subr.mxu0 %v1670_v36  ;;  %3276 = vmatprep.subr.mxu1 %v1926_v47  ;;  %v1853_v49 = vld [vmem:[#allocation19 + $0x800] sm:$0xff]  ;;  %v1830_v5 = vld [vmem:[#allocation19 + $0x748] sm:$0xff] }
 0x439   : > { %3206 = vmatpush1.msra.mxu0 %v1669_v40  ;;  %3277 = vmatpush1.msra.mxu1 %v1925_v34  ;;  %v1845_v27 = vld [vmem:[#allocation19 + $0x7c0] sm:$0xff]  ;;  %v2086_v33 = vld [vmem:[#allocation19 + $0xf48] sm:$0xff] }
 0x43a   : > { %3207 = vmatprep.subr.mxu0 %v1662_v48  ;;  %3278 = vmatprep.subr.mxu1 %v1918_v43  ;;  %v2101_v28 = vld [vmem:[#allocation19 + $0xfc0] sm:$0xff]  ;;  %v1822_v6 = vld [vmem:[#allocation19 + $0x708] sm:$0xff] }
 0x43b   : > { %3208 = vmatpush1.msra.mxu0 %v1661_v61  ;;  %3279 = vmatpush1.msra.mxu1 %v1917_v38  ;;  %v1837_v30 = vld [vmem:[#allocation19 + $0x780] sm:$0xff]  ;;  %v2078_v7 = vld [vmem:[#allocation19 + $0xf08] sm:$0xff] }
 0x43c   : > { %3209 = vmatprep.subr.mxu0 %v1654_v39  ;;  %3280 = vmatprep.subr.mxu1 %v1910_v41  ;;  %v2093_v31 = vld [vmem:[#allocation19 + $0xf80] sm:$0xff]  ;;  %v1814_v47 = vld [vmem:[#allocation19 + $0x6c8] sm:$0xff] }
 0x43d   : > { %3210 = vmatpush1.msra.mxu0 %v1653_v42  ;;  %3281 = vmatpush1.msra.mxu1 %v1909_v45  ;;  %v1829_v57 = vld [vmem:[#allocation19 + $0x740] sm:$0xff]  ;;  %v2070_v40 = vld [vmem:[#allocation19 + $0xec8] sm:$0xff] }
 0x43e   : > { %3211 = vmatprep.subr.mxu0 %v1646_v46  ;;  %3282 = vmatprep.subr.mxu1 %v1902_v51  ;;  %v2085_v32 = vld [vmem:[#allocation19 + $0xf40] sm:$0xff]  ;;  %v1806_v43 = vld [vmem:[#allocation19 + $0x688] sm:$0xff] }
 0x43f   : > { %3212 = vmatpush1.msra.mxu0 %v1645_v16  ;;  %3283 = vmatpush1.msra.mxu1 %v1901_v52  ;;  %v1821_v35 = vld [vmem:[#allocation19 + $0x700] sm:$0xff]  ;;  %v2062_v61 = vld [vmem:[#allocation19 + $0xe88] sm:$0xff] }
 0x440   : > { %3213 = vmatprep.subr.mxu0 %v1638_v53  ;;  %3284 = vmatprep.subr.mxu1 %v1894_v55  ;;  %v2077_v36 = vld [vmem:[#allocation19 + $0xf00] sm:$0xff]  ;;  %v1798_v41 = vld [vmem:[#allocation19 + $0x648] sm:$0xff] }
 0x441   : > { %3214 = vmatpush1.msra.mxu0 %v1637_v56  ;;  %3285 = vmatpush1.msra.mxu1 %v1893_v63  ;;  %v1813_v34 = vld [vmem:[#allocation19 + $0x6c0] sm:$0xff]  ;;  %v2054_v42 = vld [vmem:[#allocation19 + $0xe48] sm:$0xff] }
 0x442   : > { %3215 = vmatprep.subr.mxu0 %v1630_v0  ;;  %3286 = vmatprep.subr.mxu1 %v1886_v1  ;;  %v2069_v48 = vld [vmem:[#allocation19 + $0xec0] sm:$0xff]  ;;  %v1790_v51 = vld [vmem:[#allocation19 + $0x608] sm:$0xff] }
 0x443   : > { %3216 = vmatpush1.msra.mxu0 %v1629_v2  ;;  %3287 = vmatpush1.msra.mxu1 %v1885_v4  ;;  %v1805_v38 = vld [vmem:[#allocation19 + $0x680] sm:$0xff]  ;;  %v2046_v16 = vld [vmem:[#allocation19 + $0xe08] sm:$0xff] }
 0x444   : > { %3217 = vmatprep.subr.mxu0 %v1622_v8  ;;  %3288 = vmatprep.subr.mxu1 %v1878_v9  ;;  %v2061_v39 = vld [vmem:[#allocation19 + $0xe80] sm:$0xff]  ;;  %v1782_v55 = vld [vmem:[#allocation19 + $0x5c8] sm:$0xff] }
 0x445   : > { %3218 = vmatpush1.msra.mxu0 %v1621_v10  ;;  %3289 = vmatpush1.msra.mxu1 %v1877_v23  ;;  %v1797_v45 = vld [vmem:[#allocation19 + $0x640] sm:$0xff]  ;;  %v2038_v56 = vld [vmem:[#allocation19 + $0xdc8] sm:$0xff] }
 0x446   : > { %3219 = vmatprep.subr.mxu0 %v1614_v11  ;;  %3290 = vmatprep.subr.mxu1 %v1870_v12  ;;  %v2053_v46 = vld [vmem:[#allocation19 + $0xe40] sm:$0xff]  ;;  %v1774_v1 = vld [vmem:[#allocation19 + $0x588] sm:$0xff] }
 0x447   : > { %3220 = vmatpush1.msra.mxu0 %v1613_v13  ;;  %3291 = vmatpush1.msra.mxu1 %v1869_v15  ;;  %v1789_v52 = vld [vmem:[#allocation19 + $0x600] sm:$0xff]  ;;  %v2030_v2 = vld [vmem:[#allocation19 + $0xd88] sm:$0xff]  ;;  %v7510_v15 = vpop.f32.mrf.mxu0 }
 0x448   : > { %3221 = vmatprep.subr.mxu0 %v1606_v17  ;;  %3292 = vmatprep.subr.mxu1 %v1862_v18  ;;  %v2045_v53 = vld [vmem:[#allocation19 + $0xe00] sm:$0xff]  ;;  %v1766_v9 = vld [vmem:[#allocation19 + $0x548] sm:$0xff]  ;;  %v7512_v17 = vpop.f32.mrf.mxu1 }
 0x449   : > { %3222 = vmatpush1.msra.mxu0 %v1605_v19  ;;  %3293 = vmatpush1.msra.mxu1 %v1861_v21  ;;  %v1781_v63 = vld [vmem:[#allocation19 + $0x5c0] sm:$0xff]  ;;  %v2022_v10 = vld [vmem:[#allocation19 + $0xd48] sm:$0xff] }
 0x44a   : > { %3223 = vmatprep.subr.mxu0 %v1598_v37  ;;  %3294 = vmatprep.subr.mxu1 %v1854_v25  ;;  %v2037_v0 = vld [vmem:[#allocation19 + $0xdc0] sm:$0xff]  ;;  %v1758_v12 = vld [vmem:[#allocation19 + $0x508] sm:$0xff] }
 0x44b   : > { %3224 = vmatpush1.msra.mxu0 %v1597_v44  ;;  %3295 = vmatpush1.msra.mxu1 %v1853_v49  ;;  %v1773_v4 = vld [vmem:[#allocation19 + $0x580] sm:$0xff]  ;;  %v2014_v13 = vld [vmem:[#allocation19 + $0xd08] sm:$0xff] }
 0x44c   : > { %3225 = vmatprep.subr.mxu0 %v1846_v26  ;;  %3296 = vmatprep.subr.mxu1 %v2102_v50  ;;  %v2029_v8 = vld [vmem:[#allocation19 + $0xd80] sm:$0xff]  ;;  %v1750_v21 = vld [vmem:[#allocation19 + $0x4c8] sm:$0xff]  ;;  %v7514_v50 = vpop.f32.mrf.mxu0 }
 0x44d   : > { %3226 = vmatpush2.msra.mxu0 %v1845_v27  ;;  %3297 = vmatpush2.msra.mxu1 %v2101_v28  ;;  %v1765_v23 = vld [vmem:[#allocation19 + $0x540] sm:$0xff]  ;;  %v2006_v37 = vld [vmem:[#allocation19 + $0xcc8] sm:$0xff]  ;;  %v7516_v27 = vpop.f32.mrf.mxu1 }
 0x44e   : > { %3227 = vmatprep.subr.mxu0 %v1838_v29  ;;  %3298 = vmatprep.subr.mxu1 %v2094_v3  ;;  %v2021_v11 = vld [vmem:[#allocation19 + $0xd40] sm:$0xff]  ;;  %v1742_v49 = vld [vmem:[#allocation19 + $0x488] sm:$0xff] }
 0x44f   : > { %3228 = vmatpush2.msra.mxu0 %v1837_v30  ;;  %3299 = vmatpush2.msra.mxu1 %v2093_v31  ;;  %v1757_v18 = vld [vmem:[#allocation19 + $0x500] sm:$0xff]  ;;  %v1998_v26 = vld [vmem:[#allocation19 + $0xc88] sm:$0xff] }
 0x450   : > { %3229 = vmatprep.subr.mxu0 %v1830_v5  ;;  %3300 = vmatprep.subr.mxu1 %v2086_v33  ;;  %v2013_v19 = vld [vmem:[#allocation19 + $0xd00] sm:$0xff]  ;;  %v1734_v3 = vld [vmem:[#allocation19 + $0x448] sm:$0xff] }
 0x451   : > { %3230 = vmatpush2.msra.mxu0 %v1829_v57  ;;  %3301 = vmatpush2.msra.mxu1 %v2085_v32  ;;  %v1749_v25 = vld [vmem:[#allocation19 + $0x4c0] sm:$0xff]  ;;  %v1990_v30 = vld [vmem:[#allocation19 + $0xc48] sm:$0xff] }
 0x452   : > { %3231 = vmatprep.subr.mxu0 %v1822_v6  ;;  %3302 = vmatprep.subr.mxu1 %v2078_v7  ;;  %v2005_v44 = vld [vmem:[#allocation19 + $0xcc0] sm:$0xff]  ;;  %v1726_v32 = vld [vmem:[#allocation19 + $0x408] sm:$0xff] }
 0x453   : > { %3232 = vmatpush2.msra.mxu0 %v1821_v35  ;;  %3303 = vmatpush2.msra.mxu1 %v2077_v36  ;;  %v1741_v28 = vld [vmem:[#allocation19 + $0x480] sm:$0xff]  ;;  %v1982_v6 = vld [vmem:[#allocation19 + $0xc08] sm:$0xff]  ;;  %v1589_v35 = vmul.f32 0.2, %v7484_v54  ;;  %v1591_v36 = vmul.f32 0.2, %v7486_v58 }
 0x454   : > { %3233 = vmatprep.subr.mxu0 %v1814_v47  ;;  %3304 = vmatprep.subr.mxu1 %v2070_v40  ;;  %v1997_v29 = vld [vmem:[#allocation19 + $0xc80] sm:$0xff] }
 0x455   : > { %3234 = vmatpush2.msra.mxu0 %v1813_v34  ;;  %3305 = vmatpush2.msra.mxu1 %v2069_v48  ;;  %v1733_v31 = vld [vmem:[#allocation19 + $0x440] sm:$0xff] }
 0x456   : > { %3235 = vmatprep.subr.mxu0 %v1806_v43  ;;  %3306 = vmatprep.subr.mxu1 %v2062_v61  ;;  %v1989_v5 = vld [vmem:[#allocation19 + $0xc40] sm:$0xff]  ;;  %v1720_v61 = vld [vmem:[#allocation19 + $0x3d8] sm:$0xff] }
 0x457   : > { %3236 = vmatpush2.msra.mxu0 %v1805_v38  ;;  %3307 = vmatpush2.msra.mxu1 %v2061_v39  ;;  %v1725_v47 = vld [vmem:[#allocation19 + $0x400] sm:$0xff]  ;;  %v1976_v38 = vld [vmem:[#allocation19 + $0xbd8] sm:$0xff]  ;;  %v7527_v39 = vsel %vm1585_vm6, %v7484_v54, %v1589_v35  ;;  %v1895_v35 = vld [vmem:[#allocation19 + $0x950] sm:$0xff] }
 0x458   : > { %3237 = vmatprep.subr.mxu0 %v1798_v41  ;;  %3308 = vmatprep.subr.mxu1 %v2054_v42  ;;  %v1981_v40 = vld [vmem:[#allocation19 + $0xc00] sm:$0xff]  ;;  %v7530_v41 = vsel %vm1587_vm7, %v7486_v58, %v1591_v36  ;;  %v1719_v42 = vld [vmem:[#allocation19 + $0x3d0] sm:$0xff]  ;;  %v1704_v54 = vld [vmem:[#allocation19 + $0x358] sm:$0xff] }
 0x459   : > { %3238 = vmatpush2.msra.mxu0 %v1797_v45  ;;  %3309 = vmatpush2.msra.mxu1 %v2053_v46  ;;  %v1975_v45 = vld [vmem:[#allocation19 + $0xbd0] sm:$0xff]  ;;  %v1712_v46 = vld [vmem:[#allocation19 + $0x398] sm:$0xff] }
 0x45a   : > { %3239 = vmatprep.subr.mxu0 %v1790_v51  ;;  %3310 = vmatprep.subr.mxu1 %v2046_v16  ;;  %v1968_v51 = vld [vmem:[#allocation19 + $0xb98] sm:$0xff]  ;;  %v1711_v16 = vld [vmem:[#allocation19 + $0x390] sm:$0xff] }
 0x45b   : > { %3240 = vmatpush2.msra.mxu0 %v1789_v52  ;;  %3311 = vmatpush2.msra.mxu1 %v2045_v53  ;;  %v1967_v52 = vld [vmem:[#allocation19 + $0xb90] sm:$0xff]  ;;  %v1960_v58 = vld [vmem:[#allocation19 + $0xb58] sm:$0xff] }
 0x45c   : > { %3241 = vmatprep.subr.mxu0 %v1782_v55  ;;  %3312 = vmatprep.subr.mxu1 %v2038_v56  ;;  %v1703_v53 = vld [vmem:[#allocation19 + $0x350] sm:$0xff]  ;;  %v1696_v56 = vld [vmem:[#allocation19 + $0x318] sm:$0xff] }
 0x45d   : > { %3242 = vmatpush2.msra.mxu0 %v1781_v63  ;;  %3313 = vmatpush2.msra.mxu1 %v2037_v0  ;;  %v1959_v55 = vld [vmem:[#allocation19 + $0xb50] sm:$0xff]  ;;  %v1952_v63 = vld [vmem:[#allocation19 + $0xb18] sm:$0xff] }
 0x45e   : > { %3243 = vmatprep.subr.mxu0 %v1774_v1  ;;  %3314 = vmatprep.subr.mxu1 %v2030_v2  ;;  %v1695_v0 = vld [vmem:[#allocation19 + $0x310] sm:$0xff]  ;;  %v1688_v2 = vld [vmem:[#allocation19 + $0x2d8] sm:$0xff] }
 0x45f   : > { %3244 = vmatpush2.msra.mxu0 %v1773_v4  ;;  %3315 = vmatpush2.msra.mxu1 %v2029_v8  ;;  %v1951_v1 = vld [vmem:[#allocation19 + $0xb10] sm:$0xff]  ;;  %v1944_v4 = vld [vmem:[#allocation19 + $0xad8] sm:$0xff] }
 0x460   : > { %3245 = vmatprep.subr.mxu0 %v1766_v9  ;;  %3316 = vmatprep.subr.mxu1 %v2022_v10  ;;  %v1687_v8 = vld [vmem:[#allocation19 + $0x2d0] sm:$0xff]  ;;  %v1680_v10 = vld [vmem:[#allocation19 + $0x298] sm:$0xff] }
 0x461   : > { %3246 = vmatpush2.msra.mxu0 %v1765_v23  ;;  %3317 = vmatpush2.msra.mxu1 %v2021_v11  ;;  %v1943_v9 = vld [vmem:[#allocation19 + $0xad0] sm:$0xff]  ;;  %v1936_v23 = vld [vmem:[#allocation19 + $0xa98] sm:$0xff] }
 0x462   : > { %3247 = vmatprep.subr.mxu0 %v1758_v12  ;;  %3318 = vmatprep.subr.mxu1 %v2014_v13  ;;  %v1679_v11 = vld [vmem:[#allocation19 + $0x290] sm:$0xff]  ;;  %v1672_v13 = vld [vmem:[#allocation19 + $0x258] sm:$0xff] }
 0x463   : > { %3248 = vmatpush2.msra.mxu0 %v1757_v18  ;;  %3319 = vmatpush2.msra.mxu1 %v2013_v19  ;;  %v1935_v12 = vld [vmem:[#allocation19 + $0xa90] sm:$0xff]  ;;  %v1928_v18 = vld [vmem:[#allocation19 + $0xa58] sm:$0xff] }
 0x464   : > { %3249 = vmatprep.subr.mxu0 %v1750_v21  ;;  %3320 = vmatprep.subr.mxu1 %v2006_v37  ;;  %v1671_v19 = vld [vmem:[#allocation19 + $0x250] sm:$0xff]  ;;  %v1664_v37 = vld [vmem:[#allocation19 + $0x218] sm:$0xff] }
 0x465   : > { %3250 = vmatpush2.msra.mxu0 %v1749_v25  ;;  %3321 = vmatpush2.msra.mxu1 %v2005_v44  ;;  %v1927_v21 = vld [vmem:[#allocation19 + $0xa50] sm:$0xff]  ;;  %v1920_v25 = vld [vmem:[#allocation19 + $0xa18] sm:$0xff] }
 0x466   : > { %3251 = vmatprep.subr.mxu0 %v1742_v49  ;;  %3322 = vmatprep.subr.mxu1 %v1998_v26  ;;  %v2833_v33 = vpop.f32.mrf.mxu0  ;;  %v2904_v57 = vpop.f32.mrf.mxu1  ;;  %v1663_v44 = vld [vmem:[#allocation19 + $0x210] sm:$0xff]  ;;  %v1656_v26 = vld [vmem:[#allocation19 + $0x1d8] sm:$0xff] }
 0x467   : > { %3252 = vmatpush2.msra.mxu0 %v1741_v28  ;;  %3323 = vmatpush2.msra.mxu1 %v1997_v29  ;;  %v7518_v7 = vadd.f32 %v2904_v57, %v2833_v33  ;;  %v1919_v49 = vld [vmem:[#allocation19 + $0xa10] sm:$0xff]  ;;  %v1912_v28 = vld [vmem:[#allocation19 + $0x9d8] sm:$0xff] }
 0x468   : > { %3253 = vmatprep.subr.mxu0 %v1734_v3  ;;  %3324 = vmatprep.subr.mxu1 %v1990_v30  ;;  %v2835_v34 = vpop.f32.mrf.mxu0  ;;  %v2906_v48 = vpop.f32.mrf.mxu1  ;;  %v1655_v29 = vld [vmem:[#allocation19 + $0x1d0] sm:$0xff]  ;;  %v1648_v30 = vld [vmem:[#allocation19 + $0x198] sm:$0xff] }
 0x469   : > { %3254 = vmatpush2.msra.mxu0 %v1733_v31  ;;  %3325 = vmatpush2.msra.mxu1 %v1989_v5  ;;  %v7524_v43 = vadd.f32 %v2906_v48, %v2835_v34  ;;  %v1911_v3 = vld [vmem:[#allocation19 + $0x9d0] sm:$0xff]  ;;  %v1904_v31 = vld [vmem:[#allocation19 + $0x998] sm:$0xff] }
 0x46a   : > { %3255 = vmatprep.subr.mxu0 %v1726_v32  ;;  %3326 = vmatprep.subr.mxu1 %v1982_v6  ;;  %v1647_v5 = vld [vmem:[#allocation19 + $0x190] sm:$0xff]  ;;  %v1640_v57 = vld [vmem:[#allocation19 + $0x158] sm:$0xff] }
 0x46b   : > { %3256 = vmatpush2.msra.mxu0 %v1725_v47  ;;  %3327 = vmatpush2.msra.mxu1 %v1981_v40  ;;  %v1903_v33 = vld [vmem:[#allocation19 + $0x990] sm:$0xff]  ;;  %v1896_v32 = vld [vmem:[#allocation19 + $0x958] sm:$0xff] }
 0x46c   : > { %3258 = vmatmul.mubr.f32.vlgmr.msra.gmra.mxu0 %v7527_v39  ;;  %3329 = vmatmul.mubr.f32.vlgmr.msra.gmra.mxu1 %v7530_v41  ;;  %v1639_v6 = vld [vmem:[#allocation19 + $0x150] sm:$0xff]  ;;  %v1632_v36 = vld [vmem:[#allocation19 + $0x118] sm:$0xff] }
 0x46d   : > { %3335 = vmatprep.subr.mxu0 %v1720_v61  ;;  %3406 = vmatprep.subr.mxu1 %v1976_v38  ;;  %v1888_v47 = vld [vmem:[#allocation19 + $0x918] sm:$0xff]  ;;  %v1631_v40 = vld [vmem:[#allocation19 + $0x110] sm:$0xff] }
 0x46e   : > { %3336 = vmatpush1.msra.mxu0 %v1719_v42  ;;  %3399 = vmatprep.mubr.f32.mxu0 %v7504_v20  ;;  %v1887_v34 = vld [vmem:[#allocation19 + $0x910] sm:$0xff]  ;;  %v1624_v48 = vld [vmem:[#allocation19 + $0xd8] sm:$0xff] }
 0x46f   : > { %3407 = vmatpush1.msra.mxu1 %v1975_v45  ;;  %3470 = vmatprep.mubr.f32.mxu1 %v7507_v24  ;;  %v1880_v61 = vld [vmem:[#allocation19 + $0x8d8] sm:$0xff]  ;;  %v1623_v38 = vld [vmem:[#allocation19 + $0xd0] sm:$0xff] }
 0x470   : > { %3337 = vmatprep.subr.mxu0 %v1712_v46  ;;  %3408 = vmatprep.subr.mxu1 %v1968_v51  ;;  %v1879_v42 = vld [vmem:[#allocation19 + $0x8d0] sm:$0xff]  ;;  %v1616_v45 = vld [vmem:[#allocation19 + $0x98] sm:$0xff] }
 0x471   : > { %3338 = vmatpush1.msra.mxu0 %v1711_v16  ;;  %3409 = vmatpush1.msra.mxu1 %v1967_v52  ;;  %v1872_v46 = vld [vmem:[#allocation19 + $0x898] sm:$0xff]  ;;  %v1615_v51 = vld [vmem:[#allocation19 + $0x90] sm:$0xff] }
 0x472   : > { %3339 = vmatprep.subr.mxu0 %v1704_v54  ;;  %3410 = vmatprep.subr.mxu1 %v1960_v58  ;;  %v1871_v16 = vld [vmem:[#allocation19 + $0x890] sm:$0xff]  ;;  %v1608_v52 = vld [vmem:[#allocation19 + $0x58] sm:$0xff] }
 0x473   : > { %3340 = vmatpush1.msra.mxu0 %v1703_v53  ;;  %3411 = vmatpush1.msra.mxu1 %v1959_v55  ;;  %v1864_v54 = vld [vmem:[#allocation19 + $0x858] sm:$0xff]  ;;  %v1607_v58 = vld [vmem:[#allocation19 + $0x50] sm:$0xff] }
 0x474   : > { %3341 = vmatprep.subr.mxu0 %v1696_v56  ;;  %3412 = vmatprep.subr.mxu1 %v1952_v63  ;;  %v1863_v53 = vld [vmem:[#allocation19 + $0x850] sm:$0xff]  ;;  %v1600_v55 = vld [vmem:[#allocation19 + $0x18] sm:$0xff] }
 0x475   : > { %3342 = vmatpush1.msra.mxu0 %v1695_v0  ;;  %3413 = vmatpush1.msra.mxu1 %v1951_v1  ;;  %v1856_v56 = vld [vmem:[#allocation19 + $0x818] sm:$0xff]  ;;  %v1599_v63 = vld [vmem:[#allocation19 + $0x10] sm:$0xff] }
 0x476   : > { %3343 = vmatprep.subr.mxu0 %v1688_v2  ;;  %3414 = vmatprep.subr.mxu1 %v1944_v4  ;;  %v1855_v0 = vld [vmem:[#allocation19 + $0x810] sm:$0xff]  ;;  %v1848_v1 = vld [vmem:[#allocation19 + $0x7d8] sm:$0xff] }
 0x477   : > { %3344 = vmatpush1.msra.mxu0 %v1687_v8  ;;  %3415 = vmatpush1.msra.mxu1 %v1943_v9  ;;  %v2104_v2 = vld [vmem:[#allocation19 + $0xfd8] sm:$0xff]  ;;  %v1847_v4 = vld [vmem:[#allocation19 + $0x7d0] sm:$0xff] }
 0x478   : > { %3345 = vmatprep.subr.mxu0 %v1680_v10  ;;  %3416 = vmatprep.subr.mxu1 %v1936_v23  ;;  %v2103_v8 = vld [vmem:[#allocation19 + $0xfd0] sm:$0xff]  ;;  %v1840_v9 = vld [vmem:[#allocation19 + $0x798] sm:$0xff] }
 0x479   : > { %3346 = vmatpush1.msra.mxu0 %v1679_v11  ;;  %3417 = vmatpush1.msra.mxu1 %v1935_v12  ;;  %v2096_v10 = vld [vmem:[#allocation19 + $0xf98] sm:$0xff]  ;;  %v1839_v23 = vld [vmem:[#allocation19 + $0x790] sm:$0xff] }
 0x47a   : > { %3347 = vmatprep.subr.mxu0 %v1672_v13  ;;  %3418 = vmatprep.subr.mxu1 %v1928_v18  ;;  %v2095_v11 = vld [vmem:[#allocation19 + $0xf90] sm:$0xff]  ;;  %v1832_v12 = vld [vmem:[#allocation19 + $0x758] sm:$0xff] }
 0x47b   : > { %3348 = vmatpush1.msra.mxu0 %v1671_v19  ;;  %3419 = vmatpush1.msra.mxu1 %v1927_v21  ;;  %v2088_v13 = vld [vmem:[#allocation19 + $0xf58] sm:$0xff]  ;;  %v1831_v18 = vld [vmem:[#allocation19 + $0x750] sm:$0xff] }
 0x47c   : > { %3349 = vmatprep.subr.mxu0 %v1664_v37  ;;  %3420 = vmatprep.subr.mxu1 %v1920_v25  ;;  %v2087_v19 = vld [vmem:[#allocation19 + $0xf50] sm:$0xff]  ;;  %v1824_v21 = vld [vmem:[#allocation19 + $0x718] sm:$0xff] }
 0x47d   : > { %3350 = vmatpush1.msra.mxu0 %v1663_v44  ;;  %3421 = vmatpush1.msra.mxu1 %v1919_v49  ;;  %v2080_v37 = vld [vmem:[#allocation19 + $0xf18] sm:$0xff]  ;;  %v1823_v25 = vld [vmem:[#allocation19 + $0x710] sm:$0xff] }
 0x47e   : > { %3351 = vmatprep.subr.mxu0 %v1656_v26  ;;  %3422 = vmatprep.subr.mxu1 %v1912_v28  ;;  %v2079_v44 = vld [vmem:[#allocation19 + $0xf10] sm:$0xff]  ;;  %v1816_v49 = vld [vmem:[#allocation19 + $0x6d8] sm:$0xff] }
 0x47f   : > { %3352 = vmatpush1.msra.mxu0 %v1655_v29  ;;  %3423 = vmatpush1.msra.mxu1 %v1911_v3  ;;  %v2072_v26 = vld [vmem:[#allocation19 + $0xed8] sm:$0xff]  ;;  %v1815_v28 = vld [vmem:[#allocation19 + $0x6d0] sm:$0xff] }
 0x480   : > { %3353 = vmatprep.subr.mxu0 %v1648_v30  ;;  %3424 = vmatprep.subr.mxu1 %v1904_v31  ;;  %v2071_v29 = vld [vmem:[#allocation19 + $0xed0] sm:$0xff]  ;;  %v1808_v3 = vld [vmem:[#allocation19 + $0x698] sm:$0xff] }
 0x481   : > { %3354 = vmatpush1.msra.mxu0 %v1647_v5  ;;  %3425 = vmatpush1.msra.mxu1 %v1903_v33  ;;  %v2064_v30 = vld [vmem:[#allocation19 + $0xe98] sm:$0xff]  ;;  %v1807_v31 = vld [vmem:[#allocation19 + $0x690] sm:$0xff] }
 0x482   : > { %3355 = vmatprep.subr.mxu0 %v1640_v57  ;;  %3426 = vmatprep.subr.mxu1 %v1896_v32  ;;  %v2063_v5 = vld [vmem:[#allocation19 + $0xe90] sm:$0xff]  ;;  %v1800_v33 = vld [vmem:[#allocation19 + $0x658] sm:$0xff] }
 0x483   : > { %3356 = vmatpush1.msra.mxu0 %v1639_v6  ;;  %3427 = vmatpush1.msra.mxu1 %v1895_v35  ;;  %v2056_v57 = vld [vmem:[#allocation19 + $0xe58] sm:$0xff]  ;;  %v1799_v32 = vld [vmem:[#allocation19 + $0x650] sm:$0xff] }
 0x484   : > { %3357 = vmatprep.subr.mxu0 %v1632_v36  ;;  %3428 = vmatprep.subr.mxu1 %v1888_v47  ;;  %v2055_v6 = vld [vmem:[#allocation19 + $0xe50] sm:$0xff]  ;;  %v1792_v35 = vld [vmem:[#allocation19 + $0x618] sm:$0xff] }
 0x485   : > { %3358 = vmatpush1.msra.mxu0 %v1631_v40  ;;  %3429 = vmatpush1.msra.mxu1 %v1887_v34  ;;  %v2048_v36 = vld [vmem:[#allocation19 + $0xe18] sm:$0xff]  ;;  %v1791_v47 = vld [vmem:[#allocation19 + $0x610] sm:$0xff] }
 0x486   : > { %3359 = vmatprep.subr.mxu0 %v1624_v48  ;;  %3430 = vmatprep.subr.mxu1 %v1880_v61  ;;  %v2047_v40 = vld [vmem:[#allocation19 + $0xe10] sm:$0xff]  ;;  %v1784_v34 = vld [vmem:[#allocation19 + $0x5d8] sm:$0xff] }
 0x487   : > { %3360 = vmatpush1.msra.mxu0 %v1623_v38  ;;  %3431 = vmatpush1.msra.mxu1 %v1879_v42  ;;  %v2040_v48 = vld [vmem:[#allocation19 + $0xdd8] sm:$0xff]  ;;  %v1783_v61 = vld [vmem:[#allocation19 + $0x5d0] sm:$0xff] }
 0x488   : > { %3361 = vmatprep.subr.mxu0 %v1616_v45  ;;  %3432 = vmatprep.subr.mxu1 %v1872_v46  ;;  %v2039_v38 = vld [vmem:[#allocation19 + $0xdd0] sm:$0xff]  ;;  %v1776_v42 = vld [vmem:[#allocation19 + $0x598] sm:$0xff] }
 0x489   : > { %3362 = vmatpush1.msra.mxu0 %v1615_v51  ;;  %3433 = vmatpush1.msra.mxu1 %v1871_v16  ;;  %v2032_v45 = vld [vmem:[#allocation19 + $0xd98] sm:$0xff]  ;;  %v1775_v46 = vld [vmem:[#allocation19 + $0x590] sm:$0xff] }
 0x48a   : > { %3363 = vmatprep.subr.mxu0 %v1608_v52  ;;  %3434 = vmatprep.subr.mxu1 %v1864_v54  ;;  %v2031_v51 = vld [vmem:[#allocation19 + $0xd90] sm:$0xff]  ;;  %v1768_v16 = vld [vmem:[#allocation19 + $0x558] sm:$0xff] }
 0x48b   : > { %3364 = vmatpush1.msra.mxu0 %v1607_v58  ;;  %3435 = vmatpush1.msra.mxu1 %v1863_v53  ;;  %v2024_v52 = vld [vmem:[#allocation19 + $0xd58] sm:$0xff]  ;;  %v1767_v54 = vld [vmem:[#allocation19 + $0x550] sm:$0xff] }
 0x48c   : > { %3365 = vmatprep.subr.mxu0 %v1600_v55  ;;  %3436 = vmatprep.subr.mxu1 %v1856_v56  ;;  %v2023_v58 = vld [vmem:[#allocation19 + $0xd50] sm:$0xff]  ;;  %v1760_v53 = vld [vmem:[#allocation19 + $0x518] sm:$0xff] }
 0x48d   : > { %3366 = vmatpush1.msra.mxu0 %v1599_v63  ;;  %3437 = vmatpush1.msra.mxu1 %v1855_v0  ;;  %v2016_v55 = vld [vmem:[#allocation19 + $0xd18] sm:$0xff]  ;;  %v1759_v56 = vld [vmem:[#allocation19 + $0x510] sm:$0xff] }
 0x48e   : > { %3367 = vmatprep.subr.mxu0 %v1848_v1  ;;  %3438 = vmatprep.subr.mxu1 %v2104_v2  ;;  %v2015_v63 = vld [vmem:[#allocation19 + $0xd10] sm:$0xff]  ;;  %v1752_v0 = vld [vmem:[#allocation19 + $0x4d8] sm:$0xff] }
 0x48f   : > { %3368 = vmatpush2.msra.mxu0 %v1847_v4  ;;  %3439 = vmatpush2.msra.mxu1 %v2103_v8  ;;  %v2008_v1 = vld [vmem:[#allocation19 + $0xcd8] sm:$0xff]  ;;  %v1751_v2 = vld [vmem:[#allocation19 + $0x4d0] sm:$0xff] }
 0x490   : > { %3369 = vmatprep.subr.mxu0 %v1840_v9  ;;  %3440 = vmatprep.subr.mxu1 %v2096_v10  ;;  %v2007_v4 = vld [vmem:[#allocation19 + $0xcd0] sm:$0xff]  ;;  %v1744_v8 = vld [vmem:[#allocation19 + $0x498] sm:$0xff] }
 0x491   : > { %3370 = vmatpush2.msra.mxu0 %v1839_v23  ;;  %3441 = vmatpush2.msra.mxu1 %v2095_v11  ;;  %v2000_v9 = vld [vmem:[#allocation19 + $0xc98] sm:$0xff]  ;;  %v1743_v10 = vld [vmem:[#allocation19 + $0x490] sm:$0xff] }
 0x492   : > { %3371 = vmatprep.subr.mxu0 %v1832_v12  ;;  %3442 = vmatprep.subr.mxu1 %v2088_v13  ;;  %v1999_v23 = vld [vmem:[#allocation19 + $0xc90] sm:$0xff]  ;;  %v1736_v11 = vld [vmem:[#allocation19 + $0x458] sm:$0xff] }
 0x493   : > { %3372 = vmatpush2.msra.mxu0 %v1831_v18  ;;  %3443 = vmatpush2.msra.mxu1 %v2087_v19  ;;  %v1992_v12 = vld [vmem:[#allocation19 + $0xc58] sm:$0xff]  ;;  %v1735_v13 = vld [vmem:[#allocation19 + $0x450] sm:$0xff] }
 0x494   : > { %3373 = vmatprep.subr.mxu0 %v1824_v21  ;;  %3444 = vmatprep.subr.mxu1 %v2080_v37  ;;  %v1991_v18 = vld [vmem:[#allocation19 + $0xc50] sm:$0xff]  ;;  %v1728_v37 = vld [vmem:[#allocation19 + $0x418] sm:$0xff] }
 0x495   : > { %3374 = vmatpush2.msra.mxu0 %v1823_v25  ;;  %3445 = vmatpush2.msra.mxu1 %v2079_v44  ;;  %v1984_v25 = vld [vmem:[#allocation19 + $0xc18] sm:$0xff] }
 0x496   : > { %3375 = vmatprep.subr.mxu0 %v1816_v49  ;;  %3446 = vmatprep.subr.mxu1 %v2072_v26  ;;  %v1727_v49 = vld [vmem:[#allocation19 + $0x410] sm:$0xff] }
 0x497   : > { %3376 = vmatpush2.msra.mxu0 %v1815_v28  ;;  %3447 = vmatpush2.msra.mxu1 %v2071_v29  ;;  %v1983_v26 = vld [vmem:[#allocation19 + $0xc10] sm:$0xff] }
 0x498   : > { %3377 = vmatprep.subr.mxu0 %v1808_v3  ;;  %3448 = vmatprep.subr.mxu1 %v2064_v30  ;;  %v1722_v30 = vld [vmem:[#allocation19 + $0x3e8] sm:$0xff] }
 0x499   : > { %3378 = vmatpush2.msra.mxu0 %v1807_v31  ;;  %3449 = vmatpush2.msra.mxu1 %v2063_v5  ;;  %v1978_v31 = vld [vmem:[#allocation19 + $0xbe8] sm:$0xff]  ;;  %v1721_v5 = vld [vmem:[#allocation19 + $0x3e0] sm:$0xff] }
 0x49a   : > { %3379 = vmatprep.subr.mxu0 %v1800_v33  ;;  %3450 = vmatprep.subr.mxu1 %v2056_v57  ;;  %v1977_v33 = vld [vmem:[#allocation19 + $0xbe0] sm:$0xff]  ;;  %v1714_v57 = vld [vmem:[#allocation19 + $0x3a8] sm:$0xff] }
 0x49b   : > { %3380 = vmatpush2.msra.mxu0 %v1799_v32  ;;  %3451 = vmatpush2.msra.mxu1 %v2055_v6  ;;  %v1970_v32 = vld [vmem:[#allocation19 + $0xba8] sm:$0xff]  ;;  %v1713_v6 = vld [vmem:[#allocation19 + $0x3a0] sm:$0xff] }
 0x49c   : > { %3381 = vmatprep.subr.mxu0 %v1792_v35  ;;  %3452 = vmatprep.subr.mxu1 %v2048_v36  ;;  %v1969_v35 = vld [vmem:[#allocation19 + $0xba0] sm:$0xff]  ;;  %v1706_v36 = vld [vmem:[#allocation19 + $0x368] sm:$0xff] }
 0x49d   : > { %3382 = vmatpush2.msra.mxu0 %v1791_v47  ;;  %3453 = vmatpush2.msra.mxu1 %v2047_v40  ;;  %v1962_v47 = vld [vmem:[#allocation19 + $0xb68] sm:$0xff]  ;;  %v1705_v40 = vld [vmem:[#allocation19 + $0x360] sm:$0xff] }
 0x49e   : > { %3383 = vmatprep.subr.mxu0 %v1784_v34  ;;  %3454 = vmatprep.subr.mxu1 %v2040_v48  ;;  %v1961_v34 = vld [vmem:[#allocation19 + $0xb60] sm:$0xff]  ;;  %v1698_v48 = vld [vmem:[#allocation19 + $0x328] sm:$0xff] }
 0x49f   : > { %3384 = vmatpush2.msra.mxu0 %v1783_v61  ;;  %3455 = vmatpush2.msra.mxu1 %v2039_v38  ;;  %v1954_v61 = vld [vmem:[#allocation19 + $0xb28] sm:$0xff]  ;;  %v1697_v38 = vld [vmem:[#allocation19 + $0x320] sm:$0xff] }
 0x4a0   : > { %3385 = vmatprep.subr.mxu0 %v1776_v42  ;;  %3456 = vmatprep.subr.mxu1 %v2032_v45  ;;  %v1953_v42 = vld [vmem:[#allocation19 + $0xb20] sm:$0xff]  ;;  %v1690_v45 = vld [vmem:[#allocation19 + $0x2e8] sm:$0xff] }
 0x4a1   : > { %3386 = vmatpush2.msra.mxu0 %v1775_v46  ;;  %3457 = vmatpush2.msra.mxu1 %v2031_v51  ;;  %v1946_v46 = vld [vmem:[#allocation19 + $0xae8] sm:$0xff]  ;;  %v1689_v51 = vld [vmem:[#allocation19 + $0x2e0] sm:$0xff] }
 0x4a2   : > { %3387 = vmatprep.subr.mxu0 %v1768_v16  ;;  %3458 = vmatprep.subr.mxu1 %v2024_v52  ;;  %v1945_v16 = vld [vmem:[#allocation19 + $0xae0] sm:$0xff]  ;;  %v1682_v52 = vld [vmem:[#allocation19 + $0x2a8] sm:$0xff] }
 0x4a3   : > { %3388 = vmatpush2.msra.mxu0 %v1767_v54  ;;  %3459 = vmatpush2.msra.mxu1 %v2023_v58  ;;  %v1938_v54 = vld [vmem:[#allocation19 + $0xaa8] sm:$0xff]  ;;  %v1681_v58 = vld [vmem:[#allocation19 + $0x2a0] sm:$0xff] }
 0x4a4   : > { %3389 = vmatprep.subr.mxu0 %v1760_v53  ;;  %3460 = vmatprep.subr.mxu1 %v2016_v55  ;;  %v1937_v53 = vld [vmem:[#allocation19 + $0xaa0] sm:$0xff]  ;;  %v1674_v55 = vld [vmem:[#allocation19 + $0x268] sm:$0xff] }
 0x4a5   : > { %3390 = vmatpush2.msra.mxu0 %v1759_v56  ;;  %3461 = vmatpush2.msra.mxu1 %v2015_v63  ;;  %v1930_v56 = vld [vmem:[#allocation19 + $0xa68] sm:$0xff]  ;;  %v1673_v63 = vld [vmem:[#allocation19 + $0x260] sm:$0xff] }
 0x4a6   : > { %3391 = vmatprep.subr.mxu0 %v1752_v0  ;;  %3462 = vmatprep.subr.mxu1 %v2008_v1  ;;  %v1929_v0 = vld [vmem:[#allocation19 + $0xa60] sm:$0xff]  ;;  %v1666_v1 = vld [vmem:[#allocation19 + $0x228] sm:$0xff] }
 0x4a7   : > { %3392 = vmatpush2.msra.mxu0 %v1751_v2  ;;  %3463 = vmatpush2.msra.mxu1 %v2007_v4  ;;  %v1922_v2 = vld [vmem:[#allocation19 + $0xa28] sm:$0xff]  ;;  %v1665_v4 = vld [vmem:[#allocation19 + $0x220] sm:$0xff] }
 0x4a8   : > { %3393 = vmatprep.subr.mxu0 %v1744_v8  ;;  %3464 = vmatprep.subr.mxu1 %v2000_v9  ;;  %v2975_v19 = vpop.f32.mrf.mxu0  ;;  %v3046_v21 = vpop.f32.mrf.mxu1  ;;  %v1921_v8 = vld [vmem:[#allocation19 + $0xa20] sm:$0xff]  ;;  %v1658_v9 = vld [vmem:[#allocation19 + $0x1e8] sm:$0xff] }
 0x4a9   : > { %3394 = vmatpush2.msra.mxu0 %v1743_v10  ;;  %3465 = vmatpush2.msra.mxu1 %v1999_v23  ;;  %v7536_v44 = vadd.f32 %v3046_v21, %v2975_v19  ;;  %v1914_v10 = vld [vmem:[#allocation19 + $0x9e8] sm:$0xff]  ;;  %v1657_v23 = vld [vmem:[#allocation19 + $0x1e0] sm:$0xff] }
 0x4aa   : > { %3395 = vmatprep.subr.mxu0 %v1736_v11  ;;  %3466 = vmatprep.subr.mxu1 %v1992_v12  ;;  %v2977_v28 = vpop.f32.mrf.mxu0  ;;  %v3048_v29 = vpop.f32.mrf.mxu1  ;;  %v1913_v11 = vld [vmem:[#allocation19 + $0x9e0] sm:$0xff]  ;;  %v1650_v12 = vld [vmem:[#allocation19 + $0x1a8] sm:$0xff] }
 0x4ab   : > { %3396 = vmatpush2.msra.mxu0 %v1735_v13  ;;  %3467 = vmatpush2.msra.mxu1 %v1991_v18  ;;  %v7538_v3 = vadd.f32 %v3048_v29, %v2977_v28  ;;  %v1906_v13 = vld [vmem:[#allocation19 + $0x9a8] sm:$0xff]  ;;  %v1649_v18 = vld [vmem:[#allocation19 + $0x1a0] sm:$0xff] }
 0x4ac   : > { %3397 = vmatprep.subr.mxu0 %v1728_v37  ;;  %3468 = vmatprep.subr.mxu1 %v1984_v25  ;;  %v1905_v19 = vld [vmem:[#allocation19 + $0x9a0] sm:$0xff]  ;;  %v1642_v21 = vld [vmem:[#allocation19 + $0x168] sm:$0xff] }
 0x4ad   : > { %3398 = vmatpush2.msra.mxu0 %v1727_v49  ;;  %3469 = vmatpush2.msra.mxu1 %v1983_v26  ;;  %v1898_v37 = vld [vmem:[#allocation19 + $0x968] sm:$0xff]  ;;  %v1641_v25 = vld [vmem:[#allocation19 + $0x160] sm:$0xff] }
 0x4ae   : > { %3400 = vmatmul.mubr.f32.vlgmr.msra.gmra.mxu0 %v7527_v39  ;;  %3471 = vmatmul.mubr.f32.vlgmr.msra.gmra.mxu1 %v7530_v41  ;;  %v1897_v49 = vld [vmem:[#allocation19 + $0x960] sm:$0xff]  ;;  %v1634_v26 = vld [vmem:[#allocation19 + $0x128] sm:$0xff] }
 0x4af   : > { %3477 = vmatprep.subr.mxu0 %v1722_v30  ;;  %3548 = vmatprep.subr.mxu1 %v1978_v31  ;;  %v1890_v28 = vld [vmem:[#allocation19 + $0x928] sm:$0xff]  ;;  %v1633_v29 = vld [vmem:[#allocation19 + $0x120] sm:$0xff] }
 0x4b0   : > { %3478 = vmatpush1.msra.mxu0 %v1721_v5  ;;  %3541 = vmatprep.mubr.f32.mxu0 %v7504_v20  ;;  %v1889_v30 = vld [vmem:[#allocation19 + $0x920] sm:$0xff]  ;;  %v1626_v31 = vld [vmem:[#allocation19 + $0xe8] sm:$0xff] }
 0x4b1   : > { %3549 = vmatpush1.msra.mxu1 %v1977_v33  ;;  %3612 = vmatprep.mubr.f32.mxu1 %v7507_v24  ;;  %v1882_v5 = vld [vmem:[#allocation19 + $0x8e8] sm:$0xff]  ;;  %v1625_v33 = vld [vmem:[#allocation19 + $0xe0] sm:$0xff] }
 0x4b2   : > { %3479 = vmatprep.subr.mxu0 %v1714_v57  ;;  %3550 = vmatprep.subr.mxu1 %v1970_v32  ;;  %v1881_v57 = vld [vmem:[#allocation19 + $0x8e0] sm:$0xff]  ;;  %v1618_v32 = vld [vmem:[#allocation19 + $0xa8] sm:$0xff] }
 0x4b3   : > { %3480 = vmatpush1.msra.mxu0 %v1713_v6  ;;  %3551 = vmatpush1.msra.mxu1 %v1969_v35  ;;  %v1874_v6 = vld [vmem:[#allocation19 + $0x8a8] sm:$0xff]  ;;  %v1617_v35 = vld [vmem:[#allocation19 + $0xa0] sm:$0xff] }
 0x4b4   : > { %3481 = vmatprep.subr.mxu0 %v1706_v36  ;;  %3552 = vmatprep.subr.mxu1 %v1962_v47  ;;  %v1873_v36 = vld [vmem:[#allocation19 + $0x8a0] sm:$0xff]  ;;  %v1610_v47 = vld [vmem:[#allocation19 + $0x68] sm:$0xff] }
 0x4b5   : > { %3482 = vmatpush1.msra.mxu0 %v1705_v40  ;;  %3553 = vmatpush1.msra.mxu1 %v1961_v34  ;;  %v1866_v40 = vld [vmem:[#allocation19 + $0x868] sm:$0xff]  ;;  %v1609_v34 = vld [vmem:[#allocation19 + $0x60] sm:$0xff] }
 0x4b6   : > { %3483 = vmatprep.subr.mxu0 %v1698_v48  ;;  %3554 = vmatprep.subr.mxu1 %v1954_v61  ;;  %v1865_v48 = vld [vmem:[#allocation19 + $0x860] sm:$0xff]  ;;  %v1602_v61 = vld [vmem:[#allocation19 + $0x28] sm:$0xff] }
 0x4b7   : > { %3484 = vmatpush1.msra.mxu0 %v1697_v38  ;;  %3555 = vmatpush1.msra.mxu1 %v1953_v42  ;;  %v1858_v38 = vld [vmem:[#allocation19 + $0x828] sm:$0xff]  ;;  %v1601_v42 = vld [vmem:[#allocation19 + $0x20] sm:$0xff] }
 0x4b8   : > { %3485 = vmatprep.subr.mxu0 %v1690_v45  ;;  %3556 = vmatprep.subr.mxu1 %v1946_v46  ;;  %v1857_v45 = vld [vmem:[#allocation19 + $0x820] sm:$0xff]  ;;  %v1850_v46 = vld [vmem:[#allocation19 + $0x7e8] sm:$0xff] }
 0x4b9   : > { %3486 = vmatpush1.msra.mxu0 %v1689_v51  ;;  %3557 = vmatpush1.msra.mxu1 %v1945_v16  ;;  %v2106_v51 = vld [vmem:[#allocation19 + $0xfe8] sm:$0xff]  ;;  %v1849_v16 = vld [vmem:[#allocation19 + $0x7e0] sm:$0xff] }
 0x4ba   : > { %3487 = vmatprep.subr.mxu0 %v1682_v52  ;;  %3558 = vmatprep.subr.mxu1 %v1938_v54  ;;  %v2105_v52 = vld [vmem:[#allocation19 + $0xfe0] sm:$0xff]  ;;  %v1842_v54 = vld [vmem:[#allocation19 + $0x7a8] sm:$0xff] }
 0x4bb   : > { %3488 = vmatpush1.msra.mxu0 %v1681_v58  ;;  %3559 = vmatpush1.msra.mxu1 %v1937_v53  ;;  %v2098_v58 = vld [vmem:[#allocation19 + $0xfa8] sm:$0xff]  ;;  %v1841_v53 = vld [vmem:[#allocation19 + $0x7a0] sm:$0xff] }
 0x4bc   : > { %3489 = vmatprep.subr.mxu0 %v1674_v55  ;;  %3560 = vmatprep.subr.mxu1 %v1930_v56  ;;  %v2097_v55 = vld [vmem:[#allocation19 + $0xfa0] sm:$0xff]  ;;  %v1834_v56 = vld [vmem:[#allocation19 + $0x768] sm:$0xff] }
 0x4bd   : > { %3490 = vmatpush1.msra.mxu0 %v1673_v63  ;;  %3561 = vmatpush1.msra.mxu1 %v1929_v0  ;;  %v2090_v63 = vld [vmem:[#allocation19 + $0xf68] sm:$0xff]  ;;  %v1833_v0 = vld [vmem:[#allocation19 + $0x760] sm:$0xff] }
 0x4be   : > { %3491 = vmatprep.subr.mxu0 %v1666_v1  ;;  %3562 = vmatprep.subr.mxu1 %v1922_v2  ;;  %v2089_v1 = vld [vmem:[#allocation19 + $0xf60] sm:$0xff]  ;;  %v1826_v2 = vld [vmem:[#allocation19 + $0x728] sm:$0xff] }
 0x4bf   : > { %3492 = vmatpush1.msra.mxu0 %v1665_v4  ;;  %3563 = vmatpush1.msra.mxu1 %v1921_v8  ;;  %v2082_v4 = vld [vmem:[#allocation19 + $0xf28] sm:$0xff]  ;;  %v1825_v8 = vld [vmem:[#allocation19 + $0x720] sm:$0xff] }
 0x4c0   : > { %3493 = vmatprep.subr.mxu0 %v1658_v9  ;;  %3564 = vmatprep.subr.mxu1 %v1914_v10  ;;  %v2081_v9 = vld [vmem:[#allocation19 + $0xf20] sm:$0xff]  ;;  %v1818_v10 = vld [vmem:[#allocation19 + $0x6e8] sm:$0xff] }
 0x4c1   : > { %3494 = vmatpush1.msra.mxu0 %v1657_v23  ;;  %3565 = vmatpush1.msra.mxu1 %v1913_v11  ;;  %v2074_v23 = vld [vmem:[#allocation19 + $0xee8] sm:$0xff]  ;;  %v1817_v11 = vld [vmem:[#allocation19 + $0x6e0] sm:$0xff] }
 0x4c2   : > { %3495 = vmatprep.subr.mxu0 %v1650_v12  ;;  %3566 = vmatprep.subr.mxu1 %v1906_v13  ;;  %v2073_v12 = vld [vmem:[#allocation19 + $0xee0] sm:$0xff]  ;;  %v1810_v13 = vld [vmem:[#allocation19 + $0x6a8] sm:$0xff] }
 0x4c3   : > { %3496 = vmatpush1.msra.mxu0 %v1649_v18  ;;  %3567 = vmatpush1.msra.mxu1 %v1905_v19  ;;  %v2066_v18 = vld [vmem:[#allocation19 + $0xea8] sm:$0xff]  ;;  %v1809_v19 = vld [vmem:[#allocation19 + $0x6a0] sm:$0xff] }
 0x4c4   : > { %3497 = vmatprep.subr.mxu0 %v1642_v21  ;;  %3568 = vmatprep.subr.mxu1 %v1898_v37  ;;  %v2065_v21 = vld [vmem:[#allocation19 + $0xea0] sm:$0xff]  ;;  %v1802_v37 = vld [vmem:[#allocation19 + $0x668] sm:$0xff] }
 0x4c5   : > { %3498 = vmatpush1.msra.mxu0 %v1641_v25  ;;  %3569 = vmatpush1.msra.mxu1 %v1897_v49  ;;  %v2058_v25 = vld [vmem:[#allocation19 + $0xe68] sm:$0xff]  ;;  %v1801_v49 = vld [vmem:[#allocation19 + $0x660] sm:$0xff] }
 0x4c6   : > { %3499 = vmatprep.subr.mxu0 %v1634_v26  ;;  %3570 = vmatprep.subr.mxu1 %v1890_v28  ;;  %v2057_v26 = vld [vmem:[#allocation19 + $0xe60] sm:$0xff]  ;;  %v1794_v28 = vld [vmem:[#allocation19 + $0x628] sm:$0xff] }
 0x4c7   : > { %3500 = vmatpush1.msra.mxu0 %v1633_v29  ;;  %3571 = vmatpush1.msra.mxu1 %v1889_v30  ;;  %v2050_v29 = vld [vmem:[#allocation19 + $0xe28] sm:$0xff]  ;;  %v1793_v30 = vld [vmem:[#allocation19 + $0x620] sm:$0xff] }
 0x4c8   : > { %3501 = vmatprep.subr.mxu0 %v1626_v31  ;;  %3572 = vmatprep.subr.mxu1 %v1882_v5  ;;  %v2049_v31 = vld [vmem:[#allocation19 + $0xe20] sm:$0xff]  ;;  %v1786_v5 = vld [vmem:[#allocation19 + $0x5e8] sm:$0xff] }
 0x4c9   : > { %3502 = vmatpush1.msra.mxu0 %v1625_v33  ;;  %3573 = vmatpush1.msra.mxu1 %v1881_v57  ;;  %v2042_v33 = vld [vmem:[#allocation19 + $0xde8] sm:$0xff]  ;;  %v1785_v57 = vld [vmem:[#allocation19 + $0x5e0] sm:$0xff] }
 0x4ca   : > { %3503 = vmatprep.subr.mxu0 %v1618_v32  ;;  %3574 = vmatprep.subr.mxu1 %v1874_v6  ;;  %v2041_v32 = vld [vmem:[#allocation19 + $0xde0] sm:$0xff]  ;;  %v1778_v6 = vld [vmem:[#allocation19 + $0x5a8] sm:$0xff] }
 0x4cb   : > { %3504 = vmatpush1.msra.mxu0 %v1617_v35  ;;  %3575 = vmatpush1.msra.mxu1 %v1873_v36  ;;  %v2034_v35 = vld [vmem:[#allocation19 + $0xda8] sm:$0xff]  ;;  %v1777_v36 = vld [vmem:[#allocation19 + $0x5a0] sm:$0xff] }
 0x4cc   : > { %3505 = vmatprep.subr.mxu0 %v1610_v47  ;;  %3576 = vmatprep.subr.mxu1 %v1866_v40  ;;  %v2033_v47 = vld [vmem:[#allocation19 + $0xda0] sm:$0xff]  ;;  %v1770_v40 = vld [vmem:[#allocation19 + $0x568] sm:$0xff] }
 0x4cd   : > { %3506 = vmatpush1.msra.mxu0 %v1609_v34  ;;  %3577 = vmatpush1.msra.mxu1 %v1865_v48  ;;  %v2026_v34 = vld [vmem:[#allocation19 + $0xd68] sm:$0xff]  ;;  %v1769_v48 = vld [vmem:[#allocation19 + $0x560] sm:$0xff] }
 0x4ce   : > { %3507 = vmatprep.subr.mxu0 %v1602_v61  ;;  %3578 = vmatprep.subr.mxu1 %v1858_v38  ;;  %v2025_v61 = vld [vmem:[#allocation19 + $0xd60] sm:$0xff]  ;;  %v1762_v38 = vld [vmem:[#allocation19 + $0x528] sm:$0xff] }
 0x4cf   : > { %3508 = vmatpush1.msra.mxu0 %v1601_v42  ;;  %3579 = vmatpush1.msra.mxu1 %v1857_v45  ;;  %v2018_v42 = vld [vmem:[#allocation19 + $0xd28] sm:$0xff]  ;;  %v1761_v45 = vld [vmem:[#allocation19 + $0x520] sm:$0xff] }
 0x4d0   : > { %3509 = vmatprep.subr.mxu0 %v1850_v46  ;;  %3580 = vmatprep.subr.mxu1 %v2106_v51  ;;  %v2017_v46 = vld [vmem:[#allocation19 + $0xd20] sm:$0xff]  ;;  %v1754_v51 = vld [vmem:[#allocation19 + $0x4e8] sm:$0xff] }
 0x4d1   : > { %3510 = vmatpush2.msra.mxu0 %v1849_v16  ;;  %3581 = vmatpush2.msra.mxu1 %v2105_v52  ;;  %v2010_v16 = vld [vmem:[#allocation19 + $0xce8] sm:$0xff]  ;;  %v1753_v52 = vld [vmem:[#allocation19 + $0x4e0] sm:$0xff] }
 0x4d2   : > { %3511 = vmatprep.subr.mxu0 %v1842_v54  ;;  %3582 = vmatprep.subr.mxu1 %v2098_v58  ;;  %v2009_v54 = vld [vmem:[#allocation19 + $0xce0] sm:$0xff]  ;;  %v1746_v58 = vld [vmem:[#allocation19 + $0x4a8] sm:$0xff] }
 0x4d3   : > { %3512 = vmatpush2.msra.mxu0 %v1841_v53  ;;  %3583 = vmatpush2.msra.mxu1 %v2097_v55  ;;  %v2002_v53 = vld [vmem:[#allocation19 + $0xca8] sm:$0xff]  ;;  %v1745_v55 = vld [vmem:[#allocation19 + $0x4a0] sm:$0xff] }
 0x4d4   : > { %3513 = vmatprep.subr.mxu0 %v1834_v56  ;;  %3584 = vmatprep.subr.mxu1 %v2090_v63  ;;  %v2001_v56 = vld [vmem:[#allocation19 + $0xca0] sm:$0xff]  ;;  %v1738_v63 = vld [vmem:[#allocation19 + $0x468] sm:$0xff] }
 0x4d5   : > { %3514 = vmatpush2.msra.mxu0 %v1833_v0  ;;  %3585 = vmatpush2.msra.mxu1 %v2089_v1  ;;  %v1994_v0 = vld [vmem:[#allocation19 + $0xc68] sm:$0xff]  ;;  %v1737_v1 = vld [vmem:[#allocation19 + $0x460] sm:$0xff] }
 0x4d6   : > { %3515 = vmatprep.subr.mxu0 %v1826_v2  ;;  %3586 = vmatprep.subr.mxu1 %v2082_v4  ;;  %v1993_v2 = vld [vmem:[#allocation19 + $0xc60] sm:$0xff] }
 0x4d7   : > { %3516 = vmatpush2.msra.mxu0 %v1825_v8  ;;  %3587 = vmatpush2.msra.mxu1 %v2081_v9  ;;  %v1730_v9 = vld [vmem:[#allocation19 + $0x428] sm:$0xff] }
 0x4d8   : > { %3517 = vmatprep.subr.mxu0 %v1818_v10  ;;  %3588 = vmatprep.subr.mxu1 %v2074_v23  ;;  %v1986_v10 = vld [vmem:[#allocation19 + $0xc28] sm:$0xff] }
 0x4d9   : > { %3518 = vmatpush2.msra.mxu0 %v1817_v11  ;;  %3589 = vmatpush2.msra.mxu1 %v2073_v12  ;;  %v1729_v11 = vld [vmem:[#allocation19 + $0x420] sm:$0xff] }
 0x4da   : > { %3519 = vmatprep.subr.mxu0 %v1810_v13  ;;  %3590 = vmatprep.subr.mxu1 %v2066_v18  ;;  %v1985_v12 = vld [vmem:[#allocation19 + $0xc20] sm:$0xff] }
 0x4db   : > { %3520 = vmatpush2.msra.mxu0 %v1809_v19  ;;  %3591 = vmatpush2.msra.mxu1 %v2065_v21  ;;  %v1724_v21 = vld [vmem:[#allocation19 + $0x3f8] sm:$0xff] }
 0x4dc   : > { %3521 = vmatprep.subr.mxu0 %v1802_v37  ;;  %3592 = vmatprep.subr.mxu1 %v2058_v25  ;;  %v1980_v37 = vld [vmem:[#allocation19 + $0xbf8] sm:$0xff]  ;;  %v1723_v25 = vld [vmem:[#allocation19 + $0x3f0] sm:$0xff] }
 0x4dd   : > { %3522 = vmatpush2.msra.mxu0 %v1801_v49  ;;  %3593 = vmatpush2.msra.mxu1 %v2057_v26  ;;  %v1979_v49 = vld [vmem:[#allocation19 + $0xbf0] sm:$0xff]  ;;  %v1716_v26 = vld [vmem:[#allocation19 + $0x3b8] sm:$0xff] }
 0x4de   : > { %3523 = vmatprep.subr.mxu0 %v1794_v28  ;;  %3594 = vmatprep.subr.mxu1 %v2050_v29  ;;  %v1972_v28 = vld [vmem:[#allocation19 + $0xbb8] sm:$0xff]  ;;  %v1715_v29 = vld [vmem:[#allocation19 + $0x3b0] sm:$0xff] }
 0x4df   : > { %3524 = vmatpush2.msra.mxu0 %v1793_v30  ;;  %3595 = vmatpush2.msra.mxu1 %v2049_v31  ;;  %v1971_v30 = vld [vmem:[#allocation19 + $0xbb0] sm:$0xff]  ;;  %v1708_v31 = vld [vmem:[#allocation19 + $0x378] sm:$0xff] }
 0x4e0   : > { %3525 = vmatprep.subr.mxu0 %v1786_v5  ;;  %3596 = vmatprep.subr.mxu1 %v2042_v33  ;;  %v1964_v5 = vld [vmem:[#allocation19 + $0xb78] sm:$0xff]  ;;  %v1707_v33 = vld [vmem:[#allocation19 + $0x370] sm:$0xff] }
 0x4e1   : > { %3526 = vmatpush2.msra.mxu0 %v1785_v57  ;;  %3597 = vmatpush2.msra.mxu1 %v2041_v32  ;;  %v1963_v57 = vld [vmem:[#allocation19 + $0xb70] sm:$0xff]  ;;  %v1700_v32 = vld [vmem:[#allocation19 + $0x338] sm:$0xff] }
 0x4e2   : > { %3527 = vmatprep.subr.mxu0 %v1778_v6  ;;  %3598 = vmatprep.subr.mxu1 %v2034_v35  ;;  %v1956_v6 = vld [vmem:[#allocation19 + $0xb38] sm:$0xff]  ;;  %v1699_v35 = vld [vmem:[#allocation19 + $0x330] sm:$0xff] }
 0x4e3   : > { %3528 = vmatpush2.msra.mxu0 %v1777_v36  ;;  %3599 = vmatpush2.msra.mxu1 %v2033_v47  ;;  %v1955_v36 = vld [vmem:[#allocation19 + $0xb30] sm:$0xff]  ;;  %v1948_v47 = vld [vmem:[#allocation19 + $0xaf8] sm:$0xff] }
 0x4e4   : > { %3529 = vmatprep.subr.mxu0 %v1770_v40  ;;  %3600 = vmatprep.subr.mxu1 %v2026_v34  ;;  %v1947_v40 = vld [vmem:[#allocation19 + $0xaf0] sm:$0xff]  ;;  %v1684_v34 = vld [vmem:[#allocation19 + $0x2b8] sm:$0xff] }
 0x4e5   : > { %3530 = vmatpush2.msra.mxu0 %v1769_v48  ;;  %3601 = vmatpush2.msra.mxu1 %v2025_v61  ;;  %v1940_v48 = vld [vmem:[#allocation19 + $0xab8] sm:$0xff]  ;;  %v1683_v61 = vld [vmem:[#allocation19 + $0x2b0] sm:$0xff] }
 0x4e6   : > { %3531 = vmatprep.subr.mxu0 %v1762_v38  ;;  %3602 = vmatprep.subr.mxu1 %v2018_v42  ;;  %v1939_v38 = vld [vmem:[#allocation19 + $0xab0] sm:$0xff]  ;;  %v1676_v42 = vld [vmem:[#allocation19 + $0x278] sm:$0xff] }
 0x4e7   : > { %3532 = vmatpush2.msra.mxu0 %v1761_v45  ;;  %3603 = vmatpush2.msra.mxu1 %v2017_v46  ;;  %v1932_v45 = vld [vmem:[#allocation19 + $0xa78] sm:$0xff]  ;;  %v1675_v46 = vld [vmem:[#allocation19 + $0x270] sm:$0xff] }
 0x4e8   : > { %3533 = vmatprep.subr.mxu0 %v1754_v51  ;;  %3604 = vmatprep.subr.mxu1 %v2010_v16  ;;  %v1931_v51 = vld [vmem:[#allocation19 + $0xa70] sm:$0xff]  ;;  %v1668_v16 = vld [vmem:[#allocation19 + $0x238] sm:$0xff] }
 0x4e9   : > { %3534 = vmatpush2.msra.mxu0 %v1753_v52  ;;  %3605 = vmatpush2.msra.mxu1 %v2009_v54  ;;  %v1924_v52 = vld [vmem:[#allocation19 + $0xa38] sm:$0xff]  ;;  %v1667_v54 = vld [vmem:[#allocation19 + $0x230] sm:$0xff] }
 0x4ea   : > { %3535 = vmatprep.subr.mxu0 %v1746_v58  ;;  %3606 = vmatprep.subr.mxu1 %v2002_v53  ;;  %v3117_v4 = vpop.f32.mrf.mxu0  ;;  %v3188_v8 = vpop.f32.mrf.mxu1  ;;  %v1923_v58 = vld [vmem:[#allocation19 + $0xa30] sm:$0xff]  ;;  %v1660_v53 = vld [vmem:[#allocation19 + $0x1f8] sm:$0xff] }
 0x4eb   : > { %3536 = vmatpush2.msra.mxu0 %v1745_v55  ;;  %3607 = vmatpush2.msra.mxu1 %v2001_v56  ;;  %v7544_v23 = vadd.f32 %v3188_v8, %v3117_v4  ;;  %v1916_v55 = vld [vmem:[#allocation19 + $0x9f8] sm:$0xff]  ;;  %v1659_v56 = vld [vmem:[#allocation19 + $0x1f0] sm:$0xff] }
 0x4ec   : > { %3537 = vmatprep.subr.mxu0 %v1738_v63  ;;  %3608 = vmatprep.subr.mxu1 %v1994_v0  ;;  %v3119_v13 = vpop.f32.mrf.mxu0  ;;  %v3190_v18 = vpop.f32.mrf.mxu1  ;;  %v1915_v63 = vld [vmem:[#allocation19 + $0x9f0] sm:$0xff]  ;;  %v1652_v0 = vld [vmem:[#allocation19 + $0x1b8] sm:$0xff] }
 0x4ed   : > { %3538 = vmatpush2.msra.mxu0 %v1737_v1  ;;  %3609 = vmatpush2.msra.mxu1 %v1993_v2  ;;  %v7546_v19 = vadd.f32 %v3190_v18, %v3119_v13  ;;  %v1908_v1 = vld [vmem:[#allocation19 + $0x9b8] sm:$0xff]  ;;  %v1651_v2 = vld [vmem:[#allocation19 + $0x1b0] sm:$0xff] }
 0x4ee   : > { %3539 = vmatprep.subr.mxu0 %v1730_v9  ;;  %3610 = vmatprep.subr.mxu1 %v1986_v10  ;;  %v1907_v4 = vld [vmem:[#allocation19 + $0x9b0] sm:$0xff]  ;;  %v1644_v8 = vld [vmem:[#allocation19 + $0x178] sm:$0xff] }
 0x4ef   : > { %3540 = vmatpush2.msra.mxu0 %v1729_v11  ;;  %3611 = vmatpush2.msra.mxu1 %v1985_v12  ;;  %v1900_v9 = vld [vmem:[#allocation19 + $0x978] sm:$0xff]  ;;  %v1643_v10 = vld [vmem:[#allocation19 + $0x170] sm:$0xff] }
 0x4f0   : > { %3542 = vmatmul.mubr.f32.vlgmr.msra.gmra.mxu0 %v7527_v39  ;;  %3613 = vmatmul.mubr.f32.vlgmr.msra.gmra.mxu1 %v7530_v41  ;;  %v1899_v11 = vld [vmem:[#allocation19 + $0x970] sm:$0xff]  ;;  %v1636_v12 = vld [vmem:[#allocation19 + $0x138] sm:$0xff] }
 0x4f1   : > { %3619 = vmatprep.subr.mxu0 %v1724_v21  ;;  %3690 = vmatprep.subr.mxu1 %v1980_v37  ;;  %v1892_v13 = vld [vmem:[#allocation19 + $0x938] sm:$0xff]  ;;  %v1635_v18 = vld [vmem:[#allocation19 + $0x130] sm:$0xff] }
 0x4f2   : > { %3620 = vmatpush1.msra.mxu0 %v1723_v25  ;;  %3683 = vmatprep.mubr.f32.mxu0 %v7504_v20  ;;  %v1692_v20 = vld [vmem:[#allocation19 + $0x2f8] sm:$0xff]  ;;  %v1891_v21 = vld [vmem:[#allocation19 + $0x930] sm:$0xff] }
 0x4f3   : > { %3691 = vmatpush1.msra.mxu1 %v1979_v49  ;;  %3754 = vmatprep.mubr.f32.mxu1 %v7507_v24  ;;  %v1691_v24 = vld [vmem:[#allocation19 + $0x2f0] sm:$0xff]  ;;  %v1628_v37 = vld [vmem:[#allocation19 + $0xf8] sm:$0xff] }
 0x4f4   : > { %3621 = vmatprep.subr.mxu0 %v1716_v26  ;;  %3692 = vmatprep.subr.mxu1 %v1972_v28  ;;  %v1884_v25 = vld [vmem:[#allocation19 + $0x8f8] sm:$0xff]  ;;  %v1627_v49 = vld [vmem:[#allocation19 + $0xf0] sm:$0xff] }
 0x4f5   : > { %3622 = vmatpush1.msra.mxu0 %v1715_v29  ;;  %3693 = vmatpush1.msra.mxu1 %v1971_v30  ;;  %v1883_v26 = vld [vmem:[#allocation19 + $0x8f0] sm:$0xff]  ;;  %v1620_v28 = vld [vmem:[#allocation19 + $0xb8] sm:$0xff] }
 0x4f6   : > { %3623 = vmatprep.subr.mxu0 %v1708_v31  ;;  %3694 = vmatprep.subr.mxu1 %v1964_v5  ;;  %v1876_v29 = vld [vmem:[#allocation19 + $0x8b8] sm:$0xff]  ;;  %v1619_v30 = vld [vmem:[#allocation19 + $0xb0] sm:$0xff] }
 0x4f7   : > { %3624 = vmatpush1.msra.mxu0 %v1707_v33  ;;  %3695 = vmatpush1.msra.mxu1 %v1963_v57  ;;  %v1875_v31 = vld [vmem:[#allocation19 + $0x8b0] sm:$0xff]  ;;  %v1612_v5 = vld [vmem:[#allocation19 + $0x78] sm:$0xff] }
 0x4f8   : > { %3625 = vmatprep.subr.mxu0 %v1700_v32  ;;  %3696 = vmatprep.subr.mxu1 %v1956_v6  ;;  %v1868_v33 = vld [vmem:[#allocation19 + $0x878] sm:$0xff]  ;;  %v1611_v57 = vld [vmem:[#allocation19 + $0x70] sm:$0xff] }
 0x4f9   : > { %3626 = vmatpush1.msra.mxu0 %v1699_v35  ;;  %3697 = vmatpush1.msra.mxu1 %v1955_v36  ;;  %v1867_v32 = vld [vmem:[#allocation19 + $0x870] sm:$0xff]  ;;  %v1604_v6 = vld [vmem:[#allocation19 + $0x38] sm:$0xff] }
 0x4fa   : > { %3627 = vmatprep.subr.mxu0 %v1692_v20  ;;  %3698 = vmatprep.subr.mxu1 %v1948_v47  ;;  %v1860_v35 = vld [vmem:[#allocation19 + $0x838] sm:$0xff]  ;;  %v1603_v36 = vld [vmem:[#allocation19 + $0x30] sm:$0xff] }
 0x4fb   : > { %3628 = vmatpush1.msra.mxu0 %v1691_v24  ;;  %3699 = vmatpush1.msra.mxu1 %v1947_v40  ;;  %v1859_v20 = vld [vmem:[#allocation19 + $0x830] sm:$0xff]  ;;  %v1852_v47 = vld [vmem:[#allocation19 + $0x7f8] sm:$0xff] }
 0x4fc   : > { %3629 = vmatprep.subr.mxu0 %v1684_v34  ;;  %3700 = vmatprep.subr.mxu1 %v1940_v48  ;;  %v2108_v24 = vld [vmem:[#allocation19 + $0xff8] sm:$0xff]  ;;  %v1851_v40 = vld [vmem:[#allocation19 + $0x7f0] sm:$0xff] }
 0x4fd   : > { %3630 = vmatpush1.msra.mxu0 %v1683_v61  ;;  %3701 = vmatpush1.msra.mxu1 %v1939_v38  ;;  %v2107_v34 = vld [vmem:[#allocation19 + $0xff0] sm:$0xff]  ;;  %v1844_v48 = vld [vmem:[#allocation19 + $0x7b8] sm:$0xff] }
 0x4fe   : > { %3631 = vmatprep.subr.mxu0 %v1676_v42  ;;  %3702 = vmatprep.subr.mxu1 %v1932_v45  ;;  %v2100_v61 = vld [vmem:[#allocation19 + $0xfb8] sm:$0xff]  ;;  %v1843_v38 = vld [vmem:[#allocation19 + $0x7b0] sm:$0xff] }
 0x4ff   : > { %3632 = vmatpush1.msra.mxu0 %v1675_v46  ;;  %3703 = vmatpush1.msra.mxu1 %v1931_v51  ;;  %v2099_v42 = vld [vmem:[#allocation19 + $0xfb0] sm:$0xff]  ;;  %v1836_v45 = vld [vmem:[#allocation19 + $0x778] sm:$0xff] }
 0x500   : > { %3633 = vmatprep.subr.mxu0 %v1668_v16  ;;  %3704 = vmatprep.subr.mxu1 %v1924_v52  ;;  %v2092_v46 = vld [vmem:[#allocation19 + $0xf78] sm:$0xff]  ;;  %v1835_v51 = vld [vmem:[#allocation19 + $0x770] sm:$0xff] }
 0x501   : > { %3634 = vmatpush1.msra.mxu0 %v1667_v54  ;;  %3705 = vmatpush1.msra.mxu1 %v1923_v58  ;;  %v2091_v16 = vld [vmem:[#allocation19 + $0xf70] sm:$0xff]  ;;  %v1828_v52 = vld [vmem:[#allocation19 + $0x738] sm:$0xff] }
 0x502   : > { %3635 = vmatprep.subr.mxu0 %v1660_v53  ;;  %3706 = vmatprep.subr.mxu1 %v1916_v55  ;;  %v2084_v54 = vld [vmem:[#allocation19 + $0xf38] sm:$0xff]  ;;  %v1827_v58 = vld [vmem:[#allocation19 + $0x730] sm:$0xff] }
 0x503   : > { %3636 = vmatpush1.msra.mxu0 %v1659_v56  ;;  %3707 = vmatpush1.msra.mxu1 %v1915_v63  ;;  %v2083_v53 = vld [vmem:[#allocation19 + $0xf30] sm:$0xff]  ;;  %v1820_v55 = vld [vmem:[#allocation19 + $0x6f8] sm:$0xff] }
 0x504   : > { %3637 = vmatprep.subr.mxu0 %v1652_v0  ;;  %3708 = vmatprep.subr.mxu1 %v1908_v1  ;;  %v2076_v56 = vld [vmem:[#allocation19 + $0xef8] sm:$0xff]  ;;  %v1819_v63 = vld [vmem:[#allocation19 + $0x6f0] sm:$0xff] }
 0x505   : > { %3638 = vmatpush1.msra.mxu0 %v1651_v2  ;;  %3709 = vmatpush1.msra.mxu1 %v1907_v4  ;;  %v2075_v0 = vld [vmem:[#allocation19 + $0xef0] sm:$0xff]  ;;  %v1812_v1 = vld [vmem:[#allocation19 + $0x6b8] sm:$0xff] }
 0x506   : > { %3639 = vmatprep.subr.mxu0 %v1644_v8  ;;  %3710 = vmatprep.subr.mxu1 %v1900_v9  ;;  %v2068_v2 = vld [vmem:[#allocation19 + $0xeb8] sm:$0xff]  ;;  %v1811_v4 = vld [vmem:[#allocation19 + $0x6b0] sm:$0xff] }
 0x507   : > { %3640 = vmatpush1.msra.mxu0 %v1643_v10  ;;  %3711 = vmatpush1.msra.mxu1 %v1899_v11  ;;  %v2067_v8 = vld [vmem:[#allocation19 + $0xeb0] sm:$0xff]  ;;  %v1804_v9 = vld [vmem:[#allocation19 + $0x678] sm:$0xff] }
 0x508   : > { %3641 = vmatprep.subr.mxu0 %v1636_v12  ;;  %3712 = vmatprep.subr.mxu1 %v1892_v13  ;;  %v2060_v10 = vld [vmem:[#allocation19 + $0xe78] sm:$0xff]  ;;  %v1803_v11 = vld [vmem:[#allocation19 + $0x670] sm:$0xff] }
 0x509   : > { %3642 = vmatpush1.msra.mxu0 %v1635_v18  ;;  %3713 = vmatpush1.msra.mxu1 %v1891_v21  ;;  %v2059_v12 = vld [vmem:[#allocation19 + $0xe70] sm:$0xff]  ;;  %v1796_v13 = vld [vmem:[#allocation19 + $0x638] sm:$0xff] }
 0x50a   : > { %3643 = vmatprep.subr.mxu0 %v1628_v37  ;;  %3714 = vmatprep.subr.mxu1 %v1884_v25  ;;  %v2052_v18 = vld [vmem:[#allocation19 + $0xe38] sm:$0xff]  ;;  %v1795_v21 = vld [vmem:[#allocation19 + $0x630] sm:$0xff] }
 0x50b   : > { %3644 = vmatpush1.msra.mxu0 %v1627_v49  ;;  %3715 = vmatpush1.msra.mxu1 %v1883_v26  ;;  %v2051_v37 = vld [vmem:[#allocation19 + $0xe30] sm:$0xff]  ;;  %v1788_v25 = vld [vmem:[#allocation19 + $0x5f8] sm:$0xff] }
 0x50c   : > { %3645 = vmatprep.subr.mxu0 %v1620_v28  ;;  %3716 = vmatprep.subr.mxu1 %v1876_v29  ;;  %v2044_v49 = vld [vmem:[#allocation19 + $0xdf8] sm:$0xff]  ;;  %v1787_v26 = vld [vmem:[#allocation19 + $0x5f0] sm:$0xff] }
 0x50d   : > { %3646 = vmatpush1.msra.mxu0 %v1619_v30  ;;  %3717 = vmatpush1.msra.mxu1 %v1875_v31  ;;  %v2043_v28 = vld [vmem:[#allocation19 + $0xdf0] sm:$0xff]  ;;  %v1780_v29 = vld [vmem:[#allocation19 + $0x5b8] sm:$0xff] }
 0x50e   : > { %3647 = vmatprep.subr.mxu0 %v1612_v5  ;;  %3718 = vmatprep.subr.mxu1 %v1868_v33  ;;  %v2036_v30 = vld [vmem:[#allocation19 + $0xdb8] sm:$0xff]  ;;  %v1779_v31 = vld [vmem:[#allocation19 + $0x5b0] sm:$0xff] }
 0x50f   : > { %3648 = vmatpush1.msra.mxu0 %v1611_v57  ;;  %3719 = vmatpush1.msra.mxu1 %v1867_v32  ;;  %v2035_v5 = vld [vmem:[#allocation19 + $0xdb0] sm:$0xff]  ;;  %v1772_v33 = vld [vmem:[#allocation19 + $0x578] sm:$0xff] }
 0x510   : > { %3649 = vmatprep.subr.mxu0 %v1604_v6  ;;  %3720 = vmatprep.subr.mxu1 %v1860_v35  ;;  %v2028_v57 = vld [vmem:[#allocation19 + $0xd78] sm:$0xff]  ;;  %v1771_v32 = vld [vmem:[#allocation19 + $0x570] sm:$0xff] }
 0x511   : > { %3650 = vmatpush1.msra.mxu0 %v1603_v36  ;;  %3721 = vmatpush1.msra.mxu1 %v1859_v20  ;;  %v2027_v6 = vld [vmem:[#allocation19 + $0xd70] sm:$0xff]  ;;  %v1764_v35 = vld [vmem:[#allocation19 + $0x538] sm:$0xff] }
 0x512   : > { %3651 = vmatprep.subr.mxu0 %v1852_v47  ;;  %3722 = vmatprep.subr.mxu1 %v2108_v24  ;;  %v2020_v36 = vld [vmem:[#allocation19 + $0xd38] sm:$0xff]  ;;  %v1763_v20 = vld [vmem:[#allocation19 + $0x530] sm:$0xff] }
 0x513   : > { %3652 = vmatpush2.msra.mxu0 %v1851_v40  ;;  %3723 = vmatpush2.msra.mxu1 %v2107_v34  ;;  %v2019_v47 = vld [vmem:[#allocation19 + $0xd30] sm:$0xff]  ;;  %v1756_v24 = vld [vmem:[#allocation19 + $0x4f8] sm:$0xff] }
 0x514   : > { %3653 = vmatprep.subr.mxu0 %v1844_v48  ;;  %3724 = vmatprep.subr.mxu1 %v2100_v61  ;;  %v2012_v40 = vld [vmem:[#allocation19 + $0xcf8] sm:$0xff]  ;;  %v1755_v34 = vld [vmem:[#allocation19 + $0x4f0] sm:$0xff] }
 0x515   : > { %3654 = vmatpush2.msra.mxu0 %v1843_v38  ;;  %3725 = vmatpush2.msra.mxu1 %v2099_v42  ;;  %v2011_v48 = vld [vmem:[#allocation19 + $0xcf0] sm:$0xff]  ;;  %v1748_v61 = vld [vmem:[#allocation19 + $0x4b8] sm:$0xff] }
 0x516   : > { %3655 = vmatprep.subr.mxu0 %v1836_v45  ;;  %3726 = vmatprep.subr.mxu1 %v2092_v46  ;;  %v2004_v38 = vld [vmem:[#allocation19 + $0xcb8] sm:$0xff]  ;;  %v1747_v42 = vld [vmem:[#allocation19 + $0x4b0] sm:$0xff]  ;;  %v7552_v46 = vld [vmem:[#allocation22] sm:$0xff] }
 0x517   : > { %3656 = vmatpush2.msra.mxu0 %v1835_v51  ;;  %3727 = vmatpush2.msra.mxu1 %v2091_v16  ;;  %v2003_v45 = vld [vmem:[#allocation19 + $0xcb0] sm:$0xff]  ;;  %v2763_v51 = vadd.f32 %v7512_v17, %v7510_v15  ;;  %v1740_v16 = vld [vmem:[#allocation19 + $0x478] sm:$0xff]  ;;  %v3766_v15 = vrot.slane %v7552_v46, %v7379_v60 }
 0x518   : > { %3657 = vmatprep.subr.mxu0 %v1828_v52  ;;  %3728 = vmatprep.subr.mxu1 %v2084_v54  ;;  %v1996_v52 = vld [vmem:[#allocation19 + $0xc78] sm:$0xff]  ;;  %v1739_v54 = vld [vmem:[#allocation19 + $0x470] sm:$0xff] }
 0x519   : > { %3658 = vmatpush2.msra.mxu0 %v1827_v58  ;;  %3729 = vmatpush2.msra.mxu1 %v2083_v53  ;;  %v1995_v58 = vld [vmem:[#allocation19 + $0xc70] sm:$0xff] }
 0x51a   : > { %3659 = vmatprep.subr.mxu0 %v1820_v55  ;;  %3730 = vmatprep.subr.mxu1 %v2076_v56  ;;  %v2765_v56 = vadd.f32 %v7516_v27, %v7514_v50  ;;  %v1731_v17 = vld [vmem:[#allocation19 + $0x430] sm:$0xff] }
 0x51b   : > { %3660 = vmatpush2.msra.mxu0 %v1819_v63  ;;  %3731 = vmatpush2.msra.mxu1 %v2075_v0  ;;  %v1732_v63 = vld [vmem:[#allocation19 + $0x438] sm:$0xff] }
 0x51c   : > { %3661 = vmatprep.subr.mxu0 %v1812_v1  ;;  %3732 = vmatprep.subr.mxu1 %v2068_v2  ;;  %v1988_v0 = vld [vmem:[#allocation19 + $0xc38] sm:$0xff]  ;;  %v1987_v2 = vld [vmem:[#allocation19 + $0xc30] sm:$0xff] }
 0x51d   : > { %3662 = vmatpush2.msra.mxu0 %v1811_v4  ;;  %3733 = vmatpush2.msra.mxu1 %v2067_v8  ;;  %v3770_v8 = vrot.slane %v7552_v46, %v7382_v62 }
 0x51e   : > { %3663 = vmatprep.subr.mxu0 %v1804_v9  ;;  %3734 = vmatprep.subr.mxu1 %v2060_v10  ;;  %v4179_v9 = vld [vmem:[%s7349_s19 + $0x260] sm:$0xff] }
 0x51f   : > { %3664 = vmatpush2.msra.mxu0 %v1803_v11  ;;  %3735 = vmatpush2.msra.mxu1 %v2059_v12  ;;  %v4339_v11 = vld [vmem:[%s7349_s19 + $0x760] sm:$0xff] }
 0x520   : > { %3665 = vmatprep.subr.mxu0 %v1796_v13  ;;  %3736 = vmatprep.subr.mxu1 %v2052_v18  ;;  %v4178_v13 = vld [vmem:[%s7349_s19 + $0x258] sm:$0xff] }
 0x521   : > { %3666 = vmatpush2.msra.mxu0 %v1795_v21  ;;  %3737 = vmatpush2.msra.mxu1 %v2051_v37  ;;  %v4338_v21 = vld [vmem:[%s7349_s19 + $0x758] sm:$0xff] }
 0x522   : > { %3667 = vmatprep.subr.mxu0 %v1788_v25  ;;  %3738 = vmatprep.subr.mxu1 %v2044_v49  ;;  %v4174_v37 = vld [vmem:[%s7349_s19 + $0x238] sm:$0xff] }
 0x523   : > { %3668 = vmatpush2.msra.mxu0 %v1787_v26  ;;  %3739 = vmatpush2.msra.mxu1 %v2043_v28  ;;  %v4334_v25 = vld [vmem:[%s7349_s19 + $0x738] sm:$0xff] }
 0x524   : > { %3669 = vmatprep.subr.mxu0 %v1780_v29  ;;  %3740 = vmatprep.subr.mxu1 %v2036_v30  ;;  %v4173_v29 = vld [vmem:[%s7349_s19 + $0x230] sm:$0xff] }
 0x525   : > { %3670 = vmatpush2.msra.mxu0 %v1779_v31  ;;  %3741 = vmatpush2.msra.mxu1 %v2035_v5  ;;  %v4333_v30 = vld [vmem:[%s7349_s19 + $0x730] sm:$0xff] }
 0x526   : > { %3671 = vmatprep.subr.mxu0 %v1772_v33  ;;  %3742 = vmatprep.subr.mxu1 %v2028_v57 }
 0x527   : > { %3672 = vmatpush2.msra.mxu0 %v1771_v32  ;;  %3743 = vmatpush2.msra.mxu1 %v2027_v6  ;;  %v4168_v32 = vld [vmem:[%s7349_s19 + $0x208] sm:$0xff] }
 0x528   : > { %3673 = vmatprep.subr.mxu0 %v1764_v35  ;;  %3744 = vmatprep.subr.mxu1 %v2020_v36  ;;  %v4328_v6 = vld [vmem:[%s7349_s19 + $0x708] sm:$0xff] }
 0x529   : > { %3674 = vmatpush2.msra.mxu0 %v1763_v20  ;;  %3745 = vmatpush2.msra.mxu1 %v2019_v47  ;;  %v4164_v35 = vld [vmem:[%s7349_s19 + $0x1e8] sm:$0xff] }
 0x52a   : > { %3675 = vmatprep.subr.mxu0 %v1756_v24  ;;  %3746 = vmatprep.subr.mxu1 %v2012_v40  ;;  %v4324_v36 = vld [vmem:[%s7349_s19 + $0x6e8] sm:$0xff] }
 0x52b   : > { %3676 = vmatpush2.msra.mxu0 %v1755_v34  ;;  %3747 = vmatpush2.msra.mxu1 %v2011_v48  ;;  %v4163_v34 = vld [vmem:[%s7349_s19 + $0x1e0] sm:$0xff] }
 0x52c   : > { %3677 = vmatprep.subr.mxu0 %v1748_v61  ;;  %3748 = vmatprep.subr.mxu1 %v2004_v38  ;;  %v3259_v53 = vpop.f32.mrf.mxu0  ;;  %v3330_v55 = vpop.f32.mrf.mxu1  ;;  %v4323_v48 = vld [vmem:[%s7349_s19 + $0x6e0] sm:$0xff] }
 0x52d   : > { %3678 = vmatpush2.msra.mxu0 %v1747_v42  ;;  %3749 = vmatpush2.msra.mxu1 %v2003_v45  ;;  %v3260_v1 = vadd.f32 %v3259_v53, %v2763_v51  ;;  %v4159_v61 = vld [vmem:[%s7349_s19 + $0x1c0] sm:$0xff]  ;;  %v4314_v53 = vld [vmem:[%s7349_s19 + $0x698] sm:$0xff] }
 0x52e   : > { %3679 = vmatprep.subr.mxu0 %v1740_v16  ;;  %3750 = vmatprep.subr.mxu1 %v1996_v52  ;;  %v3261_v4 = vpop.f32.mrf.mxu0  ;;  %v3332_v10 = vpop.f32.mrf.mxu1  ;;  %v4319_v38 = vld [vmem:[%s7349_s19 + $0x6c0] sm:$0xff]  ;;  %v4158_v52 = vld [vmem:[%s7349_s19 + $0x1b8] sm:$0xff] }
 0x52f   : > { %3680 = vmatpush2.msra.mxu0 %v1739_v54  ;;  %3751 = vmatpush2.msra.mxu1 %v1995_v58  ;;  %v3331_v50 = vadd.f32 %v3330_v55, %v3260_v1  ;;  %v3262_v27 = vadd.f32 %v3261_v4, %v2765_v56  ;;  %v4318_v54 = vld [vmem:[%s7349_s19 + $0x6b8] sm:$0xff]  ;;  %v4153_v1 = vld [vmem:[%s7349_s19 + $0x190] sm:$0xff] }
 0x530   : > { %3681 = vmatprep.subr.mxu0 %v1732_v63  ;;  %3752 = vmatprep.subr.mxu1 %v1988_v0  ;;  %v4154_v58 = vld [vmem:[%s7349_s19 + $0x198] sm:$0xff] }
 0x531   : > { %3682 = vmatpush2.msra.mxu0 %v1731_v17  ;;  %3753 = vmatpush2.msra.mxu1 %v1987_v2  ;;  %v7564_v12 = vadd.f32 %v3766_v15, %v3331_v50  ;;  %v3333_v18 = vadd.f32 %v3332_v10, %v3262_v27  ;;  %v4313_v15 = vld [vmem:[%s7349_s19 + $0x690] sm:$0xff]  ;;  %v4148_v27 = vld [vmem:[%s7349_s19 + $0x168] sm:$0xff] }
 0x532   : > { %3684 = vmatmul.mubr.f32.vlgmr.msra.gmra.mxu0 %v7527_v39  ;;  %3755 = vmatmul.mubr.f32.vlgmr.msra.gmra.mxu1 %v7530_v41  ;;  %v4169_v39 = vld [vmem:[%s7349_s19 + $0x210] sm:$0xff] }
 0x533   : > { %v3813_v49 = vrot.slane %v7564_v12, 4  ;;  %v3861_v26 = vmul.f32 %v7564_v12, %v7564_v12  ;;  %4770 = vmatprep.subr.mxu0 %v4179_v9  ;;  %v7575_v28 = vadd.f32 %v3770_v8, %v3333_v18  ;;  %4841 = vmatprep.subr.mxu1 %v4339_v11  ;;  %v4329_v41 = vld [vmem:[%s7349_s19 + $0x710] sm:$0xff]  ;;  %v4308_v8 = vld [vmem:[%s7349_s19 + $0x668] sm:$0xff] }
 0x534   : > { %4771 = vmatpush1.msra.mxu0 %v4178_v13  ;;  %4842 = vmatpush1.msra.mxu1 %v4338_v21  ;;  %v4149_v17 = vld [vmem:[%s7349_s19 + $0x170] sm:$0xff]  ;;  %v4144_v11 = vld [vmem:[%s7349_s19 + $0x148] sm:$0xff] }
 0x535   : > { %v3814_v31 = vadd.f32 %v3813_v49, %v7564_v12  ;;  %v3869_v5 = vrot.slane %v3861_v26, 4  ;;  %v3819_v33 = vrot.slane %v7575_v28, 4  ;;  %v3862_v57 = vmul.f32 %v7575_v28, %v7575_v28  ;;  %4772 = vmatprep.subr.mxu0 %v4174_v37  ;;  %4843 = vmatprep.subr.mxu1 %v4334_v25  ;;  %v4309_v2 = vld [vmem:[%s7349_s19 + $0x670] sm:$0xff]  ;;  %v4304_v13 = vld [vmem:[%s7349_s19 + $0x648] sm:$0xff]  ;;  %v4143_v37 = vld [vmem:[%s7349_s19 + $0x140] sm:$0xff] }
 0x536   : > { %4773 = vmatpush1.msra.mxu0 %v4173_v29  ;;  %4844 = vmatpush1.msra.mxu1 %v4333_v30  ;;  %v4303_v25 = vld [vmem:[%s7349_s19 + $0x640] sm:$0xff]  ;;  %v4138_v30 = vld [vmem:[%s7349_s19 + $0x118] sm:$0xff] }
 0x537   : > { %v3815_v20 = vrot.slane %v3814_v31, 2  ;;  %v3870_v47 = vadd.f32 %v3869_v5, %v3861_v26  ;;  %v3820_v24 = vadd.f32 %v3819_v33, %v7575_v28  ;;  %v3875_v40 = vrot.slane %v3862_v57, 4  ;;  %4774 = vmatprep.subr.mxu0 %v4169_v39  ;;  %4845 = vmatprep.subr.mxu1 %v4329_v41  ;;  %v4139_v49 = vld [vmem:[%s7349_s19 + $0x120] sm:$0xff]  ;;  %v4298_v39 = vld [vmem:[%s7349_s19 + $0x618] sm:$0xff] }
 0x538   : > { %4775 = vmatpush1.msra.mxu0 %v4168_v32  ;;  %4846 = vmatpush1.msra.mxu1 %v4328_v6  ;;  %v4299_v26 = vld [vmem:[%s7349_s19 + $0x620] sm:$0xff]  ;;  %v4134_v33 = vld [vmem:[%s7349_s19 + $0xf8] sm:$0xff]  ;;  %v4133_v6 = vld [vmem:[%s7349_s19 + $0xf0] sm:$0xff] }
 0x539   : > { %v3816_v42 = vadd.f32 %v3815_v20, %v3814_v31  ;;  %v3871_v45 = vrot.slane %v3870_v47, 2  ;;  %v3821_v51 = vrot.slane %v3820_v24, 2  ;;  %v3876_v16 = vadd.f32 %v3875_v40, %v3862_v57  ;;  %4776 = vmatprep.subr.mxu0 %v4164_v35  ;;  %4847 = vmatprep.subr.mxu1 %v4324_v36  ;;  %v4294_v57 = vld [vmem:[%s7349_s19 + $0x5f8] sm:$0xff]  ;;  %v4293_v35 = vld [vmem:[%s7349_s19 + $0x5f0] sm:$0xff]  ;;  %v4288_v40 = vld [vmem:[%s7349_s19 + $0x5c8] sm:$0xff] }
 0x53a   : > { %4777 = vmatpush1.msra.mxu0 %v4163_v34  ;;  %4848 = vmatpush1.msra.mxu1 %v4323_v48  ;;  %v4129_v20 = vld [vmem:[%s7349_s19 + $0xd0] sm:$0xff] }
 0x53b   : > { %v3817_v55 = vrot.slane %v3816_v42, 1  ;;  %v3872_v56 = vadd.f32 %v3871_v45, %v3870_v47  ;;  %v3822_v63 = vadd.f32 %v3821_v51, %v3820_v24  ;;  %v3877_v0 = vrot.slane %v3876_v16, 2  ;;  %4778 = vmatprep.subr.mxu0 %v4159_v61  ;;  %4849 = vmatprep.subr.mxu1 %v4319_v38  ;;  %v4289_v47 = vld [vmem:[%s7349_s19 + $0x5d0] sm:$0xff]  ;;  %v4128_v24 = vld [vmem:[%s7349_s19 + $0xc8] sm:$0xff]  ;;  %v4123_v45 = vld [vmem:[%s7349_s19 + $0xa0] sm:$0xff] }
 0x53c   : > { %4779 = vmatpush1.msra.mxu0 %v4158_v52  ;;  %4850 = vmatpush1.msra.mxu1 %v4318_v54  ;;  %v4124_v38 = vld [vmem:[%s7349_s19 + $0xa8] sm:$0xff]  ;;  %v4283_v51 = vld [vmem:[%s7349_s19 + $0x5a0] sm:$0xff] }
 0x53d   : > { %v3823_v4 = vrot.slane %v3822_v63, 1  ;;  %v3878_v50 = vadd.f32 %v3877_v0, %v3876_v16  ;;  %4780 = vmatprep.subr.mxu0 %v4154_v58  ;;  %4851 = vmatprep.subr.mxu1 %v4314_v53  ;;  %v3818_v9 = vadd.f32 %v3817_v55, %v3816_v42  ;;  %v3873_v10 = vrot.slane %v3872_v56, 1  ;;  %v4284_v42 = vld [vmem:[%s7349_s19 + $0x5a8] sm:$0xff]  ;;  %v4119_v52 = vld [vmem:[%s7349_s19 + $0x80] sm:$0xff]  ;;  %v4118_v58 = vld [vmem:[%s7349_s19 + $0x78] sm:$0xff] }
 0x53e   : > { %4781 = vmatpush1.msra.mxu0 %v4153_v1  ;;  %4852 = vmatpush1.msra.mxu1 %v4313_v15  ;;  %v4279_v54 = vld [vmem:[%s7349_s19 + $0x580] sm:$0xff]  ;;  %v4278_v53 = vld [vmem:[%s7349_s19 + $0x578] sm:$0xff]  ;;  %v4113_v0 = vld [vmem:[%s7349_s19 + $0x50] sm:$0xff] }
 0x53f   : > { %v3824_v18 = vadd.f32 %v3823_v4, %v3822_v63  ;;  %v3879_v21 = vrot.slane %v3878_v50, 1  ;;  %4782 = vmatprep.subr.mxu0 %v4149_v17  ;;  %4853 = vmatprep.subr.mxu1 %v4309_v2  ;;  %v3874_v41 = vadd.f32 %v3873_v10, %v3872_v56  ;;  %v7612_v31 = vmul.f32 0.125, %v3818_v9  ;;  %v4114_v56 = vld [vmem:[%s7349_s19 + $0x58] sm:$0xff]  ;;  %v4273_v1 = vld [vmem:[%s7349_s19 + $0x550] sm:$0xff]  ;;  %v4108_v2 = vld [vmem:[%s7349_s19 + $0x28] sm:$0xff] }
 0x540   : > { %4783 = vmatpush1.msra.mxu0 %v4148_v27  ;;  %4854 = vmatpush1.msra.mxu1 %v4308_v8  ;;  %v4274_v63 = vld [vmem:[%s7349_s19 + $0x558] sm:$0xff]  ;;  %v4109_v15 = vld [vmem:[%s7349_s19 + $0x30] sm:$0xff]  ;;  %v4268_v4 = vld [vmem:[%s7349_s19 + $0x528] sm:$0xff] }
 0x541   : > { %v3880_v29 = vadd.f32 %v3879_v21, %v3878_v50  ;;  %4784 = vmatprep.subr.mxu0 %v4144_v11  ;;  %4855 = vmatprep.subr.mxu1 %v4304_v13  ;;  %v7614_v5 = vmul.f32 0.125, %v3824_v18  ;;  %v3925_v34 = vmul.f32 0.125, %v3874_v41  ;;  %v3933_v48 = vmul.f32 %v7612_v31, %v7612_v31  ;;  %v4269_v17 = vld [vmem:[%s7349_s19 + $0x530] sm:$0xff]  ;;  %v4104_v27 = vld [vmem:[%s7349_s19 + $0x8] sm:$0xff]  ;;  %v4103_v9 = vld [vmem:[%s7349_s19] sm:$0xff] }
 0x542   : > { %4785 = vmatpush1.msra.mxu0 %v4143_v37  ;;  %4856 = vmatpush1.msra.mxu1 %v4303_v25  ;;  %v4264_v8 = vld [vmem:[%s7349_s19 + $0x508] sm:$0xff]  ;;  %v4263_v10 = vld [vmem:[%s7349_s19 + $0x500] sm:$0xff]  ;;  %v4258_v18 = vld [vmem:[%s7349_s19 + $0x4d8] sm:$0xff] }
 0x543   : > { %v3926_v32 = vmul.f32 0.125, %v3880_v29  ;;  %4786 = vmatprep.subr.mxu0 %v4139_v49  ;;  %4857 = vmatprep.subr.mxu1 %v4299_v26  ;;  %v3934_v36 = vmul.f32 %v7614_v5, %v7614_v5  ;;  %v3941_v55 = vsub.f32 %v3925_v34, %v3933_v48  ;;  %v4259_v11 = vld [vmem:[%s7349_s19 + $0x4e0] sm:$0xff]  ;;  %v4418_v21 = vld [vmem:[%s7349_s19 + $0x9d8] sm:$0xff]  ;;  %v4253_v49 = vld [vmem:[%s7349_s19 + $0x4b0] sm:$0xff] }
 0x544   : > { %4787 = vmatpush1.msra.mxu0 %v4138_v30  ;;  %4858 = vmatpush1.msra.mxu1 %v4298_v39  ;;  %v4419_v13 = vld [vmem:[%s7349_s19 + $0x9e0] sm:$0xff]  ;;  %v4254_v37 = vld [vmem:[%s7349_s19 + $0x4b8] sm:$0xff]  ;;  %v4413_v26 = vld [vmem:[%s7349_s19 + $0x9b0] sm:$0xff] }
 0x545   : > { %4788 = vmatprep.subr.mxu0 %v4134_v33  ;;  %4859 = vmatprep.subr.mxu1 %v4294_v57  ;;  %v3942_v61 = vsub.f32 %v3926_v32, %v3934_v36  ;;  %v3957_v50 = vadd.f32 0.8, %v3941_v55  ;;  %v4414_v25 = vld [vmem:[%s7349_s19 + $0x9b8] sm:$0xff]  ;;  %v4249_v29 = vld [vmem:[%s7349_s19 + $0x490] sm:$0xff]  ;;  %v4248_v39 = vld [vmem:[%s7349_s19 + $0x488] sm:$0xff]  ;;  %v3950_v57 = vsub.f32 %v7575_v28, %v7614_v5 }
 0x546   : > { %4789 = vmatpush1.msra.mxu0 %v4133_v6  ;;  %4860 = vmatpush1.msra.mxu1 %v4293_v35  ;;  %v4409_v30 = vld [vmem:[%s7349_s19 + $0x990] sm:$0xff]  ;;  %v4408_v33 = vld [vmem:[%s7349_s19 + $0x988] sm:$0xff]  ;;  %v4239_v28 = vld [vmem:[%s7349_s19 + $0x440] sm:$0xff] }
 0x547   : > { %4790 = vmatprep.subr.mxu0 %v4129_v20  ;;  %4861 = vmatprep.subr.mxu1 %v4289_v47  ;;  %v3958_v16 = vadd.f32 0.8, %v3942_v61  ;;  %v7659_v41 = vld [vmem:[#allocation24] sm:$0xff]  ;;  %v4244_v32 = vld [vmem:[%s7349_s19 + $0x468] sm:$0xff]  ;;  %v4243_v20 = vld [vmem:[%s7349_s19 + $0x460] sm:$0xff] }
 0x548   : > { %4791 = vmatpush1.msra.mxu0 %v4128_v24  ;;  %4862 = vmatpush1.msra.mxu1 %v4288_v40  ;;  %v3989_v6 = vrot.slane %v7659_v41, %v7382_v62  ;;  %v4404_v35 = vld [vmem:[%s7349_s19 + $0x968] sm:$0xff]  ;;  %v7669_v47 = vld [vmem:[#allocation25] sm:$0xff]  ;;  %v4403_v24 = vld [vmem:[%s7349_s19 + $0x960] sm:$0xff] }
 0x549   : > { %4792 = vmatprep.subr.mxu0 %v4124_v38  ;;  %4863 = vmatprep.subr.mxu1 %v4284_v42  ;;  %6338 = vrsqrt.f32 %v3958_v16  ;;  %v4038_v40 = vrot.slane %v7669_v47, %v7382_v62  ;;  %v4399_v34 = vld [vmem:[%s7349_s19 + $0x940] sm:$0xff]  ;;  %v4238_v48 = vld [vmem:[%s7349_s19 + $0x438] sm:$0xff]  ;;  %v4393_v16 = vld [vmem:[%s7349_s19 + $0x910] sm:$0xff] }
 0x54a   : > { %4793 = vmatpush1.msra.mxu0 %v4123_v45  ;;  %4864 = vmatpush1.msra.mxu1 %v4283_v51  ;;  %6340 = vrsqrt.f32 %v3957_v50  ;;  %v4398_v61 = vld [vmem:[%s7349_s19 + $0x938] sm:$0xff]  ;;  %v4233_v51 = vld [vmem:[%s7349_s19 + $0x410] sm:$0xff]  ;;  %v4388_v55 = vld [vmem:[%s7349_s19 + $0x8e8] sm:$0xff] }
 0x54b   : > { %4794 = vmatprep.subr.mxu0 %v4119_v52  ;;  %4865 = vmatprep.subr.mxu1 %v4279_v54  ;;  %v4234_v38 = vld [vmem:[%s7349_s19 + $0x418] sm:$0xff]  ;;  %v4229_v52 = vld [vmem:[%s7349_s19 + $0x3f0] sm:$0xff]  ;;  %v4383_v50 = vld [vmem:[%s7349_s19 + $0x8c0] sm:$0xff] }
 0x54c   : > { %4795 = vmatpush1.msra.mxu0 %v4118_v58  ;;  %4866 = vmatpush1.msra.mxu1 %v4278_v53  ;;  %v4394_v45 = vld [vmem:[%s7349_s19 + $0x918] sm:$0xff]  ;;  %v4389_v58 = vld [vmem:[%s7349_s19 + $0x8f0] sm:$0xff]  ;;  %v4228_v53 = vld [vmem:[%s7349_s19 + $0x3e8] sm:$0xff] }
 0x54d   : > { %4796 = vmatprep.subr.mxu0 %v4114_v56  ;;  %4867 = vmatprep.subr.mxu1 %v4274_v63  ;;  %v4224_v56 = vld [vmem:[%s7349_s19 + $0x3c8] sm:$0xff] }
 0x54e   : > { %4797 = vmatpush1.msra.mxu0 %v4113_v0  ;;  %4868 = vmatpush1.msra.mxu1 %v4273_v1  ;;  %v4223_v1 = vld [vmem:[%s7349_s19 + $0x3c0] sm:$0xff] }
 0x54f   : > { %4798 = vmatprep.subr.mxu0 %v4109_v15  ;;  %4869 = vmatprep.subr.mxu1 %v4269_v17  ;;  %v4384_v15 = vld [vmem:[%s7349_s19 + $0x8c8] sm:$0xff]  ;;  %v3949_v17 = vsub.f32 %v7564_v12, %v7612_v31  ;;  %v3985_v31 = vrot.slane %v7659_v41, %v7379_v60 }
 0x550   : > { %4799 = vmatpush1.msra.mxu0 %v4108_v2  ;;  %4870 = vmatpush1.msra.mxu1 %v4268_v4  ;;  %v4219_v2 = vld [vmem:[%s7349_s19 + $0x3a0] sm:$0xff] }
 0x551   : > { %4800 = vmatprep.subr.mxu0 %v4104_v27  ;;  %4871 = vmatprep.subr.mxu1 %v4264_v8  ;;  %v4218_v27 = vld [vmem:[%s7349_s19 + $0x398] sm:$0xff]  ;;  %v4379_v8 = vld [vmem:[%s7349_s19 + $0x8a0] sm:$0xff] }
 0x552   : > { %4801 = vmatpush1.msra.mxu0 %v4103_v9  ;;  %4872 = vmatpush1.msra.mxu1 %v4263_v10  ;;  %v4214_v9 = vld [vmem:[%s7349_s19 + $0x378] sm:$0xff] }
 0x553   : > { %4802 = vmatprep.subr.mxu0 %v4259_v11  ;;  %4873 = vmatprep.subr.mxu1 %v4419_v13  ;;  %v4378_v10 = vld [vmem:[%s7349_s19 + $0x898] sm:$0xff]  ;;  %v4213_v11 = vld [vmem:[%s7349_s19 + $0x370] sm:$0xff] }
 0x554   : > { %4803 = vmatpush2.msra.mxu0 %v4258_v18  ;;  %4874 = vmatpush2.msra.mxu1 %v4418_v21  ;;  %v4374_v13 = vld [vmem:[%s7349_s19 + $0x878] sm:$0xff]  ;;  %v4209_v18 = vld [vmem:[%s7349_s19 + $0x350] sm:$0xff] }
 0x555   : > { %4804 = vmatprep.subr.mxu0 %v4254_v37  ;;  %4875 = vmatprep.subr.mxu1 %v4414_v25  ;;  %v4373_v21 = vld [vmem:[%s7349_s19 + $0x870] sm:$0xff]  ;;  %v4208_v37 = vld [vmem:[%s7349_s19 + $0x348] sm:$0xff] }
 0x556   : > { %4805 = vmatpush2.msra.mxu0 %v4253_v49  ;;  %4876 = vmatpush2.msra.mxu1 %v4413_v26  ;;  %v6339_v36 = vpop.eup %6338  ;;  %v4369_v25 = vld [vmem:[%s7349_s19 + $0x850] sm:$0xff]  ;;  %v4204_v49 = vld [vmem:[%s7349_s19 + $0x328] sm:$0xff] }
 0x557   : > { %4806 = vmatprep.subr.mxu0 %v4249_v29  ;;  %4877 = vmatprep.subr.mxu1 %v4409_v30  ;;  %v3974_v5 = vmul.f32 %v6339_v36, %v3950_v57  ;;  %v6341_v0 = vpop.eup %6340  ;;  %v4034_v29 = vrot.slane %v7669_v47, %v7379_v60  ;;  %v4368_v30 = vld [vmem:[%s7349_s19 + $0x848] sm:$0xff]  ;;  %v4199_v57 = vld [vmem:[%s7349_s19 + $0x300] sm:$0xff]  ;;  %v4194_v36 = vld [vmem:[%s7349_s19 + $0x2d8] sm:$0xff] }
 0x558   : > { %4807 = vmatpush2.msra.mxu0 %v4248_v39  ;;  %4878 = vmatpush2.msra.mxu1 %v4408_v33  ;;  %v3973_v12 = vmul.f32 %v6341_v0, %v3949_v17  ;;  %v4203_v39 = vld [vmem:[%s7349_s19 + $0x320] sm:$0xff]  ;;  %v4364_v33 = vld [vmem:[%s7349_s19 + $0x828] sm:$0xff] }
 0x559   : > { %4808 = vmatprep.subr.mxu0 %v4244_v32  ;;  %4879 = vmatprep.subr.mxu1 %v4404_v35  ;;  %v4023_v42 = vmul.f32 %v3989_v6, %v3974_v5  ;;  %v4363_v32 = vld [vmem:[%s7349_s19 + $0x820] sm:$0xff]  ;;  %v4198_v6 = vld [vmem:[%s7349_s19 + $0x2f8] sm:$0xff] }
 0x55a   : > { %4809 = vmatpush2.msra.mxu0 %v4243_v20  ;;  %4880 = vmatpush2.msra.mxu1 %v4403_v24  ;;  %v4022_v26 = vmul.f32 %v3985_v31, %v3973_v12  ;;  %v4359_v35 = vld [vmem:[%s7349_s19 + $0x800] sm:$0xff]  ;;  %v4358_v24 = vld [vmem:[%s7349_s19 + $0x7f8] sm:$0xff] }
 0x55b   : > { %4810 = vmatprep.subr.mxu0 %v4239_v28  ;;  %4881 = vmatprep.subr.mxu1 %v4399_v34  ;;  %v4072_v54 = vadd.f32 %v4038_v40, %v4023_v42  ;;  %v4193_v28 = vld [vmem:[%s7349_s19 + $0x2d0] sm:$0xff]  ;;  %v4354_v5 = vld [vmem:[%s7349_s19 + $0x7d8] sm:$0xff] }
 0x55c   : > { %4811 = vmatpush2.msra.mxu0 %v4238_v48  ;;  %4882 = vmatpush2.msra.mxu1 %v4398_v61  ;;  %v4071_v20 = vadd.f32 %v4034_v29, %v4022_v26  ;;  %v4189_v40 = vld [vmem:[%s7349_s19 + $0x2b0] sm:$0xff]  ;;  %v4188_v48 = vld [vmem:[%s7349_s19 + $0x2a8] sm:$0xff] }
 0x55d   : > { %4812 = vmatprep.subr.mxu0 %v4234_v38  ;;  %4883 = vmatprep.subr.mxu1 %v4394_v45  ;;  %vm4080_vm8 = vcmp.gt.f32.partialorder %v4072_v54, 0.0  ;;  %v4088_v63 = vmul.f32 0.2, %v4072_v54  ;;  %v4353_v34 = vld [vmem:[%s7349_s19 + $0x7d0] sm:$0xff]  ;;  %v4184_v38 = vld [vmem:[%s7349_s19 + $0x288] sm:$0xff] }
 0x55e   : > { %4813 = vmatpush2.msra.mxu0 %v4233_v51  ;;  %4884 = vmatpush2.msra.mxu1 %v4393_v16  ;;  %v4349_v61 = vld [vmem:[%s7349_s19 + $0x7b0] sm:$0xff]  ;;  %v4087_v51 = vmul.f32 0.2, %v4071_v20  ;;  %v4348_v16 = vld [vmem:[%s7349_s19 + $0x7a8] sm:$0xff]  ;;  %vm4079_vm9 = vcmp.gt.f32.partialorder %v4071_v20, 0.0 }
 0x55f   : > { %4814 = vmatprep.subr.mxu0 %v4229_v52  ;;  %4885 = vmatprep.subr.mxu1 %v4389_v58  ;;  %v7692_v4 = vsel %vm4080_vm8, %v4072_v54, %v4088_v63  ;;  %v4183_v52 = vld [vmem:[%s7349_s19 + $0x280] sm:$0xff]  ;;  %v3774_v58 = vrot.slane %v7552_v46, %v7407_v14 }
 0x560   : > { %4815 = vmatpush2.msra.mxu0 %v4228_v53  ;;  %4886 = vmatpush2.msra.mxu1 %v4388_v55  ;;  %v4344_v53 = vld [vmem:[%s7349_s19 + $0x788] sm:$0xff]  ;;  %v7739_v17 = vsel %vm4079_vm9, %v4071_v20, %v4087_v51  ;;  %v4474_v20 = vld [vmem:[%s7349_s19 + $0xb98] sm:$0xff] }
 0x561   : > { %4816 = vmatprep.subr.mxu0 %v4224_v56  ;;  %4834 = vmatprep.mubr.f32.mxu0 %v7692_v4  ;;  %v4343_v56 = vld [vmem:[%s7349_s19 + $0x780] sm:$0xff] }
 0x562   : > { %4817 = vmatpush2.msra.mxu0 %v4223_v1  ;;  %4887 = vmatprep.subr.mxu1 %v4384_v15  ;;  %v4499_v1 = vld [vmem:[%s7349_s19 + $0xc60] sm:$0xff] }
 0x563   : > { %4818 = vmatprep.subr.mxu0 %v4219_v2  ;;  %4888 = vmatpush2.msra.mxu1 %v4383_v50  ;;  %v4659_v15 = vld [vmem:[%s7349_s19 + $0x1160] sm:$0xff]  ;;  %v4498_v50 = vld [vmem:[%s7349_s19 + $0xc58] sm:$0xff] }
 0x564   : > { %4819 = vmatpush2.msra.mxu0 %v4218_v27  ;;  %4889 = vmatprep.subr.mxu1 %v4379_v8  ;;  %v4494_v8 = vld [vmem:[%s7349_s19 + $0xc38] sm:$0xff] }
 0x565   : > { %4820 = vmatprep.subr.mxu0 %v4214_v9  ;;  %4890 = vmatpush2.msra.mxu1 %v4378_v10  ;;  %v4489_v10 = vld [vmem:[%s7349_s19 + $0xc10] sm:$0xff] }
 0x566   : > { %4821 = vmatpush2.msra.mxu0 %v4213_v11  ;;  %4891 = vmatprep.subr.mxu1 %v4374_v13  ;;  %v4488_v11 = vld [vmem:[%s7349_s19 + $0xc08] sm:$0xff] }
 0x567   : > { %4822 = vmatprep.subr.mxu0 %v4209_v18  ;;  %4892 = vmatpush2.msra.mxu1 %v4373_v21 }
 0x568   : > { %4823 = vmatpush2.msra.mxu0 %v4208_v37  ;;  %4893 = vmatprep.subr.mxu1 %v4369_v25  ;;  %v4484_v25 = vld [vmem:[%s7349_s19 + $0xbe8] sm:$0xff] }
 0x569   : > { %4824 = vmatprep.subr.mxu0 %v4204_v49  ;;  %4894 = vmatpush2.msra.mxu1 %v4368_v30  ;;  %v4483_v49 = vld [vmem:[%s7349_s19 + $0xbe0] sm:$0xff] }
 0x56a   : > { %4825 = vmatpush2.msra.mxu0 %v4203_v39  ;;  %4895 = vmatprep.subr.mxu1 %v4364_v33  ;;  %v4479_v33 = vld [vmem:[%s7349_s19 + $0xbc0] sm:$0xff] }
 0x56b   : > { %4826 = vmatprep.subr.mxu0 %v4199_v57  ;;  %4896 = vmatpush2.msra.mxu1 %v4363_v32  ;;  %v4478_v57 = vld [vmem:[%s7349_s19 + $0xbb8] sm:$0xff] }
 0x56c   : > { %4827 = vmatpush2.msra.mxu0 %v4198_v6  ;;  %4897 = vmatprep.subr.mxu1 %v4359_v35 }
 0x56d   : > { %4828 = vmatprep.subr.mxu0 %v4194_v36  ;;  %4898 = vmatpush2.msra.mxu1 %v4358_v24  ;;  %v4473_v24 = vld [vmem:[%s7349_s19 + $0xb90] sm:$0xff] }
 0x56e   : > { %4829 = vmatpush2.msra.mxu0 %v4193_v28  ;;  %v3401_v42 = vpop.f32.mrf.mxu0  ;;  %v3472_v45 = vpop.f32.mrf.mxu1  ;;  %4899 = vmatprep.subr.mxu1 %v4354_v5 }
 0x56f   : > { %4830 = vmatprep.subr.mxu0 %v4189_v40  ;;  %v3402_v54 = vadd.f32 %v3401_v42, %v7518_v7  ;;  %4900 = vmatpush2.msra.mxu1 %v4353_v34  ;;  %v3778_v7 = vrot.slane %v7552_v46, %v7410_v22  ;;  %v4493_v46 = vld [vmem:[%s7349_s19 + $0xc30] sm:$0xff] }
 0x570   : > { %4831 = vmatpush2.msra.mxu0 %v4188_v48  ;;  %v3403_v55 = vpop.f32.mrf.mxu0  ;;  %4901 = vmatprep.subr.mxu1 %v4349_v61  ;;  %v3474_v2 = vpop.f32.mrf.mxu1  ;;  %v4469_v48 = vld [vmem:[%s7349_s19 + $0xb70] sm:$0xff]  ;;  %v4468_v61 = vld [vmem:[%s7349_s19 + $0xb68] sm:$0xff] }
 0x571   : > { %4832 = vmatprep.subr.mxu0 %v4184_v38  ;;  %v3473_v63 = vadd.f32 %v3472_v45, %v3402_v54  ;;  %v3404_v0 = vadd.f32 %v3403_v55, %v7524_v43  ;;  %4902 = vmatpush2.msra.mxu1 %v4348_v16  ;;  %v4464_v16 = vld [vmem:[%s7349_s19 + $0xb48] sm:$0xff] }
 0x572   : > { %4833 = vmatpush2.msra.mxu0 %v4183_v52  ;;  %4903 = vmatprep.subr.mxu1 %v4344_v53  ;;  %v4463_v52 = vld [vmem:[%s7349_s19 + $0xb40] sm:$0xff] }
 0x573   : > { %v7742_v27 = vadd.f32 %v3774_v58, %v3473_v63  ;;  %4835 = vmatmul.mubr.f32.vlgmr.msra.gmra.mxu0 %v7739_v17  ;;  %v3475_v43 = vadd.f32 %v3474_v2, %v3404_v0  ;;  %4904 = vmatpush2.msra.mxu1 %v4343_v56  ;;  %v4459_v56 = vld [vmem:[%s7349_s19 + $0xb20] sm:$0xff]  ;;  %v4458_v63 = vld [vmem:[%s7349_s19 + $0xb18] sm:$0xff] }
 0x574   : > { %4912 = vmatprep.subr.mxu0 %v4499_v1  ;;  %4983 = vmatprep.subr.mxu1 %v4659_v15  ;;  %v4454_v15 = vld [vmem:[%s7349_s19 + $0xaf8] sm:$0xff] }
 0x575   : > { %v3825_v9 = vrot.slane %v7742_v27, 4  ;;  %v3863_v12 = vmul.f32 %v7742_v27, %v7742_v27  ;;  %v7750_v31 = vadd.f32 %v3778_v7, %v3475_v43  ;;  %4913 = vmatpush1.msra.mxu0 %v4498_v50  ;;  %v4453_v50 = vld [vmem:[%s7349_s19 + $0xaf0] sm:$0xff] }
 0x576   : > { %4914 = vmatprep.subr.mxu0 %v4494_v8 }
 0x577   : > { %v3826_v13 = vadd.f32 %v3825_v9, %v7742_v27  ;;  %v3881_v18 = vrot.slane %v3863_v12, 4  ;;  %v3831_v21 = vrot.slane %v7750_v31, 4  ;;  %v3864_v37 = vmul.f32 %v7750_v31, %v7750_v31  ;;  %4915 = vmatpush1.msra.mxu0 %v4493_v46  ;;  %v4449_v46 = vld [vmem:[%s7349_s19 + $0xad0] sm:$0xff] }
 0x578   : > { %4916 = vmatprep.subr.mxu0 %v4489_v10 }
 0x579   : > { %v3827_v26 = vrot.slane %v3826_v13, 2  ;;  %v3882_v29 = vadd.f32 %v3881_v18, %v3863_v12  ;;  %v3832_v30 = vadd.f32 %v3831_v21, %v7750_v31  ;;  %v3887_v39 = vrot.slane %v3864_v37, 4  ;;  %4917 = vmatpush1.msra.mxu0 %v4488_v11  ;;  %v4448_v12 = vld [vmem:[%s7349_s19 + $0xac8] sm:$0xff]  ;;  %v4443_v18 = vld [vmem:[%s7349_s19 + $0xaa0] sm:$0xff] }
 0x57a   : > { %4918 = vmatprep.subr.mxu0 %v4484_v25  ;;  %v4444_v11 = vld [vmem:[%s7349_s19 + $0xaa8] sm:$0xff]  ;;  %v4439_v21 = vld [vmem:[%s7349_s19 + $0xa80] sm:$0xff]  ;;  %v4438_v25 = vld [vmem:[%s7349_s19 + $0xa78] sm:$0xff] }
 0x57b   : > { %v3828_v32 = vadd.f32 %v3827_v26, %v3826_v13  ;;  %v3883_v6 = vrot.slane %v3882_v29, 2  ;;  %v3833_v35 = vrot.slane %v3832_v30, 2  ;;  %v3888_v36 = vadd.f32 %v3887_v39, %v3864_v37  ;;  %4919 = vmatpush1.msra.mxu0 %v4483_v49  ;;  %v4434_v49 = vld [vmem:[%s7349_s19 + $0xa58] sm:$0xff]  ;;  %v4433_v26 = vld [vmem:[%s7349_s19 + $0xa50] sm:$0xff]  ;;  %v4424_v39 = vld [vmem:[%s7349_s19 + $0xa08] sm:$0xff] }
 0x57c   : > { %4920 = vmatprep.subr.mxu0 %v4479_v33  ;;  %v4423_v33 = vld [vmem:[%s7349_s19 + $0xa00] sm:$0xff] }
 0x57d   : > { %v3829_v28 = vrot.slane %v3828_v32, 1  ;;  %v3884_v5 = vadd.f32 %v3883_v6, %v3882_v29  ;;  %v3834_v40 = vadd.f32 %v3833_v35, %v3832_v30  ;;  %v3889_v34 = vrot.slane %v3888_v36, 2  ;;  %4921 = vmatpush1.msra.mxu0 %v4478_v57  ;;  %v4429_v29 = vld [vmem:[%s7349_s19 + $0xa30] sm:$0xff]  ;;  %v4428_v30 = vld [vmem:[%s7349_s19 + $0xa28] sm:$0xff]  ;;  %v4579_v57 = vld [vmem:[%s7349_s19 + $0xee0] sm:$0xff] }
 0x57e   : > { %4922 = vmatprep.subr.mxu0 %v4474_v20  ;;  %v4574_v6 = vld [vmem:[%s7349_s19 + $0xeb8] sm:$0xff]  ;;  %v4573_v35 = vld [vmem:[%s7349_s19 + $0xeb0] sm:$0xff]  ;;  %v3993_v20 = vrot.slane %v7659_v41, %v7407_v14 }
 0x57f   : > { %v3830_v38 = vadd.f32 %v3829_v28, %v3828_v32  ;;  %v3885_v42 = vrot.slane %v3884_v5, 1  ;;  %v3835_v45 = vrot.slane %v3834_v40, 1  ;;  %v3890_v51 = vadd.f32 %v3889_v34, %v3888_v36  ;;  %4923 = vmatpush1.msra.mxu0 %v4473_v24  ;;  %v4578_v32 = vld [vmem:[%s7349_s19 + $0xed8] sm:$0xff]  ;;  %v4569_v24 = vld [vmem:[%s7349_s19 + $0xe90] sm:$0xff] }
 0x580   : > { %4924 = vmatprep.subr.mxu0 %v4469_v48  ;;  %v4042_v34 = vrot.slane %v7669_v47, %v7407_v14  ;;  %v4564_v48 = vld [vmem:[%s7349_s19 + $0xe68] sm:$0xff] }
 0x581   : > { %v3886_v54 = vadd.f32 %v3885_v42, %v3884_v5  ;;  %v7769_v58 = vmul.f32 0.125, %v3830_v38  ;;  %v3836_v53 = vadd.f32 %v3835_v45, %v3834_v40  ;;  %v3891_v55 = vrot.slane %v3890_v51, 1  ;;  %4925 = vmatpush1.msra.mxu0 %v4468_v61  ;;  %v4568_v5 = vld [vmem:[%s7349_s19 + $0xe88] sm:$0xff]  ;;  %v4563_v38 = vld [vmem:[%s7349_s19 + $0xe60] sm:$0xff] }
 0x582   : > { %4926 = vmatprep.subr.mxu0 %v4464_v16  ;;  %v3997_v61 = vrot.slane %v7659_v41, %v7410_v22 }
 0x583   : > { %v3927_v0 = vmul.f32 0.125, %v3886_v54  ;;  %v3935_v7 = vmul.f32 %v7769_v58, %v7769_v58  ;;  %v3892_v1 = vadd.f32 %v3891_v55, %v3890_v51  ;;  %4927 = vmatpush1.msra.mxu0 %v4463_v52  ;;  %v7776_v2 = vmul.f32 0.125, %v3836_v53  ;;  %v4559_v51 = vld [vmem:[%s7349_s19 + $0xe40] sm:$0xff]  ;;  %v4558_v54 = vld [vmem:[%s7349_s19 + $0xe38] sm:$0xff]  ;;  %v4553_v55 = vld [vmem:[%s7349_s19 + $0xe10] sm:$0xff] }
 0x584   : > { %4928 = vmatprep.subr.mxu0 %v4459_v56  ;;  %v3951_v36 = vsub.f32 %v7742_v27, %v7769_v58  ;;  %v4046_v52 = vrot.slane %v7669_v47, %v7410_v22  ;;  %v4554_v58 = vld [vmem:[%s7349_s19 + $0xe18] sm:$0xff]  ;;  %v4549_v56 = vld [vmem:[%s7349_s19 + $0xdf0] sm:$0xff] }
 0x585   : > { %v3943_v43 = vsub.f32 %v3927_v0, %v3935_v7  ;;  %v3928_v8 = vmul.f32 0.125, %v3892_v1  ;;  %4929 = vmatpush1.msra.mxu0 %v4458_v63  ;;  %v3936_v9 = vmul.f32 %v7776_v2, %v7776_v2  ;;  %v3952_v27 = vsub.f32 %v7750_v31, %v7776_v2  ;;  %v4548_v0 = vld [vmem:[%s7349_s19 + $0xde8] sm:$0xff]  ;;  %v4543_v2 = vld [vmem:[%s7349_s19 + $0xdc0] sm:$0xff] }
 0x586   : > { %4930 = vmatprep.subr.mxu0 %v4454_v15  ;;  %v4544_v1 = vld [vmem:[%s7349_s19 + $0xdc8] sm:$0xff] }
 0x587   : > { %v3959_v10 = vadd.f32 0.8, %v3943_v43  ;;  %4931 = vmatpush1.msra.mxu0 %v4453_v50  ;;  %v3944_v13 = vsub.f32 %v3928_v8, %v3936_v9  ;;  %v4539_v50 = vld [vmem:[%s7349_s19 + $0xda0] sm:$0xff]  ;;  %v4538_v8 = vld [vmem:[%s7349_s19 + $0xd98] sm:$0xff] }
 0x588   : > { %4932 = vmatprep.subr.mxu0 %v4449_v46  ;;  %v4658_v46 = vld [vmem:[%s7349_s19 + $0x1158] sm:$0xff] }
 0x589   : > { %6342 = vrsqrt.f32 %v3959_v10  ;;  %4933 = vmatpush1.msra.mxu0 %v4448_v12  ;;  %v3960_v37 = vadd.f32 0.8, %v3944_v13  ;;  %v4534_v12 = vld [vmem:[%s7349_s19 + $0xd78] sm:$0xff]  ;;  %v4653_v13 = vld [vmem:[%s7349_s19 + $0x1130] sm:$0xff] }
 0x58a   : > { %4934 = vmatprep.subr.mxu0 %v4444_v11  ;;  %v4654_v10 = vld [vmem:[%s7349_s19 + $0x1138] sm:$0xff]  ;;  %v4533_v11 = vld [vmem:[%s7349_s19 + $0xd70] sm:$0xff] }
 0x58b   : > { %4935 = vmatpush1.msra.mxu0 %v4443_v18  ;;  %6344 = vrsqrt.f32 %v3960_v37  ;;  %v4529_v18 = vld [vmem:[%s7349_s19 + $0xd50] sm:$0xff]  ;;  %v4528_v37 = vld [vmem:[%s7349_s19 + $0xd48] sm:$0xff] }
 0x58c   : > { %4936 = vmatprep.subr.mxu0 %v4439_v21  ;;  %v4649_v21 = vld [vmem:[%s7349_s19 + $0x1110] sm:$0xff] }
 0x58d   : > { %4937 = vmatpush1.msra.mxu0 %v4438_v25  ;;  %v4648_v25 = vld [vmem:[%s7349_s19 + $0x1108] sm:$0xff] }
 0x58e   : > { %4938 = vmatprep.subr.mxu0 %v4434_v49  ;;  %v4524_v49 = vld [vmem:[%s7349_s19 + $0xd28] sm:$0xff] }
 0x58f   : > { %4939 = vmatpush1.msra.mxu0 %v4433_v26  ;;  %v4644_v26 = vld [vmem:[%s7349_s19 + $0x10e8] sm:$0xff] }
 0x590   : > { %4940 = vmatprep.subr.mxu0 %v4429_v29  ;;  %v4523_v29 = vld [vmem:[%s7349_s19 + $0xd20] sm:$0xff] }
 0x591   : > { %4941 = vmatpush1.msra.mxu0 %v4428_v30  ;;  %v4643_v30 = vld [vmem:[%s7349_s19 + $0x10e0] sm:$0xff] }
 0x592   : > { %4942 = vmatprep.subr.mxu0 %v4424_v39  ;;  %v4519_v39 = vld [vmem:[%s7349_s19 + $0xd00] sm:$0xff] }
 0x593   : > { %4943 = vmatpush1.msra.mxu0 %v4423_v33  ;;  %v4639_v33 = vld [vmem:[%s7349_s19 + $0x10c0] sm:$0xff] }
 0x594   : > { %4944 = vmatprep.subr.mxu0 %v4579_v57  ;;  %v4518_v57 = vld [vmem:[%s7349_s19 + $0xcf8] sm:$0xff] }
 0x595   : > { %4945 = vmatpush2.msra.mxu0 %v4578_v32  ;;  %v4638_v32 = vld [vmem:[%s7349_s19 + $0x10b8] sm:$0xff] }
 0x596   : > { %v6343_v28 = vpop.eup %6342  ;;  %4946 = vmatprep.subr.mxu0 %v4574_v6  ;;  %v4514_v6 = vld [vmem:[%s7349_s19 + $0xcd8] sm:$0xff] }
 0x597   : > { %v3975_v40 = vmul.f32 %v6343_v28, %v3951_v36  ;;  %4947 = vmatpush2.msra.mxu0 %v4573_v35  ;;  %v4634_v35 = vld [vmem:[%s7349_s19 + $0x1098] sm:$0xff]  ;;  %v4513_v36 = vld [vmem:[%s7349_s19 + $0xcd0] sm:$0xff] }
 0x598   : > { %4948 = vmatprep.subr.mxu0 %v4569_v24  ;;  %v6345_v42 = vpop.eup %6344  ;;  %v7851_v24 = vsub.s32 4, %v7376_v59  ;;  %v4509_v28 = vld [vmem:[%s7349_s19 + $0xcb0] sm:$0xff] }
 0x599   : > { %v4024_v45 = vmul.f32 %v3993_v20, %v3975_v40  ;;  %4949 = vmatpush2.msra.mxu0 %v4568_v5  ;;  %v3976_v16 = vmul.f32 %v6345_v42, %v3952_v27  ;;  %v4633_v20 = vld [vmem:[%s7349_s19 + $0x1090] sm:$0xff]  ;;  %v4508_v40 = vld [vmem:[%s7349_s19 + $0xca8] sm:$0xff] }
 0x59a   : > { %4950 = vmatprep.subr.mxu0 %v4564_v48  ;;  %v4629_v5 = vld [vmem:[%s7349_s19 + $0x1070] sm:$0xff]  ;;  %v7858_v48 = vsub.s32 5, %v7376_v59  ;;  %v4504_v27 = vld [vmem:[%s7349_s19 + $0xc88] sm:$0xff] }
 0x59b   : > { %v4073_v31 = vadd.f32 %v4042_v34, %v4024_v45  ;;  %4951 = vmatpush2.msra.mxu0 %v4563_v38  ;;  %v4025_v53 = vmul.f32 %v3997_v61, %v3976_v16  ;;  %v4628_v34 = vld [vmem:[%s7349_s19 + $0x1068] sm:$0xff]  ;;  %v4503_v45 = vld [vmem:[%s7349_s19 + $0xc80] sm:$0xff] }
 0x59c   : > { %4952 = vmatprep.subr.mxu0 %v4559_v51  ;;  %v4624_v61 = vld [vmem:[%s7349_s19 + $0x1048] sm:$0xff]  ;;  %v4623_v51 = vld [vmem:[%s7349_s19 + $0x1040] sm:$0xff] }
 0x59d   : > { %4953 = vmatpush2.msra.mxu0 %v4558_v54  ;;  %v4074_v63 = vadd.f32 %v4046_v52, %v4025_v53  ;;  %v4089_v7 = vmul.f32 0.2, %v4073_v31  ;;  %vm4081_vm11 = vcmp.gt.f32.partialorder %v4073_v31, 0.0  ;;  %v7865_v52 = vld [vmem:[#allocation22] sm:$0xff] }
 0x59e   : > { %4954 = vmatprep.subr.mxu0 %v4554_v58  ;;  %v3782_v54 = vrot.slane %v7865_v52, %v7851_v24  ;;  %v4619_v58 = vld [vmem:[%s7349_s19 + $0x1020] sm:$0xff] }
 0x59f   : > { %4955 = vmatpush2.msra.mxu0 %v4553_v55  ;;  %vm4082_vm10 = vcmp.gt.f32.partialorder %v4074_v63, 0.0  ;;  %v4090_v15 = vmul.f32 0.2, %v4074_v63  ;;  %v7827_v9 = vsel %vm4081_vm11, %v4073_v31, %v4089_v7  ;;  %v4181_v31 = vld [vmem:[%s7349_s19 + $0x270] sm:$0xff]  ;;  %v4618_v55 = vld [vmem:[%s7349_s19 + $0x1018] sm:$0xff] }
 0x5a0   : > { %4956 = vmatprep.subr.mxu0 %v4549_v56 }
 0x5a1   : > { %4957 = vmatpush2.msra.mxu0 %v4548_v0  ;;  %v7822_v43 = vsel %vm4082_vm10, %v4074_v63, %v4090_v15  ;;  %v3786_v63 = vrot.slane %v7865_v52, %v7858_v48  ;;  %v4614_v0 = vld [vmem:[%s7349_s19 + $0xff8] sm:$0xff] }
 0x5a2   : > { %4958 = vmatprep.subr.mxu0 %v4544_v1  ;;  %4905 = vmatprep.mubr.f32.mxu1 %v7822_v43  ;;  %v4613_v1 = vld [vmem:[%s7349_s19 + $0xff0] sm:$0xff] }
 0x5a3   : > { %4959 = vmatpush2.msra.mxu0 %v4543_v2  ;;  %4906 = vmatmul.mubr.f32.vlgmr.msra.gmra.mxu1 %v7827_v9 }
 0x5a4   : > { %4960 = vmatprep.subr.mxu0 %v4539_v50  ;;  %4984 = vmatpush1.msra.mxu1 %v4658_v46  ;;  %v4609_v50 = vld [vmem:[%s7349_s19 + $0xfd0] sm:$0xff] }
 0x5a5   : > { %4961 = vmatpush2.msra.mxu0 %v4538_v8  ;;  %4985 = vmatprep.subr.mxu1 %v4654_v10  ;;  %v4604_v10 = vld [vmem:[%s7349_s19 + $0xfa8] sm:$0xff] }
 0x5a6   : > { %4962 = vmatprep.subr.mxu0 %v4534_v12  ;;  %4986 = vmatpush1.msra.mxu1 %v4653_v13 }
 0x5a7   : > { %4963 = vmatpush2.msra.mxu0 %v4533_v11  ;;  %4987 = vmatprep.subr.mxu1 %v4649_v21  ;;  %v4603_v11 = vld [vmem:[%s7349_s19 + $0xfa0] sm:$0xff] }
 0x5a8   : > { %4964 = vmatprep.subr.mxu0 %v4529_v18  ;;  %4988 = vmatpush1.msra.mxu1 %v4648_v25  ;;  %v4599_v25 = vld [vmem:[%s7349_s19 + $0xf80] sm:$0xff] }
 0x5a9   : > { %4965 = vmatpush2.msra.mxu0 %v4528_v37  ;;  %4989 = vmatprep.subr.mxu1 %v4644_v26 }
 0x5aa   : > { %4966 = vmatprep.subr.mxu0 %v4524_v49  ;;  %4990 = vmatpush1.msra.mxu1 %v4643_v30  ;;  %v4598_v49 = vld [vmem:[%s7349_s19 + $0xf78] sm:$0xff] }
 0x5ab   : > { %4967 = vmatpush2.msra.mxu0 %v4523_v29  ;;  %4991 = vmatprep.subr.mxu1 %v4639_v33  ;;  %v4594_v33 = vld [vmem:[%s7349_s19 + $0xf58] sm:$0xff] }
 0x5ac   : > { %4968 = vmatprep.subr.mxu0 %v4519_v39  ;;  %4992 = vmatpush1.msra.mxu1 %v4638_v32 }
 0x5ad   : > { %4969 = vmatpush2.msra.mxu0 %v4518_v57  ;;  %4993 = vmatprep.subr.mxu1 %v4634_v35  ;;  %v4593_v57 = vld [vmem:[%s7349_s19 + $0xf50] sm:$0xff] }
 0x5ae   : > { %4970 = vmatprep.subr.mxu0 %v4514_v6  ;;  %4994 = vmatpush1.msra.mxu1 %v4633_v20  ;;  %v4589_v20 = vld [vmem:[%s7349_s19 + $0xf30] sm:$0xff] }
 0x5af   : > { %4971 = vmatpush2.msra.mxu0 %v4513_v36  ;;  %4995 = vmatprep.subr.mxu1 %v4629_v5 }
 0x5b0   : > { %v3543_v38 = vpop.f32.mrf.mxu0  ;;  %v3614_v42 = vpop.f32.mrf.mxu1  ;;  %4972 = vmatprep.subr.mxu0 %v4509_v28  ;;  %4996 = vmatpush1.msra.mxu1 %v4628_v34  ;;  %v4588_v28 = vld [vmem:[%s7349_s19 + $0xf28] sm:$0xff] }
 0x5b1   : > { %v3544_v16 = vadd.f32 %v3543_v38, %v7536_v44  ;;  %4973 = vmatpush2.msra.mxu0 %v4508_v40  ;;  %4997 = vmatprep.subr.mxu1 %v4624_v61  ;;  %v4584_v61 = vld [vmem:[%s7349_s19 + $0xf08] sm:$0xff]  ;;  %v4583_v38 = vld [vmem:[%s7349_s19 + $0xf00] sm:$0xff] }
 0x5b2   : > { %v3545_v53 = vpop.f32.mrf.mxu0  ;;  %4974 = vmatprep.subr.mxu0 %v4504_v27  ;;  %4998 = vmatpush1.msra.mxu1 %v4623_v51  ;;  %v3616_v7 = vpop.f32.mrf.mxu1 }
 0x5b3   : > { %v3615_v56 = vadd.f32 %v3614_v42, %v3544_v16  ;;  %v3546_v44 = vadd.f32 %v3545_v53, %v7538_v3  ;;  %4975 = vmatpush2.msra.mxu0 %v4503_v45  ;;  %4999 = vmatprep.subr.mxu1 %v4619_v58  ;;  %v4608_v3 = vld [vmem:[%s7349_s19 + $0xfc8] sm:$0xff] }
 0x5b4   : > { %5054 = vmatprep.subr.mxu0 %v4181_v31  ;;  %5000 = vmatpush1.msra.mxu1 %v4618_v55  ;;  %v4738_v31 = vld [vmem:[%s7349_s19 + $0x13d8] sm:$0xff] }
 0x5b5   : > { %v7877_v15 = vadd.f32 %v3782_v54, %v3615_v56  ;;  %v3617_v2 = vadd.f32 %v3616_v7, %v3546_v44  ;;  %5001 = vmatprep.subr.mxu1 %v4614_v0  ;;  %v4739_v54 = vld [vmem:[%s7349_s19 + $0x13e0] sm:$0xff]  ;;  %v4734_v44 = vld [vmem:[%s7349_s19 + $0x13b8] sm:$0xff] }
 0x5b6   : > { %5002 = vmatpush1.msra.mxu1 %v4613_v1 }
 0x5b7   : > { %v3837_v8 = vrot.slane %v7877_v15, 4  ;;  %v3865_v46 = vmul.f32 %v7877_v15, %v7877_v15  ;;  %v7884_v12 = vadd.f32 %v3786_v63, %v3617_v2  ;;  %5003 = vmatprep.subr.mxu1 %v4609_v50  ;;  %v4733_v63 = vld [vmem:[%s7349_s19 + $0x13b0] sm:$0xff] }
 0x5b8   : > { %5004 = vmatpush1.msra.mxu1 %v4608_v3  ;;  %v4729_v2 = vld [vmem:[%s7349_s19 + $0x1390] sm:$0xff]  ;;  %v4728_v3 = vld [vmem:[%s7349_s19 + $0x1388] sm:$0xff] }
 0x5b9   : > { %v3838_v13 = vadd.f32 %v3837_v8, %v7877_v15  ;;  %v3893_v18 = vrot.slane %v3865_v46, 4  ;;  %v3843_v21 = vrot.slane %v7884_v12, 4  ;;  %v3866_v37 = vmul.f32 %v7884_v12, %v7884_v12  ;;  %5005 = vmatprep.subr.mxu1 %v4604_v10  ;;  %v4724_v10 = vld [vmem:[%s7349_s19 + $0x1368] sm:$0xff] }
 0x5ba   : > { %5006 = vmatpush1.msra.mxu1 %v4603_v11 }
 0x5bb   : > { %v3839_v26 = vrot.slane %v3838_v13, 2  ;;  %v3894_v29 = vadd.f32 %v3893_v18, %v3865_v46  ;;  %v3844_v30 = vadd.f32 %v3843_v21, %v7884_v12  ;;  %v3899_v39 = vrot.slane %v3866_v37, 4  ;;  %5007 = vmatprep.subr.mxu1 %v4599_v25  ;;  %v4719_v21 = vld [vmem:[%s7349_s19 + $0x1340] sm:$0xff]  ;;  %v4718_v25 = vld [vmem:[%s7349_s19 + $0x1338] sm:$0xff] }
 0x5bc   : > { %5008 = vmatpush1.msra.mxu1 %v4598_v49  ;;  %v4714_v49 = vld [vmem:[%s7349_s19 + $0x1318] sm:$0xff] }
 0x5bd   : > { %v3840_v32 = vadd.f32 %v3839_v26, %v3838_v13  ;;  %v3895_v6 = vrot.slane %v3894_v29, 2  ;;  %v3845_v35 = vrot.slane %v3844_v30, 2  ;;  %v3900_v36 = vadd.f32 %v3899_v39, %v3866_v37  ;;  %5009 = vmatprep.subr.mxu1 %v4594_v33  ;;  %v4723_v13 = vld [vmem:[%s7349_s19 + $0x1360] sm:$0xff]  ;;  %v4708_v39 = vld [vmem:[%s7349_s19 + $0x12e8] sm:$0xff] }
 0x5be   : > { %5010 = vmatpush1.msra.mxu1 %v4593_v57  ;;  %v4704_v33 = vld [vmem:[%s7349_s19 + $0x12c8] sm:$0xff]  ;;  %v4703_v57 = vld [vmem:[%s7349_s19 + $0x12c0] sm:$0xff] }
 0x5bf   : > { %v3841_v5 = vrot.slane %v3840_v32, 1  ;;  %v3896_v40 = vadd.f32 %v3895_v6, %v3894_v29  ;;  %v3846_v34 = vadd.f32 %v3845_v35, %v3844_v30  ;;  %v3901_v27 = vrot.slane %v3900_v36, 2  ;;  %5011 = vmatprep.subr.mxu1 %v4589_v20  ;;  %v4713_v29 = vld [vmem:[%s7349_s19 + $0x1310] sm:$0xff]  ;;  %v4698_v6 = vld [vmem:[%s7349_s19 + $0x1298] sm:$0xff] }
 0x5c0   : > { %5012 = vmatpush1.msra.mxu1 %v4588_v28  ;;  %v4709_v30 = vld [vmem:[%s7349_s19 + $0x12f0] sm:$0xff]  ;;  %v4694_v35 = vld [vmem:[%s7349_s19 + $0x1278] sm:$0xff]  ;;  %v4688_v28 = vld [vmem:[%s7349_s19 + $0x1248] sm:$0xff] }
 0x5c1   : > { %v3842_v42 = vadd.f32 %v3841_v5, %v3840_v32  ;;  %v3897_v45 = vrot.slane %v3896_v40, 1  ;;  %v3847_v51 = vrot.slane %v3846_v34, 1  ;;  %v3902_v16 = vadd.f32 %v3901_v27, %v3900_v36  ;;  %5013 = vmatprep.subr.mxu1 %v4584_v61  ;;  %v4699_v32 = vld [vmem:[%s7349_s19 + $0x12a0] sm:$0xff]  ;;  %v4693_v36 = vld [vmem:[%s7349_s19 + $0x1270] sm:$0xff] }
 0x5c2   : > { %5014 = vmatpush1.msra.mxu1 %v4583_v38  ;;  %v4689_v20 = vld [vmem:[%s7349_s19 + $0x1250] sm:$0xff]  ;;  %v4683_v61 = vld [vmem:[%s7349_s19 + $0x1220] sm:$0xff] }
 0x5c3   : > { %v3898_v58 = vadd.f32 %v3897_v45, %v3896_v40  ;;  %v7903_v53 = vmul.f32 0.125, %v3842_v42  ;;  %v3848_v55 = vadd.f32 %v3847_v51, %v3846_v34  ;;  %v3903_v56 = vrot.slane %v3902_v16, 1  ;;  %5015 = vmatprep.subr.mxu1 %v4739_v54  ;;  %v4684_v34 = vld [vmem:[%s7349_s19 + $0x1228] sm:$0xff]  ;;  %v4679_v45 = vld [vmem:[%s7349_s19 + $0x1200] sm:$0xff] }
 0x5c4   : > { %5016 = vmatpush2.msra.mxu1 %v4738_v31  ;;  %v4001_v40 = vrot.slane %v7659_v41, %v7851_v24  ;;  %v4050_v42 = vrot.slane %v7669_v47, %v7851_v24  ;;  %v4005_v51 = vrot.slane %v7659_v41, %v7858_v48 }
 0x5c5   : > { %v3929_v0 = vmul.f32 0.125, %v3898_v58  ;;  %v3937_v7 = vmul.f32 %v7903_v53, %v7903_v53  ;;  %v3904_v1 = vadd.f32 %v3903_v56, %v3902_v16  ;;  %v7910_v50 = vmul.f32 0.125, %v3848_v55  ;;  %5017 = vmatprep.subr.mxu1 %v4734_v44  ;;  %v4678_v16 = vld [vmem:[%s7349_s19 + $0x11f8] sm:$0xff]  ;;  %v4673_v56 = vld [vmem:[%s7349_s19 + $0x11d0] sm:$0xff] }
 0x5c6   : > { %5018 = vmatpush2.msra.mxu1 %v4733_v63  ;;  %v3953_v5 = vsub.f32 %v7877_v15, %v7903_v53  ;;  %v4674_v58 = vld [vmem:[%s7349_s19 + $0x11d8] sm:$0xff]  ;;  %v4054_v55 = vrot.slane %v7669_v47, %v7858_v48  ;;  %v4669_v44 = vld [vmem:[%s7349_s19 + $0x11b0] sm:$0xff]  ;;  %v4668_v63 = vld [vmem:[%s7349_s19 + $0x11a8] sm:$0xff] }
 0x5c7   : > { %v3945_v8 = vsub.f32 %v3929_v0, %v3937_v7  ;;  %v3930_v46 = vmul.f32 0.125, %v3904_v1  ;;  %v3938_v11 = vmul.f32 %v7910_v50, %v7910_v50  ;;  %5019 = vmatprep.subr.mxu1 %v4729_v2  ;;  %v3954_v15 = vsub.f32 %v7884_v12, %v7910_v50  ;;  %v4664_v0 = vld [vmem:[%s7349_s19 + $0x1188] sm:$0xff]  ;;  %v4663_v1 = vld [vmem:[%s7349_s19 + $0x1180] sm:$0xff]  ;;  %v4341_v47 = vld [vmem:[%s7349_s19 + $0x770] sm:$0xff] }
 0x5c8   : > { %5020 = vmatpush2.msra.mxu1 %v4728_v3  ;;  %v4180_v3 = vld [vmem:[%s7349_s19 + $0x268] sm:$0xff] }
 0x5c9   : > { %v3961_v18 = vadd.f32 0.8, %v3945_v8  ;;  %v3946_v37 = vsub.f32 %v3930_v46, %v3938_v11  ;;  %5021 = vmatprep.subr.mxu1 %v4724_v10  ;;  %v4176_v46 = vld [vmem:[%s7349_s19 + $0x248] sm:$0xff]  ;;  %v4175_v10 = vld [vmem:[%s7349_s19 + $0x240] sm:$0xff] }
 0x5ca   : > { %5022 = vmatpush2.msra.mxu1 %v4723_v13  ;;  %v4171_v11 = vld [vmem:[%s7349_s19 + $0x220] sm:$0xff]  ;;  %v4170_v13 = vld [vmem:[%s7349_s19 + $0x218] sm:$0xff] }
 0x5cb   : > { %6346 = vrsqrt.f32 %v3961_v18  ;;  %v3962_v26 = vadd.f32 0.8, %v3946_v37  ;;  %5023 = vmatprep.subr.mxu1 %v4719_v21  ;;  %v4166_v18 = vld [vmem:[%s7349_s19 + $0x1f8] sm:$0xff]  ;;  %v4165_v21 = vld [vmem:[%s7349_s19 + $0x1f0] sm:$0xff] }
 0x5cc   : > { %5024 = vmatpush2.msra.mxu1 %v4718_v25  ;;  %v4161_v37 = vld [vmem:[%s7349_s19 + $0x1d0] sm:$0xff]  ;;  %v4160_v25 = vld [vmem:[%s7349_s19 + $0x1c8] sm:$0xff] }
 0x5cd   : > { %6348 = vrsqrt.f32 %v3962_v26  ;;  %5025 = vmatprep.subr.mxu1 %v4714_v49  ;;  %v4156_v49 = vld [vmem:[%s7349_s19 + $0x1a8] sm:$0xff]  ;;  %v4155_v26 = vld [vmem:[%s7349_s19 + $0x1a0] sm:$0xff] }
 0x5ce   : > { %5026 = vmatpush2.msra.mxu1 %v4713_v29  ;;  %v7973_v29 = vsub.s32 6, %v7376_v59 }
 0x5cf   : > { %5027 = vmatprep.subr.mxu1 %v4709_v30  ;;  %v4151_v30 = vld [vmem:[%s7349_s19 + $0x180] sm:$0xff] }
 0x5d0   : > { %5028 = vmatpush2.msra.mxu1 %v4708_v39  ;;  %v4150_v39 = vld [vmem:[%s7349_s19 + $0x178] sm:$0xff] }
 0x5d1   : > { %5029 = vmatprep.subr.mxu1 %v4704_v33  ;;  %v7978_v33 = vsub.s32 7, %v7376_v59  ;;  %v4140_v59 = vld [vmem:[%s7349_s19 + $0x128] sm:$0xff] }
 0x5d2   : > { %5030 = vmatpush2.msra.mxu1 %v4703_v57  ;;  %v4146_v57 = vld [vmem:[%s7349_s19 + $0x158] sm:$0xff] }
 0x5d3   : > { %5031 = vmatprep.subr.mxu1 %v4699_v32 }
 0x5d4   : > { %5032 = vmatpush2.msra.mxu1 %v4698_v6 }
 0x5d5   : > { %5033 = vmatprep.subr.mxu1 %v4694_v35  ;;  %v4145_v35 = vld [vmem:[%s7349_s19 + $0x150] sm:$0xff] }
 0x5d6   : > { %5034 = vmatpush2.msra.mxu1 %v4693_v36 }
 0x5d7   : > { %5035 = vmatprep.subr.mxu1 %v4689_v20  ;;  %v3790_v20 = vrot.slane %v7865_v52, %v7973_v29 }
 0x5d8   : > { %v6347_v27 = vpop.eup %6346  ;;  %5036 = vmatpush2.msra.mxu1 %v4688_v28  ;;  %v4141_v28 = vld [vmem:[%s7349_s19 + $0x130] sm:$0xff] }
 0x5d9   : > { %v3977_v38 = vmul.f32 %v6347_v27, %v3953_v5  ;;  %5037 = vmatprep.subr.mxu1 %v4684_v34  ;;  %v3794_v27 = vrot.slane %v7865_v52, %v7978_v33 }
 0x5da   : > { %v6349_v54 = vpop.eup %6348  ;;  %5038 = vmatpush2.msra.mxu1 %v4683_v61  ;;  %v4136_v61 = vld [vmem:[%s7349_s19 + $0x108] sm:$0xff] }
 0x5db   : > { %v4026_v31 = vmul.f32 %v4001_v40, %v3977_v38  ;;  %v3978_v53 = vmul.f32 %v6349_v54, %v3954_v15  ;;  %5039 = vmatprep.subr.mxu1 %v4679_v45  ;;  %v4135_v38 = vld [vmem:[%s7349_s19 + $0x100] sm:$0xff]  ;;  %v4126_v54 = vld [vmem:[%s7349_s19 + $0xb8] sm:$0xff] }
 0x5dc   : > { %5040 = vmatpush2.msra.mxu1 %v4678_v16  ;;  %v4131_v15 = vld [vmem:[%s7349_s19 + $0xe0] sm:$0xff] }
 0x5dd   : > { %v4075_v12 = vadd.f32 %v4050_v42, %v4026_v31  ;;  %v4027_v41 = vmul.f32 %v4005_v51, %v3978_v53  ;;  %5041 = vmatprep.subr.mxu1 %v4674_v58  ;;  %v4130_v51 = vld [vmem:[%s7349_s19 + $0xd8] sm:$0xff]  ;;  %v4125_v31 = vld [vmem:[%s7349_s19 + $0xb0] sm:$0xff] }
 0x5de   : > { %5042 = vmatpush2.msra.mxu1 %v4673_v56 }
 0x5df   : > { %v4076_v7 = vadd.f32 %v4054_v55, %v4027_v41  ;;  %5043 = vmatprep.subr.mxu1 %v4669_v44  ;;  %v4091_v2 = vmul.f32 0.2, %v4075_v12  ;;  %vm4083_vm13 = vcmp.gt.f32.partialorder %v4075_v12, 0.0  ;;  %v4120_v44 = vld [vmem:[%s7349_s19 + $0x88] sm:$0xff] }
 0x5e0   : > { %5044 = vmatpush2.msra.mxu1 %v4668_v63 }
 0x5e1   : > { %vm4084_vm12 = vcmp.gt.f32.partialorder %v4076_v7, 0.0  ;;  %v4092_v48 = vmul.f32 0.2, %v4076_v7  ;;  %5045 = vmatprep.subr.mxu1 %v4664_v0  ;;  %v7958_v8 = vsel %vm4083_vm13, %v4075_v12, %v4091_v2  ;;  %v4121_v12 = vld [vmem:[%s7349_s19 + $0x90] sm:$0xff]  ;;  %v4115_v2 = vld [vmem:[%s7349_s19 + $0x60] sm:$0xff] }
 0x5e2   : > { %5046 = vmatpush2.msra.mxu1 %v4663_v1  ;;  %v4116_v1 = vld [vmem:[%s7349_s19 + $0x68] sm:$0xff] }
 0x5e3   : > { %v7954_v50 = vsel %vm4084_vm12, %v4076_v7, %v4092_v48  ;;  %5125 = vmatprep.subr.mxu1 %v4341_v47 }
 0x5e4   : > { %4976 = vmatprep.mubr.f32.mxu0 %v7954_v50 }
 0x5e5   : > { %4977 = vmatmul.mubr.f32.vlgmr.msra.gmra.mxu0 %v7958_v8 }
 0x5e6   : > { %5055 = vmatpush1.msra.mxu0 %v4180_v3  ;;  %5118 = vmatprep.mubr.f32.mxu0 %v7692_v4 }
 0x5e7   : > { %5056 = vmatprep.subr.mxu0 %v4176_v46 }
 0x5e8   : > { %5057 = vmatpush1.msra.mxu0 %v4175_v10  ;;  %v4111_v10 = vld [vmem:[%s7349_s19 + $0x40] sm:$0xff] }
 0x5e9   : > { %5058 = vmatprep.subr.mxu0 %v4171_v11  ;;  %v4110_v11 = vld [vmem:[%s7349_s19 + $0x38] sm:$0xff] }
 0x5ea   : > { %5059 = vmatpush1.msra.mxu0 %v4170_v13 }
 0x5eb   : > { %5060 = vmatprep.subr.mxu0 %v4166_v18 }
 0x5ec   : > { %5061 = vmatpush1.msra.mxu0 %v4165_v21 }
 0x5ed   : > { %5062 = vmatprep.subr.mxu0 %v4161_v37 }
 0x5ee   : > { %5063 = vmatpush1.msra.mxu0 %v4160_v25  ;;  %v4106_v25 = vld [vmem:[%s7349_s19 + $0x18] sm:$0xff] }
 0x5ef   : > { %5064 = vmatprep.subr.mxu0 %v4156_v49  ;;  %v4105_v49 = vld [vmem:[%s7349_s19 + $0x10] sm:$0xff] }
 0x5f0   : > { %5065 = vmatpush1.msra.mxu0 %v4155_v26 }
 0x5f1   : > { %5066 = vmatprep.subr.mxu0 %v4151_v30 }
 0x5f2   : > { %v3685_v32 = vpop.f32.mrf.mxu0  ;;  %v3756_v6 = vpop.f32.mrf.mxu1  ;;  %5067 = vmatpush1.msra.mxu0 %v4150_v39 }
 0x5f3   : > { %v3686_v36 = vadd.f32 %v3685_v32, %v7544_v23  ;;  %5068 = vmatprep.subr.mxu0 %v4146_v57  ;;  %v4261_v32 = vld [vmem:[%s7349_s19 + $0x4f0] sm:$0xff] }
 0x5f4   : > { %v3687_v5 = vpop.f32.mrf.mxu0  ;;  %5069 = vmatpush1.msra.mxu0 %v4145_v35  ;;  %v3758_v23 = vpop.f32.mrf.mxu1 }
 0x5f5   : > { %v3757_v40 = vadd.f32 %v3756_v6, %v3686_v36  ;;  %v3688_v34 = vadd.f32 %v3687_v5, %v7546_v19  ;;  %5070 = vmatprep.subr.mxu0 %v4141_v28  ;;  %v4260_v6 = vld [vmem:[%s7349_s19 + $0x4e8] sm:$0xff] }
 0x5f6   : > { %5071 = vmatpush1.msra.mxu0 %v4140_v59  ;;  %v4256_v5 = vld [vmem:[%s7349_s19 + $0x4c8] sm:$0xff]  ;;  %v4255_v59 = vld [vmem:[%s7349_s19 + $0x4c0] sm:$0xff] }
 0x5f7   : > { %v7992_v42 = vadd.f32 %v3790_v20, %v3757_v40  ;;  %v3759_v45 = vadd.f32 %v3758_v23, %v3688_v34  ;;  %5072 = vmatprep.subr.mxu0 %v4136_v61  ;;  %v4251_v61 = vld [vmem:[%s7349_s19 + $0x4a0] sm:$0xff] }
 0x5f8   : > { %5073 = vmatpush1.msra.mxu0 %v4135_v38  ;;  %v4250_v38 = vld [vmem:[%s7349_s19 + $0x498] sm:$0xff] }
 0x5f9   : > { %v3849_v19 = vrot.slane %v7992_v42, 4  ;;  %v3867_v52 = vmul.f32 %v7992_v42, %v7992_v42  ;;  %v7999_v16 = vadd.f32 %v3794_v27, %v3759_v45  ;;  %5074 = vmatprep.subr.mxu0 %v4131_v15 }
 0x5fa   : > { %5075 = vmatpush1.msra.mxu0 %v4130_v51  ;;  %v4246_v51 = vld [vmem:[%s7349_s19 + $0x478] sm:$0xff] }
 0x5fb   : > { %v3850_v58 = vadd.f32 %v3849_v19, %v7992_v42  ;;  %v3905_v53 = vrot.slane %v3867_v52, 4  ;;  %v3855_v55 = vrot.slane %v7999_v16, 4  ;;  %v3868_v56 = vmul.f32 %v7999_v16, %v7999_v16  ;;  %5076 = vmatprep.subr.mxu0 %v4126_v54 }
 0x5fc   : > { %5077 = vmatpush1.msra.mxu0 %v4125_v31  ;;  %v4241_v31 = vld [vmem:[%s7349_s19 + $0x450] sm:$0xff] }
 0x5fd   : > { %v3851_v41 = vrot.slane %v3850_v58, 2  ;;  %v3906_v63 = vadd.f32 %v3905_v53, %v3867_v52  ;;  %v3856_v0 = vadd.f32 %v3855_v55, %v7999_v16  ;;  %v3911_v7 = vrot.slane %v3868_v56, 4  ;;  %5078 = vmatprep.subr.mxu0 %v4121_v12  ;;  %v4245_v52 = vld [vmem:[%s7349_s19 + $0x470] sm:$0xff]  ;;  %v4240_v53 = vld [vmem:[%s7349_s19 + $0x448] sm:$0xff]  ;;  %v4235_v12 = vld [vmem:[%s7349_s19 + $0x420] sm:$0xff] }
 0x5fe   : > { %5079 = vmatpush1.msra.mxu0 %v4120_v44  ;;  %v4236_v55 = vld [vmem:[%s7349_s19 + $0x428] sm:$0xff]  ;;  %v4231_v44 = vld [vmem:[%s7349_s19 + $0x400] sm:$0xff] }
 0x5ff   : > { %v3852_v47 = vadd.f32 %v3851_v41, %v3850_v58  ;;  %v3907_v48 = vrot.slane %v3906_v63, 2  ;;  %v3857_v3 = vrot.slane %v3856_v0, 2  ;;  %v3912_v46 = vadd.f32 %v3911_v7, %v3868_v56  ;;  %5080 = vmatprep.subr.mxu0 %v4116_v1  ;;  %v4230_v41 = vld [vmem:[%s7349_s19 + $0x3f8] sm:$0xff]  ;;  %v4221_v7 = vld [vmem:[%s7349_s19 + $0x3b0] sm:$0xff]  ;;  %v4220_v1 = vld [vmem:[%s7349_s19 + $0x3a8] sm:$0xff] }
 0x600   : > { %5081 = vmatpush1.msra.mxu0 %v4115_v2  ;;  %v4216_v2 = vld [vmem:[%s7349_s19 + $0x388] sm:$0xff] }
 0x601   : > { %v3853_v13 = vrot.slane %v3852_v47, 1  ;;  %v3908_v18 = vadd.f32 %v3907_v48, %v3906_v63  ;;  %v3858_v21 = vadd.f32 %v3857_v3, %v3856_v0  ;;  %v3913_v37 = vrot.slane %v3912_v46, 2  ;;  %5082 = vmatprep.subr.mxu0 %v4111_v10  ;;  %v4226_v63 = vld [vmem:[%s7349_s19 + $0x3d8] sm:$0xff]  ;;  %v4225_v0 = vld [vmem:[%s7349_s19 + $0x3d0] sm:$0xff]  ;;  %v4211_v48 = vld [vmem:[%s7349_s19 + $0x360] sm:$0xff] }
 0x602   : > { %5083 = vmatpush1.msra.mxu0 %v4110_v11  ;;  %v4210_v3 = vld [vmem:[%s7349_s19 + $0x358] sm:$0xff]  ;;  %v6369_v11 = vld [vmem:[#allocation24] sm:$0xff] }
 0x603   : > { %v3854_v26 = vadd.f32 %v3853_v13, %v3852_v47  ;;  %v3909_v30 = vrot.slane %v3908_v18, 1  ;;  %v3859_v39 = vrot.slane %v3858_v21, 1  ;;  %v3914_v57 = vadd.f32 %v3913_v37, %v3912_v46  ;;  %5084 = vmatprep.subr.mxu0 %v4106_v25  ;;  %v4215_v47 = vld [vmem:[%s7349_s19 + $0x380] sm:$0xff]  ;;  %v4206_v10 = vld [vmem:[%s7349_s19 + $0x338] sm:$0xff]  ;;  %v4201_v37 = vld [vmem:[%s7349_s19 + $0x310] sm:$0xff] }
 0x604   : > { %5085 = vmatpush1.msra.mxu0 %v4105_v49  ;;  %v4009_v13 = vrot.slane %v6369_v11, %v7973_v29  ;;  %v6370_v49 = vld [vmem:[#allocation25] sm:$0xff] }
 0x605   : > { %v3910_v35 = vadd.f32 %v3909_v30, %v3908_v18  ;;  %v8018_v36 = vmul.f32 0.125, %v3854_v26  ;;  %v3860_v20 = vadd.f32 %v3859_v39, %v3858_v21  ;;  %v3915_v28 = vrot.slane %v3914_v57, 1  ;;  %5086 = vmatprep.subr.mxu0 %v4261_v32  ;;  %v4205_v21 = vld [vmem:[%s7349_s19 + $0x330] sm:$0xff]  ;;  %v4200_v30 = vld [vmem:[%s7349_s19 + $0x308] sm:$0xff] }
 0x606   : > { %5087 = vmatpush2.msra.mxu0 %v4260_v6  ;;  %v4058_v26 = vrot.slane %v6370_v49, %v7973_v29  ;;  %v4013_v39 = vrot.slane %v6369_v11, %v7978_v33  ;;  %v4196_v32 = vld [vmem:[%s7349_s19 + $0x2e8] sm:$0xff]  ;;  %v4062_v29 = vrot.slane %v6370_v49, %v7978_v33  ;;  %v4310_v11 = vld [vmem:[%s7349_s19 + $0x678] sm:$0xff]  ;;  %v4301_v49 = vld [vmem:[%s7349_s19 + $0x630] sm:$0xff] }
 0x607   : > { %v3931_v40 = vmul.f32 0.125, %v3910_v35  ;;  %v3939_v34 = vmul.f32 %v8018_v36, %v8018_v36  ;;  %v3916_v27 = vadd.f32 %v3915_v28, %v3914_v57  ;;  %v8025_v23 = vmul.f32 0.125, %v3860_v20  ;;  %5088 = vmatprep.subr.mxu0 %v4256_v5  ;;  %v4195_v35 = vld [vmem:[%s7349_s19 + $0x2e0] sm:$0xff]  ;;  %v4190_v28 = vld [vmem:[%s7349_s19 + $0x2b8] sm:$0xff] }
 0x608   : > { %5089 = vmatpush2.msra.mxu0 %v4255_v59  ;;  %v3955_v46 = vsub.f32 %v7992_v42, %v8018_v36  ;;  %v4191_v20 = vld [vmem:[%s7349_s19 + $0x2c0] sm:$0xff]  ;;  %v4186_v59 = vld [vmem:[%s7349_s19 + $0x298] sm:$0xff] }
 0x609   : > { %v3947_v45 = vsub.f32 %v3931_v40, %v3939_v34  ;;  %v3932_v15 = vmul.f32 0.125, %v3916_v27  ;;  %v3940_v19 = vmul.f32 %v8025_v23, %v8025_v23  ;;  %5090 = vmatprep.subr.mxu0 %v4251_v61  ;;  %v3956_v42 = vsub.f32 %v7999_v16, %v8025_v23  ;;  %v4185_v40 = vld [vmem:[%s7349_s19 + $0x290] sm:$0xff]  ;;  %v4500_v23 = vld [vmem:[%s7349_s19 + $0xc68] sm:$0xff] }
 0x60a   : > { %5091 = vmatpush2.msra.mxu0 %v4250_v38  ;;  %v4501_v27 = vld [vmem:[%s7349_s19 + $0xc70] sm:$0xff] }
 0x60b   : > { %v3963_v54 = vadd.f32 0.8, %v3947_v45  ;;  %v3948_v58 = vsub.f32 %v3932_v15, %v3940_v19  ;;  %5092 = vmatprep.subr.mxu0 %v4246_v51  ;;  %v4340_v45 = vld [vmem:[%s7349_s19 + $0x768] sm:$0xff] }
 0x60c   : > { %5093 = vmatpush2.msra.mxu0 %v4245_v52  ;;  %v4336_v51 = vld [vmem:[%s7349_s19 + $0x748] sm:$0xff]  ;;  %v4335_v52 = vld [vmem:[%s7349_s19 + $0x740] sm:$0xff] }
 0x60d   : > { %6350 = vrsqrt.f32 %v3963_v54  ;;  %v3964_v56 = vadd.f32 0.8, %v3948_v58  ;;  %5094 = vmatprep.subr.mxu0 %v4241_v31  ;;  %v4496_v19 = vld [vmem:[%s7349_s19 + $0xc48] sm:$0xff]  ;;  %v4495_v54 = vld [vmem:[%s7349_s19 + $0xc40] sm:$0xff] }
 0x60e   : > { %5095 = vmatpush2.msra.mxu0 %v4240_v53  ;;  %v4331_v31 = vld [vmem:[%s7349_s19 + $0x720] sm:$0xff]  ;;  %v4330_v53 = vld [vmem:[%s7349_s19 + $0x718] sm:$0xff] }
 0x60f   : > { %6352 = vrsqrt.f32 %v3964_v56  ;;  %5096 = vmatprep.subr.mxu0 %v4236_v55  ;;  %v4491_v58 = vld [vmem:[%s7349_s19 + $0xc20] sm:$0xff]  ;;  %v4490_v55 = vld [vmem:[%s7349_s19 + $0xc18] sm:$0xff] }
 0x610   : > { %5097 = vmatpush2.msra.mxu0 %v4235_v12  ;;  %v4326_v56 = vld [vmem:[%s7349_s19 + $0x6f8] sm:$0xff] }
 0x611   : > { %5098 = vmatprep.subr.mxu0 %v4231_v44  ;;  %v4486_v12 = vld [vmem:[%s7349_s19 + $0xbf8] sm:$0xff]  ;;  %v4325_v44 = vld [vmem:[%s7349_s19 + $0x6f0] sm:$0xff] }
 0x612   : > { %5099 = vmatpush2.msra.mxu0 %v4230_v41  ;;  %v4485_v41 = vld [vmem:[%s7349_s19 + $0xbf0] sm:$0xff] }
 0x613   : > { %5100 = vmatprep.subr.mxu0 %v4226_v63  ;;  %v4321_v63 = vld [vmem:[%s7349_s19 + $0x6d0] sm:$0xff] }
 0x614   : > { %5101 = vmatpush2.msra.mxu0 %v4225_v0  ;;  %v4481_v0 = vld [vmem:[%s7349_s19 + $0xbd0] sm:$0xff] }
 0x615   : > { %5102 = vmatprep.subr.mxu0 %v4221_v7  ;;  %v4320_v7 = vld [vmem:[%s7349_s19 + $0x6c8] sm:$0xff] }
 0x616   : > { %5103 = vmatpush2.msra.mxu0 %v4220_v1  ;;  %v4480_v1 = vld [vmem:[%s7349_s19 + $0xbc8] sm:$0xff] }
 0x617   : > { %5104 = vmatprep.subr.mxu0 %v4216_v2  ;;  %v4316_v2 = vld [vmem:[%s7349_s19 + $0x6a8] sm:$0xff] }
 0x618   : > { %5105 = vmatpush2.msra.mxu0 %v4215_v47  ;;  %v4476_v47 = vld [vmem:[%s7349_s19 + $0xba8] sm:$0xff] }
 0x619   : > { %5106 = vmatprep.subr.mxu0 %v4211_v48  ;;  %v4315_v48 = vld [vmem:[%s7349_s19 + $0x6a0] sm:$0xff] }
 0x61a   : > { %v6351_v18 = vpop.eup %6350  ;;  %5107 = vmatpush2.msra.mxu0 %v4210_v3  ;;  %v4475_v3 = vld [vmem:[%s7349_s19 + $0xba0] sm:$0xff] }
 0x61b   : > { %v3979_v25 = vmul.f32 %v6351_v18, %v3955_v46  ;;  %5108 = vmatprep.subr.mxu0 %v4206_v10  ;;  %v4311_v46 = vld [vmem:[%s7349_s19 + $0x680] sm:$0xff]  ;;  %v4306_v18 = vld [vmem:[%s7349_s19 + $0x658] sm:$0xff] }
 0x61c   : > { %v6353_v57 = vpop.eup %6352  ;;  %5109 = vmatpush2.msra.mxu0 %v4205_v21  ;;  %v4471_v10 = vld [vmem:[%s7349_s19 + $0xb80] sm:$0xff]  ;;  %v4466_v21 = vld [vmem:[%s7349_s19 + $0xb58] sm:$0xff] }
 0x61d   : > { %v4028_v6 = vmul.f32 %v4009_v13, %v3979_v25  ;;  %5110 = vmatprep.subr.mxu0 %v4201_v37  ;;  %v3980_v36 = vmul.f32 %v6353_v57, %v3956_v42  ;;  %v4470_v13 = vld [vmem:[%s7349_s19 + $0xb78] sm:$0xff]  ;;  %v4305_v37 = vld [vmem:[%s7349_s19 + $0x650] sm:$0xff]  ;;  %v4300_v42 = vld [vmem:[%s7349_s19 + $0x628] sm:$0xff] }
 0x61e   : > { %5111 = vmatpush2.msra.mxu0 %v4200_v30  ;;  %v4465_v25 = vld [vmem:[%s7349_s19 + $0xb50] sm:$0xff]  ;;  %v4460_v30 = vld [vmem:[%s7349_s19 + $0xb28] sm:$0xff] }
 0x61f   : > { %v4077_v16 = vadd.f32 %v4058_v26, %v4028_v6  ;;  %5112 = vmatprep.subr.mxu0 %v4196_v32  ;;  %v4029_v5 = vmul.f32 %v4013_v39, %v3980_v36  ;;  %v4461_v26 = vld [vmem:[%s7349_s19 + $0xb30] sm:$0xff]  ;;  %v4296_v39 = vld [vmem:[%s7349_s19 + $0x608] sm:$0xff]  ;;  %v4295_v32 = vld [vmem:[%s7349_s19 + $0x600] sm:$0xff] }
 0x620   : > { %5113 = vmatpush2.msra.mxu0 %v4195_v35  ;;  %v4456_v57 = vld [vmem:[%s7349_s19 + $0xb08] sm:$0xff]  ;;  %v4455_v6 = vld [vmem:[%s7349_s19 + $0xb00] sm:$0xff] }
 0x621   : > { %5114 = vmatprep.subr.mxu0 %v4191_v20  ;;  %v4078_v34 = vadd.f32 %v4062_v29, %v4029_v5  ;;  %v4093_v61 = vmul.f32 0.2, %v4077_v16  ;;  %vm4085_vm15 = vcmp.gt.f32.partialorder %v4077_v16, 0.0  ;;  %v4291_v35 = vld [vmem:[%s7349_s19 + $0x5e0] sm:$0xff]  ;;  %v4290_v29 = vld [vmem:[%s7349_s19 + $0x5d8] sm:$0xff]  ;;  %v4285_v5 = vld [vmem:[%s7349_s19 + $0x5b0] sm:$0xff] }
 0x622   : > { %5115 = vmatpush2.msra.mxu0 %v4190_v28  ;;  %v4451_v36 = vld [vmem:[%s7349_s19 + $0xae0] sm:$0xff]  ;;  %v4450_v20 = vld [vmem:[%s7349_s19 + $0xad8] sm:$0xff] }
 0x623   : > { %5116 = vmatprep.subr.mxu0 %v4186_v59  ;;  %vm4086_vm14 = vcmp.gt.f32.partialorder %v4078_v34, 0.0  ;;  %v4094_v33 = vmul.f32 0.2, %v4078_v34  ;;  %v8071_v15 = vsel %vm4085_vm15, %v4077_v16, %v4093_v61  ;;  %v4286_v16 = vld [vmem:[%s7349_s19 + $0x5b8] sm:$0xff]  ;;  %v4445_v59 = vld [vmem:[%s7349_s19 + $0xab0] sm:$0xff]  ;;  %v4440_v61 = vld [vmem:[%s7349_s19 + $0xa88] sm:$0xff] }
 0x624   : > { %5117 = vmatpush2.msra.mxu0 %v4185_v40  ;;  %v4446_v28 = vld [vmem:[%s7349_s19 + $0xab8] sm:$0xff]  ;;  %v4281_v40 = vld [vmem:[%s7349_s19 + $0x590] sm:$0xff] }
 0x625   : > { %v8066_v38 = vsel %vm4086_vm14, %v4078_v34, %v4094_v33  ;;  %5119 = vmatmul.mubr.f32.vlgmr.msra.gmra.mxu0 %v7739_v17  ;;  %5196 = vmatprep.subr.mxu0 %v4501_v27  ;;  %v4441_v34 = vld [vmem:[%s7349_s19 + $0xa90] sm:$0xff]  ;;  %v4280_v27 = vld [vmem:[%s7349_s19 + $0x588] sm:$0xff] }
 0x626   : > { %5047 = vmatprep.mubr.f32.mxu1 %v8066_v38  ;;  %5197 = vmatpush1.msra.mxu0 %v4500_v23  ;;  %v4276_v33 = vld [vmem:[%s7349_s19 + $0x568] sm:$0xff] }
 0x627   : > { %5048 = vmatmul.mubr.f32.vlgmr.msra.gmra.mxu1 %v8071_v15  ;;  %5260 = vmatprep.mubr.f32.mxu0 %v7954_v50  ;;  %v4436_v23 = vld [vmem:[%s7349_s19 + $0xa68] sm:$0xff] }
 0x628   : > { %5126 = vmatpush1.msra.mxu1 %v4340_v45  ;;  %5189 = vmatprep.mubr.f32.mxu1 %v7822_v43  ;;  %v4275_v45 = vld [vmem:[%s7349_s19 + $0x560] sm:$0xff] }
 0x629   : > { %5127 = vmatprep.subr.mxu1 %v4336_v51  ;;  %5198 = vmatprep.subr.mxu0 %v4496_v19  ;;  %v4435_v51 = vld [vmem:[%s7349_s19 + $0xa60] sm:$0xff] }
 0x62a   : > { %5128 = vmatpush1.msra.mxu1 %v4335_v52  ;;  %5199 = vmatpush1.msra.mxu0 %v4495_v54  ;;  %v4271_v19 = vld [vmem:[%s7349_s19 + $0x540] sm:$0xff]  ;;  %v4270_v54 = vld [vmem:[%s7349_s19 + $0x538] sm:$0xff] }
 0x62b   : > { %5129 = vmatprep.subr.mxu1 %v4331_v31  ;;  %5200 = vmatprep.subr.mxu0 %v4491_v58  ;;  %v4431_v52 = vld [vmem:[%s7349_s19 + $0xa40] sm:$0xff]  ;;  %v4430_v31 = vld [vmem:[%s7349_s19 + $0xa38] sm:$0xff] }
 0x62c   : > { %5130 = vmatpush1.msra.mxu1 %v4330_v53  ;;  %5201 = vmatpush1.msra.mxu0 %v4490_v55  ;;  %v4266_v58 = vld [vmem:[%s7349_s19 + $0x518] sm:$0xff]  ;;  %v4265_v55 = vld [vmem:[%s7349_s19 + $0x510] sm:$0xff] }
 0x62d   : > { %5131 = vmatprep.subr.mxu1 %v4326_v56  ;;  %5202 = vmatprep.subr.mxu0 %v4486_v12  ;;  %v4426_v53 = vld [vmem:[%s7349_s19 + $0xa18] sm:$0xff]  ;;  %v4425_v56 = vld [vmem:[%s7349_s19 + $0xa10] sm:$0xff] }
 0x62e   : > { %5132 = vmatpush1.msra.mxu1 %v4325_v44  ;;  %5203 = vmatpush1.msra.mxu0 %v4485_v41  ;;  %v4421_v12 = vld [vmem:[%s7349_s19 + $0x9f0] sm:$0xff]  ;;  %v4420_v41 = vld [vmem:[%s7349_s19 + $0x9e8] sm:$0xff] }
 0x62f   : > { %5133 = vmatprep.subr.mxu1 %v4321_v63  ;;  %5204 = vmatprep.subr.mxu0 %v4481_v0  ;;  %v4581_v44 = vld [vmem:[%s7349_s19 + $0xef0] sm:$0xff]  ;;  %v4580_v63 = vld [vmem:[%s7349_s19 + $0xee8] sm:$0xff] }
 0x630   : > { %5134 = vmatpush1.msra.mxu1 %v4320_v7  ;;  %5205 = vmatpush1.msra.mxu0 %v4480_v1  ;;  %v4416_v0 = vld [vmem:[%s7349_s19 + $0x9c8] sm:$0xff]  ;;  %v4415_v1 = vld [vmem:[%s7349_s19 + $0x9c0] sm:$0xff] }
 0x631   : > { %5135 = vmatprep.subr.mxu1 %v4316_v2  ;;  %5206 = vmatprep.subr.mxu0 %v4476_v47  ;;  %v4576_v7 = vld [vmem:[%s7349_s19 + $0xec8] sm:$0xff]  ;;  %v4575_v2 = vld [vmem:[%s7349_s19 + $0xec0] sm:$0xff] }
 0x632   : > { %5136 = vmatpush1.msra.mxu1 %v4315_v48  ;;  %5207 = vmatpush1.msra.mxu0 %v4475_v3  ;;  %v4411_v47 = vld [vmem:[%s7349_s19 + $0x9a0] sm:$0xff]  ;;  %v4410_v3 = vld [vmem:[%s7349_s19 + $0x998] sm:$0xff] }
 0x633   : > { %5137 = vmatprep.subr.mxu1 %v4311_v46  ;;  %5208 = vmatprep.subr.mxu0 %v4471_v10  ;;  %v4571_v48 = vld [vmem:[%s7349_s19 + $0xea0] sm:$0xff]  ;;  %v4570_v46 = vld [vmem:[%s7349_s19 + $0xe98] sm:$0xff] }
 0x634   : > { %5138 = vmatpush1.msra.mxu1 %v4310_v11  ;;  %5209 = vmatpush1.msra.mxu0 %v4470_v13  ;;  %v4406_v10 = vld [vmem:[%s7349_s19 + $0x978] sm:$0xff]  ;;  %v4405_v13 = vld [vmem:[%s7349_s19 + $0x970] sm:$0xff] }
 0x635   : > { %5139 = vmatprep.subr.mxu1 %v4306_v18  ;;  %5210 = vmatprep.subr.mxu0 %v4466_v21  ;;  %v4566_v11 = vld [vmem:[%s7349_s19 + $0xe78] sm:$0xff]  ;;  %v4565_v18 = vld [vmem:[%s7349_s19 + $0xe70] sm:$0xff] }
 0x636   : > { %5140 = vmatpush1.msra.mxu1 %v4305_v37  ;;  %5211 = vmatpush1.msra.mxu0 %v4465_v25  ;;  %v4401_v21 = vld [vmem:[%s7349_s19 + $0x950] sm:$0xff]  ;;  %v4400_v25 = vld [vmem:[%s7349_s19 + $0x948] sm:$0xff] }
 0x637   : > { %5141 = vmatprep.subr.mxu1 %v4301_v49  ;;  %5212 = vmatprep.subr.mxu0 %v4461_v26  ;;  %v4561_v37 = vld [vmem:[%s7349_s19 + $0xe50] sm:$0xff]  ;;  %v4560_v49 = vld [vmem:[%s7349_s19 + $0xe48] sm:$0xff] }
 0x638   : > { %5142 = vmatpush1.msra.mxu1 %v4300_v42  ;;  %5213 = vmatpush1.msra.mxu0 %v4460_v30  ;;  %v4396_v26 = vld [vmem:[%s7349_s19 + $0x928] sm:$0xff]  ;;  %v4395_v30 = vld [vmem:[%s7349_s19 + $0x920] sm:$0xff] }
 0x639   : > { %5143 = vmatprep.subr.mxu1 %v4296_v39  ;;  %5214 = vmatprep.subr.mxu0 %v4456_v57  ;;  %v4556_v42 = vld [vmem:[%s7349_s19 + $0xe28] sm:$0xff]  ;;  %v4555_v39 = vld [vmem:[%s7349_s19 + $0xe20] sm:$0xff] }
 0x63a   : > { %5144 = vmatpush1.msra.mxu1 %v4295_v32  ;;  %5215 = vmatpush1.msra.mxu0 %v4455_v6  ;;  %v4391_v57 = vld [vmem:[%s7349_s19 + $0x900] sm:$0xff]  ;;  %v4390_v6 = vld [vmem:[%s7349_s19 + $0x8f8] sm:$0xff] }
 0x63b   : > { %5145 = vmatprep.subr.mxu1 %v4291_v35  ;;  %5216 = vmatprep.subr.mxu0 %v4451_v36  ;;  %v4551_v32 = vld [vmem:[%s7349_s19 + $0xe00] sm:$0xff]  ;;  %v4550_v35 = vld [vmem:[%s7349_s19 + $0xdf8] sm:$0xff] }
 0x63c   : > { %5146 = vmatpush1.msra.mxu1 %v4290_v29  ;;  %5217 = vmatpush1.msra.mxu0 %v4450_v20  ;;  %v4386_v36 = vld [vmem:[%s7349_s19 + $0x8d8] sm:$0xff]  ;;  %v4385_v20 = vld [vmem:[%s7349_s19 + $0x8d0] sm:$0xff] }
 0x63d   : > { %5147 = vmatprep.subr.mxu1 %v4286_v16  ;;  %5218 = vmatprep.subr.mxu0 %v4446_v28  ;;  %v4546_v29 = vld [vmem:[%s7349_s19 + $0xdd8] sm:$0xff]  ;;  %v4545_v16 = vld [vmem:[%s7349_s19 + $0xdd0] sm:$0xff] }
 0x63e   : > { %5148 = vmatpush1.msra.mxu1 %v4285_v5  ;;  %5219 = vmatpush1.msra.mxu0 %v4445_v59  ;;  %v4381_v28 = vld [vmem:[%s7349_s19 + $0x8b0] sm:$0xff]  ;;  %v4380_v59 = vld [vmem:[%s7349_s19 + $0x8a8] sm:$0xff] }
 0x63f   : > { %5149 = vmatprep.subr.mxu1 %v4281_v40  ;;  %5220 = vmatprep.subr.mxu0 %v4441_v34  ;;  %v4541_v5 = vld [vmem:[%s7349_s19 + $0xdb0] sm:$0xff]  ;;  %v4540_v40 = vld [vmem:[%s7349_s19 + $0xda8] sm:$0xff] }
 0x640   : > { %5150 = vmatpush1.msra.mxu1 %v4280_v27  ;;  %5221 = vmatpush1.msra.mxu0 %v4440_v61  ;;  %v4376_v34 = vld [vmem:[%s7349_s19 + $0x888] sm:$0xff]  ;;  %v4375_v61 = vld [vmem:[%s7349_s19 + $0x880] sm:$0xff] }
 0x641   : > { %5151 = vmatprep.subr.mxu1 %v4276_v33  ;;  %5222 = vmatprep.subr.mxu0 %v4436_v23  ;;  %v4536_v27 = vld [vmem:[%s7349_s19 + $0xd88] sm:$0xff]  ;;  %v4535_v33 = vld [vmem:[%s7349_s19 + $0xd80] sm:$0xff] }
 0x642   : > { %5152 = vmatpush1.msra.mxu1 %v4275_v45  ;;  %5223 = vmatpush1.msra.mxu0 %v4435_v51  ;;  %v4371_v23 = vld [vmem:[%s7349_s19 + $0x860] sm:$0xff]  ;;  %v4370_v51 = vld [vmem:[%s7349_s19 + $0x858] sm:$0xff] }
 0x643   : > { %5153 = vmatprep.subr.mxu1 %v4271_v19  ;;  %5224 = vmatprep.subr.mxu0 %v4431_v52  ;;  %v4531_v45 = vld [vmem:[%s7349_s19 + $0xd60] sm:$0xff]  ;;  %v4530_v19 = vld [vmem:[%s7349_s19 + $0xd58] sm:$0xff] }
 0x644   : > { %5154 = vmatpush1.msra.mxu1 %v4270_v54  ;;  %5225 = vmatpush1.msra.mxu0 %v4430_v31  ;;  %v4366_v52 = vld [vmem:[%s7349_s19 + $0x838] sm:$0xff]  ;;  %v4365_v31 = vld [vmem:[%s7349_s19 + $0x830] sm:$0xff] }
 0x645   : > { %5155 = vmatprep.subr.mxu1 %v4266_v58  ;;  %5226 = vmatprep.subr.mxu0 %v4426_v53  ;;  %v4526_v54 = vld [vmem:[%s7349_s19 + $0xd38] sm:$0xff]  ;;  %v4525_v58 = vld [vmem:[%s7349_s19 + $0xd30] sm:$0xff] }
 0x646   : > { %5156 = vmatpush1.msra.mxu1 %v4265_v55  ;;  %5227 = vmatpush1.msra.mxu0 %v4425_v56  ;;  %v4361_v53 = vld [vmem:[%s7349_s19 + $0x810] sm:$0xff]  ;;  %v4360_v56 = vld [vmem:[%s7349_s19 + $0x808] sm:$0xff] }
 0x647   : > { %5157 = vmatprep.subr.mxu1 %v4421_v12  ;;  %5228 = vmatprep.subr.mxu0 %v4581_v44  ;;  %v4521_v55 = vld [vmem:[%s7349_s19 + $0xd10] sm:$0xff]  ;;  %v4520_v12 = vld [vmem:[%s7349_s19 + $0xd08] sm:$0xff] }
 0x648   : > { %5158 = vmatpush2.msra.mxu1 %v4420_v41  ;;  %5229 = vmatpush2.msra.mxu0 %v4580_v63  ;;  %v4356_v44 = vld [vmem:[%s7349_s19 + $0x7e8] sm:$0xff]  ;;  %v4355_v63 = vld [vmem:[%s7349_s19 + $0x7e0] sm:$0xff] }
 0x649   : > { %5159 = vmatprep.subr.mxu1 %v4416_v0  ;;  %5230 = vmatprep.subr.mxu0 %v4576_v7  ;;  %v4516_v41 = vld [vmem:[%s7349_s19 + $0xce8] sm:$0xff]  ;;  %v4515_v0 = vld [vmem:[%s7349_s19 + $0xce0] sm:$0xff] }
 0x64a   : > { %5160 = vmatpush2.msra.mxu1 %v4415_v1  ;;  %5231 = vmatpush2.msra.mxu0 %v4575_v2  ;;  %v4351_v7 = vld [vmem:[%s7349_s19 + $0x7c0] sm:$0xff]  ;;  %v4350_v2 = vld [vmem:[%s7349_s19 + $0x7b8] sm:$0xff] }
 0x64b   : > { %5161 = vmatprep.subr.mxu1 %v4411_v47  ;;  %5232 = vmatprep.subr.mxu0 %v4571_v48  ;;  %v4511_v1 = vld [vmem:[%s7349_s19 + $0xcc0] sm:$0xff]  ;;  %v4510_v47 = vld [vmem:[%s7349_s19 + $0xcb8] sm:$0xff] }
 0x64c   : > { %5162 = vmatpush2.msra.mxu1 %v4410_v3  ;;  %5233 = vmatpush2.msra.mxu0 %v4570_v46  ;;  %v4346_v48 = vld [vmem:[%s7349_s19 + $0x798] sm:$0xff]  ;;  %v4345_v46 = vld [vmem:[%s7349_s19 + $0x790] sm:$0xff] }
 0x64d   : > { %5163 = vmatprep.subr.mxu1 %v4406_v10  ;;  %5234 = vmatprep.subr.mxu0 %v4566_v11  ;;  %v4506_v3 = vld [vmem:[%s7349_s19 + $0xc98] sm:$0xff]  ;;  %v4505_v10 = vld [vmem:[%s7349_s19 + $0xc90] sm:$0xff] }
 0x64e   : > { %5164 = vmatpush2.msra.mxu1 %v4405_v13  ;;  %5235 = vmatpush2.msra.mxu0 %v4565_v18  ;;  %v4661_v11 = vld [vmem:[%s7349_s19 + $0x1170] sm:$0xff]  ;;  %v4262_v13 = vld [vmem:[%s7349_s19 + $0x4f8] sm:$0xff]  ;;  %v4660_v18 = vld [vmem:[%s7349_s19 + $0x1168] sm:$0xff] }
 0x64f   : > { %5165 = vmatprep.subr.mxu1 %v4401_v21  ;;  %5236 = vmatprep.subr.mxu0 %v4561_v37  ;;  %v4182_v21 = vld [vmem:[%s7349_s19 + $0x278] sm:$0xff]  ;;  %v4656_v37 = vld [vmem:[%s7349_s19 + $0x1148] sm:$0xff] }
 0x650   : > { %5166 = vmatpush2.msra.mxu1 %v4400_v25  ;;  %5237 = vmatpush2.msra.mxu0 %v4560_v49  ;;  %v4257_v25 = vld [vmem:[%s7349_s19 + $0x4d0] sm:$0xff]  ;;  %v4655_v49 = vld [vmem:[%s7349_s19 + $0x1140] sm:$0xff] }
 0x651   : > { %5167 = vmatprep.subr.mxu1 %v4396_v26  ;;  %5238 = vmatprep.subr.mxu0 %v4556_v42  ;;  %v4177_v26 = vld [vmem:[%s7349_s19 + $0x250] sm:$0xff]  ;;  %v4651_v42 = vld [vmem:[%s7349_s19 + $0x1120] sm:$0xff] }
 0x652   : > { %5168 = vmatpush2.msra.mxu1 %v4395_v30  ;;  %5239 = vmatpush2.msra.mxu0 %v4555_v39  ;;  %v4252_v30 = vld [vmem:[%s7349_s19 + $0x4a8] sm:$0xff]  ;;  %v4650_v39 = vld [vmem:[%s7349_s19 + $0x1118] sm:$0xff] }
 0x653   : > { %5169 = vmatprep.subr.mxu1 %v4391_v57  ;;  %5240 = vmatprep.subr.mxu0 %v4551_v32  ;;  %v4172_v57 = vld [vmem:[%s7349_s19 + $0x228] sm:$0xff]  ;;  %v4646_v32 = vld [vmem:[%s7349_s19 + $0x10f8] sm:$0xff] }
 0x654   : > { %5170 = vmatpush2.msra.mxu1 %v4390_v6  ;;  %5241 = vmatpush2.msra.mxu0 %v4550_v35  ;;  %v4247_v6 = vld [vmem:[%s7349_s19 + $0x480] sm:$0xff]  ;;  %v4645_v35 = vld [vmem:[%s7349_s19 + $0x10f0] sm:$0xff] }
 0x655   : > { %5171 = vmatprep.subr.mxu1 %v4386_v36  ;;  %5242 = vmatprep.subr.mxu0 %v4546_v29  ;;  %v4641_v36 = vld [vmem:[%s7349_s19 + $0x10d0] sm:$0xff]  ;;  %v4242_v29 = vld [vmem:[%s7349_s19 + $0x458] sm:$0xff] }
 0x656   : > { %5172 = vmatpush2.msra.mxu1 %v4385_v20  ;;  %5243 = vmatpush2.msra.mxu0 %v4545_v16  ;;  %v4640_v20 = vld [vmem:[%s7349_s19 + $0x10c8] sm:$0xff]  ;;  %v4162_v16 = vld [vmem:[%s7349_s19 + $0x1d8] sm:$0xff] }
 0x657   : > { %5173 = vmatprep.subr.mxu1 %v4381_v28  ;;  %5244 = vmatprep.subr.mxu0 %v4541_v5  ;;  %v4636_v28 = vld [vmem:[%s7349_s19 + $0x10a8] sm:$0xff]  ;;  %v4237_v5 = vld [vmem:[%s7349_s19 + $0x430] sm:$0xff] }
 0x658   : > { %5174 = vmatpush2.msra.mxu1 %v4380_v59  ;;  %5245 = vmatpush2.msra.mxu0 %v4540_v40  ;;  %v4635_v59 = vld [vmem:[%s7349_s19 + $0x10a0] sm:$0xff]  ;;  %v4157_v40 = vld [vmem:[%s7349_s19 + $0x1b0] sm:$0xff] }
 0x659   : > { %5175 = vmatprep.subr.mxu1 %v4376_v34  ;;  %5246 = vmatprep.subr.mxu0 %v4536_v27  ;;  %v4631_v34 = vld [vmem:[%s7349_s19 + $0x1080] sm:$0xff]  ;;  %v4232_v27 = vld [vmem:[%s7349_s19 + $0x408] sm:$0xff] }
 0x65a   : > { %5176 = vmatpush2.msra.mxu1 %v4375_v61  ;;  %5247 = vmatpush2.msra.mxu0 %v4535_v33  ;;  %v4630_v61 = vld [vmem:[%s7349_s19 + $0x1078] sm:$0xff]  ;;  %v4152_v33 = vld [vmem:[%s7349_s19 + $0x188] sm:$0xff] }
 0x65b   : > { %5177 = vmatprep.subr.mxu1 %v4371_v23  ;;  %5248 = vmatprep.subr.mxu0 %v4531_v45  ;;  %v4626_v23 = vld [vmem:[%s7349_s19 + $0x1058] sm:$0xff]  ;;  %v4227_v45 = vld [vmem:[%s7349_s19 + $0x3e0] sm:$0xff] }
 0x65c   : > { %5178 = vmatpush2.msra.mxu1 %v4370_v51  ;;  %5249 = vmatpush2.msra.mxu0 %v4530_v19  ;;  %v4625_v51 = vld [vmem:[%s7349_s19 + $0x1050] sm:$0xff]  ;;  %v4147_v19 = vld [vmem:[%s7349_s19 + $0x160] sm:$0xff] }
 0x65d   : > { %5179 = vmatprep.subr.mxu1 %v4366_v52  ;;  %5250 = vmatprep.subr.mxu0 %v4526_v54  ;;  %v4621_v52 = vld [vmem:[%s7349_s19 + $0x1030] sm:$0xff]  ;;  %v4222_v54 = vld [vmem:[%s7349_s19 + $0x3b8] sm:$0xff] }
 0x65e   : > { %5180 = vmatpush2.msra.mxu1 %v4365_v31  ;;  %5251 = vmatpush2.msra.mxu0 %v4525_v58  ;;  %v4620_v31 = vld [vmem:[%s7349_s19 + $0x1028] sm:$0xff]  ;;  %v4142_v58 = vld [vmem:[%s7349_s19 + $0x138] sm:$0xff] }
 0x65f   : > { %5181 = vmatprep.subr.mxu1 %v4361_v53  ;;  %5252 = vmatprep.subr.mxu0 %v4521_v55  ;;  %v4616_v53 = vld [vmem:[%s7349_s19 + $0x1008] sm:$0xff]  ;;  %v4217_v55 = vld [vmem:[%s7349_s19 + $0x390] sm:$0xff] }
 0x660   : > { %5182 = vmatpush2.msra.mxu1 %v4360_v56  ;;  %5253 = vmatpush2.msra.mxu0 %v4520_v12  ;;  %v4615_v56 = vld [vmem:[%s7349_s19 + $0x1000] sm:$0xff]  ;;  %v4137_v12 = vld [vmem:[%s7349_s19 + $0x110] sm:$0xff] }
 0x661   : > { %5183 = vmatprep.subr.mxu1 %v4356_v44  ;;  %5254 = vmatprep.subr.mxu0 %v4516_v41  ;;  %v4611_v44 = vld [vmem:[%s7349_s19 + $0xfe0] sm:$0xff]  ;;  %v4212_v41 = vld [vmem:[%s7349_s19 + $0x368] sm:$0xff] }
 0x662   : > { %5184 = vmatpush2.msra.mxu1 %v4355_v63  ;;  %5255 = vmatpush2.msra.mxu0 %v4515_v0  ;;  %v4610_v63 = vld [vmem:[%s7349_s19 + $0xfd8] sm:$0xff]  ;;  %v4132_v0 = vld [vmem:[%s7349_s19 + $0xe8] sm:$0xff] }
 0x663   : > { %5185 = vmatprep.subr.mxu1 %v4351_v7  ;;  %5256 = vmatprep.subr.mxu0 %v4511_v1  ;;  %v4606_v7 = vld [vmem:[%s7349_s19 + $0xfb8] sm:$0xff]  ;;  %v4207_v1 = vld [vmem:[%s7349_s19 + $0x340] sm:$0xff] }
 0x664   : > { %5186 = vmatpush2.msra.mxu1 %v4350_v2  ;;  %5257 = vmatpush2.msra.mxu0 %v4510_v47  ;;  %v4605_v2 = vld [vmem:[%s7349_s19 + $0xfb0] sm:$0xff]  ;;  %v4127_v47 = vld [vmem:[%s7349_s19 + $0xc0] sm:$0xff] }
 0x665   : > { %5187 = vmatprep.subr.mxu1 %v4346_v48  ;;  %5258 = vmatprep.subr.mxu0 %v4506_v3  ;;  %v4601_v48 = vld [vmem:[%s7349_s19 + $0xf90] sm:$0xff]  ;;  %v4202_v3 = vld [vmem:[%s7349_s19 + $0x318] sm:$0xff] }
 0x666   : > { %5188 = vmatpush2.msra.mxu1 %v4345_v46  ;;  %5259 = vmatpush2.msra.mxu0 %v4505_v10  ;;  %v4600_v46 = vld [vmem:[%s7349_s19 + $0xf88] sm:$0xff]  ;;  %v4122_v10 = vld [vmem:[%s7349_s19 + $0x98] sm:$0xff] }
 0x667   : > { %5190 = vmatmul.mubr.f32.vlgmr.msra.gmra.mxu1 %v7827_v9  ;;  %5261 = vmatmul.mubr.f32.vlgmr.msra.gmra.mxu0 %v7958_v8 }
 0x668   : > { %5267 = vmatprep.subr.mxu1 %v4661_v11  ;;  %5929 = vmatprep.subr.mxu0 %v4262_v13  ;;  %v4596_v11 = vld [vmem:[%s7349_s19 + $0xf68] sm:$0xff]  ;;  %v4197_v13 = vld [vmem:[%s7349_s19 + $0x2f0] sm:$0xff] }
 0x669   : > { %5268 = vmatpush1.msra.mxu1 %v4660_v18  ;;  %5331 = vmatprep.mubr.f32.mxu1 %v8066_v38  ;;  %v4595_v18 = vld [vmem:[%s7349_s19 + $0xf60] sm:$0xff] }
 0x66a   : > { %5930 = vmatpush3.msra.mxu0 %v4182_v21  ;;  %5402 = vmatprep.mubr.f32.mxu0 %v7692_v4  ;;  %v4167_v4 = vld [vmem:[%s7349_s19 + $0x200] sm:$0xff]  ;;  %v4117_v21 = vld [vmem:[%s7349_s19 + $0x70] sm:$0xff] }
 0x66b   : > { %5269 = vmatprep.subr.mxu1 %v4656_v37  ;;  %5931 = vmatprep.subr.mxu0 %v4257_v25  ;;  %v4591_v37 = vld [vmem:[%s7349_s19 + $0xf40] sm:$0xff]  ;;  %v4192_v25 = vld [vmem:[%s7349_s19 + $0x2c8] sm:$0xff] }
 0x66c   : > { %5270 = vmatpush1.msra.mxu1 %v4655_v49  ;;  %5932 = vmatpush3.msra.mxu0 %v4177_v26  ;;  %v4590_v49 = vld [vmem:[%s7349_s19 + $0xf38] sm:$0xff]  ;;  %v4112_v26 = vld [vmem:[%s7349_s19 + $0x48] sm:$0xff] }
 0x66d   : > { %5271 = vmatprep.subr.mxu1 %v4651_v42  ;;  %5933 = vmatprep.subr.mxu0 %v4252_v30  ;;  %v4586_v42 = vld [vmem:[%s7349_s19 + $0xf18] sm:$0xff]  ;;  %v4187_v30 = vld [vmem:[%s7349_s19 + $0x2a0] sm:$0xff] }
 0x66e   : > { %5272 = vmatpush1.msra.mxu1 %v4650_v39  ;;  %5934 = vmatpush3.msra.mxu0 %v4172_v57  ;;  %v4585_v39 = vld [vmem:[%s7349_s19 + $0xf10] sm:$0xff]  ;;  %v4107_v57 = vld [vmem:[%s7349_s19 + $0x20] sm:$0xff] }
 0x66f   : > { %5273 = vmatprep.subr.mxu1 %v4646_v32  ;;  %5935 = vmatprep.subr.mxu0 %v4247_v6  ;;  %v4741_v32 = vld [vmem:[%s7349_s19 + $0x13f0] sm:$0xff]  ;;  %v4582_v6 = vld [vmem:[%s7349_s19 + $0xef8] sm:$0xff] }
 0x670   : > { %5274 = vmatpush1.msra.mxu1 %v4645_v35  ;;  %5936 = vmatpush3.msra.mxu0 %v4167_v4  ;;  %v4740_v35 = vld [vmem:[%s7349_s19 + $0x13e8] sm:$0xff]  ;;  %v4502_v4 = vld [vmem:[%s7349_s19 + $0xc78] sm:$0xff] }
 0x671   : > { %5275 = vmatprep.subr.mxu1 %v4641_v36  ;;  %5937 = vmatprep.subr.mxu0 %v4242_v29  ;;  %v4736_v36 = vld [vmem:[%s7349_s19 + $0x13c8] sm:$0xff]  ;;  %v4577_v29 = vld [vmem:[%s7349_s19 + $0xed0] sm:$0xff] }
 0x672   : > { %5276 = vmatpush1.msra.mxu1 %v4640_v20  ;;  %5938 = vmatpush3.msra.mxu0 %v4162_v16  ;;  %v4735_v20 = vld [vmem:[%s7349_s19 + $0x13c0] sm:$0xff]  ;;  %v4497_v16 = vld [vmem:[%s7349_s19 + $0xc50] sm:$0xff] }
 0x673   : > { %5277 = vmatprep.subr.mxu1 %v4636_v28  ;;  %5939 = vmatprep.subr.mxu0 %v4237_v5  ;;  %v4731_v28 = vld [vmem:[%s7349_s19 + $0x13a0] sm:$0xff]  ;;  %v4572_v5 = vld [vmem:[%s7349_s19 + $0xea8] sm:$0xff] }
 0x674   : > { %5278 = vmatpush1.msra.mxu1 %v4635_v59  ;;  %5940 = vmatpush3.msra.mxu0 %v4157_v40  ;;  %v4492_v59 = vld [vmem:[%s7349_s19 + $0xc28] sm:$0xff]  ;;  %v4726_v40 = vld [vmem:[%s7349_s19 + $0x1378] sm:$0xff] }
 0x675   : > { %5279 = vmatprep.subr.mxu1 %v4631_v34  ;;  %5941 = vmatprep.subr.mxu0 %v4232_v27  ;;  %v4567_v34 = vld [vmem:[%s7349_s19 + $0xe80] sm:$0xff]  ;;  %v4725_v27 = vld [vmem:[%s7349_s19 + $0x1370] sm:$0xff] }
 0x676   : > { %5280 = vmatpush1.msra.mxu1 %v4630_v61  ;;  %5942 = vmatpush3.msra.mxu0 %v4152_v33  ;;  %v4721_v61 = vld [vmem:[%s7349_s19 + $0x1350] sm:$0xff]  ;;  %v4562_v33 = vld [vmem:[%s7349_s19 + $0xe58] sm:$0xff] }
 0x677   : > { %5281 = vmatprep.subr.mxu1 %v4626_v23  ;;  %5943 = vmatprep.subr.mxu0 %v4227_v45  ;;  %v4720_v23 = vld [vmem:[%s7349_s19 + $0x1348] sm:$0xff]  ;;  %v4482_v45 = vld [vmem:[%s7349_s19 + $0xbd8] sm:$0xff] }
 0x678   : > { %5282 = vmatpush1.msra.mxu1 %v4625_v51  ;;  %5944 = vmatpush3.msra.mxu0 %v4147_v19  ;;  %v4716_v51 = vld [vmem:[%s7349_s19 + $0x1328] sm:$0xff]  ;;  %v4557_v19 = vld [vmem:[%s7349_s19 + $0xe30] sm:$0xff] }
 0x679   : > { %5283 = vmatprep.subr.mxu1 %v4621_v52  ;;  %5945 = vmatprep.subr.mxu0 %v4222_v54  ;;  %v4715_v52 = vld [vmem:[%s7349_s19 + $0x1320] sm:$0xff]  ;;  %v4477_v54 = vld [vmem:[%s7349_s19 + $0xbb0] sm:$0xff] }
 0x67a   : > { %5284 = vmatpush1.msra.mxu1 %v4620_v31  ;;  %5946 = vmatpush3.msra.mxu0 %v4142_v58  ;;  %v4711_v31 = vld [vmem:[%s7349_s19 + $0x1300] sm:$0xff]  ;;  %v4552_v58 = vld [vmem:[%s7349_s19 + $0xe08] sm:$0xff] }
 0x67b   : > { %5285 = vmatprep.subr.mxu1 %v4616_v53  ;;  %5947 = vmatprep.subr.mxu0 %v4217_v55  ;;  %v4710_v53 = vld [vmem:[%s7349_s19 + $0x12f8] sm:$0xff]  ;;  %v4472_v55 = vld [vmem:[%s7349_s19 + $0xb88] sm:$0xff] }
 0x67c   : > { %5286 = vmatpush1.msra.mxu1 %v4615_v56  ;;  %5948 = vmatpush3.msra.mxu0 %v4137_v12  ;;  %v4706_v56 = vld [vmem:[%s7349_s19 + $0x12d8] sm:$0xff]  ;;  %v4547_v12 = vld [vmem:[%s7349_s19 + $0xde0] sm:$0xff] }
 0x67d   : > { %5287 = vmatprep.subr.mxu1 %v4611_v44  ;;  %5949 = vmatprep.subr.mxu0 %v4212_v41  ;;  %v4705_v44 = vld [vmem:[%s7349_s19 + $0x12d0] sm:$0xff]  ;;  %v4467_v41 = vld [vmem:[%s7349_s19 + $0xb60] sm:$0xff] }
 0x67e   : > { %5288 = vmatpush1.msra.mxu1 %v4610_v63  ;;  %5950 = vmatpush3.msra.mxu0 %v4132_v0  ;;  %v4701_v63 = vld [vmem:[%s7349_s19 + $0x12b0] sm:$0xff]  ;;  %v4542_v0 = vld [vmem:[%s7349_s19 + $0xdb8] sm:$0xff] }
 0x67f   : > { %5289 = vmatprep.subr.mxu1 %v4606_v7  ;;  %5951 = vmatprep.subr.mxu0 %v4207_v1  ;;  %v4700_v7 = vld [vmem:[%s7349_s19 + $0x12a8] sm:$0xff]  ;;  %v4462_v1 = vld [vmem:[%s7349_s19 + $0xb38] sm:$0xff] }
 0x680   : > { %5290 = vmatpush1.msra.mxu1 %v4605_v2  ;;  %5952 = vmatpush3.msra.mxu0 %v4127_v47  ;;  %v4696_v2 = vld [vmem:[%s7349_s19 + $0x1288] sm:$0xff]  ;;  %v4537_v47 = vld [vmem:[%s7349_s19 + $0xd90] sm:$0xff] }
 0x681   : > { %5291 = vmatprep.subr.mxu1 %v4601_v48  ;;  %5953 = vmatprep.subr.mxu0 %v4202_v3  ;;  %v4695_v48 = vld [vmem:[%s7349_s19 + $0x1280] sm:$0xff]  ;;  %v4457_v3 = vld [vmem:[%s7349_s19 + $0xb10] sm:$0xff] }
 0x682   : > { %5292 = vmatpush1.msra.mxu1 %v4600_v46  ;;  %5954 = vmatpush3.msra.mxu0 %v4122_v10  ;;  %v4691_v46 = vld [vmem:[%s7349_s19 + $0x1260] sm:$0xff]  ;;  %v4532_v10 = vld [vmem:[%s7349_s19 + $0xd68] sm:$0xff] }
 0x683   : > { %5293 = vmatprep.subr.mxu1 %v4596_v11  ;;  %5955 = vmatprep.subr.mxu0 %v4197_v13  ;;  %v4690_v11 = vld [vmem:[%s7349_s19 + $0x1258] sm:$0xff]  ;;  %v4452_v13 = vld [vmem:[%s7349_s19 + $0xae8] sm:$0xff] }
 0x684   : > { %5294 = vmatpush1.msra.mxu1 %v4595_v18  ;;  %5956 = vmatpush3.msra.mxu0 %v4117_v21  ;;  %v4686_v18 = vld [vmem:[%s7349_s19 + $0x1238] sm:$0xff]  ;;  %v4527_v21 = vld [vmem:[%s7349_s19 + $0xd40] sm:$0xff] }
 0x685   : > { %5295 = vmatprep.subr.mxu1 %v4591_v37  ;;  %5957 = vmatprep.subr.mxu0 %v4192_v25  ;;  %v4685_v37 = vld [vmem:[%s7349_s19 + $0x1230] sm:$0xff]  ;;  %v4447_v25 = vld [vmem:[%s7349_s19 + $0xac0] sm:$0xff] }
 0x686   : > { %5296 = vmatpush1.msra.mxu1 %v4590_v49  ;;  %5958 = vmatpush3.msra.mxu0 %v4112_v26  ;;  %v4681_v49 = vld [vmem:[%s7349_s19 + $0x1210] sm:$0xff]  ;;  %v4522_v26 = vld [vmem:[%s7349_s19 + $0xd18] sm:$0xff] }
 0x687   : > { %5297 = vmatprep.subr.mxu1 %v4586_v42  ;;  %5959 = vmatprep.subr.mxu0 %v4187_v30  ;;  %v4680_v42 = vld [vmem:[%s7349_s19 + $0x1208] sm:$0xff]  ;;  %v4442_v30 = vld [vmem:[%s7349_s19 + $0xa98] sm:$0xff] }
 0x688   : > { %5298 = vmatpush1.msra.mxu1 %v4585_v39  ;;  %5960 = vmatpush3.msra.mxu0 %v4107_v57  ;;  %v4676_v39 = vld [vmem:[%s7349_s19 + $0x11e8] sm:$0xff]  ;;  %v4517_v57 = vld [vmem:[%s7349_s19 + $0xcf0] sm:$0xff] }
 0x689   : > { %5299 = vmatprep.subr.mxu1 %v4741_v32  ;;  %5403 = vmatmul.mubr.f32.vlgmr.msra.gmra.mxu0 %v7739_v17  ;;  %v4730_v17 = vld [vmem:[%s7349_s19 + $0x1398] sm:$0xff]  ;;  %v4675_v32 = vld [vmem:[%s7349_s19 + $0x11e0] sm:$0xff] }
 0x68a   : > { %5999 = vmatprep.subr.mxu0 %v4582_v6  ;;  %5300 = vmatpush2.msra.mxu1 %v4740_v35  ;;  %v4437_v6 = vld [vmem:[%s7349_s19 + $0xa70] sm:$0xff]  ;;  %v4671_v35 = vld [vmem:[%s7349_s19 + $0x11c0] sm:$0xff] }
 0x68b   : > { %6000 = vmatpush3.msra.mxu0 %v4502_v4  ;;  %5542 = vmatprep.mubr.f32.mxu0 %v7954_v50  ;;  %v4487_v50 = vld [vmem:[%s7349_s19 + $0xc00] sm:$0xff]  ;;  %v4512_v4 = vld [vmem:[%s7349_s19 + $0xcc8] sm:$0xff] }
 0x68c   : > { %5301 = vmatprep.subr.mxu1 %v4736_v36  ;;  %6001 = vmatprep.subr.mxu0 %v4577_v29  ;;  %v4670_v36 = vld [vmem:[%s7349_s19 + $0x11b8] sm:$0xff]  ;;  %v4432_v29 = vld [vmem:[%s7349_s19 + $0xa48] sm:$0xff] }
 0x68d   : > { %5302 = vmatpush2.msra.mxu1 %v4735_v20  ;;  %6002 = vmatpush3.msra.mxu0 %v4497_v16  ;;  %v4666_v20 = vld [vmem:[%s7349_s19 + $0x1198] sm:$0xff]  ;;  %v4507_v16 = vld [vmem:[%s7349_s19 + $0xca0] sm:$0xff] }
 0x68e   : > { %5303 = vmatprep.subr.mxu1 %v4731_v28  ;;  %6003 = vmatprep.subr.mxu0 %v4572_v5  ;;  %v4665_v28 = vld [vmem:[%s7349_s19 + $0x1190] sm:$0xff]  ;;  %v4427_v5 = vld [vmem:[%s7349_s19 + $0xa20] sm:$0xff] }
 0x68f   : > { %5304 = vmatpush2.msra.mxu1 %v4730_v17  ;;  %6004 = vmatpush3.msra.mxu0 %v4492_v59  ;;  %v4422_v17 = vld [vmem:[%s7349_s19 + $0x9f8] sm:$0xff] }
 0x690   : > { %5305 = vmatprep.subr.mxu1 %v4726_v40  ;;  %6005 = vmatprep.subr.mxu0 %v4567_v34  ;;  %v4342_v59 = vld [vmem:[%s7349_s19 + $0x778] sm:$0xff]  ;;  %v4417_v40 = vld [vmem:[%s7349_s19 + $0x9d0] sm:$0xff] }
 0x691   : > { %5306 = vmatpush2.msra.mxu1 %v4725_v27  ;;  %6006 = vmatpush3.msra.mxu0 %v4487_v50  ;;  %v4337_v34 = vld [vmem:[%s7349_s19 + $0x750] sm:$0xff]  ;;  %v4412_v27 = vld [vmem:[%s7349_s19 + $0x9a8] sm:$0xff] }
 0x692   : > { %5307 = vmatprep.subr.mxu1 %v4721_v61  ;;  %6007 = vmatprep.subr.mxu0 %v4562_v33  ;;  %v4332_v50 = vld [vmem:[%s7349_s19 + $0x728] sm:$0xff]  ;;  %v4407_v61 = vld [vmem:[%s7349_s19 + $0x980] sm:$0xff] }
 0x693   : > { %5308 = vmatpush2.msra.mxu1 %v4720_v23  ;;  %6008 = vmatpush3.msra.mxu0 %v4482_v45  ;;  %v4327_v33 = vld [vmem:[%s7349_s19 + $0x700] sm:$0xff]  ;;  %v4402_v23 = vld [vmem:[%s7349_s19 + $0x958] sm:$0xff]  ;;  %v4397_v45 = vld [vmem:[%s7349_s19 + $0x930] sm:$0xff] }
 0x694   : > { %5309 = vmatprep.subr.mxu1 %v4716_v51  ;;  %6009 = vmatprep.subr.mxu0 %v4557_v19  ;;  %v4392_v51 = vld [vmem:[%s7349_s19 + $0x908] sm:$0xff] }
 0x695   : > { %5310 = vmatpush2.msra.mxu1 %v4715_v52  ;;  %6010 = vmatpush3.msra.mxu0 %v4477_v54  ;;  %v4312_v19 = vld [vmem:[%s7349_s19 + $0x688] sm:$0xff]  ;;  %v4387_v52 = vld [vmem:[%s7349_s19 + $0x8e0] sm:$0xff] }
 0x696   : > { %5311 = vmatprep.subr.mxu1 %v4711_v31  ;;  %6011 = vmatprep.subr.mxu0 %v4552_v58  ;;  %v4307_v54 = vld [vmem:[%s7349_s19 + $0x660] sm:$0xff]  ;;  %v4382_v31 = vld [vmem:[%s7349_s19 + $0x8b8] sm:$0xff] }
 0x697   : > { %5312 = vmatpush2.msra.mxu1 %v4710_v53  ;;  %6012 = vmatpush3.msra.mxu0 %v4472_v55  ;;  %v4302_v58 = vld [vmem:[%s7349_s19 + $0x638] sm:$0xff]  ;;  %v4377_v53 = vld [vmem:[%s7349_s19 + $0x890] sm:$0xff] }
 0x698   : > { %5313 = vmatprep.subr.mxu1 %v4706_v56  ;;  %6013 = vmatprep.subr.mxu0 %v4547_v12  ;;  %v4297_v55 = vld [vmem:[%s7349_s19 + $0x610] sm:$0xff]  ;;  %v4372_v56 = vld [vmem:[%s7349_s19 + $0x868] sm:$0xff] }
 0x699   : > { %5314 = vmatpush2.msra.mxu1 %v4705_v44  ;;  %6014 = vmatpush3.msra.mxu0 %v4467_v41  ;;  %v4292_v12 = vld [vmem:[%s7349_s19 + $0x5e8] sm:$0xff]  ;;  %v4367_v44 = vld [vmem:[%s7349_s19 + $0x840] sm:$0xff] }
 0x69a   : > { %5315 = vmatprep.subr.mxu1 %v4701_v63  ;;  %6015 = vmatprep.subr.mxu0 %v4542_v0  ;;  %v4287_v41 = vld [vmem:[%s7349_s19 + $0x5c0] sm:$0xff]  ;;  %v4362_v63 = vld [vmem:[%s7349_s19 + $0x818] sm:$0xff] }
 0x69b   : > { %5316 = vmatpush2.msra.mxu1 %v4700_v7  ;;  %6016 = vmatpush3.msra.mxu0 %v4462_v1  ;;  %v4282_v0 = vld [vmem:[%s7349_s19 + $0x598] sm:$0xff]  ;;  %v4357_v7 = vld [vmem:[%s7349_s19 + $0x7f0] sm:$0xff] }
 0x69c   : > { %5317 = vmatprep.subr.mxu1 %v4696_v2  ;;  %6017 = vmatprep.subr.mxu0 %v4537_v47  ;;  %v4277_v1 = vld [vmem:[%s7349_s19 + $0x570] sm:$0xff]  ;;  %v4352_v2 = vld [vmem:[%s7349_s19 + $0x7c8] sm:$0xff] }
 0x69d   : > { %5318 = vmatpush2.msra.mxu1 %v4695_v48  ;;  %6018 = vmatpush3.msra.mxu0 %v4457_v3  ;;  %v4272_v47 = vld [vmem:[%s7349_s19 + $0x548] sm:$0xff]  ;;  %v4347_v48 = vld [vmem:[%s7349_s19 + $0x7a0] sm:$0xff] }
 0x69e   : > { %5319 = vmatprep.subr.mxu1 %v4691_v46  ;;  %6019 = vmatprep.subr.mxu0 %v4532_v10  ;;  %v4267_v3 = vld [vmem:[%s7349_s19 + $0x520] sm:$0xff]  ;;  %v4742_v46 = vld [vmem:[%s7349_s19 + $0x13f8] sm:$0xff] }
 0x69f   : > { %5320 = vmatpush2.msra.mxu1 %v4690_v11  ;;  %6020 = vmatpush3.msra.mxu0 %v4452_v13  ;;  %v4662_v10 = vld [vmem:[%s7349_s19 + $0x1178] sm:$0xff]  ;;  %v4737_v11 = vld [vmem:[%s7349_s19 + $0x13d0] sm:$0xff] }
 0x6a0   : > { %5321 = vmatprep.subr.mxu1 %v4686_v18  ;;  %6021 = vmatprep.subr.mxu0 %v4527_v21  ;;  %v4657_v13 = vld [vmem:[%s7349_s19 + $0x1150] sm:$0xff]  ;;  %v4732_v18 = vld [vmem:[%s7349_s19 + $0x13a8] sm:$0xff] }
 0x6a1   : > { %5322 = vmatpush2.msra.mxu1 %v4685_v37  ;;  %6022 = vmatpush3.msra.mxu0 %v4447_v25  ;;  %v4652_v21 = vld [vmem:[%s7349_s19 + $0x1128] sm:$0xff]  ;;  %v4727_v37 = vld [vmem:[%s7349_s19 + $0x1380] sm:$0xff] }
 0x6a2   : > { %5323 = vmatprep.subr.mxu1 %v4681_v49  ;;  %6023 = vmatprep.subr.mxu0 %v4522_v26  ;;  %v4647_v25 = vld [vmem:[%s7349_s19 + $0x1100] sm:$0xff]  ;;  %v4642_v49 = vld [vmem:[%s7349_s19 + $0x10d8] sm:$0xff]  ;;  %v4637_v26 = vld [vmem:[%s7349_s19 + $0x10b0] sm:$0xff] }
 0x6a3   : > { %5324 = vmatpush2.msra.mxu1 %v4680_v42  ;;  %6024 = vmatpush3.msra.mxu0 %v4442_v30  ;;  %v4712_v42 = vld [vmem:[%s7349_s19 + $0x1308] sm:$0xff] }
 0x6a4   : > { %5325 = vmatprep.subr.mxu1 %v4676_v39  ;;  %6025 = vmatprep.subr.mxu0 %v4517_v57  ;;  %v4632_v30 = vld [vmem:[%s7349_s19 + $0x1088] sm:$0xff]  ;;  %v4707_v39 = vld [vmem:[%s7349_s19 + $0x12e0] sm:$0xff] }
 0x6a5   : > { %5326 = vmatpush2.msra.mxu1 %v4675_v32  ;;  %6026 = vmatpush3.msra.mxu0 %v4437_v6  ;;  %v4627_v57 = vld [vmem:[%s7349_s19 + $0x1060] sm:$0xff]  ;;  %v4702_v32 = vld [vmem:[%s7349_s19 + $0x12b8] sm:$0xff] }
 0x6a6   : > { %5327 = vmatprep.subr.mxu1 %v4671_v35  ;;  %6027 = vmatprep.subr.mxu0 %v4512_v4  ;;  %v4622_v6 = vld [vmem:[%s7349_s19 + $0x1038] sm:$0xff]  ;;  %v4697_v35 = vld [vmem:[%s7349_s19 + $0x1290] sm:$0xff] }
 0x6a7   : > { %5328 = vmatpush2.msra.mxu1 %v4670_v36  ;;  %6028 = vmatpush3.msra.mxu0 %v4432_v29  ;;  %v4617_v4 = vld [vmem:[%s7349_s19 + $0x1010] sm:$0xff]  ;;  %v8393_v36 = vld [vmem:[%s801_s12] sm:$0x1f]  ;;  %v4836_v29 = vpop.f32.mrf.mxu0 }
 0x6a8   : > { %5329 = vmatprep.subr.mxu1 %v4666_v20  ;;  %6029 = vmatprep.subr.mxu0 %v4507_v16  ;;  %v4692_v20 = vld [vmem:[%s7349_s19 + $0x1268] sm:$0xff] }
 0x6a9   : > { %5330 = vmatpush2.msra.mxu1 %v4665_v28  ;;  %6030 = vmatpush3.msra.mxu0 %v4427_v5  ;;  %v4612_v16 = vld [vmem:[%s7349_s19 + $0xfe8] sm:$0xff]  ;;  %v4687_v28 = vld [vmem:[%s7349_s19 + $0x1240] sm:$0xff]  ;;  %v4748_v5 = vrot.slane %v8393_v36, %v7379_v60  ;;  %v4597_v60 = vld [vmem:[%s7349_s19 + $0xf70] sm:$0xff] }
 0x6aa   : > { %5332 = vmatmul.mubr.f32.vlgmr.msra.gmra.mxu1 %v8071_v15  ;;  %5964 = vmatprep.subr.mxu1 %v4422_v17  ;;  %v4607_v17 = vld [vmem:[%s7349_s19 + $0xfc0] sm:$0xff] }
 0x6ab   : > { %5543 = vmatmul.mubr.f32.vlgmr.msra.gmra.mxu0 %v7958_v8  ;;  %5965 = vmatpush3.msra.mxu1 %v4342_v59  ;;  %v4322_v8 = vld [vmem:[%s7349_s19 + $0x6d8] sm:$0xff]  ;;  %v4838_v59 = vpop.f32.mrf.mxu0 }
 0x6ac   : > { %5472 = vmatprep.mubr.f32.mxu1 %v7822_v43  ;;  %5966 = vmatprep.subr.mxu1 %v4417_v40  ;;  %v4317_v43 = vld [vmem:[%s7349_s19 + $0x6b0] sm:$0xff]  ;;  %v4907_v40 = vpop.f32.mrf.mxu1 }
 0x6ad   : > { %5967 = vmatpush3.msra.mxu1 %v4337_v34  ;;  %v4682_v34 = vld [vmem:[%s7349_s19 + $0x1218] sm:$0xff] }
 0x6ae   : > { %5968 = vmatprep.subr.mxu1 %v4412_v27  ;;  %v4752_v27 = vrot.slane %v8393_v36, %v7382_v62  ;;  %v4667_v62 = vld [vmem:[%s7349_s19 + $0x11a0] sm:$0xff] }
 0x6af   : > { %5969 = vmatpush3.msra.mxu1 %v4332_v50  ;;  %v4602_v50 = vld [vmem:[%s7349_s19 + $0xf98] sm:$0xff] }
 0x6b0   : > { %5970 = vmatprep.subr.mxu1 %v4407_v61  ;;  %v4978_v61 = vpop.f32.mrf.mxu0 }
 0x6b1   : > { %5971 = vmatpush3.msra.mxu1 %v4327_v33  ;;  %v4677_v33 = vld [vmem:[%s7349_s19 + $0x11f0] sm:$0xff] }
 0x6b2   : > { %5972 = vmatprep.subr.mxu1 %v4402_v23  ;;  %v4837_v23 = vadd.f32 %v4836_v29, %v4748_v5 }
 0x6b3   : > { %5973 = vmatpush3.msra.mxu1 %v4322_v8  ;;  %v4909_v8 = vpop.f32.mrf.mxu1 }
 0x6b4   : > { %5974 = vmatprep.subr.mxu1 %v4397_v45  ;;  %v4672_v45 = vld [vmem:[%s7349_s19 + $0x11c8] sm:$0xff] }
 0x6b5   : > { %5975 = vmatpush3.msra.mxu1 %v4317_v43  ;;  %v4839_v43 = vadd.f32 %v4838_v59, %v4752_v27 }
 0x6b6   : > { %5976 = vmatprep.subr.mxu1 %v4392_v51  ;;  %v4908_v51 = vadd.f32 %v4907_v40, %v4837_v23 }
 0x6b7   : > { %5977 = vmatpush3.msra.mxu1 %v4312_v19  ;;  %v4592_v19 = vld [vmem:[%s7349_s19 + $0xf48] sm:$0xff] }
 0x6b8   : > { %5978 = vmatprep.subr.mxu1 %v4387_v52  ;;  %v4980_v52 = vpop.f32.mrf.mxu0 }
 0x6b9   : > { %5979 = vmatpush3.msra.mxu1 %v4307_v54  ;;  %v4910_v54 = vadd.f32 %v4909_v8, %v4839_v43 }
 0x6ba   : > { %5980 = vmatprep.subr.mxu1 %v4382_v31  ;;  %v4979_v31 = vadd.f32 %v4978_v61, %v4908_v51 }
 0x6bb   : > { %5981 = vmatpush3.msra.mxu1 %v4302_v58  ;;  %v4587_v58 = vld [vmem:[%s7349_s19 + $0xf20] sm:$0xff] }
 0x6bc   : > { %5982 = vmatprep.subr.mxu1 %v4377_v53 }
 0x6bd   : > { %5983 = vmatpush3.msra.mxu1 %v4297_v55  ;;  %v4981_v55 = vadd.f32 %v4980_v52, %v4910_v54 }
 0x6be   : > { %5984 = vmatprep.subr.mxu1 %v4372_v56 }
 0x6bf   : > { %5985 = vmatpush3.msra.mxu1 %v4292_v12 }
 0x6c0   : > { %5986 = vmatprep.subr.mxu1 %v4367_v44 }
 0x6c1   : > { %5987 = vmatpush3.msra.mxu1 %v4287_v41 }
 0x6c2   : > { %5988 = vmatprep.subr.mxu1 %v4362_v63 }
 0x6c3   : > { %5989 = vmatpush3.msra.mxu1 %v4282_v0 }
 0x6c4   : > { %5990 = vmatprep.subr.mxu1 %v4357_v7 }
 0x6c5   : > { %5991 = vmatpush3.msra.mxu1 %v4277_v1  ;;  %v4760_v1 = vrot.slane %v8393_v36, %v7410_v22 }
 0x6c6   : > { %5992 = vmatprep.subr.mxu1 %v4352_v2 }
 0x6c7   : > { %5993 = vmatpush3.msra.mxu1 %v4272_v47 }
 0x6c8   : > { %5994 = vmatprep.subr.mxu1 %v4347_v48 }
 0x6c9   : > { %5995 = vmatpush3.msra.mxu1 %v4267_v3 }
 0x6ca   : > { %5473 = vmatmul.mubr.f32.vlgmr.msra.gmra.mxu1 %v7827_v9  ;;  %6034 = vmatprep.subr.mxu1 %v4742_v46  ;;  %v4722_v9 = vld [vmem:[%s7349_s19 + $0x1358] sm:$0xff] }
 0x6cb   : > { %6035 = vmatpush3.msra.mxu1 %v4662_v10  ;;  %5612 = vmatprep.mubr.f32.mxu1 %v8066_v38  ;;  %v4717_v38 = vld [vmem:[%s7349_s19 + $0x1330] sm:$0xff] }
 0x6cc   : > { %6036 = vmatprep.subr.mxu1 %v4737_v11 }
 0x6cd   : > { %6037 = vmatpush3.msra.mxu1 %v4657_v13 }
 0x6ce   : > { %6038 = vmatprep.subr.mxu1 %v4732_v18 }
 0x6cf   : > { %6039 = vmatpush3.msra.mxu1 %v4652_v21 }
 0x6d0   : > { %6040 = vmatprep.subr.mxu1 %v4727_v37 }
 0x6d1   : > { %6041 = vmatpush3.msra.mxu1 %v4647_v25 }
 0x6d2   : > { %6042 = vmatprep.subr.mxu1 %v4722_v9 }
 0x6d3   : > { %6043 = vmatpush3.msra.mxu1 %v4642_v49 }
 0x6d4   : > { %6044 = vmatprep.subr.mxu1 %v4717_v38 }
 0x6d5   : > { %6045 = vmatpush3.msra.mxu1 %v4637_v26 }
 0x6d6   : > { %6046 = vmatprep.subr.mxu1 %v4712_v42 }
 0x6d7   : > { %6047 = vmatpush3.msra.mxu1 %v4632_v30 }
 0x6d8   : > { %6048 = vmatprep.subr.mxu1 %v4707_v39  ;;  %v4764_v39 = vrot.slane %v8393_v36, %v7851_v24 }
 0x6d9   : > { %6049 = vmatpush3.msra.mxu1 %v4627_v57 }
 0x6da   : > { %6050 = vmatprep.subr.mxu1 %v4702_v32 }
 0x6db   : > { %6051 = vmatpush3.msra.mxu1 %v4622_v6 }
 0x6dc   : > { %6052 = vmatprep.subr.mxu1 %v4697_v35 }
 0x6dd   : > { %6053 = vmatpush3.msra.mxu1 %v4617_v4 }
 0x6de   : > { %6054 = vmatprep.subr.mxu1 %v4692_v20 }
 0x6df   : > { %6055 = vmatpush3.msra.mxu1 %v4612_v16 }
 0x6e0   : > { %6056 = vmatprep.subr.mxu1 %v4687_v28 }
 0x6e1   : > { %6057 = vmatpush3.msra.mxu1 %v4607_v17 }
 0x6e2   : > { %6058 = vmatprep.subr.mxu1 %v4682_v34 }
 0x6e3   : > { %6059 = vmatpush3.msra.mxu1 %v4602_v50 }
 0x6e4   : > { %6060 = vmatprep.subr.mxu1 %v4677_v33 }
 0x6e5   : > { %6061 = vmatpush3.msra.mxu1 %v4597_v60  ;;  %v5120_v0 = vpop.f32.mrf.mxu0 }
 0x6e6   : > { %6062 = vmatprep.subr.mxu1 %v4672_v45 }
 0x6e7   : > { %6063 = vmatpush3.msra.mxu1 %v4592_v19  ;;  %v5049_v53 = vpop.f32.mrf.mxu1  ;;  %v5122_v2 = vpop.f32.mrf.mxu0 }
 0x6e8   : > { %6064 = vmatprep.subr.mxu1 %v4667_v62  ;;  %v5050_v56 = vadd.f32 %v5049_v53, %v4979_v31  ;;  %v5123_v3 = vadd.f32 %v5122_v2, %v4760_v1 }
 0x6e9   : > { %6065 = vmatpush3.msra.mxu1 %v4587_v58  ;;  %v5051_v12 = vpop.f32.mrf.mxu1 }
 0x6ea   : > { %5613 = vmatmul.mubr.f32.vlgmr.msra.gmra.mxu1 %v8071_v15  ;;  %6354 = vtanh.f32 %v5050_v56  ;;  %v5052_v44 = vadd.f32 %v5051_v12, %v4981_v55  ;;  %v4756_v15 = vrot.slane %v8393_v36, %v7407_v14 }
 0x6ec   : > { %6356 = vtanh.f32 %v5052_v44  ;;  %v5121_v47 = vadd.f32 %v5120_v0, %v4756_v15 }
 0x6f7   : > { %v6355_v41 = vpop.eup %6354 }
 0x6f8   : > { %5623 = vst [vmem:[%s8416_s8] sm:$0xff] %v6355_v41 }
 0x6f9   : > { %v6357_v63 = vpop.eup %6356 }
 0x6fa   : > { %5624 = vst [vmem:[%s8416_s8 + $0x8] sm:$0xff] %v6357_v63 }
 0x727   : > { %v5191_v7 = vpop.f32.mrf.mxu1  ;;  %v5262_v10 = vpop.f32.mrf.mxu0 }
 0x728   : > { %v5192_v46 = vadd.f32 %v5191_v7, %v5121_v47 }
 0x729   : > { %v5193_v48 = vpop.f32.mrf.mxu1  ;;  %v5264_v18 = vpop.f32.mrf.mxu0 }
 0x72a   : > { %v5194_v11 = vadd.f32 %v5193_v48, %v5123_v3  ;;  %v5263_v13 = vadd.f32 %v5262_v10, %v5192_v46 }
 0x72c   : > { %v5265_v37 = vadd.f32 %v5264_v18, %v5194_v11 }
 0x749   : > { %v5961_v38 = vpop.f32.mrf.mxu0 }
 0x74b   : > { %v5962_v42 = vpop.f32.mrf.mxu0 }
 0x74c   : > { %v5963_v57 = vadd.f32 %v5962_v42, %v5961_v38 }
 0x74e   : > { %v5405_v35 = vadd.f32 %v5963_v57, %v4764_v39 }
 0x76a   : > { %v5333_v21 = vpop.f32.mrf.mxu1 }
 0x76b   : > { %v5334_v25 = vadd.f32 %v5333_v21, %v5263_v13  ;;  %v6031_v32 = vpop.f32.mrf.mxu0 }
 0x76c   : > { %v5335_v9 = vpop.f32.mrf.mxu1 }
 0x76d   : > { %6358 = vtanh.f32 %v5334_v25  ;;  %v5336_v14 = vadd.f32 %v5335_v9, %v5265_v37  ;;  %v6032_v4 = vpop.f32.mrf.mxu0 }
 0x76e   : > { %v6033_v16 = vadd.f32 %v6032_v4, %v6031_v32 }
 0x76f   : > { %6360 = vtanh.f32 %v5336_v14 }
 0x77a   : > { %v6359_v49 = vpop.eup %6358 }
 0x77b   : > { %5625 = vst [vmem:[%s8416_s8 + $0x10] sm:$0xff] %v6359_v49 }
 0x77c   : > { %v6361_v22 = vpop.eup %6360 }
 0x77d   : > { %5626 = vst [vmem:[%s8416_s8 + $0x18] sm:$0xff] %v6361_v22 }
 0x78a   : > { %v5996_v26 = vpop.f32.mrf.mxu1 }
 0x78c   : > { %v5997_v30 = vpop.f32.mrf.mxu1 }
 0x78d   : > { %v5998_v6 = vadd.f32 %v5997_v30, %v5996_v26 }
 0x78f   : > { %v5475_v29 = vadd.f32 %v5998_v6, %v5405_v35 }
 0x791   : > { %v5545_v5 = vadd.f32 %v6033_v16, %v5475_v29 }
 0x7aa   : > { %v6066_v20 = vpop.f32.mrf.mxu1 }
 0x7ac   : > { %v6067_v28 = vpop.f32.mrf.mxu1 }
 0x7ad   : > { %v6068_v17 = vadd.f32 %v6067_v28, %v6066_v20 }
 0x7af   : > { %v5615_v59 = vadd.f32 %v6068_v17, %v5545_v5 }
 0x7b1   : > { %6362 = vtanh.f32 %v5615_v59 }
 0x7be   : > { %v6363_v40 = vpop.eup %6362 }
 0x7bf   : > { %5627 = vst [vmem:[%s8416_s8 + $0x20] sm:$0xff] %v6363_v40 }
 0x7c0 PF: > { %p35_p10 = scmp.ge.s32.totalorder %s7164_s23, 5   ;;  %s8536_s0 = smov %s6905_s30 }
 0x7c1   : > { %s8537_s30 = smov %s6909_s20  ;;  %s8538_s20 = smov %s7176_s29 }
 0x7c2   : > { %s8539_s21 = smov %s7164_s23  ;;  %37 = sbr.rel (!%p35_p10) target bundleno = 24 (0x18), region = 210 }
 0x7c7   :  { %5650 = vsyncpa [#allocation3], 1 }
 0x7c8   :  { %5652 = vsyncpa [#allocation3 + $0x1], 1 }
 0x7c9   :  { %5653 = vsyncpa [#allocation5], 1 }
 0x7ca   :  { %5654 = vsyncpa [#allocation8], 1 }
 0x7cb   :  { %5655 = vsyncpa [#allocation11], 1 }
 0x7cc   :  { %5656 = vsyncpa [#allocation14], 1 }
 0x7cd   :  { %5657 = vsyncpa [#allocation17], 1 }
 0x7ce   :  { %5658 = vsyncpa [#allocation20], 1 }
 0x7cf   :  { %5659 = vsyncpa [#allocation23], 1 }
 0x7d0   :  { %5660 = vsyncpa [#allocation26], 1 }

</bundles_post_ra>
